<compile_context>
chip_gen: v7x
topology: tpu7x:2x2x1
jax: 0.10.0
libtpu: 0.0.40
codegen_flags: <defaults>
</compile_context>

<pallas_src>
import jax
import jax.numpy as jnp
from jax import lax
from jax.experimental import pallas as pl
from jax.experimental.pallas import tpu as pltpu

RATES = (3, 6, 12, 18, 24)
_BN_EPS = 1e-5
MATMUL_DTYPE = jnp.float32   # switch to jnp.bfloat16 for bandwidth-bound sizes


# -----------------------------------------------------------------------------
# Static planning helpers
# -----------------------------------------------------------------------------
def _plan_taps(rate, H, W):
    """Trace-time tap pruning: drop 3x3 taps whose dilated window falls
    entirely inside the zero padding, and shrink the VMEM padding to match."""
    ok_y = tuple(ky for ky in range(3) if ky == 1 or rate < H)
    ok_x = tuple(kx for kx in range(3) if kx == 1 or rate < W)
    taps = tuple((ky, kx) for ky in ok_y for kx in ok_x)
    pad_h = rate if rate < H else 0
    pad_w = rate if rate < W else 0
    return taps, pad_h, pad_w


# -----------------------------------------------------------------------------
# Fused per-stage Pallas kernel:  1x1 conv+BN+ReLU -> dilated 3x3 conv+BN+ReLU
# -----------------------------------------------------------------------------
def _make_stage_kernel(H, W, C_slab, Cmid, rate, taps, pad_h, pad_w):
    HW = H * W

    def kernel(x_ref, w1_ref, s1_ref, w2_ref, s2_ref, o_ref, hpad_ref, xcat_ref):
        # ---- 1x1 conv + folded-BN + ReLU; `h` stays in VMEM ------------------
        x2 = x_ref[0].reshape(HW, C_slab)
        h = jnp.dot(x2.astype(MATMUL_DTYPE), w1_ref[...].astype(MATMUL_DTYPE),
                    preferred_element_type=jnp.float32)
        h = jnp.maximum(h + s1_ref[...], 0.0)

        # ---- zero-padded intermediate lives in a VMEM scratch (no HBM pad) ---
        if pad_h or pad_w:
            hpad_ref[...] = jnp.zeros_like(hpad_ref)
        hpad_ref[pad_h:pad_h + H, pad_w:pad_w + W, :] = (
            h.reshape(H, W, Cmid).astype(hpad_ref.dtype))

        # ---- im2col over surviving taps into one (HW, ntaps*Cmid) slab -------
        for t, (ky, kx) in enumerate(taps):
            r0 = (ky - 1) * rate + pad_h
            c0 = (kx - 1) * rate + pad_w
            xcat_ref[:, t * Cmid:(t + 1) * Cmid] = (
                hpad_ref[r0:r0 + H, c0:c0 + W, :].reshape(HW, Cmid))

        # ---- single K = ntaps*Cmid MXU matmul + folded-BN + ReLU -------------
        y = jnp.dot(xcat_ref[...], w2_ref[...].astype(MATMUL_DTYPE),
                    preferred_element_type=jnp.float32)
        y = jnp.maximum(y + s2_ref[...], 0.0)
        # Output stays flat (HW, Cout); the wrapper reshape is free.
        o_ref[0] = y.astype(o_ref.dtype)

    return kernel


def _fused_stage(slab, w1p, shift1, w2p, shift2, *, rate, taps, pad_h, pad_w):
    N, H, W, C_slab = slab.shape
    Cmid = w1p.shape[1]
    Cout = w2p.shape[1]
    HW = H * W
    ntaps = len(taps)

    kernel = _make_stage_kernel(H, W, C_slab, Cmid, rate, taps, pad_h, pad_w)

    grid_spec = pltpu.PrefetchScalarGridSpec(
        num_scalar_prefetch=0,
        grid=(N,),
        in_specs=[
            pl.BlockSpec((1, H, W, C_slab), lambda n: (n, 0, 0, 0)),
            pl.BlockSpec((C_slab, Cmid), lambda n: (0, 0)),
            pl.BlockSpec((1, Cmid), lambda n: (0, 0)),
            pl.BlockSpec((ntaps * Cmid, Cout), lambda n: (0, 0)),
            pl.BlockSpec((1, Cout), lambda n: (0, 0)),
        ],
        out_specs=pl.BlockSpec((1, HW, Cout), lambda n: (n, 0, 0)),
        scratch_shapes=[
            pltpu.VMEM((H + 2 * pad_h, W + 2 * pad_w, Cmid), MATMUL_DTYPE),
            pltpu.VMEM((HW, ntaps * Cmid), MATMUL_DTYPE),
        ],
    )
    return pl.pallas_call(
        kernel,
        out_shape=jax.ShapeDtypeStruct((N, HW, Cout), jnp.float32),
        grid_spec=grid_spec,
        compiler_params=pltpu.CompilerParams(
            dimension_semantics=("parallel",),
            vmem_limit_bytes=32 * 1024 * 1024,
        ),
    )(slab, w1p, shift1, w2p, shift2)


# -----------------------------------------------------------------------------
# Parameter construction (deterministic; folds conv bias + eval-mode BN into
# per-output-channel weight scale + additive shift)
# -----------------------------------------------------------------------------
def init_aspp_conv_params(key, cin, cmid, cout):
    ks = jax.random.split(key, 12)
    w1 = 0.1 * jax.random.normal(ks[0], (cin, cmid), jnp.float32)
    b1 = 0.1 * jax.random.normal(ks[1], (cmid,), jnp.float32)
    g1 = 1.0 + 0.1 * jax.random.normal(ks[2], (cmid,), jnp.float32)
    be1 = 0.1 * jax.random.normal(ks[3], (cmid,), jnp.float32)
    rm1 = 0.1 * jax.random.normal(ks[4], (cmid,), jnp.float32)
    rv1 = 0.5 + jax.random.uniform(ks[5], (cmid,), jnp.float32)

    w2 = 0.1 * jax.random.normal(ks[6], (3, 3, cmid, cout), jnp.float32)
    b2 = 0.1 * jax.random.normal(ks[7], (cout,), jnp.float32)
    g2 = 1.0 + 0.1 * jax.random.normal(ks[8], (cout,), jnp.float32)
    be2 = 0.1 * jax.random.normal(ks[9], (cout,), jnp.float32)
    rm2 = 0.1 * jax.random.normal(ks[10], (cout,), jnp.float32)
    rv2 = 0.5 + jax.random.uniform(ks[11], (cout,), jnp.float32)

    s1 = g1 / jnp.sqrt(rv1 + _BN_EPS)
    s2 = g2 / jnp.sqrt(rv2 + _BN_EPS)
    return dict(
        w1=w1 * s1[None, :],            # BN scale folded into conv1 weights
        shift1=(b1 - rm1) * s1 + be1,
        w2=w2 * s2,                     # BN scale folded into conv2 weights
        shift2=(b2 - rm2) * s2 + be2,
    )


# -----------------------------------------------------------------------------
# _DenseASPPBlock forward (Pallas)
# -----------------------------------------------------------------------------
@jax.jit
def dense_aspp_block(x_nchw, stage_params):
    N, Cin, H, W = x_nchw.shape
    n_stages = len(stage_params)
    Cmid = stage_params[0]["w1"].shape[1]
    Cout = stage_params[0]["w2"].shape[-1]
    C_total = Cin + n_stages * Cout

    x_nhwc = jnp.transpose(x_nchw, (0, 2, 3, 1))

    # One preallocated channel slab replaces the growing torch.cat chain.
    # Final channel layout (== torch.cat([aspp, x], dim=1) applied 5 times):
    #   [aspp24 | aspp18 | aspp12 | aspp6 | aspp3 | x]
    slab = jnp.zeros((N, H, W, C_total), jnp.float32)
    slab = lax.dynamic_update_slice(slab, x_nhwc, (0, 0, 0, n_stages * Cout))

    for i, (p, rate) in enumerate(zip(stage_params, RATES)):
        taps, pad_h, pad_w = _plan_taps(rate, H, W)
        # Stage i consumes slab[..., (n_stages-i)*Cout:].  Instead of slicing
        # (an HBM copy), feed the full slab and zero-pad the 1x1 weights for
        # the not-yet-written leading channels (which are exactly zero anyway).
        w1p = jnp.concatenate(
            [jnp.zeros(((n_stages - i) * Cout, Cmid), p["w1"].dtype), p["w1"]],
            axis=0)
        # Pack only the contributing taps -> single (ntaps*Cmid, Cout) weight.
        w2p = jnp.concatenate([p["w2"][ky, kx] for ky, kx in taps], axis=0)

        feat = _fused_stage(
            slab, w1p, p["shift1"].reshape(1, Cmid),
            w2p, p["shift2"].reshape(1, Cout),
            rate=rate, taps=taps, pad_h=pad_h, pad_w=pad_w)
        feat = feat.reshape(N, H, W, Cout)      # free on a contiguous array
        ch_lo = (n_stages - 1 - i) * Cout
        slab = lax.dynamic_update_slice(slab, feat, (0, 0, 0, ch_lo))
        # dropout(p=0.1) is identity in eval mode.

    return jnp.transpose(slab, (0, 3, 1, 2))    # back to NCHW


# -----------------------------------------------------------------------------
# Pure-JAX reference (independent path via conv_general_dilated)
# -----------------------------------------------------------------------------
def _ref_stage(x_nhwc, p, rate):
    cin, cmid = p["w1"].shape
    h = lax.conv_general_dilated(
        x_nhwc, p["w1"].reshape(1, 1, cin, cmid), (1, 1), "VALID",
        dimension_numbers=("NHWC", "HWIO", "NHWC"))
    h = jnp.maximum(h + p["shift1"], 0.0)
    y = lax.conv_general_dilated(
        h, p["w2"], (1, 1), ((rate, rate), (rate, rate)),
        rhs_dilation=(rate, rate),
        dimension_numbers=("NHWC", "HWIO", "NHWC"))
    return jnp.maximum(y + p["shift2"], 0.0)


@jax.jit
def _ref_block(x_nchw, stage_params):
    x = jnp.transpose(x_nchw, (0, 2, 3, 1))
    for p, rate in zip(stage_params, RATES):
        feat = _ref_stage(x, p, rate)
        x = jnp.concatenate([feat, x], axis=-1)
    return jnp.transpose(x, (0, 3, 1, 2))


# -----------------------------------------------------------------------------
# Main
# -----------------------------------------------------------------------------
if __name__ == "__main__":
    N, Cin, H, W = 2, 8, 16, 16
    inter1, inter2 = 8, 8

    key = jax.random.PRNGKey(0)
    kx, *pkeys = jax.random.split(key, 6)
    x = jax.random.normal(kx, (N, Cin, H, W), jnp.float32)

    all_params = []
    c = Cin
    for pk in pkeys:
        all_params.append(init_aspp_conv_params(pk, c, inter1, inter2))
        c += inter2
    all_params = tuple(all_params)

    out = jax.block_until_ready(dense_aspp_block(x, all_params))
    expected_channels = Cin + 5 * inter2
    assert out.shape == (N, expected_channels, H, W), out.shape

    ref = jax.block_until_ready(_ref_block(x, all_params))
    max_err = float(jnp.max(jnp.abs(out - ref)))
    # Tolerance accounts for TPU default matmul/conv precision (bf16 MXU
    # passes) differing between the Pallas matmul path and XLA's conv path.
    assert max_err < 1e-2, f"max abs err {max_err}"

    print("KERNEL_OK")
</pallas_src>

<mosaic_0001>
module attributes {stable_mosaic.version = 11 : i64} {
  func.func @kernel(%arg0: i32, %arg1: memref<1x16x16x48xf32, #tpu.memory_space<vmem>>, %arg2: memref<48x8xf32, #tpu.memory_space<vmem>>, %arg3: memref<1x8xf32, #tpu.memory_space<vmem>>, %arg4: memref<72x8xf32, #tpu.memory_space<vmem>>, %arg5: memref<1x8xf32, #tpu.memory_space<vmem>>, %arg6: memref<1x256x8xf32, #tpu.memory_space<vmem>>, %arg7: memref<22x22x8xf32, #tpu.memory_space<vmem>>, %arg8: memref<256x72xf32, #tpu.memory_space<vmem>>) attributes {dimension_semantics = [#tpu.dimension_semantics<parallel>], iteration_bounds = array<i64: 2>, scalar_prefetch = 0 : i64, scratch_operands = 2 : i64, tpu.core_type = #tpu.core_type<tc>, window_params = [{transform_indices = @transform_0, window_bounds = array<i64: 1, 16, 16, 48>}, {pipeline_mode = #tpu.pipeline_mode<synchronous>, transform_indices = @transform_1, window_bounds = array<i64: 48, 8>}, {pipeline_mode = #tpu.pipeline_mode<synchronous>, transform_indices = @transform_2, window_bounds = array<i64: 1, 8>}, {pipeline_mode = #tpu.pipeline_mode<synchronous>, transform_indices = @transform_3, window_bounds = array<i64: 72, 8>}, {pipeline_mode = #tpu.pipeline_mode<synchronous>, transform_indices = @transform_4, window_bounds = array<i64: 1, 8>}, {transform_indices = @transform_5, window_bounds = array<i64: 1, 256, 8>}]} {
    %c0 = arith.constant 0 : index
    %c0_0 = arith.constant 0 : index
    %c0_1 = arith.constant 0 : index
    %c0_2 = arith.constant 0 : index
    %0 = vector.load %arg1[%c0, %c0_0, %c0_1, %c0_2] : memref<1x16x16x48xf32, #tpu.memory_space<vmem>>, vector<1x16x16x48xf32>
    %1 = vector.shape_cast %0 : vector<1x16x16x48xf32> to vector<16x16x48xf32>
    %2 = vector.shape_cast %1 : vector<16x16x48xf32> to vector<256x48xf32>
    %c0_3 = arith.constant 0 : index
    %c0_4 = arith.constant 0 : index
    %3 = vector.load %arg2[%c0_3, %c0_4] : memref<48x8xf32, #tpu.memory_space<vmem>>, vector<48x8xf32>
    %cst = arith.constant dense<0.000000e+00> : vector<256x8xf32>
    %4 = tpu.matmul %2, %3, %cst {dimension_numbers = #tpu.dot_dimension_numbers<[1], [0], [0], [1], [0, 0, 1, 1], [], []>} : vector<256x48xf32>, vector<48x8xf32>, vector<256x8xf32> -> vector<256x8xf32>
    %c0_5 = arith.constant 0 : index
    %c0_6 = arith.constant 0 : index
    %5 = vector.load %arg3[%c0_5, %c0_6] : memref<1x8xf32, #tpu.memory_space<vmem>>, vector<1x8xf32>
    %6 = vector.broadcast %5 : vector<1x8xf32> to vector<256x8xf32>
    %7 = arith.addf %4, %6 : vector<256x8xf32>
    %cst_7 = arith.constant 0.000000e+00 : f32
    %8 = vector.broadcast %cst_7 : f32 to vector<256x8xf32>
    %9 = arith.maximumf %7, %8 : vector<256x8xf32>
    %cst_8 = arith.constant 0.000000e+00 : f32
    %10 = vector.broadcast %cst_8 : f32 to vector<22x22x8xf32>
    %c0_9 = arith.constant 0 : index
    %c0_10 = arith.constant 0 : index
    %c0_11 = arith.constant 0 : index
    %11 = vector.load %arg7[%c0_9, %c0_10, %c0_11] : memref<22x22x8xf32, #tpu.memory_space<vmem>>, vector<22x22x8xf32>
    tpu.vector_store %arg7[%c0_9, %c0_10, %c0_11], %10 {strides = array<i32>} : memref<22x22x8xf32, #tpu.memory_space<vmem>>, vector<22x22x8xf32>,
    %12 = vector.shape_cast %9 : vector<256x8xf32> to vector<16x16x8xf32>
    %c3 = arith.constant 3 : index
    %c3_12 = arith.constant 3 : index
    %c0_13 = arith.constant 0 : index
    %13 = vector.load %arg7[%c3, %c3_12, %c0_13] : memref<22x22x8xf32, #tpu.memory_space<vmem>>, vector<16x16x8xf32>
    tpu.vector_store %arg7[%c3, %c3_12, %c0_13], %12 {strides = array<i32>} : memref<22x22x8xf32, #tpu.memory_space<vmem>>, vector<16x16x8xf32>,
    %c0_14 = arith.constant 0 : index
    %c0_15 = arith.constant 0 : index
    %c0_16 = arith.constant 0 : index
    %14 = vector.load %arg7[%c0_14, %c0_15, %c0_16] : memref<22x22x8xf32, #tpu.memory_space<vmem>>, vector<16x16x8xf32>
    %15 = vector.shape_cast %14 : vector<16x16x8xf32> to vector<256x8xf32>
    %c0_17 = arith.constant 0 : index
    %c0_18 = arith.constant 0 : index
    %16 = vector.load %arg8[%c0_17, %c0_18] : memref<256x72xf32, #tpu.memory_space<vmem>>, vector<256x8xf32>
    tpu.vector_store %arg8[%c0_17, %c0_18], %15 {strides = array<i32>} : memref<256x72xf32, #tpu.memory_space<vmem>>, vector<256x8xf32>,
    %c0_19 = arith.constant 0 : index
    %c3_20 = arith.constant 3 : index
    %c0_21 = arith.constant 0 : index
    %17 = vector.load %arg7[%c0_19, %c3_20, %c0_21] : memref<22x22x8xf32, #tpu.memory_space<vmem>>, vector<16x16x8xf32>
    %18 = vector.shape_cast %17 : vector<16x16x8xf32> to vector<256x8xf32>
    %c0_22 = arith.constant 0 : index
    %c8 = arith.constant 8 : index
    %19 = vector.load %arg8[%c0_22, %c8] : memref<256x72xf32, #tpu.memory_space<vmem>>, vector<256x8xf32>
    tpu.vector_store %arg8[%c0_22, %c8], %18 {strides = array<i32>} : memref<256x72xf32, #tpu.memory_space<vmem>>, vector<256x8xf32>,
    %c0_23 = arith.constant 0 : index
    %c6 = arith.constant 6 : index
    %c0_24 = arith.constant 0 : index
    %20 = vector.load %arg7[%c0_23, %c6, %c0_24] : memref<22x22x8xf32, #tpu.memory_space<vmem>>, vector<16x16x8xf32>
    %21 = vector.shape_cast %20 : vector<16x16x8xf32> to vector<256x8xf32>
    %c0_25 = arith.constant 0 : index
    %c16 = arith.constant 16 : index
    %22 = vector.load %arg8[%c0_25, %c16] : memref<256x72xf32, #tpu.memory_space<vmem>>, vector<256x8xf32>
    tpu.vector_store %arg8[%c0_25, %c16], %21 {strides = array<i32>} : memref<256x72xf32, #tpu.memory_space<vmem>>, vector<256x8xf32>,
    %c3_26 = arith.constant 3 : index
    %c0_27 = arith.constant 0 : index
    %c0_28 = arith.constant 0 : index
    %23 = vector.load %arg7[%c3_26, %c0_27, %c0_28] : memref<22x22x8xf32, #tpu.memory_space<vmem>>, vector<16x16x8xf32>
    %24 = vector.shape_cast %23 : vector<16x16x8xf32> to vector<256x8xf32>
    %c0_29 = arith.constant 0 : index
    %c24 = arith.constant 24 : index
    %25 = vector.load %arg8[%c0_29, %c24] : memref<256x72xf32, #tpu.memory_space<vmem>>, vector<256x8xf32>
    tpu.vector_store %arg8[%c0_29, %c24], %24 {strides = array<i32>} : memref<256x72xf32, #tpu.memory_space<vmem>>, vector<256x8xf32>,
    %c3_30 = arith.constant 3 : index
    %c3_31 = arith.constant 3 : index
    %c0_32 = arith.constant 0 : index
    %26 = vector.load %arg7[%c3_30, %c3_31, %c0_32] : memref<22x22x8xf32, #tpu.memory_space<vmem>>, vector<16x16x8xf32>
    %27 = vector.shape_cast %26 : vector<16x16x8xf32> to vector<256x8xf32>
    %c0_33 = arith.constant 0 : index
    %c32 = arith.constant 32 : index
    %28 = vector.load %arg8[%c0_33, %c32] : memref<256x72xf32, #tpu.memory_space<vmem>>, vector<256x8xf32>
    tpu.vector_store %arg8[%c0_33, %c32], %27 {strides = array<i32>} : memref<256x72xf32, #tpu.memory_space<vmem>>, vector<256x8xf32>,
    %c3_34 = arith.constant 3 : index
    %c6_35 = arith.constant 6 : index
    %c0_36 = arith.constant 0 : index
    %29 = vector.load %arg7[%c3_34, %c6_35, %c0_36] : memref<22x22x8xf32, #tpu.memory_space<vmem>>, vector<16x16x8xf32>
    %30 = vector.shape_cast %29 : vector<16x16x8xf32> to vector<256x8xf32>
    %c0_37 = arith.constant 0 : index
    %c40 = arith.constant 40 : index
    %31 = vector.load %arg8[%c0_37, %c40] : memref<256x72xf32, #tpu.memory_space<vmem>>, vector<256x8xf32>
    tpu.vector_store %arg8[%c0_37, %c40], %30 {strides = array<i32>} : memref<256x72xf32, #tpu.memory_space<vmem>>, vector<256x8xf32>,
    %c6_38 = arith.constant 6 : index
    %c0_39 = arith.constant 0 : index
    %c0_40 = arith.constant 0 : index
    %32 = vector.load %arg7[%c6_38, %c0_39, %c0_40] : memref<22x22x8xf32, #tpu.memory_space<vmem>>, vector<16x16x8xf32>
    %33 = vector.shape_cast %32 : vector<16x16x8xf32> to vector<256x8xf32>
    %c0_41 = arith.constant 0 : index
    %c48 = arith.constant 48 : index
    %34 = vector.load %arg8[%c0_41, %c48] : memref<256x72xf32, #tpu.memory_space<vmem>>, vector<256x8xf32>
    tpu.vector_store %arg8[%c0_41, %c48], %33 {strides = array<i32>} : memref<256x72xf32, #tpu.memory_space<vmem>>, vector<256x8xf32>,
    %c6_42 = arith.constant 6 : index
    %c3_43 = arith.constant 3 : index
    %c0_44 = arith.constant 0 : index
    %35 = vector.load %arg7[%c6_42, %c3_43, %c0_44] : memref<22x22x8xf32, #tpu.memory_space<vmem>>, vector<16x16x8xf32>
    %36 = vector.shape_cast %35 : vector<16x16x8xf32> to vector<256x8xf32>
    %c0_45 = arith.constant 0 : index
    %c56 = arith.constant 56 : index
    %37 = vector.load %arg8[%c0_45, %c56] : memref<256x72xf32, #tpu.memory_space<vmem>>, vector<256x8xf32>
    tpu.vector_store %arg8[%c0_45, %c56], %36 {strides = array<i32>} : memref<256x72xf32, #tpu.memory_space<vmem>>, vector<256x8xf32>,
    %c6_46 = arith.constant 6 : index
    %c6_47 = arith.constant 6 : index
    %c0_48 = arith.constant 0 : index
    %38 = vector.load %arg7[%c6_46, %c6_47, %c0_48] : memref<22x22x8xf32, #tpu.memory_space<vmem>>, vector<16x16x8xf32>
    %39 = vector.shape_cast %38 : vector<16x16x8xf32> to vector<256x8xf32>
    %c0_49 = arith.constant 0 : index
    %c64 = arith.constant 64 : index
    %40 = vector.load %arg8[%c0_49, %c64] : memref<256x72xf32, #tpu.memory_space<vmem>>, vector<256x8xf32>
    tpu.vector_store %arg8[%c0_49, %c64], %39 {strides = array<i32>} : memref<256x72xf32, #tpu.memory_space<vmem>>, vector<256x8xf32>,
    %c0_50 = arith.constant 0 : index
    %c0_51 = arith.constant 0 : index
    %41 = vector.load %arg8[%c0_50, %c0_51] : memref<256x72xf32, #tpu.memory_space<vmem>>, vector<256x72xf32>
    %c0_52 = arith.constant 0 : index
    %c0_53 = arith.constant 0 : index
    %42 = vector.load %arg4[%c0_52, %c0_53] : memref<72x8xf32, #tpu.memory_space<vmem>>, vector<72x8xf32>
    %cst_54 = arith.constant dense<0.000000e+00> : vector<256x8xf32>
    %43 = tpu.matmul %41, %42, %cst_54 {dimension_numbers = #tpu.dot_dimension_numbers<[1], [0], [0], [1], [0, 0, 1, 1], [], []>} : vector<256x72xf32>, vector<72x8xf32>, vector<256x8xf32> -> vector<256x8xf32>
    %c0_55 = arith.constant 0 : index
    %c0_56 = arith.constant 0 : index
    %44 = vector.load %arg5[%c0_55, %c0_56] : memref<1x8xf32, #tpu.memory_space<vmem>>, vector<1x8xf32>
    %45 = vector.broadcast %44 : vector<1x8xf32> to vector<256x8xf32>
    %46 = arith.addf %43, %45 : vector<256x8xf32>
    %cst_57 = arith.constant 0.000000e+00 : f32
    %47 = vector.broadcast %cst_57 : f32 to vector<256x8xf32>
    %48 = arith.maximumf %46, %47 : vector<256x8xf32>
    %c0_58 = arith.constant 0 : index
    %c0_59 = arith.constant 0 : index
    %c0_60 = arith.constant 0 : index
    %49 = vector.load %arg6[%c0_58, %c0_59, %c0_60] : memref<1x256x8xf32, #tpu.memory_space<vmem>>, vector<1x256x8xf32>
    %50 = vector.shape_cast %49 : vector<1x256x8xf32> to vector<256x8xf32>
    %51 = vector.shape_cast %48 : vector<256x8xf32> to vector<1x256x8xf32>
    tpu.vector_store %arg6[%c0_58, %c0_59, %c0_60], %51 {strides = array<i32>} : memref<1x256x8xf32, #tpu.memory_space<vmem>>, vector<1x256x8xf32>,
    return
  }
  func.func @transform_0(%arg0: i32) -> (i32, i32, i32, i32) {
    %c0_i32 = arith.constant 0 : i32
    %c0_i32_0 = arith.constant 0 : i32
    %c0_i32_1 = arith.constant 0 : i32
    %c0_i32_2 = arith.constant 0 : i32
    return %arg0, %c0_i32, %c0_i32_0, %c0_i32_1 : i32, i32, i32, i32
  }
  func.func @transform_1(%arg0: i32) -> (i32, i32) {
    %c0_i32 = arith.constant 0 : i32
    %c0_i32_0 = arith.constant 0 : i32
    %c0_i32_1 = arith.constant 0 : i32
    return %c0_i32, %c0_i32_0 : i32, i32
  }
  func.func @transform_2(%arg0: i32) -> (i32, i32) {
    %c0_i32 = arith.constant 0 : i32
    %c0_i32_0 = arith.constant 0 : i32
    %c0_i32_1 = arith.constant 0 : i32
    return %c0_i32, %c0_i32_0 : i32, i32
  }
  func.func @transform_3(%arg0: i32) -> (i32, i32) {
    %c0_i32 = arith.constant 0 : i32
    %c0_i32_0 = arith.constant 0 : i32
    %c0_i32_1 = arith.constant 0 : i32
    return %c0_i32, %c0_i32_0 : i32, i32
  }
  func.func @transform_4(%arg0: i32) -> (i32, i32) {
    %c0_i32 = arith.constant 0 : i32
    %c0_i32_0 = arith.constant 0 : i32
    %c0_i32_1 = arith.constant 0 : i32
    return %c0_i32, %c0_i32_0 : i32, i32
  }
  func.func @transform_5(%arg0: i32) -> (i32, i32, i32) {
    %c0_i32 = arith.constant 0 : i32
    %c0_i32_0 = arith.constant 0 : i32
    %c0_i32_1 = arith.constant 0 : i32
    return %arg0, %c0_i32, %c0_i32_0 : i32, i32, i32
  }
}

module attributes {stable_mosaic.version = 11 : i64} {
  func.func @kernel(%arg0: i32, %arg1: memref<1x16x16x48xf32, #tpu.memory_space<vmem>>, %arg2: memref<48x8xf32, #tpu.memory_space<vmem>>, %arg3: memref<1x8xf32, #tpu.memory_space<vmem>>, %arg4: memref<72x8xf32, #tpu.memory_space<vmem>>, %arg5: memref<1x8xf32, #tpu.memory_space<vmem>>, %arg6: memref<1x256x8xf32, #tpu.memory_space<vmem>>, %arg7: memref<28x28x8xf32, #tpu.memory_space<vmem>>, %arg8: memref<256x72xf32, #tpu.memory_space<vmem>>) attributes {dimension_semantics = [#tpu.dimension_semantics<parallel>], iteration_bounds = array<i64: 2>, scalar_prefetch = 0 : i64, scratch_operands = 2 : i64, tpu.core_type = #tpu.core_type<tc>, window_params = [{transform_indices = @transform_0, window_bounds = array<i64: 1, 16, 16, 48>}, {pipeline_mode = #tpu.pipeline_mode<synchronous>, transform_indices = @transform_1, window_bounds = array<i64: 48, 8>}, {pipeline_mode = #tpu.pipeline_mode<synchronous>, transform_indices = @transform_2, window_bounds = array<i64: 1, 8>}, {pipeline_mode = #tpu.pipeline_mode<synchronous>, transform_indices = @transform_3, window_bounds = array<i64: 72, 8>}, {pipeline_mode = #tpu.pipeline_mode<synchronous>, transform_indices = @transform_4, window_bounds = array<i64: 1, 8>}, {transform_indices = @transform_5, window_bounds = array<i64: 1, 256, 8>}]} {
    %c0 = arith.constant 0 : index
    %c0_0 = arith.constant 0 : index
    %c0_1 = arith.constant 0 : index
    %c0_2 = arith.constant 0 : index
    %0 = vector.load %arg1[%c0, %c0_0, %c0_1, %c0_2] : memref<1x16x16x48xf32, #tpu.memory_space<vmem>>, vector<1x16x16x48xf32>
    %1 = vector.shape_cast %0 : vector<1x16x16x48xf32> to vector<16x16x48xf32>
    %2 = vector.shape_cast %1 : vector<16x16x48xf32> to vector<256x48xf32>
    %c0_3 = arith.constant 0 : index
    %c0_4 = arith.constant 0 : index
    %3 = vector.load %arg2[%c0_3, %c0_4] : memref<48x8xf32, #tpu.memory_space<vmem>>, vector<48x8xf32>
    %cst = arith.constant dense<0.000000e+00> : vector<256x8xf32>
    %4 = tpu.matmul %2, %3, %cst {dimension_numbers = #tpu.dot_dimension_numbers<[1], [0], [0], [1], [0, 0, 1, 1], [], []>} : vector<256x48xf32>, vector<48x8xf32>, vector<256x8xf32> -> vector<256x8xf32>
    %c0_5 = arith.constant 0 : index
    %c0_6 = arith.constant 0 : index
    %5 = vector.load %arg3[%c0_5, %c0_6] : memref<1x8xf32, #tpu.memory_space<vmem>>, vector<1x8xf32>
    %6 = vector.broadcast %5 : vector<1x8xf32> to vector<256x8xf32>
    %7 = arith.addf %4, %6 : vector<256x8xf32>
    %cst_7 = arith.constant 0.000000e+00 : f32
    %8 = vector.broadcast %cst_7 : f32 to vector<256x8xf32>
    %9 = arith.maximumf %7, %8 : vector<256x8xf32>
    %cst_8 = arith.constant 0.000000e+00 : f32
    %10 = vector.broadcast %cst_8 : f32 to vector<28x28x8xf32>
    %c0_9 = arith.constant 0 : index
    %c0_10 = arith.constant 0 : index
    %c0_11 = arith.constant 0 : index
    %11 = vector.load %arg7[%c0_9, %c0_10, %c0_11] : memref<28x28x8xf32, #tpu.memory_space<vmem>>, vector<28x28x8xf32>
    tpu.vector_store %arg7[%c0_9, %c0_10, %c0_11], %10 {strides = array<i32>} : memref<28x28x8xf32, #tpu.memory_space<vmem>>, vector<28x28x8xf32>,
    %12 = vector.shape_cast %9 : vector<256x8xf32> to vector<16x16x8xf32>
    %c6 = arith.constant 6 : index
    %c6_12 = arith.constant 6 : index
    %c0_13 = arith.constant 0 : index
    %13 = vector.load %arg7[%c6, %c6_12, %c0_13] : memref<28x28x8xf32, #tpu.memory_space<vmem>>, vector<16x16x8xf32>
    tpu.vector_store %arg7[%c6, %c6_12, %c0_13], %12 {strides = array<i32>} : memref<28x28x8xf32, #tpu.memory_space<vmem>>, vector<16x16x8xf32>,
    %c0_14 = arith.constant 0 : index
    %c0_15 = arith.constant 0 : index
    %c0_16 = arith.constant 0 : index
    %14 = vector.load %arg7[%c0_14, %c0_15, %c0_16] : memref<28x28x8xf32, #tpu.memory_space<vmem>>, vector<16x16x8xf32>
    %15 = vector.shape_cast %14 : vector<16x16x8xf32> to vector<256x8xf32>
    %c0_17 = arith.constant 0 : index
    %c0_18 = arith.constant 0 : index
    %16 = vector.load %arg8[%c0_17, %c0_18] : memref<256x72xf32, #tpu.memory_space<vmem>>, vector<256x8xf32>
    tpu.vector_store %arg8[%c0_17, %c0_18], %15 {strides = array<i32>} : memref<256x72xf32, #tpu.memory_space<vmem>>, vector<256x8xf32>,
    %c0_19 = arith.constant 0 : index
    %c6_20 = arith.constant 6 : index
    %c0_21 = arith.constant 0 : index
    %17 = vector.load %arg7[%c0_19, %c6_20, %c0_21] : memref<28x28x8xf32, #tpu.memory_space<vmem>>, vector<16x16x8xf32>
    %18 = vector.shape_cast %17 : vector<16x16x8xf32> to vector<256x8xf32>
    %c0_22 = arith.constant 0 : index
    %c8 = arith.constant 8 : index
    %19 = vector.load %arg8[%c0_22, %c8] : memref<256x72xf32, #tpu.memory_space<vmem>>, vector<256x8xf32>
    tpu.vector_store %arg8[%c0_22, %c8], %18 {strides = array<i32>} : memref<256x72xf32, #tpu.memory_space<vmem>>, vector<256x8xf32>,
    %c0_23 = arith.constant 0 : index
    %c12 = arith.constant 12 : index
    %c0_24 = arith.constant 0 : index
    %20 = vector.load %arg7[%c0_23, %c12, %c0_24] : memref<28x28x8xf32, #tpu.memory_space<vmem>>, vector<16x16x8xf32>
    %21 = vector.shape_cast %20 : vector<16x16x8xf32> to vector<256x8xf32>
    %c0_25 = arith.constant 0 : index
    %c16 = arith.constant 16 : index
    %22 = vector.load %arg8[%c0_25, %c16] : memref<256x72xf32, #tpu.memory_space<vmem>>, vector<256x8xf32>
    tpu.vector_store %arg8[%c0_25, %c16], %21 {strides = array<i32>} : memref<256x72xf32, #tpu.memory_space<vmem>>, vector<256x8xf32>,
    %c6_26 = arith.constant 6 : index
    %c0_27 = arith.constant 0 : index
    %c0_28 = arith.constant 0 : index
    %23 = vector.load %arg7[%c6_26, %c0_27, %c0_28] : memref<28x28x8xf32, #tpu.memory_space<vmem>>, vector<16x16x8xf32>
    %24 = vector.shape_cast %23 : vector<16x16x8xf32> to vector<256x8xf32>
    %c0_29 = arith.constant 0 : index
    %c24 = arith.constant 24 : index
    %25 = vector.load %arg8[%c0_29, %c24] : memref<256x72xf32, #tpu.memory_space<vmem>>, vector<256x8xf32>
    tpu.vector_store %arg8[%c0_29, %c24], %24 {strides = array<i32>} : memref<256x72xf32, #tpu.memory_space<vmem>>, vector<256x8xf32>,
    %c6_30 = arith.constant 6 : index
    %c6_31 = arith.constant 6 : index
    %c0_32 = arith.constant 0 : index
    %26 = vector.load %arg7[%c6_30, %c6_31, %c0_32] : memref<28x28x8xf32, #tpu.memory_space<vmem>>, vector<16x16x8xf32>
    %27 = vector.shape_cast %26 : vector<16x16x8xf32> to vector<256x8xf32>
    %c0_33 = arith.constant 0 : index
    %c32 = arith.constant 32 : index
    %28 = vector.load %arg8[%c0_33, %c32] : memref<256x72xf32, #tpu.memory_space<vmem>>, vector<256x8xf32>
    tpu.vector_store %arg8[%c0_33, %c32], %27 {strides = array<i32>} : memref<256x72xf32, #tpu.memory_space<vmem>>, vector<256x8xf32>,
    %c6_34 = arith.constant 6 : index
    %c12_35 = arith.constant 12 : index
    %c0_36 = arith.constant 0 : index
    %29 = vector.load %arg7[%c6_34, %c12_35, %c0_36] : memref<28x28x8xf32, #tpu.memory_space<vmem>>, vector<16x16x8xf32>
    %30 = vector.shape_cast %29 : vector<16x16x8xf32> to vector<256x8xf32>
    %c0_37 = arith.constant 0 : index
    %c40 = arith.constant 40 : index
    %31 = vector.load %arg8[%c0_37, %c40] : memref<256x72xf32, #tpu.memory_space<vmem>>, vector<256x8xf32>
    tpu.vector_store %arg8[%c0_37, %c40], %30 {strides = array<i32>} : memref<256x72xf32, #tpu.memory_space<vmem>>, vector<256x8xf32>,
    %c12_38 = arith.constant 12 : index
    %c0_39 = arith.constant 0 : index
    %c0_40 = arith.constant 0 : index
    %32 = vector.load %arg7[%c12_38, %c0_39, %c0_40] : memref<28x28x8xf32, #tpu.memory_space<vmem>>, vector<16x16x8xf32>
    %33 = vector.shape_cast %32 : vector<16x16x8xf32> to vector<256x8xf32>
    %c0_41 = arith.constant 0 : index
    %c48 = arith.constant 48 : index
    %34 = vector.load %arg8[%c0_41, %c48] : memref<256x72xf32, #tpu.memory_space<vmem>>, vector<256x8xf32>
    tpu.vector_store %arg8[%c0_41, %c48], %33 {strides = array<i32>} : memref<256x72xf32, #tpu.memory_space<vmem>>, vector<256x8xf32>,
    %c12_42 = arith.constant 12 : index
    %c6_43 = arith.constant 6 : index
    %c0_44 = arith.constant 0 : index
    %35 = vector.load %arg7[%c12_42, %c6_43, %c0_44] : memref<28x28x8xf32, #tpu.memory_space<vmem>>, vector<16x16x8xf32>
    %36 = vector.shape_cast %35 : vector<16x16x8xf32> to vector<256x8xf32>
    %c0_45 = arith.constant 0 : index
    %c56 = arith.constant 56 : index
    %37 = vector.load %arg8[%c0_45, %c56] : memref<256x72xf32, #tpu.memory_space<vmem>>, vector<256x8xf32>
    tpu.vector_store %arg8[%c0_45, %c56], %36 {strides = array<i32>} : memref<256x72xf32, #tpu.memory_space<vmem>>, vector<256x8xf32>,
    %c12_46 = arith.constant 12 : index
    %c12_47 = arith.constant 12 : index
    %c0_48 = arith.constant 0 : index
    %38 = vector.load %arg7[%c12_46, %c12_47, %c0_48] : memref<28x28x8xf32, #tpu.memory_space<vmem>>, vector<16x16x8xf32>
    %39 = vector.shape_cast %38 : vector<16x16x8xf32> to vector<256x8xf32>
    %c0_49 = arith.constant 0 : index
    %c64 = arith.constant 64 : index
    %40 = vector.load %arg8[%c0_49, %c64] : memref<256x72xf32, #tpu.memory_space<vmem>>, vector<256x8xf32>
    tpu.vector_store %arg8[%c0_49, %c64], %39 {strides = array<i32>} : memref<256x72xf32, #tpu.memory_space<vmem>>, vector<256x8xf32>,
    %c0_50 = arith.constant 0 : index
    %c0_51 = arith.constant 0 : index
    %41 = vector.load %arg8[%c0_50, %c0_51] : memref<256x72xf32, #tpu.memory_space<vmem>>, vector<256x72xf32>
    %c0_52 = arith.constant 0 : index
    %c0_53 = arith.constant 0 : index
    %42 = vector.load %arg4[%c0_52, %c0_53] : memref<72x8xf32, #tpu.memory_space<vmem>>, vector<72x8xf32>
    %cst_54 = arith.constant dense<0.000000e+00> : vector<256x8xf32>
    %43 = tpu.matmul %41, %42, %cst_54 {dimension_numbers = #tpu.dot_dimension_numbers<[1], [0], [0], [1], [0, 0, 1, 1], [], []>} : vector<256x72xf32>, vector<72x8xf32>, vector<256x8xf32> -> vector<256x8xf32>
    %c0_55 = arith.constant 0 : index
    %c0_56 = arith.constant 0 : index
    %44 = vector.load %arg5[%c0_55, %c0_56] : memref<1x8xf32, #tpu.memory_space<vmem>>, vector<1x8xf32>
    %45 = vector.broadcast %44 : vector<1x8xf32> to vector<256x8xf32>
    %46 = arith.addf %43, %45 : vector<256x8xf32>
    %cst_57 = arith.constant 0.000000e+00 : f32
    %47 = vector.broadcast %cst_57 : f32 to vector<256x8xf32>
    %48 = arith.maximumf %46, %47 : vector<256x8xf32>
    %c0_58 = arith.constant 0 : index
    %c0_59 = arith.constant 0 : index
    %c0_60 = arith.constant 0 : index
    %49 = vector.load %arg6[%c0_58, %c0_59, %c0_60] : memref<1x256x8xf32, #tpu.memory_space<vmem>>, vector<1x256x8xf32>
    %50 = vector.shape_cast %49 : vector<1x256x8xf32> to vector<256x8xf32>
    %51 = vector.shape_cast %48 : vector<256x8xf32> to vector<1x256x8xf32>
    tpu.vector_store %arg6[%c0_58, %c0_59, %c0_60], %51 {strides = array<i32>} : memref<1x256x8xf32, #tpu.memory_space<vmem>>, vector<1x256x8xf32>,
    return
  }
  func.func @transform_0(%arg0: i32) -> (i32, i32, i32, i32) {
    %c0_i32 = arith.constant 0 : i32
    %c0_i32_0 = arith.constant 0 : i32
    %c0_i32_1 = arith.constant 0 : i32
    %c0_i32_2 = arith.constant 0 : i32
    return %arg0, %c0_i32, %c0_i32_0, %c0_i32_1 : i32, i32, i32, i32
  }
  func.func @transform_1(%arg0: i32) -> (i32, i32) {
    %c0_i32 = arith.constant 0 : i32
    %c0_i32_0 = arith.constant 0 : i32
    %c0_i32_1 = arith.constant 0 : i32
    return %c0_i32, %c0_i32_0 : i32, i32
  }
  func.func @transform_2(%arg0: i32) -> (i32, i32) {
    %c0_i32 = arith.constant 0 : i32
    %c0_i32_0 = arith.constant 0 : i32
    %c0_i32_1 = arith.constant 0 : i32
    return %c0_i32, %c0_i32_0 : i32, i32
  }
  func.func @transform_3(%arg0: i32) -> (i32, i32) {
    %c0_i32 = arith.constant 0 : i32
    %c0_i32_0 = arith.constant 0 : i32
    %c0_i32_1 = arith.constant 0 : i32
    return %c0_i32, %c0_i32_0 : i32, i32
  }
  func.func @transform_4(%arg0: i32) -> (i32, i32) {
    %c0_i32 = arith.constant 0 : i32
    %c0_i32_0 = arith.constant 0 : i32
    %c0_i32_1 = arith.constant 0 : i32
    return %c0_i32, %c0_i32_0 : i32, i32
  }
  func.func @transform_5(%arg0: i32) -> (i32, i32, i32) {
    %c0_i32 = arith.constant 0 : i32
    %c0_i32_0 = arith.constant 0 : i32
    %c0_i32_1 = arith.constant 0 : i32
    return %arg0, %c0_i32, %c0_i32_0 : i32, i32, i32
  }
}

module attributes {stable_mosaic.version = 11 : i64} {
  func.func @kernel(%arg0: i32, %arg1: memref<1x16x16x48xf32, #tpu.memory_space<vmem>>, %arg2: memref<48x8xf32, #tpu.memory_space<vmem>>, %arg3: memref<1x8xf32, #tpu.memory_space<vmem>>, %arg4: memref<72x8xf32, #tpu.memory_space<vmem>>, %arg5: memref<1x8xf32, #tpu.memory_space<vmem>>, %arg6: memref<1x256x8xf32, #tpu.memory_space<vmem>>, %arg7: memref<40x40x8xf32, #tpu.memory_space<vmem>>, %arg8: memref<256x72xf32, #tpu.memory_space<vmem>>) attributes {dimension_semantics = [#tpu.dimension_semantics<parallel>], iteration_bounds = array<i64: 2>, scalar_prefetch = 0 : i64, scratch_operands = 2 : i64, tpu.core_type = #tpu.core_type<tc>, window_params = [{transform_indices = @transform_0, window_bounds = array<i64: 1, 16, 16, 48>}, {pipeline_mode = #tpu.pipeline_mode<synchronous>, transform_indices = @transform_1, window_bounds = array<i64: 48, 8>}, {pipeline_mode = #tpu.pipeline_mode<synchronous>, transform_indices = @transform_2, window_bounds = array<i64: 1, 8>}, {pipeline_mode = #tpu.pipeline_mode<synchronous>, transform_indices = @transform_3, window_bounds = array<i64: 72, 8>}, {pipeline_mode = #tpu.pipeline_mode<synchronous>, transform_indices = @transform_4, window_bounds = array<i64: 1, 8>}, {transform_indices = @transform_5, window_bounds = array<i64: 1, 256, 8>}]} {
    %c0 = arith.constant 0 : index
    %c0_0 = arith.constant 0 : index
    %c0_1 = arith.constant 0 : index
    %c0_2 = arith.constant 0 : index
    %0 = vector.load %arg1[%c0, %c0_0, %c0_1, %c0_2] : memref<1x16x16x48xf32, #tpu.memory_space<vmem>>, vector<1x16x16x48xf32>
    %1 = vector.shape_cast %0 : vector<1x16x16x48xf32> to vector<16x16x48xf32>
    %2 = vector.shape_cast %1 : vector<16x16x48xf32> to vector<256x48xf32>
    %c0_3 = arith.constant 0 : index
    %c0_4 = arith.constant 0 : index
    %3 = vector.load %arg2[%c0_3, %c0_4] : memref<48x8xf32, #tpu.memory_space<vmem>>, vector<48x8xf32>
    %cst = arith.constant dense<0.000000e+00> : vector<256x8xf32>
    %4 = tpu.matmul %2, %3, %cst {dimension_numbers = #tpu.dot_dimension_numbers<[1], [0], [0], [1], [0, 0, 1, 1], [], []>} : vector<256x48xf32>, vector<48x8xf32>, vector<256x8xf32> -> vector<256x8xf32>
    %c0_5 = arith.constant 0 : index
    %c0_6 = arith.constant 0 : index
    %5 = vector.load %arg3[%c0_5, %c0_6] : memref<1x8xf32, #tpu.memory_space<vmem>>, vector<1x8xf32>
    %6 = vector.broadcast %5 : vector<1x8xf32> to vector<256x8xf32>
    %7 = arith.addf %4, %6 : vector<256x8xf32>
    %cst_7 = arith.constant 0.000000e+00 : f32
    %8 = vector.broadcast %cst_7 : f32 to vector<256x8xf32>
    %9 = arith.maximumf %7, %8 : vector<256x8xf32>
    %cst_8 = arith.constant 0.000000e+00 : f32
    %10 = vector.broadcast %cst_8 : f32 to vector<40x40x8xf32>
    %c0_9 = arith.constant 0 : index
    %c0_10 = arith.constant 0 : index
    %c0_11 = arith.constant 0 : index
    %11 = vector.load %arg7[%c0_9, %c0_10, %c0_11] : memref<40x40x8xf32, #tpu.memory_space<vmem>>, vector<40x40x8xf32>
    tpu.vector_store %arg7[%c0_9, %c0_10, %c0_11], %10 {strides = array<i32>} : memref<40x40x8xf32, #tpu.memory_space<vmem>>, vector<40x40x8xf32>,
    %12 = vector.shape_cast %9 : vector<256x8xf32> to vector<16x16x8xf32>
    %c12 = arith.constant 12 : index
    %c12_12 = arith.constant 12 : index
    %c0_13 = arith.constant 0 : index
    %13 = vector.load %arg7[%c12, %c12_12, %c0_13] : memref<40x40x8xf32, #tpu.memory_space<vmem>>, vector<16x16x8xf32>
    tpu.vector_store %arg7[%c12, %c12_12, %c0_13], %12 {strides = array<i32>} : memref<40x40x8xf32, #tpu.memory_space<vmem>>, vector<16x16x8xf32>,
    %c0_14 = arith.constant 0 : index
    %c0_15 = arith.constant 0 : index
    %c0_16 = arith.constant 0 : index
    %14 = vector.load %arg7[%c0_14, %c0_15, %c0_16] : memref<40x40x8xf32, #tpu.memory_space<vmem>>, vector<16x16x8xf32>
    %15 = vector.shape_cast %14 : vector<16x16x8xf32> to vector<256x8xf32>
    %c0_17 = arith.constant 0 : index
    %c0_18 = arith.constant 0 : index
    %16 = vector.load %arg8[%c0_17, %c0_18] : memref<256x72xf32, #tpu.memory_space<vmem>>, vector<256x8xf32>
    tpu.vector_store %arg8[%c0_17, %c0_18], %15 {strides = array<i32>} : memref<256x72xf32, #tpu.memory_space<vmem>>, vector<256x8xf32>,
    %c0_19 = arith.constant 0 : index
    %c12_20 = arith.constant 12 : index
    %c0_21 = arith.constant 0 : index
    %17 = vector.load %arg7[%c0_19, %c12_20, %c0_21] : memref<40x40x8xf32, #tpu.memory_space<vmem>>, vector<16x16x8xf32>
    %18 = vector.shape_cast %17 : vector<16x16x8xf32> to vector<256x8xf32>
    %c0_22 = arith.constant 0 : index
    %c8 = arith.constant 8 : index
    %19 = vector.load %arg8[%c0_22, %c8] : memref<256x72xf32, #tpu.memory_space<vmem>>, vector<256x8xf32>
    tpu.vector_store %arg8[%c0_22, %c8], %18 {strides = array<i32>} : memref<256x72xf32, #tpu.memory_space<vmem>>, vector<256x8xf32>,
    %c0_23 = arith.constant 0 : index
    %c24 = arith.constant 24 : index
    %c0_24 = arith.constant 0 : index
    %20 = vector.load %arg7[%c0_23, %c24, %c0_24] : memref<40x40x8xf32, #tpu.memory_space<vmem>>, vector<16x16x8xf32>
    %21 = vector.shape_cast %20 : vector<16x16x8xf32> to vector<256x8xf32>
    %c0_25 = arith.constant 0 : index
    %c16 = arith.constant 16 : index
    %22 = vector.load %arg8[%c0_25, %c16] : memref<256x72xf32, #tpu.memory_space<vmem>>, vector<256x8xf32>
    tpu.vector_store %arg8[%c0_25, %c16], %21 {strides = array<i32>} : memref<256x72xf32, #tpu.memory_space<vmem>>, vector<256x8xf32>,
    %c12_26 = arith.constant 12 : index
    %c0_27 = arith.constant 0 : index
    %c0_28 = arith.constant 0 : index
    %23 = vector.load %arg7[%c12_26, %c0_27, %c0_28] : memref<40x40x8xf32, #tpu.memory_space<vmem>>, vector<16x16x8xf32>
    %24 = vector.shape_cast %23 : vector<16x16x8xf32> to vector<256x8xf32>
    %c0_29 = arith.constant 0 : index
    %c24_30 = arith.constant 24 : index
    %25 = vector.load %arg8[%c0_29, %c24_30] : memref<256x72xf32, #tpu.memory_space<vmem>>, vector<256x8xf32>
    tpu.vector_store %arg8[%c0_29, %c24_30], %24 {strides = array<i32>} : memref<256x72xf32, #tpu.memory_space<vmem>>, vector<256x8xf32>,
    %c12_31 = arith.constant 12 : index
    %c12_32 = arith.constant 12 : index
    %c0_33 = arith.constant 0 : index
    %26 = vector.load %arg7[%c12_31, %c12_32, %c0_33] : memref<40x40x8xf32, #tpu.memory_space<vmem>>, vector<16x16x8xf32>
    %27 = vector.shape_cast %26 : vector<16x16x8xf32> to vector<256x8xf32>
    %c0_34 = arith.constant 0 : index
    %c32 = arith.constant 32 : index
    %28 = vector.load %arg8[%c0_34, %c32] : memref<256x72xf32, #tpu.memory_space<vmem>>, vector<256x8xf32>
    tpu.vector_store %arg8[%c0_34, %c32], %27 {strides = array<i32>} : memref<256x72xf32, #tpu.memory_space<vmem>>, vector<256x8xf32>,
    %c12_35 = arith.constant 12 : index
    %c24_36 = arith.constant 24 : index
    %c0_37 = arith.constant 0 : index
    %29 = vector.load %arg7[%c12_35, %c24_36, %c0_37] : memref<40x40x8xf32, #tpu.memory_space<vmem>>, vector<16x16x8xf32>
    %30 = vector.shape_cast %29 : vector<16x16x8xf32> to vector<256x8xf32>
    %c0_38 = arith.constant 0 : index
    %c40 = arith.constant 40 : index
    %31 = vector.load %arg8[%c0_38, %c40] : memref<256x72xf32, #tpu.memory_space<vmem>>, vector<256x8xf32>
    tpu.vector_store %arg8[%c0_38, %c40], %30 {strides = array<i32>} : memref<256x72xf32, #tpu.memory_space<vmem>>, vector<256x8xf32>,
    %c24_39 = arith.constant 24 : index
    %c0_40 = arith.constant 0 : index
    %c0_41 = arith.constant 0 : index
    %32 = vector.load %arg7[%c24_39, %c0_40, %c0_41] : memref<40x40x8xf32, #tpu.memory_space<vmem>>, vector<16x16x8xf32>
    %33 = vector.shape_cast %32 : vector<16x16x8xf32> to vector<256x8xf32>
    %c0_42 = arith.constant 0 : index
    %c48 = arith.constant 48 : index
    %34 = vector.load %arg8[%c0_42, %c48] : memref<256x72xf32, #tpu.memory_space<vmem>>, vector<256x8xf32>
    tpu.vector_store %arg8[%c0_42, %c48], %33 {strides = array<i32>} : memref<256x72xf32, #tpu.memory_space<vmem>>, vector<256x8xf32>,
    %c24_43 = arith.constant 24 : index
    %c12_44 = arith.constant 12 : index
    %c0_45 = arith.constant 0 : index
    %35 = vector.load %arg7[%c24_43, %c12_44, %c0_45] : memref<40x40x8xf32, #tpu.memory_space<vmem>>, vector<16x16x8xf32>
    %36 = vector.shape_cast %35 : vector<16x16x8xf32> to vector<256x8xf32>
    %c0_46 = arith.constant 0 : index
    %c56 = arith.constant 56 : index
    %37 = vector.load %arg8[%c0_46, %c56] : memref<256x72xf32, #tpu.memory_space<vmem>>, vector<256x8xf32>
    tpu.vector_store %arg8[%c0_46, %c56], %36 {strides = array<i32>} : memref<256x72xf32, #tpu.memory_space<vmem>>, vector<256x8xf32>,
    %c24_47 = arith.constant 24 : index
    %c24_48 = arith.constant 24 : index
    %c0_49 = arith.constant 0 : index
    %38 = vector.load %arg7[%c24_47, %c24_48, %c0_49] : memref<40x40x8xf32, #tpu.memory_space<vmem>>, vector<16x16x8xf32>
    %39 = vector.shape_cast %38 : vector<16x16x8xf32> to vector<256x8xf32>
    %c0_50 = arith.constant 0 : index
    %c64 = arith.constant 64 : index
    %40 = vector.load %arg8[%c0_50, %c64] : memref<256x72xf32, #tpu.memory_space<vmem>>, vector<256x8xf32>
    tpu.vector_store %arg8[%c0_50, %c64], %39 {strides = array<i32>} : memref<256x72xf32, #tpu.memory_space<vmem>>, vector<256x8xf32>,
    %c0_51 = arith.constant 0 : index
    %c0_52 = arith.constant 0 : index
    %41 = vector.load %arg8[%c0_51, %c0_52] : memref<256x72xf32, #tpu.memory_space<vmem>>, vector<256x72xf32>
    %c0_53 = arith.constant 0 : index
    %c0_54 = arith.constant 0 : index
    %42 = vector.load %arg4[%c0_53, %c0_54] : memref<72x8xf32, #tpu.memory_space<vmem>>, vector<72x8xf32>
    %cst_55 = arith.constant dense<0.000000e+00> : vector<256x8xf32>
    %43 = tpu.matmul %41, %42, %cst_55 {dimension_numbers = #tpu.dot_dimension_numbers<[1], [0], [0], [1], [0, 0, 1, 1], [], []>} : vector<256x72xf32>, vector<72x8xf32>, vector<256x8xf32> -> vector<256x8xf32>
    %c0_56 = arith.constant 0 : index
    %c0_57 = arith.constant 0 : index
    %44 = vector.load %arg5[%c0_56, %c0_57] : memref<1x8xf32, #tpu.memory_space<vmem>>, vector<1x8xf32>
    %45 = vector.broadcast %44 : vector<1x8xf32> to vector<256x8xf32>
    %46 = arith.addf %43, %45 : vector<256x8xf32>
    %cst_58 = arith.constant 0.000000e+00 : f32
    %47 = vector.broadcast %cst_58 : f32 to vector<256x8xf32>
    %48 = arith.maximumf %46, %47 : vector<256x8xf32>
    %c0_59 = arith.constant 0 : index
    %c0_60 = arith.constant 0 : index
    %c0_61 = arith.constant 0 : index
    %49 = vector.load %arg6[%c0_59, %c0_60, %c0_61] : memref<1x256x8xf32, #tpu.memory_space<vmem>>, vector<1x256x8xf32>
    %50 = vector.shape_cast %49 : vector<1x256x8xf32> to vector<256x8xf32>
    %51 = vector.shape_cast %48 : vector<256x8xf32> to vector<1x256x8xf32>
    tpu.vector_store %arg6[%c0_59, %c0_60, %c0_61], %51 {strides = array<i32>} : memref<1x256x8xf32, #tpu.memory_space<vmem>>, vector<1x256x8xf32>,
    return
  }
  func.func @transform_0(%arg0: i32) -> (i32, i32, i32, i32) {
    %c0_i32 = arith.constant 0 : i32
    %c0_i32_0 = arith.constant 0 : i32
    %c0_i32_1 = arith.constant 0 : i32
    %c0_i32_2 = arith.constant 0 : i32
    return %arg0, %c0_i32, %c0_i32_0, %c0_i32_1 : i32, i32, i32, i32
  }
  func.func @transform_1(%arg0: i32) -> (i32, i32) {
    %c0_i32 = arith.constant 0 : i32
    %c0_i32_0 = arith.constant 0 : i32
    %c0_i32_1 = arith.constant 0 : i32
    return %c0_i32, %c0_i32_0 : i32, i32
  }
  func.func @transform_2(%arg0: i32) -> (i32, i32) {
    %c0_i32 = arith.constant 0 : i32
    %c0_i32_0 = arith.constant 0 : i32
    %c0_i32_1 = arith.constant 0 : i32
    return %c0_i32, %c0_i32_0 : i32, i32
  }
  func.func @transform_3(%arg0: i32) -> (i32, i32) {
    %c0_i32 = arith.constant 0 : i32
    %c0_i32_0 = arith.constant 0 : i32
    %c0_i32_1 = arith.constant 0 : i32
    return %c0_i32, %c0_i32_0 : i32, i32
  }
  func.func @transform_4(%arg0: i32) -> (i32, i32) {
    %c0_i32 = arith.constant 0 : i32
    %c0_i32_0 = arith.constant 0 : i32
    %c0_i32_1 = arith.constant 0 : i32
    return %c0_i32, %c0_i32_0 : i32, i32
  }
  func.func @transform_5(%arg0: i32) -> (i32, i32, i32) {
    %c0_i32 = arith.constant 0 : i32
    %c0_i32_0 = arith.constant 0 : i32
    %c0_i32_1 = arith.constant 0 : i32
    return %arg0, %c0_i32, %c0_i32_0 : i32, i32, i32
  }
}

module attributes {stable_mosaic.version = 11 : i64} {
  func.func @kernel(%arg0: i32, %arg1: memref<1x16x16x48xf32, #tpu.memory_space<vmem>>, %arg2: memref<48x8xf32, #tpu.memory_space<vmem>>, %arg3: memref<1x8xf32, #tpu.memory_space<vmem>>, %arg4: memref<8x8xf32, #tpu.memory_space<vmem>>, %arg5: memref<1x8xf32, #tpu.memory_space<vmem>>, %arg6: memref<1x256x8xf32, #tpu.memory_space<vmem>>, %arg7: memref<16x16x8xf32, #tpu.memory_space<vmem>>, %arg8: memref<256x8xf32, #tpu.memory_space<vmem>>) attributes {dimension_semantics = [#tpu.dimension_semantics<parallel>], iteration_bounds = array<i64: 2>, scalar_prefetch = 0 : i64, scratch_operands = 2 : i64, tpu.core_type = #tpu.core_type<tc>, window_params = [{transform_indices = @transform_0, window_bounds = array<i64: 1, 16, 16, 48>}, {pipeline_mode = #tpu.pipeline_mode<synchronous>, transform_indices = @transform_1, window_bounds = array<i64: 48, 8>}, {pipeline_mode = #tpu.pipeline_mode<synchronous>, transform_indices = @transform_2, window_bounds = array<i64: 1, 8>}, {pipeline_mode = #tpu.pipeline_mode<synchronous>, transform_indices = @transform_3, window_bounds = array<i64: 8, 8>}, {pipeline_mode = #tpu.pipeline_mode<synchronous>, transform_indices = @transform_4, window_bounds = array<i64: 1, 8>}, {transform_indices = @transform_5, window_bounds = array<i64: 1, 256, 8>}]} {
    %c0 = arith.constant 0 : index
    %c0_0 = arith.constant 0 : index
    %c0_1 = arith.constant 0 : index
    %c0_2 = arith.constant 0 : index
    %0 = vector.load %arg1[%c0, %c0_0, %c0_1, %c0_2] : memref<1x16x16x48xf32, #tpu.memory_space<vmem>>, vector<1x16x16x48xf32>
    %1 = vector.shape_cast %0 : vector<1x16x16x48xf32> to vector<16x16x48xf32>
    %2 = vector.shape_cast %1 : vector<16x16x48xf32> to vector<256x48xf32>
    %c0_3 = arith.constant 0 : index
    %c0_4 = arith.constant 0 : index
    %3 = vector.load %arg2[%c0_3, %c0_4] : memref<48x8xf32, #tpu.memory_space<vmem>>, vector<48x8xf32>
    %cst = arith.constant dense<0.000000e+00> : vector<256x8xf32>
    %4 = tpu.matmul %2, %3, %cst {dimension_numbers = #tpu.dot_dimension_numbers<[1], [0], [0], [1], [0, 0, 1, 1], [], []>} : vector<256x48xf32>, vector<48x8xf32>, vector<256x8xf32> -> vector<256x8xf32>
    %c0_5 = arith.constant 0 : index
    %c0_6 = arith.constant 0 : index
    %5 = vector.load %arg3[%c0_5, %c0_6] : memref<1x8xf32, #tpu.memory_space<vmem>>, vector<1x8xf32>
    %6 = vector.broadcast %5 : vector<1x8xf32> to vector<256x8xf32>
    %7 = arith.addf %4, %6 : vector<256x8xf32>
    %cst_7 = arith.constant 0.000000e+00 : f32
    %8 = vector.broadcast %cst_7 : f32 to vector<256x8xf32>
    %9 = arith.maximumf %7, %8 : vector<256x8xf32>
    %10 = vector.shape_cast %9 : vector<256x8xf32> to vector<16x16x8xf32>
    %c0_8 = arith.constant 0 : index
    %c0_9 = arith.constant 0 : index
    %c0_10 = arith.constant 0 : index
    %11 = vector.load %arg7[%c0_8, %c0_9, %c0_10] : memref<16x16x8xf32, #tpu.memory_space<vmem>>, vector<16x16x8xf32>
    tpu.vector_store %arg7[%c0_8, %c0_9, %c0_10], %10 {strides = array<i32>} : memref<16x16x8xf32, #tpu.memory_space<vmem>>, vector<16x16x8xf32>,
    %c0_11 = arith.constant 0 : index
    %c0_12 = arith.constant 0 : index
    %c0_13 = arith.constant 0 : index
    %12 = vector.load %arg7[%c0_11, %c0_12, %c0_13] : memref<16x16x8xf32, #tpu.memory_space<vmem>>, vector<16x16x8xf32>
    %13 = vector.shape_cast %12 : vector<16x16x8xf32> to vector<256x8xf32>
    %c0_14 = arith.constant 0 : index
    %c0_15 = arith.constant 0 : index
    %14 = vector.load %arg8[%c0_14, %c0_15] : memref<256x8xf32, #tpu.memory_space<vmem>>, vector<256x8xf32>
    tpu.vector_store %arg8[%c0_14, %c0_15], %13 {strides = array<i32>} : memref<256x8xf32, #tpu.memory_space<vmem>>, vector<256x8xf32>,
    %c0_16 = arith.constant 0 : index
    %c0_17 = arith.constant 0 : index
    %15 = vector.load %arg8[%c0_16, %c0_17] : memref<256x8xf32, #tpu.memory_space<vmem>>, vector<256x8xf32>
    %c0_18 = arith.constant 0 : index
    %c0_19 = arith.constant 0 : index
    %16 = vector.load %arg4[%c0_18, %c0_19] : memref<8x8xf32, #tpu.memory_space<vmem>>, vector<8x8xf32>
    %cst_20 = arith.constant dense<0.000000e+00> : vector<256x8xf32>
    %17 = tpu.matmul %15, %16, %cst_20 {dimension_numbers = #tpu.dot_dimension_numbers<[1], [0], [0], [1], [0, 0, 1, 1], [], []>} : vector<256x8xf32>, vector<8x8xf32>, vector<256x8xf32> -> vector<256x8xf32>
    %c0_21 = arith.constant 0 : index
    %c0_22 = arith.constant 0 : index
    %18 = vector.load %arg5[%c0_21, %c0_22] : memref<1x8xf32, #tpu.memory_space<vmem>>, vector<1x8xf32>
    %19 = vector.broadcast %18 : vector<1x8xf32> to vector<256x8xf32>
    %20 = arith.addf %17, %19 : vector<256x8xf32>
    %cst_23 = arith.constant 0.000000e+00 : f32
    %21 = vector.broadcast %cst_23 : f32 to vector<256x8xf32>
    %22 = arith.maximumf %20, %21 : vector<256x8xf32>
    %c0_24 = arith.constant 0 : index
    %c0_25 = arith.constant 0 : index
    %c0_26 = arith.constant 0 : index
    %23 = vector.load %arg6[%c0_24, %c0_25, %c0_26] : memref<1x256x8xf32, #tpu.memory_space<vmem>>, vector<1x256x8xf32>
    %24 = vector.shape_cast %23 : vector<1x256x8xf32> to vector<256x8xf32>
    %25 = vector.shape_cast %22 : vector<256x8xf32> to vector<1x256x8xf32>
    tpu.vector_store %arg6[%c0_24, %c0_25, %c0_26], %25 {strides = array<i32>} : memref<1x256x8xf32, #tpu.memory_space<vmem>>, vector<1x256x8xf32>,
    return
  }
  func.func @transform_0(%arg0: i32) -> (i32, i32, i32, i32) {
    %c0_i32 = arith.constant 0 : i32
    %c0_i32_0 = arith.constant 0 : i32
    %c0_i32_1 = arith.constant 0 : i32
    %c0_i32_2 = arith.constant 0 : i32
    return %arg0, %c0_i32, %c0_i32_0, %c0_i32_1 : i32, i32, i32, i32
  }
  func.func @transform_1(%arg0: i32) -> (i32, i32) {
    %c0_i32 = arith.constant 0 : i32
    %c0_i32_0 = arith.constant 0 : i32
    %c0_i32_1 = arith.constant 0 : i32
    return %c0_i32, %c0_i32_0 : i32, i32
  }
  func.func @transform_2(%arg0: i32) -> (i32, i32) {
    %c0_i32 = arith.constant 0 : i32
    %c0_i32_0 = arith.constant 0 : i32
    %c0_i32_1 = arith.constant 0 : i32
    return %c0_i32, %c0_i32_0 : i32, i32
  }
  func.func @transform_3(%arg0: i32) -> (i32, i32) {
    %c0_i32 = arith.constant 0 : i32
    %c0_i32_0 = arith.constant 0 : i32
    %c0_i32_1 = arith.constant 0 : i32
    return %c0_i32, %c0_i32_0 : i32, i32
  }
  func.func @transform_4(%arg0: i32) -> (i32, i32) {
    %c0_i32 = arith.constant 0 : i32
    %c0_i32_0 = arith.constant 0 : i32
    %c0_i32_1 = arith.constant 0 : i32
    return %c0_i32, %c0_i32_0 : i32, i32
  }
  func.func @transform_5(%arg0: i32) -> (i32, i32, i32) {
    %c0_i32 = arith.constant 0 : i32
    %c0_i32_0 = arith.constant 0 : i32
    %c0_i32_1 = arith.constant 0 : i32
    return %arg0, %c0_i32, %c0_i32_0 : i32, i32, i32
  }
}

</mosaic_0001>

<bundles_post_ra>
// kernel: dense_aspp_block.5
= control target key start
LH: loop header
LB: loop body
LE: loop exit
PB: predicated region body
PF: predicated region fallthrough
CT: control target
= control target key end

     0   :  { %s3200_s18 = smov 0   ;;  %s4562_s0 = inlined_call_operand.vmem [shape: f32[2,16,16,48], index: 0, kind: input, shape index: {}]   ;;  %s4563_s1 = inlined_call_operand.vmem [shape: f32[48,8], index: 1, kind: input, shape index: {}]   ;;  %s4564_s2 = inlined_call_operand.vmem [shape: f32[1,8], index: 2, kind: input, shape index: {}]   ;;  %s4565_s3 = inlined_call_operand.vmem [shape: f32[72,8], index: 3, kind: input, shape index: {}]   ;;  %s4566_s4 = inlined_call_operand.vmem [shape: f32[1,8], index: 4, kind: input, shape index: {}]   ;;  %s4567_s5 = inlined_call_operand.vmem [shape: f32[2,256,8], index: 5, kind: output, shape index: {}]  }
   0x1 LB: > { %s2823_s19 = sadd.s32 4294967295, %s3159_s18   ;;  %p2827_p0 = scmp.ge.s32.totalorder %s3159_s18, 1  ;;  %s3159_s18 = sphi %s3200_s18, %s15_s18  }
   0x2   : > { %p187_p1 = scmp.lt.s32.totalorder %s3159_s18, 3 }
   0x4   : > { %p188_p2 = pnand %p2827_p0, %p187_p1 }
   0x5   : > { %v257_v0 = vld [vmem:[%s4563_s1] sm:$0xff] (!%p188_p2)  ;;  %v258_v1 = vld [vmem:[%s4563_s1 + $0x8] sm:$0xff] (!%p188_p2)  ;;  %v259_v2 = vld [vmem:[%s4563_s1 + $0x10] sm:$0xff] (!%p188_p2)  ;;  %p215_p3 = scmp.lt.s32.totalorder (!%p188_p2), %s2823_s19, 1  ;;  %vm624_vm0 = vcmask (!%p188_p2), 64512   ;;  %vm627_vm1 = vcmask (!%p188_p2), 62464  }
   0x6   : > { %191 = sbr.rel (%p188_p2) target bundleno = 1071 (0x42f), region = 40  ;;  %v3217_v3 = vpack.c.bf16 (!%p188_p2), %v258_v1, %v257_v0  ;;  %v260_v4 = vld [vmem:[%s4563_s1 + $0x18] sm:$0xff] (!%p188_p2)  ;;  %v3227_v6 = vld [vmem:[%s4563_s1 + $0x20] sm:$0xff] (!%p188_p2)  ;;  %v3232_v7 = vld [vmem:[%s4563_s1 + $0x28] sm:$0xff] (!%p188_p2)  ;;  %v3161_v8 = vmov (!%p188_p2), 0.0   ;;  %vm270_vm2 = vcmask (!%p188_p2), 392192  }
   0x7   : > { %v3222_v5 = vpack.c.bf16 (!%p188_p2), %v260_v4, %v259_v2  ;;  %629 = vst.msk [vmem:[#allocation2 + $0x18] sm:$0xff] (!%p188_p2), %vm624_vm0, %v3161_v8  ;;  %630 = vst.msk [vmem:[#allocation2 + $0x20] sm:$0xff] (!%p188_p2), %vm624_vm0, %v3161_v8  ;;  %v3115_v9 = vpack.c.bf16 (!%p188_p2), %v3232_v7, %v3227_v6  ;;  %s3162_s11 = smov (!%p188_p2), 8   ;;  %s3163_s12 = smov (!%p188_p2), 16   ;;  %vm949_vm3 = vcmask (!%p188_p2), 130112   ;;  %vm1142_vm4 = vcmask (!%p188_p2), 195712  }
   0x8   : > { %625 = vst.msk [vmem:[#allocation2] sm:$0xff] (!%p188_p2), %vm624_vm0, %v3161_v8  ;;  %626 = vst.msk [vmem:[#allocation2 + $0x8] sm:$0xff] (!%p188_p2), %vm624_vm0, %v3161_v8  ;;  %3108 = vmatprep.subr.bf16.mxu0 (!%p188_p2), %v3217_v3  ;;  %v3467_v2 = vld [vmem:[%s4564_s2] ss:$0 sm:$0xff] (!%p188_p2)  ;;  %s3164_s15 = smov (!%p188_p2), 32   ;;  %s3165_s16 = smov (!%p188_p2), 24  }
   0x9   : > { %632 = vst.msk [vmem:[#allocation2 + $0x30] sm:$0xff] (!%p188_p2), %vm624_vm0, %v3161_v8  ;;  %633 = vst.msk [vmem:[#allocation2 + $0x38] sm:$0xff] (!%p188_p2), %vm624_vm0, %v3161_v8  ;;  %3110 = vmatpush3.bf16.msra.mxu0 (!%p188_p2), %v3217_v3  ;;  %s3166_s17 = smov (!%p188_p2), 40   ;;  %s3167_s20 = smov (!%p188_p2), 56   ;;  %vm1335_vm5 = vcmask (!%p188_p2), 261312   ;;  %vm1528_vm6 = vcmask (!%p188_p2), 326912  }
   0xa   : > { %635 = vst.msk [vmem:[#allocation2 + $0x48] sm:$0xff] (!%p188_p2), %vm624_vm0, %v3161_v8  ;;  %636 = vst.msk [vmem:[#allocation2 + $0x50] sm:$0xff] (!%p188_p2), %vm624_vm0, %v3161_v8  ;;  %3112 = vmatprep.subr.bf16.mxu0 (!%p188_p2), %v3222_v5  ;;  %s3168_s21 = smov (!%p188_p2), 64   ;;  %s3169_s23 = smov (!%p188_p2), 48   ;;  %vm1721_vm7 = vcmask (!%p188_p2), 392512   ;;  %vm1915_vm8 = vcmask (!%p188_p2), 458112  }
   0xb   : > { %638 = vst.msk [vmem:[#allocation2 + $0x60] sm:$0xff] (!%p188_p2), %vm624_vm0, %v3161_v8  ;;  %639 = vst.msk [vmem:[#allocation2 + $0x68] sm:$0xff] (!%p188_p2), %vm624_vm0, %v3161_v8  ;;  %vm2108_vm9 = vcmask (!%p188_p2), 523712   ;;  %vm2301_vm10 = vcmask (!%p188_p2), 589312   ;;  %vm2382_vm11 = vcmask (!%p188_p2), 588800  }
   0xc   : > { %641 = vst.msk [vmem:[#allocation2 + $0x78] sm:$0xff] (!%p188_p2), %vm624_vm0, %v3161_v8  ;;  %642 = vst.msk [vmem:[#allocation2 + $0x80] sm:$0xff] (!%p188_p2), %vm624_vm0, %v3161_v8 }
   0xd   : > { %s4569_s19 = smov (!%p215_p3, %s2823_s19), 1  ;;  %644 = vst.msk [vmem:[#allocation2 + $0x90] sm:$0xff] %vm624_vm0, %v3161_v8  ;;  %645 = vst.msk [vmem:[#allocation2 + $0x98] sm:$0xff] %vm624_vm0, %v3161_v8  ;;  %3114 = vmatpush3.bf16.msra.mxu0 %v3222_v5 }
   0xe   : > { %647 = vst.msk [vmem:[#allocation2 + $0xa8] sm:$0xff] %vm624_vm0, %v3161_v8  ;;  %648 = vst.msk [vmem:[#allocation2 + $0xb0] sm:$0xff] %vm624_vm0, %v3161_v8  ;;  %s2900_s7 = sshll.u32 %s4569_s19, 8  ;;  %3116 = vmatprep.subr.bf16.mxu0 %v3115_v9  ;;  %v791_v11 = vld [vmem:[#allocation2 + $0x1b] sm:$0xff] }
   0xf   : > { %650 = vst.msk [vmem:[#allocation2 + $0xc0] sm:$0xff] %vm624_vm0, %v3161_v8  ;;  %651 = vst.msk [vmem:[#allocation2 + $0xc8] sm:$0xff] %vm624_vm0, %v3161_v8  ;;  %s3379_s10 = scalar_lea.vmem %s4562_s0, %s2900_s7  ;;  %v789_v12 = vld [vmem:[#allocation2 + $0x3] sm:$0xff]  ;;  %857 = vrot.lane.b32.xlu1 %v791_v11, %s3162_s11  ;;  %v727_v49 = vld [vmem:[#allocation2 + $0x18] sm:$0xff]  ;;  %s4313_s30 = scalar_lea.vmem %s4567_s5, %s2900_s7 }
  0x10   : > { %653 = vst.msk [vmem:[#allocation2 + $0xd8] sm:$0xff] %vm624_vm0, %v3161_v8  ;;  %654 = vst.msk [vmem:[#allocation2 + $0xe0] sm:$0xff] %vm624_vm0, %v3161_v8  ;;  %v225_v10 = vld [vmem:[%s3379_s10] sm:$0xff]  ;;  %v226_v13 = vld [vmem:[%s3379_s10 + $0x8] sm:$0xff]  ;;  %853 = vrot.lane.b32.xlu0 %v789_v12, %s3162_s11 }
  0x11   : > { %656 = vst.msk [vmem:[#allocation2 + $0xf0] sm:$0xff] %vm624_vm0, %v3161_v8  ;;  %657 = vst.msk [vmem:[#allocation2 + $0xf8] sm:$0xff] %vm624_vm0, %v3161_v8  ;;  %2993 = vmatprep.mubr.msk.f32.mxu0 %vm270_vm2, %v225_v10  ;;  %3118 = vmatpush3.bf16.msra.mxu0 %v3115_v9  ;;  %v227_v14 = vld [vmem:[%s3379_s10 + $0x10] sm:$0xff]  ;;  %v228_v17 = vld [vmem:[%s3379_s10 + $0x18] sm:$0xff] }
  0x12   : > { %659 = vst.msk [vmem:[#allocation2 + $0x108] sm:$0xff] %vm624_vm0, %v3161_v8  ;;  %660 = vst.msk [vmem:[#allocation2 + $0x110] sm:$0xff] %vm624_vm0, %v3161_v8  ;;  %v229_v18 = vld [vmem:[%s3379_s10 + $0x20] sm:$0xff]  ;;  %v793_v20 = vld [vmem:[#allocation2 + $0x33] sm:$0xff] }
  0x13   : > { %662 = vst.msk [vmem:[#allocation2 + $0x120] sm:$0xff] %vm624_vm0, %v3161_v8  ;;  %663 = vst.msk [vmem:[#allocation2 + $0x128] sm:$0xff] %vm624_vm0, %v3161_v8  ;;  %v230_v21 = vld [vmem:[%s3379_s10 + $0x28] sm:$0xff]  ;;  %v231_v22 = vld [vmem:[%s3379_s10 + $0x30] sm:$0xff] }
  0x14   : > { %665 = vst.msk [vmem:[#allocation2 + $0x138] sm:$0xff] %vm624_vm0, %v3161_v8  ;;  %666 = vst.msk [vmem:[#allocation2 + $0x140] sm:$0xff] %vm624_vm0, %v3161_v8  ;;  %2994 = vmatmul.mubr.msk.f32.vlgmr.msra.gmra.mrb[0].mxu0 %vm270_vm2, %v226_v13  ;;  %v232_v23 = vld [vmem:[%s3379_s10 + $0x38] sm:$0xff]  ;;  %v233_v24 = vld [vmem:[%s3379_s10 + $0x40] sm:$0xff] }
  0x15   : > { %668 = vst.msk [vmem:[#allocation2 + $0x150] sm:$0xff] %vm624_vm0, %v3161_v8  ;;  %669 = vst.msk [vmem:[#allocation2 + $0x158] sm:$0xff] %vm624_vm0, %v3161_v8  ;;  %2996 = vmatprep.mubr.msk.f32.mxu0 %vm270_vm2, %v227_v14  ;;  %v234_v25 = vld [vmem:[%s3379_s10 + $0x48] sm:$0xff]  ;;  %v235_v26 = vld [vmem:[%s3379_s10 + $0x50] sm:$0xff] }
  0x16   : > { %671 = vst.msk [vmem:[#allocation2 + $0x168] sm:$0xff] %vm624_vm0, %v3161_v8  ;;  %672 = vst.msk [vmem:[#allocation2 + $0x170] sm:$0xff] %vm624_vm0, %v3161_v8  ;;  %v236_v27 = vld [vmem:[%s3379_s10 + $0x58] sm:$0xff]  ;;  %v237_v28 = vld [vmem:[%s3379_s10 + $0x60] sm:$0xff] }
  0x17   : > { %674 = vst.msk [vmem:[#allocation2 + $0x180] sm:$0xff] %vm624_vm0, %v3161_v8  ;;  %675 = vst.msk [vmem:[#allocation2 + $0x188] sm:$0xff] %vm624_vm0, %v3161_v8  ;;  %v238_v29 = vld [vmem:[%s3379_s10 + $0x68] sm:$0xff]  ;;  %v239_v30 = vld [vmem:[%s3379_s10 + $0x70] sm:$0xff] }
  0x18   : > { %677 = vst.msk [vmem:[#allocation2 + $0x198] sm:$0xff] %vm624_vm0, %v3161_v8  ;;  %678 = vst.msk [vmem:[#allocation2 + $0x1a0] sm:$0xff] %vm624_vm0, %v3161_v8  ;;  %2997 = vmatmul.mubr.msk.f32.gmra.mrb[2].mxu0 %vm270_vm2, %v228_v17  ;;  %v240_v31 = vld [vmem:[%s3379_s10 + $0x78] sm:$0xff]  ;;  %v241_v32 = vld [vmem:[%s3379_s10 + $0x80] sm:$0xff] }
  0x19   : > { %680 = vst.msk [vmem:[#allocation2 + $0x1b0] sm:$0xff] %vm624_vm0, %v3161_v8  ;;  %681 = vst.msk [vmem:[#allocation2 + $0x1b8] sm:$0xff] %vm624_vm0, %v3161_v8  ;;  %2999 = vmatprep.mubr.msk.f32.mxu0 %vm270_vm2, %v229_v18  ;;  %v242_v33 = vld [vmem:[%s3379_s10 + $0x88] sm:$0xff]  ;;  %v984_v37 = vld [vmem:[#allocation2 + $0x1e] sm:$0xff] }
  0x1a   : > { %683 = vst.msk [vmem:[#allocation2 + $0x1c8] sm:$0xff] %vm624_vm0, %v3161_v8  ;;  %684 = vst.msk [vmem:[#allocation2 + $0x1d0] sm:$0xff] %vm624_vm0, %v3161_v8  ;;  %v982_v35 = vld [vmem:[#allocation2 + $0x6] sm:$0xff]  ;;  %v986_v39 = vld [vmem:[#allocation2 + $0x36] sm:$0xff] }
  0x1b   : > { %686 = vst.msk [vmem:[#allocation2 + $0x1e0] sm:$0xff] %vm624_vm0, %v3161_v8  ;;  %687 = vst.msk [vmem:[#allocation2 + $0x1e8] sm:$0xff] %vm624_vm0, %v3161_v8  ;;  %v243_v40 = vld [vmem:[%s3379_s10 + $0x90] sm:$0xff]  ;;  %v244_v41 = vld [vmem:[%s3379_s10 + $0x98] sm:$0xff] }
  0x1c   : > { %689 = vst.msk [vmem:[#allocation2 + $0x1f8] sm:$0xff] %vm624_vm0, %v3161_v8  ;;  %690 = vst.msk [vmem:[#allocation2 + $0x200] sm:$0xff] %vm624_vm0, %v3161_v8  ;;  %3000 = vmatmul.mubr.msk.f32.gmra.mrb[4].mxu0 %vm270_vm2, %v230_v21  ;;  %v245_v42 = vld [vmem:[%s3379_s10 + $0xa0] sm:$0xff]  ;;  %v246_v43 = vld [vmem:[%s3379_s10 + $0xa8] sm:$0xff] }
  0x1d   : > { %631 = vst.msk [vmem:[#allocation2 + $0x28] sm:$0x3f] %vm627_vm1, %v3161_v8  ;;  %628 = vst.msk [vmem:[#allocation2 + $0x10] sm:$0x3f] %vm627_vm1, %v3161_v8  ;;  %3002 = vmatprep.mubr.msk.f32.mxu0 %vm270_vm2, %v231_v22  ;;  %v247_v44 = vld [vmem:[%s3379_s10 + $0xb0] sm:$0xff]  ;;  %v248_v45 = vld [vmem:[%s3379_s10 + $0xb8] sm:$0xff] }
  0x1e   : > { %634 = vst.msk [vmem:[#allocation2 + $0x40] sm:$0x3f] %vm627_vm1, %v3161_v8  ;;  %637 = vst.msk [vmem:[#allocation2 + $0x58] sm:$0x3f] %vm627_vm1, %v3161_v8  ;;  %v249_v46 = vld [vmem:[%s3379_s10 + $0xc0] sm:$0xff]  ;;  %v250_v47 = vld [vmem:[%s3379_s10 + $0xc8] sm:$0xff] }
  0x1f   : > { %640 = vst.msk [vmem:[#allocation2 + $0x70] sm:$0x3f] %vm627_vm1, %v3161_v8  ;;  %643 = vst.msk [vmem:[#allocation2 + $0x88] sm:$0x3f] %vm627_vm1, %v3161_v8  ;;  %v725_v51 = vld [vmem:[#allocation2] sm:$0xff]  ;;  %v726_v54 = vld [vmem:[#allocation2 + $0x8] sm:$0xff] }
  0x20   : > { %646 = vst.msk [vmem:[#allocation2 + $0xa0] sm:$0x3f] %vm627_vm1, %v3161_v8  ;;  %649 = vst.msk [vmem:[#allocation2 + $0xb8] sm:$0x3f] %vm627_vm1, %v3161_v8  ;;  %3003 = vmatmul.mubr.msk.f32.gmra.mrb[6].mxu0 %vm270_vm2, %v232_v23  ;;  %v728_v52 = vld [vmem:[#allocation2 + $0x20] sm:$0xff]  ;;  %v730_v56 = vld [vmem:[#allocation2 + $0x38] sm:$0xff] }
  0x21   : > { %652 = vst.msk [vmem:[#allocation2 + $0xd0] sm:$0x3f] %vm627_vm1, %v3161_v8  ;;  %655 = vst.msk [vmem:[#allocation2 + $0xe8] sm:$0x3f] %vm627_vm1, %v3161_v8  ;;  %3005 = vmatprep.mubr.msk.f32.mxu0 %vm270_vm2, %v233_v24  ;;  %v729_v58 = vld [vmem:[#allocation2 + $0x30] sm:$0xff] }
  0x22   : > { %658 = vst.msk [vmem:[#allocation2 + $0x100] sm:$0x3f] %vm627_vm1, %v3161_v8  ;;  %661 = vst.msk [vmem:[#allocation2 + $0x118] sm:$0x3f] %vm627_vm1, %v3161_v8 }
  0x23   : > { %664 = vst.msk [vmem:[#allocation2 + $0x130] sm:$0x3f] %vm627_vm1, %v3161_v8  ;;  %667 = vst.msk [vmem:[#allocation2 + $0x148] sm:$0x3f] %vm627_vm1, %v3161_v8 }
  0x24   : > { %670 = vst.msk [vmem:[#allocation2 + $0x160] sm:$0x3f] %vm627_vm1, %v3161_v8  ;;  %673 = vst.msk [vmem:[#allocation2 + $0x178] sm:$0x3f] %vm627_vm1, %v3161_v8  ;;  %v792_v15 = vld [vmem:[#allocation2 + $0x23] sm:$0xff]  ;;  %v790_v16 = vld [vmem:[#allocation2 + $0xb] sm:$0xff]  ;;  %3006 = vmatmul.mubr.msk.f32.gmra.mrb[8].mxu0 %vm270_vm2, %v234_v25 }
  0x25   : > { %676 = vst.msk [vmem:[#allocation2 + $0x190] sm:$0x3f] %vm627_vm1, %v3161_v8  ;;  %679 = vst.msk [vmem:[#allocation2 + $0x1a8] sm:$0x3f] %vm627_vm1, %v3161_v8  ;;  %859 = vrot.lane.b32.xlu1 %v792_v15, %s3162_s11  ;;  %855 = vrot.lane.b32.xlu0 %v790_v16, %s3162_s11  ;;  %v794_v19 = vld [vmem:[#allocation2 + $0x3b] sm:$0xff]  ;;  %v983_v34 = vld [vmem:[#allocation2 + $0xe] sm:$0xff] }
  0x26   : > { %682 = vst.msk [vmem:[#allocation2 + $0x1c0] sm:$0x3f] %vm627_vm1, %v3161_v8  ;;  %685 = vst.msk [vmem:[#allocation2 + $0x1d8] sm:$0x3f] %vm627_vm1, %v3161_v8  ;;  %3008 = vmatprep.mubr.msk.f32.mxu0 %vm270_vm2, %v235_v26  ;;  %v985_v36 = vld [vmem:[#allocation2 + $0x26] sm:$0xff]  ;;  %v987_v38 = vld [vmem:[#allocation2 + $0x3e] sm:$0xff] }
  0x27   : > { %688 = vst.msk [vmem:[#allocation2 + $0x1f0] sm:$0x3f] %vm627_vm1, %v3161_v8  ;;  %691 = vst.msk [vmem:[#allocation2 + $0x208] sm:$0x3f] %vm627_vm1, %v3161_v8 }
  0x28   : > { %3009 = vmatmul.mubr.msk.f32.gmra.mrb[10].mxu0 %vm270_vm2, %v236_v27  ;;  %759 = vst.msk [vmem:[#allocation3 + $0x10] sm:$0xff] %vm624_vm0, %v727_v49  ;;  %757 = vst.msk [vmem:[#allocation3] sm:$0xff] %vm624_vm0, %v725_v51 }
  0x29   : > { %863 = vrot.lane.b32.xlu1 %v794_v19, %s3162_s11  ;;  %861 = vrot.lane.b32.xlu0 %v793_v20, %s3162_s11  ;;  %760 = vst.msk [vmem:[#allocation3 + $0x18] sm:$0xff] %vm624_vm0, %v728_v52  ;;  %758 = vst.msk [vmem:[#allocation3 + $0x8] sm:$0xff] %vm624_vm0, %v726_v54 }
  0x2a   : > { %3011 = vmatprep.mubr.msk.f32.mxu0 %vm270_vm2, %v237_v28  ;;  %762 = vst.msk [vmem:[#allocation3 + $0x28] sm:$0xff] %vm624_vm0, %v730_v56  ;;  %761 = vst.msk [vmem:[#allocation3 + $0x20] sm:$0xff] %vm624_vm0, %v729_v58 }
  0x2c   : > { %3012 = vmatmul.mubr.msk.f32.gmra.mrb[12].mxu0 %vm270_vm2, %v238_v29  ;;  %v251_v29 = vld [vmem:[%s3379_s10 + $0xd0] sm:$0xff] }
  0x2d   : > { %3014 = vmatprep.mubr.msk.f32.mxu0 %vm270_vm2, %v239_v30  ;;  %1048 = vrot.lane.b32.xlu1 %v983_v34, %s3163_s12  ;;  %v252_v34 = vld [vmem:[%s3379_s10 + $0xd8] sm:$0xff] }
  0x2e   : > { %1046 = vrot.lane.b32.xlu0 %v982_v35, %s3163_s12 }
  0x30   : > { %3015 = vmatmul.mubr.msk.f32.gmra.mrb[14].mxu0 %vm270_vm2, %v240_v31 }
  0x31   : > { %3017 = vmatprep.mubr.msk.f32.mxu0 %vm270_vm2, %v241_v32  ;;  %1052 = vrot.lane.b32.xlu1 %v985_v36, %s3163_s12 }
  0x32   : > { %1050 = vrot.lane.b32.xlu0 %v984_v37, %s3163_s12 }
  0x34   : > { %3018 = vmatmul.mubr.msk.f32.gmra.mrb[16].mxu0 %vm270_vm2, %v242_v33 }
  0x35   : > { %1056 = vrot.lane.b32.xlu1 %v987_v38, %s3163_s12  ;;  %3020 = vmatprep.mubr.msk.f32.mxu0 %vm270_vm2, %v243_v40 }
  0x36   : > { %1054 = vrot.lane.b32.xlu0 %v986_v39, %s3163_s12 }
  0x38   : > { %3021 = vmatmul.mubr.msk.f32.gmra.mrb[18].mxu0 %vm270_vm2, %v244_v41 }
  0x39   : > { %3023 = vmatprep.mubr.msk.f32.mxu0 %vm270_vm2, %v245_v42 }
  0x3c   : > { %3024 = vmatmul.mubr.msk.f32.gmra.mrb[20].mxu0 %vm270_vm2, %v246_v43 }
  0x3d   : > { %3026 = vmatprep.mubr.msk.f32.mxu0 %vm270_vm2, %v247_v44 }
  0x40   : > { %3027 = vmatmul.mubr.msk.f32.gmra.mrb[22].mxu0 %vm270_vm2, %v248_v45 }
  0x41   : > { %3029 = vmatprep.mubr.msk.f32.mxu0 %vm270_vm2, %v249_v46 }
  0x44   : > { %3030 = vmatmul.mubr.msk.f32.gmra.mrb[24].mxu0 %vm270_vm2, %v250_v47 }
  0x45   : > { %3032 = vmatprep.mubr.msk.f32.mxu0 %vm270_vm2, %v251_v29 }
  0x48   : > { %3033 = vmatmul.mubr.msk.f32.gmra.mrb[26].mxu0 %vm270_vm2, %v252_v34 }
  0x81   : > { %v858_v48 = vpop.permute.xlu1 %857 }
  0x82   : > { %v854_v50 = vpop.permute.xlu0 %853  ;;  %952 = vst.msk [vmem:[#allocation3 + $0x10] sm:$0xff] %vm949_vm3, %v858_v48 }
  0x83   : > { %950 = vst.msk [vmem:[#allocation3] sm:$0xff] %vm949_vm3, %v854_v50 }
  0x97   : > { %v860_v53 = vpop.permute.xlu1 %859  ;;  %v856_v55 = vpop.permute.xlu0 %855 }
  0x98   : > { %953 = vst.msk [vmem:[#allocation3 + $0x18] sm:$0xff] %vm949_vm3, %v860_v53  ;;  %951 = vst.msk [vmem:[#allocation3 + $0x8] sm:$0xff] %vm949_vm3, %v856_v55 }
  0x9b   : > { %v864_v57 = vpop.permute.xlu1 %863  ;;  %v862_v59 = vpop.permute.xlu0 %861 }
  0x9c   : > { %955 = vst.msk [vmem:[#allocation3 + $0x28] sm:$0xff] %vm949_vm3, %v864_v57  ;;  %954 = vst.msk [vmem:[#allocation3 + $0x20] sm:$0xff] %vm949_vm3, %v862_v59 }
  0x9f   : > { %v1049_v60 = vpop.permute.xlu1 %1048 }
  0xa0   : > { %1144 = vst.msk [vmem:[#allocation3 + $0x8] sm:$0xff] %vm1142_vm4, %v1049_v60  ;;  %v1047_v61 = vpop.permute.xlu0 %1046 }
  0xa1   : > { %1143 = vst.msk [vmem:[#allocation3] sm:$0xff] %vm1142_vm4, %v1047_v61 }
  0xa3   : > { %v1053_v62 = vpop.permute.xlu1 %1052 }
  0xa4   : > { %1146 = vst.msk [vmem:[#allocation3 + $0x18] sm:$0xff] %vm1142_vm4, %v1053_v62  ;;  %v1051_v63 = vpop.permute.xlu0 %1050 }
  0xa5   : > { %1145 = vst.msk [vmem:[#allocation3 + $0x10] sm:$0xff] %vm1142_vm4, %v1051_v63 }
  0xa7   : > { %v1057_v0 = vpop.permute.xlu1 %1056 }
  0xa8   : > { %1148 = vst.msk [vmem:[#allocation3 + $0x28] sm:$0xff] %vm1142_vm4, %v1057_v0  ;;  %v1055_v1 = vpop.permute.xlu0 %1054 }
  0xa9   : > { %1147 = vst.msk [vmem:[#allocation3 + $0x20] sm:$0xff] %vm1142_vm4, %v1055_v1 }
  0xe7   : > { %v2995_v3 = vpop.f32.mrb[0].mxu0 }
  0xe8   : > { %v439_v4 = vadd.f32 %v2995_v3, %v3467_v2  ;;  %v433_v5 = vpop.f32.mrb[1].mxu0 }
  0xe9   : > { %v434_v6 = vadd.f32 %v3467_v2, %v433_v5 }
  0xea   : > { %v593_v7 = vmax.f32 %v439_v4, 0.0  ;;  %v253_v4 = vld [vmem:[%s3379_s10 + $0xe0] sm:$0xff] }
  0xeb   : > { %v592_v8 = vmax.f32 %v434_v6, 0.0  ;;  %v2998_v9 = vpop.f32.mrb[2].mxu0  ;;  %3035 = vmatprep.mubr.msk.f32.mxu0 %vm270_vm2, %v253_v4  ;;  %v254_v6 = vld [vmem:[%s3379_s10 + $0xe8] sm:$0xff] }
  0xec   : > { %694 = vst.msk [vmem:[#allocation2 + $0x53] sm:$0xff] %vm624_vm0, %v593_v7  ;;  %v449_v10 = vadd.f32 %v2998_v9, %v3467_v2  ;;  %v443_v11 = vpop.f32.mrb[3].mxu0  ;;  %3036 = vmatmul.mubr.msk.f32.gmra.mrb[28].mxu0 %vm270_vm2, %v254_v6 }
  0xed   : > { %693 = vst.msk [vmem:[#allocation2 + $0x4b] sm:$0xff] %vm624_vm0, %v592_v8  ;;  %v444_v12 = vadd.f32 %v3467_v2, %v443_v11 }
  0xee   : > { %v595_v13 = vmax.f32 %v449_v10, 0.0 }
  0xef   : > { %v594_v14 = vmax.f32 %v444_v12, 0.0  ;;  %v3001_v15 = vpop.f32.mrb[4].mxu0 }
  0xf0   : > { %696 = vst.msk [vmem:[#allocation2 + $0x6b] sm:$0xff] %vm624_vm0, %v595_v13  ;;  %v459_v16 = vadd.f32 %v3001_v15, %v3467_v2  ;;  %v453_v17 = vpop.f32.mrb[5].mxu0 }
  0xf1   : > { %695 = vst.msk [vmem:[#allocation2 + $0x63] sm:$0xff] %vm624_vm0, %v594_v14  ;;  %v454_v18 = vadd.f32 %v3467_v2, %v453_v17 }
  0xf2   : > { %v597_v19 = vmax.f32 %v459_v16, 0.0 }
  0xf3   : > { %v796_v20 = vld [vmem:[#allocation2 + $0x53] sm:$0xff]  ;;  %v596_v21 = vmax.f32 %v454_v18, 0.0  ;;  %v3004_v22 = vpop.f32.mrb[6].mxu0 }
  0xf4   : > { %867 = vrot.lane.b32.xlu1 %v796_v20, %s3162_s11  ;;  %v795_v23 = vld [vmem:[#allocation2 + $0x4b] sm:$0xff]  ;;  %698 = vst.msk [vmem:[#allocation2 + $0x83] sm:$0xff] %vm624_vm0, %v597_v19  ;;  %v469_v25 = vadd.f32 %v3004_v22, %v3467_v2  ;;  %v463_v26 = vpop.f32.mrb[7].mxu0  ;;  %v989_v31 = vld [vmem:[#allocation2 + $0x56] sm:$0xff] }
  0xf5   : > { %v1175_v24 = vld [vmem:[#allocation2 + $0x48] sm:$0xff]  ;;  %865 = vrot.lane.b32.xlu0 %v795_v23, %s3162_s11  ;;  %v1176_v27 = vld [vmem:[#allocation2 + $0x50] sm:$0xff]  ;;  %697 = vst.msk [vmem:[#allocation2 + $0x7b] sm:$0xff] %vm624_vm0, %v596_v21  ;;  %v464_v28 = vadd.f32 %v3467_v2, %v463_v26 }
  0xf6   : > { %763 = vst.msk [vmem:[#allocation3 + $0x30] sm:$0xff] %vm624_vm0, %v1175_v24  ;;  %v599_v30 = vmax.f32 %v469_v25, 0.0  ;;  %764 = vst.msk [vmem:[#allocation3 + $0x38] sm:$0xff] %vm624_vm0, %v1176_v27  ;;  %v988_v35 = vld [vmem:[#allocation2 + $0x4e] sm:$0xff]  ;;  %v2366_v25 = vld [vmem:[%s4565_s3] sm:$0xff] }
  0xf7   : > { %v598_v32 = vmax.f32 %v464_v28, 0.0  ;;  %v3007_v33 = vpop.f32.mrb[8].mxu0  ;;  %v798_v60 = vld [vmem:[#allocation2 + $0x6b] sm:$0xff] }
  0xf8   : > { %1060 = vrot.lane.b32.xlu1 %v989_v31, %s3163_s12  ;;  %v3491_v36 = vld [vmem:[#allocation2 + $0x68] sm:$0xff]  ;;  %700 = vst.msk [vmem:[#allocation2 + $0x9b] sm:$0xff] %vm624_vm0, %v599_v30  ;;  %v479_v37 = vadd.f32 %v3007_v33, %v3467_v2  ;;  %v473_v38 = vpop.f32.mrb[9].mxu0  ;;  %v3497_v39 = vld [vmem:[#allocation2 + $0x60] sm:$0xff]  ;;  %v255_v18 = vld [vmem:[%s3379_s10 + $0xf0] sm:$0xff] }
  0xf9   : > { %1058 = vrot.lane.b32.xlu0 %v988_v35, %s3163_s12  ;;  %699 = vst.msk [vmem:[#allocation2 + $0x93] sm:$0xff] %vm624_vm0, %v598_v32  ;;  %v474_v40 = vadd.f32 %v3467_v2, %v473_v38  ;;  %766 = vst.msk [vmem:[#allocation3 + $0x48] sm:$0xff] %vm624_vm0, %v3491_v36  ;;  %v991_v0 = vld [vmem:[#allocation2 + $0x6e] sm:$0xff]  ;;  %v797_v1 = vld [vmem:[#allocation2 + $0x63] sm:$0xff]  ;;  %3038 = vmatprep.mubr.msk.f32.mxu0 %vm270_vm2, %v255_v18 }
  0xfa   : > { %v601_v41 = vmax.f32 %v479_v37, 0.0  ;;  %765 = vst.msk [vmem:[#allocation3 + $0x40] sm:$0xff] %vm624_vm0, %v3497_v39  ;;  %v990_v7 = vld [vmem:[#allocation2 + $0x66] sm:$0xff]  ;;  %v2368_v30 = vld [vmem:[%s4565_s3 + $0x10] sm:$0xff] }
  0xfb   : > { %v600_v42 = vmax.f32 %v474_v40, 0.0  ;;  %v3010_v43 = vpop.f32.mrb[10].mxu0  ;;  %v1373_v8 = vld [vmem:[#allocation2 + $0x83] sm:$0xff] }
  0xfc   : > { %1434 = vrot.lane.b32.xlu1 %v796_v20, %s3164_s15  ;;  %v3506_v44 = vld [vmem:[#allocation2 + $0x78] sm:$0xff]  ;;  %702 = vst.msk [vmem:[#allocation2 + $0xb3] sm:$0xff] %vm624_vm0, %v601_v41  ;;  %v489_v45 = vadd.f32 %v3010_v43, %v3467_v2  ;;  %v483_v46 = vpop.f32.mrb[11].mxu0  ;;  %v3511_v47 = vld [vmem:[#allocation2 + $0x80] sm:$0xff]  ;;  %v2367_v26 = vld [vmem:[%s4565_s3 + $0x8] sm:$0xff] }
  0xfd   : > { %1239 = vrot.lane.b32.xlu0 %v1175_v24, %s3165_s16  ;;  %701 = vst.msk [vmem:[#allocation2 + $0xab] sm:$0xff] %vm624_vm0, %v600_v42  ;;  %v484_v48 = vadd.f32 %v3467_v2, %v483_v46  ;;  %767 = vst.msk [vmem:[#allocation3 + $0x50] sm:$0xff] %vm624_vm0, %v3506_v44  ;;  %v799_v12 = vld [vmem:[#allocation2 + $0x7b] sm:$0xff]  ;;  %v993_v17 = vld [vmem:[#allocation2 + $0x86] sm:$0xff] }
  0xfe   : > { %v603_v49 = vmax.f32 %v489_v45, 0.0  ;;  %768 = vst.msk [vmem:[#allocation3 + $0x58] sm:$0xff] %vm624_vm0, %v3511_v47  ;;  %v992_v16 = vld [vmem:[#allocation2 + $0x7e] sm:$0xff]  ;;  %v2372_v41 = vld [vmem:[%s4565_s3 + $0x30] sm:$0xff] }
  0xff   : > { %v602_v50 = vmax.f32 %v484_v48, 0.0  ;;  %v3013_v51 = vpop.f32.mrb[12].mxu0  ;;  %v1949_v19 = vld [vmem:[#allocation2 + $0x9b] sm:$0xff] }
 0x100   : > { %1627 = vrot.lane.b32.xlu1 %v989_v31, %s3166_s17  ;;  %v3520_v52 = vld [vmem:[#allocation2 + $0x90] sm:$0xff]  ;;  %704 = vst.msk [vmem:[#allocation2 + $0xcb] sm:$0xff] %vm624_vm0, %v603_v49  ;;  %v499_v53 = vadd.f32 %v3013_v51, %v3467_v2  ;;  %v493_v54 = vpop.f32.mrb[13].mxu0  ;;  %v3525_v55 = vld [vmem:[#allocation2 + $0x98] sm:$0xff]  ;;  %v2370_v38 = vld [vmem:[%s4565_s3 + $0x20] sm:$0xff] }
 0x101   : > { %1432 = vrot.lane.b32.xlu0 %v795_v23, %s3164_s15  ;;  %703 = vst.msk [vmem:[#allocation2 + $0xc3] sm:$0xff] %vm624_vm0, %v602_v50  ;;  %v494_v56 = vadd.f32 %v3467_v2, %v493_v54  ;;  %769 = vst.msk [vmem:[#allocation3 + $0x60] sm:$0xff] %vm624_vm0, %v3520_v52  ;;  %v256_v20 = vld [vmem:[%s3379_s10 + $0xf8] sm:$0xff] }
 0x102   : > { %v605_v57 = vmax.f32 %v499_v53, 0.0  ;;  %770 = vst.msk [vmem:[#allocation3 + $0x68] sm:$0xff] %vm624_vm0, %v3525_v55  ;;  %3039 = vmatmul.mubr.msk.f32.gmra.mrb[30].mxu0 %vm270_vm2, %v256_v20  ;;  %v2142_v23 = vld [vmem:[#allocation2 + $0x9e] sm:$0xff]  ;;  %v801_v24 = vld [vmem:[#allocation2 + $0x93] sm:$0xff] }
 0x103   : > { %v604_v58 = vmax.f32 %v494_v56, 0.0  ;;  %v3016_v9 = vpop.f32.mrb[14].mxu0  ;;  %v994_v28 = vld [vmem:[#allocation2 + $0x96] sm:$0xff] }
 0x104   : > { %1241 = vrot.lane.b32.xlu1 %v1176_v27, %s3165_s16  ;;  %v3534_v59 = vld [vmem:[#allocation2 + $0xa8] sm:$0xff]  ;;  %706 = vst.msk [vmem:[#allocation2 + $0xe3] sm:$0xff] %vm624_vm0, %v605_v57  ;;  %v3538_v61 = vld [vmem:[#allocation2 + $0xb0] sm:$0xff]  ;;  %v509_v10 = vadd.f32 %v3016_v9, %v3467_v2  ;;  %v503_v11 = vpop.f32.mrb[15].mxu0  ;;  %v3119_v27 = vpack.c.bf16 %v2367_v26, %v2366_v25  ;;  %v2369_v31 = vld [vmem:[%s4565_s3 + $0x18] sm:$0xff] }
 0x105   : > { %1625 = vrot.lane.b32.xlu0 %v988_v35, %s3166_s17  ;;  %705 = vst.msk [vmem:[#allocation2 + $0xdb] sm:$0xff] %vm624_vm0, %v604_v58  ;;  %771 = vst.msk [vmem:[#allocation3 + $0x70] sm:$0xff] %vm624_vm0, %v3534_v59  ;;  %v504_v13 = vadd.f32 %v3467_v2, %v503_v11  ;;  %v3123_v34 = vpack.c.bf16 %v2369_v31, %v2368_v30  ;;  %v2373_v42 = vld [vmem:[%s4565_s3 + $0x38] sm:$0xff]  ;;  %v3676_v56 = vld [vmem:[#allocation2 + $0xae] sm:$0xff] }
 0x106   : > { %772 = vst.msk [vmem:[#allocation3 + $0x78] sm:$0xff] %vm624_vm0, %v3538_v61  ;;  %v607_v14 = vmax.f32 %v509_v10, 0.0  ;;  %3120 = vmatprep.subr.bf16.mxu1 %v3119_v27  ;;  %v3131_v43 = vpack.c.bf16 %v2373_v42, %v2372_v41  ;;  %v1951_v45 = vld [vmem:[#allocation2 + $0xb3] sm:$0xff] }
 0x107   : > { %v606_v15 = vmax.f32 %v504_v13, 0.0  ;;  %v3019_v29 = vpop.f32.mrb[16].mxu0  ;;  %3122 = vmatpush3.bf16.msra.mxu1 %v3119_v27  ;;  %v2144_v48 = vld [vmem:[#allocation2 + $0xb6] sm:$0xff] }
 0x108   : > { %871 = vrot.lane.b32.xlu1 %v798_v60, %s3162_s11  ;;  %v3546_v62 = vld [vmem:[#allocation2 + $0xc0] sm:$0xff]  ;;  %v3549_v63 = vld [vmem:[#allocation2 + $0xc8] sm:$0xff]  ;;  %708 = vst.msk [vmem:[#allocation2 + $0xfb] sm:$0xff] %vm624_vm0, %v607_v14  ;;  %v519_v32 = vadd.f32 %v3019_v29, %v3467_v2  ;;  %v513_v33 = vpop.f32.mrb[17].mxu0  ;;  %3124 = vmatprep.subr.bf16.mxu1 %v3123_v34 }
 0x109   : > { %1438 = vrot.lane.b32.xlu0 %v798_v60, %s3164_s15  ;;  %773 = vst.msk [vmem:[#allocation3 + $0x80] sm:$0xff] %vm624_vm0, %v3546_v62  ;;  %774 = vst.msk [vmem:[#allocation3 + $0x88] sm:$0xff] %vm624_vm0, %v3549_v63  ;;  %v514_v35 = vadd.f32 %v3467_v2, %v513_v33 }
 0x10a   : > { %707 = vst.msk [vmem:[#allocation2 + $0xf3] sm:$0xff] %vm624_vm0, %v606_v15  ;;  %v1953_v15 = vld [vmem:[#allocation2 + $0xcb] sm:$0xff] }
 0x10b   : > { %v608_v37 = vmax.f32 %v514_v35, 0.0  ;;  %3126 = vmatpush3.bf16.msra.mxu1 %v3123_v34  ;;  %v3022_v49 = vpop.f32.mrb[18].mxu0  ;;  %v805_v34 = vld [vmem:[#allocation2 + $0xc3] sm:$0xff] }
 0x10c   : > { %1064 = vrot.lane.b32.xlu1 %v991_v0, %s3163_s12  ;;  %v3556_v3 = vld [vmem:[#allocation2 + $0xd8] sm:$0xff]  ;;  %v3560_v5 = vld [vmem:[#allocation2 + $0xe0] sm:$0xff]  ;;  %v529_v50 = vadd.f32 %v3022_v49, %v3467_v2  ;;  %v523_v51 = vpop.f32.mrb[19].mxu0 }
 0x10d   : > { %869 = vrot.lane.b32.xlu0 %v797_v1, %s3162_s11  ;;  %775 = vst.msk [vmem:[#allocation3 + $0x90] sm:$0xff] %vm624_vm0, %v3556_v3  ;;  %776 = vst.msk [vmem:[#allocation3 + $0x98] sm:$0xff] %vm624_vm0, %v3560_v5  ;;  %v1955_v49 = vld [vmem:[#allocation2 + $0xe3] sm:$0xff] }
 0x10e   : > { %709 = vst.msk [vmem:[#allocation2 + $0x10b] sm:$0xff] %vm624_vm0, %v608_v37  ;;  %v611_v53 = vmax.f32 %v529_v50, 0.0 }
 0x10f   : > { %v3025_v57 = vpop.f32.mrb[20].mxu0 }
 0x110   : > { %1631 = vrot.lane.b32.xlu1 %v991_v0, %s3166_s17  ;;  %712 = vst.msk [vmem:[#allocation2 + $0x12b] sm:$0xff] %vm624_vm0, %v611_v53  ;;  %v539_v58 = vadd.f32 %v3025_v57, %v3467_v2  ;;  %v533_v60 = vpop.f32.mrb[21].mxu0 }
 0x111   : > { %1062 = vrot.lane.b32.xlu0 %v990_v7, %s3163_s12  ;;  %v3594_v21 = vld [vmem:[#allocation2 + $0xf0] sm:$0xff]  ;;  %v3596_v22 = vld [vmem:[#allocation2 + $0xf8] sm:$0xff]  ;;  %v534_v0 = vadd.f32 %v3467_v2, %v533_v60 }
 0x112   : > { %777 = vst.msk [vmem:[#allocation3 + $0xa0] sm:$0xff] %vm624_vm0, %v3594_v21  ;;  %778 = vst.msk [vmem:[#allocation3 + $0xa8] sm:$0xff] %vm624_vm0, %v3596_v22  ;;  %v1000_v60 = vld [vmem:[#allocation2 + $0xde] sm:$0xff] }
 0x113   : > { %v612_v4 = vmax.f32 %v534_v0, 0.0  ;;  %v3028_v6 = vpop.f32.mrb[22].mxu0 }
 0x114   : > { %1245 = vrot.lane.b32.xlu1 %v3491_v36, %s3165_s16  ;;  %v609_v36 = vmax.f32 %v519_v32, 0.0  ;;  %v549_v9 = vadd.f32 %v3028_v6, %v3467_v2  ;;  %v543_v10 = vpop.f32.mrb[23].mxu0 }
 0x115   : > { %1243 = vrot.lane.b32.xlu0 %v3497_v39, %s3165_s16  ;;  %v2371_v39 = vld [vmem:[%s4565_s3 + $0x28] sm:$0xff]  ;;  %713 = vst.msk [vmem:[#allocation2 + $0x13b] sm:$0xff] %vm624_vm0, %v612_v4  ;;  %v544_v11 = vadd.f32 %v3467_v2, %v543_v10 }
 0x116   : > { %710 = vst.msk [vmem:[#allocation2 + $0x113] sm:$0xff] %vm624_vm0, %v609_v36  ;;  %v3127_v40 = vpack.c.bf16 %v2371_v39, %v2370_v38  ;;  %v998_v39 = vld [vmem:[#allocation2 + $0xc6] sm:$0xff] }
 0x117   : > { %v614_v13 = vmax.f32 %v544_v11, 0.0 }
 0x118   : > { %1436 = vrot.lane.b32.xlu1 %v797_v1, %s3164_s15  ;;  %3128 = vmatprep.subr.bf16.mxu1 %v3127_v40  ;;  %v613_v1 = vmax.f32 %v539_v58, 0.0 }
 0x119   : > { %1442 = vrot.lane.b32.xlu0 %v1373_v8, %s3164_s15  ;;  %3130 = vmatpush3.bf16.msra.mxu1 %v3127_v40  ;;  %715 = vst.msk [vmem:[#allocation2 + $0x153] sm:$0xff] %vm624_vm0, %v614_v13 }
 0x11a   : > { %3132 = vmatprep.subr.bf16.mxu1 %v3131_v43  ;;  %714 = vst.msk [vmem:[#allocation2 + $0x143] sm:$0xff] %vm624_vm0, %v613_v1 }
 0x11c   : > { %1629 = vrot.lane.b32.xlu1 %v990_v7, %s3166_s17  ;;  %v3709_v18 = vld [vmem:[#allocation2 + $0x138] sm:$0xff] }
 0x11d   : > { %873 = vrot.lane.b32.xlu0 %v799_v12, %s3162_s11  ;;  %3134 = vmatpush3.bf16.msra.mxu1 %v3131_v43  ;;  %v3651_v46 = vld [vmem:[#allocation2 + $0x110] sm:$0xff]  ;;  %783 = vst.msk [vmem:[#allocation3 + $0xd0] sm:$0xff] %vm624_vm0, %v3709_v18 }
 0x11e   : > { %780 = vst.msk [vmem:[#allocation3 + $0xb8] sm:$0xff] %vm624_vm0, %v3651_v46 }
 0x120   : > { %875 = vrot.lane.b32.xlu1 %v1373_v8, %s3162_s11  ;;  %v3728_v30 = vld [vmem:[#allocation2 + $0x150] sm:$0xff] }
 0x121   : > { %1066 = vrot.lane.b32.xlu0 %v992_v16, %s3163_s12  ;;  %785 = vst.msk [vmem:[#allocation3 + $0xe0] sm:$0xff] %vm624_vm0, %v3728_v30 }
 0x124   : > { %1068 = vrot.lane.b32.xlu1 %v993_v17, %s3163_s12 }
 0x125   : > { %1247 = vrot.lane.b32.xlu0 %v3506_v44, %s3165_s16  ;;  %v2374_v44 = vld [vmem:[%s4565_s3 + $0x40] sm:$0xff] }
 0x126   : > { %3057 = vmatprep.subr.mxu1 %v2374_v44 }
 0x127   : > { %3058 = vmatpush3.msra.mxu1 %v2374_v44 }
 0x128   : > { %1635 = vrot.lane.b32.xlu1 %v993_v17, %s3166_s17  ;;  %v3707_v17 = vld [vmem:[#allocation2 + $0x140] sm:$0xff] }
 0x129   : > { %2014 = vrot.lane.b32.xlu0 %v1949_v19, %s3167_s20  ;;  %784 = vst.msk [vmem:[#allocation3 + $0xd8] sm:$0xff] %vm624_vm0, %v3707_v17 }
 0x12c   : > { %1249 = vrot.lane.b32.xlu1 %v3511_v47, %s3165_s16  ;;  %v3653_v47 = vld [vmem:[#allocation2 + $0x108] sm:$0xff] }
 0x12d   : > { %2207 = vrot.lane.b32.xlu0 %v2142_v23, %s3168_s21  ;;  %779 = vst.msk [vmem:[#allocation3 + $0xb0] sm:$0xff] %vm624_vm0, %v3653_v47 }
 0x130   : > { %1440 = vrot.lane.b32.xlu1 %v799_v12, %s3164_s15  ;;  %v615_v12 = vmax.f32 %v549_v9, 0.0 }
 0x131   : > { %1446 = vrot.lane.b32.xlu0 %v1949_v19, %s3164_s15 }
 0x132   : > { %716 = vst.msk [vmem:[#allocation2 + $0x15b] sm:$0xff] %vm624_vm0, %v615_v12  ;;  %v3811_v12 = vld [vmem:[#allocation2 + $0xfb] sm:$0xff] }
 0x134   : > { %1633 = vrot.lane.b32.xlu1 %v992_v16, %s3166_s17 }
 0x135   : > { %877 = vrot.lane.b32.xlu0 %v801_v24, %s3162_s11 }
 0x138   : > { %879 = vrot.lane.b32.xlu1 %v1949_v19, %s3162_s11 }
 0x139   : > { %1070 = vrot.lane.b32.xlu0 %v994_v28, %s3163_s12  ;;  %v3730_v31 = vld [vmem:[#allocation2 + $0x158] sm:$0xff] }
 0x13a   : > { %786 = vst.msk [vmem:[#allocation3 + $0xe8] sm:$0xff] %vm624_vm0, %v3730_v31 }
 0x13c   : > { %1072 = vrot.lane.b32.xlu1 %v2142_v23, %s3163_s12 }
 0x13d   : > { %1251 = vrot.lane.b32.xlu0 %v3520_v52, %s3165_s16 }
 0x140   : > { %1639 = vrot.lane.b32.xlu1 %v2142_v23, %s3166_s17 }
 0x141   : > { %1819 = vrot.lane.b32.xlu0 %v3520_v52, %s3169_s23  ;;  %v524_v52 = vadd.f32 %v3467_v2, %v523_v51 }
 0x143   : > { %v610_v54 = vmax.f32 %v524_v52, 0.0  ;;  %v3780_v52 = vld [vmem:[#allocation2 + $0xe6] sm:$0xff] }
 0x144   : > { %1253 = vrot.lane.b32.xlu1 %v3525_v55, %s3165_s16 }
 0x145   : > { %2012 = vrot.lane.b32.xlu0 %v801_v24, %s3167_s20  ;;  %711 = vst.msk [vmem:[#allocation2 + $0x123] sm:$0xff] %vm624_vm0, %v610_v54 }
 0x148   : > { %1821 = vrot.lane.b32.xlu1 %v3525_v55, %s3169_s23  ;;  %v3669_v55 = vld [vmem:[#allocation2 + $0xab] sm:$0xff] }
 0x149   : > { %2018 = vrot.lane.b32.xlu0 %v1951_v45, %s3167_s20 }
 0x14c   : > { %2205 = vrot.lane.b32.xlu1 %v994_v28, %s3168_s21  ;;  %v3687_v7 = vld [vmem:[#allocation2 + $0x128] sm:$0xff]  ;;  %v3689_v8 = vld [vmem:[#allocation2 + $0x120] sm:$0xff] }
 0x14d   : > { %2211 = vrot.lane.b32.xlu0 %v2144_v48, %s3168_s21  ;;  %782 = vst.msk [vmem:[#allocation3 + $0xc8] sm:$0xff] %vm624_vm0, %v3687_v7  ;;  %781 = vst.msk [vmem:[#allocation3 + $0xc0] sm:$0xff] %vm624_vm0, %v3689_v8 }
 0x150   : > { %1444 = vrot.lane.b32.xlu1 %v801_v24, %s3164_s15 }
 0x151   : > { %1450 = vrot.lane.b32.xlu0 %v1951_v45, %s3164_s15 }
 0x154   : > { %1637 = vrot.lane.b32.xlu1 %v994_v28, %s3166_s17 }
 0x155   : > { %881 = vrot.lane.b32.xlu0 %v3669_v55, %s3162_s11 }
 0x158   : > { %883 = vrot.lane.b32.xlu1 %v1951_v45, %s3162_s11 }
 0x159   : > { %1074 = vrot.lane.b32.xlu0 %v3676_v56, %s3163_s12 }
 0x15c   : > { %1076 = vrot.lane.b32.xlu1 %v2144_v48, %s3163_s12 }
 0x15d   : > { %1255 = vrot.lane.b32.xlu0 %v3534_v59, %s3165_s16 }
 0x160   : > { %1643 = vrot.lane.b32.xlu1 %v2144_v48, %s3166_s17 }
 0x161   : > { %1823 = vrot.lane.b32.xlu0 %v3534_v59, %s3169_s23  ;;  %v3031_v59 = vpop.f32.mrb[24].mxu0 }
 0x162   : > { %v559_v19 = vadd.f32 %v3031_v59, %v3467_v2  ;;  %v553_v20 = vpop.f32.mrb[25].mxu0  ;;  %v3828_v59 = vld [vmem:[#allocation2 + $0xf3] sm:$0xff] }
 0x163   : > { %v554_v23 = vadd.f32 %v3467_v2, %v553_v20 }
 0x164   : > { %1257 = vrot.lane.b32.xlu1 %v3538_v61, %s3165_s16  ;;  %v617_v25 = vmax.f32 %v559_v19, 0.0 }
 0x165   : > { %2016 = vrot.lane.b32.xlu0 %v3669_v55, %s3167_s20  ;;  %v616_v27 = vmax.f32 %v554_v23, 0.0  ;;  %v3835_v23 = vld [vmem:[#allocation2 + $0xf6] sm:$0xff] }
 0x166   : > { %v868_v14 = vpop.permute.xlu1 %867  ;;  %718 = vst.msk [vmem:[#allocation2 + $0x173] sm:$0xff] %vm624_vm0, %v617_v25 }
 0x167   : > { %957 = vst.msk [vmem:[#allocation3 + $0x38] sm:$0xff] %vm949_vm3, %v868_v14  ;;  %v866_v16 = vpop.permute.xlu0 %865 }
 0x168   : > { %956 = vst.msk [vmem:[#allocation3 + $0x30] sm:$0xff] %vm949_vm3, %v866_v16  ;;  %1825 = vrot.lane.b32.xlu1 %v3538_v61, %s3169_s23  ;;  %v2146_v61 = vld [vmem:[#allocation2 + $0xce] sm:$0xff] }
 0x169   : > { %2022 = vrot.lane.b32.xlu0 %v1953_v15, %s3167_s20  ;;  %717 = vst.msk [vmem:[#allocation2 + $0x16b] sm:$0xff] %vm624_vm0, %v616_v27 }
 0x16a   : > { %v1061_v24 = vpop.permute.xlu1 %1060 }
 0x16b   : > { %1150 = vst.msk [vmem:[#allocation3 + $0x38] sm:$0xff] %vm1142_vm4, %v1061_v24  ;;  %v1059_v26 = vpop.permute.xlu0 %1058 }
 0x16c   : > { %1149 = vst.msk [vmem:[#allocation3 + $0x30] sm:$0xff] %vm1142_vm4, %v1059_v26  ;;  %2209 = vrot.lane.b32.xlu1 %v3676_v56, %s3168_s21 }
 0x16d   : > { %2215 = vrot.lane.b32.xlu0 %v2146_v61, %s3168_s21 }
 0x16e   : > { %v1435_v28 = vpop.permute.xlu1 %1434 }
 0x16f   : > { %v1240_v29 = vpop.permute.xlu0 %1239 }
 0x170   : > { %1336 = vst.msk [vmem:[#allocation3] sm:$0xff] %vm1335_vm5, %v1240_v29  ;;  %1448 = vrot.lane.b32.xlu1 %v3669_v55, %s3164_s15  ;;  %v3745_v37 = vld [vmem:[#allocation2 + $0x168] sm:$0xff]  ;;  %v3747_v38 = vld [vmem:[#allocation2 + $0x170] sm:$0xff] }
 0x171   : > { %1454 = vrot.lane.b32.xlu0 %v1953_v15, %s3164_s15  ;;  %788 = vst.msk [vmem:[#allocation3 + $0xf8] sm:$0xff] %vm624_vm0, %v3747_v38  ;;  %787 = vst.msk [vmem:[#allocation3 + $0xf0] sm:$0xff] %vm624_vm0, %v3745_v37 }
 0x172   : > { %v1628_v32 = vpop.permute.xlu1 %1627 }
 0x173   : > { %v1433_v33 = vpop.permute.xlu0 %1432 }
 0x174   : > { %1529 = vst.msk [vmem:[#allocation3] sm:$0xff] %vm1528_vm6, %v1433_v33  ;;  %1641 = vrot.lane.b32.xlu1 %v3676_v56, %s3166_s17  ;;  %v807_v56 = vld [vmem:[#allocation2 + $0xdb] sm:$0xff] }
 0x175   : > { %885 = vrot.lane.b32.xlu0 %v805_v34, %s3162_s11 }
 0x176   : > { %v1242_v35 = vpop.permute.xlu1 %1241 }
 0x177   : > { %1337 = vst.msk [vmem:[#allocation3 + $0x8] sm:$0xff] %vm1335_vm5, %v1242_v35  ;;  %v1626_v36 = vpop.permute.xlu0 %1625 }
 0x178   : > { %1530 = vst.msk [vmem:[#allocation3 + $0x8] sm:$0xff] %vm1528_vm6, %v1435_v28  ;;  %887 = vrot.lane.b32.xlu1 %v1953_v15, %s3162_s11 }
 0x179   : > { %1722 = vst.msk [vmem:[#allocation3] sm:$0xff] %vm1721_vm7, %v1626_v36  ;;  %1723 = vst.msk [vmem:[#allocation3 + $0x8] sm:$0xff] %vm1721_vm7, %v1628_v32  ;;  %1078 = vrot.lane.b32.xlu0 %v998_v39, %s3163_s12  ;;  %v3861_v32 = vld [vmem:[#allocation2 + $0x113] sm:$0xff] }
 0x17a   : > { %v872_v40 = vpop.permute.xlu1 %871  ;;  %v3874_v36 = vld [vmem:[#allocation2 + $0x116] sm:$0xff] }
 0x17b   : > { %959 = vst.msk [vmem:[#allocation3 + $0x48] sm:$0xff] %vm949_vm3, %v872_v40  ;;  %v1439_v41 = vpop.permute.xlu0 %1438 }
 0x17c   : > { %1080 = vrot.lane.b32.xlu1 %v2146_v61, %s3163_s12 }
 0x17d   : > { %1259 = vrot.lane.b32.xlu0 %v3546_v62, %s3165_s16 }
 0x17e   : > { %v1065_v42 = vpop.permute.xlu1 %1064 }
 0x17f   : > { %1152 = vst.msk [vmem:[#allocation3 + $0x48] sm:$0xff] %vm1142_vm4, %v1065_v42  ;;  %v870_v43 = vpop.permute.xlu0 %869  ;;  %v3882_v42 = vld [vmem:[#allocation2 + $0x10b] sm:$0xff] }
 0x180   : > { %958 = vst.msk [vmem:[#allocation3 + $0x40] sm:$0xff] %vm949_vm3, %v870_v43  ;;  %1647 = vrot.lane.b32.xlu1 %v2146_v61, %s3166_s17 }
 0x181   : > { %1827 = vrot.lane.b32.xlu0 %v3546_v62, %s3169_s23 }
 0x182   : > { %v1632_v44 = vpop.permute.xlu1 %1631 }
 0x183   : > { %v1063_v45 = vpop.permute.xlu0 %1062 }
 0x184   : > { %1151 = vst.msk [vmem:[#allocation3 + $0x40] sm:$0xff] %vm1142_vm4, %v1063_v45  ;;  %1261 = vrot.lane.b32.xlu1 %v3549_v63, %s3165_s16 }
 0x185   : > { %2020 = vrot.lane.b32.xlu0 %v805_v34, %s3167_s20 }
 0x186   : > { %v1246_v48 = vpop.permute.xlu1 %1245 }
 0x187   : > { %1339 = vst.msk [vmem:[#allocation3 + $0x18] sm:$0xff] %vm1335_vm5, %v1246_v48  ;;  %v1244_v50 = vpop.permute.xlu0 %1243 }
 0x188   : > { %1532 = vst.msk [vmem:[#allocation3 + $0x18] sm:$0xff] %vm1528_vm6, %v1439_v41  ;;  %1829 = vrot.lane.b32.xlu1 %v3549_v63, %s3169_s23  ;;  %v3034_v41 = vpop.f32.mrb[26].mxu0 }
 0x189   : > { %1338 = vst.msk [vmem:[#allocation3 + $0x10] sm:$0xff] %vm1335_vm5, %v1244_v50  ;;  %2026 = vrot.lane.b32.xlu0 %v1955_v49, %s3167_s20  ;;  %v569_v43 = vadd.f32 %v3034_v41, %v3467_v2 }
 0x18a   : > { %1725 = vst.msk [vmem:[#allocation3 + $0x18] sm:$0xff] %vm1721_vm7, %v1632_v44  ;;  %v1437_v62 = vpop.permute.xlu1 %1436  ;;  %v563_v44 = vpop.f32.mrb[27].mxu0 }
 0x18b   : > { %1531 = vst.msk [vmem:[#allocation3 + $0x10] sm:$0xff] %vm1528_vm6, %v1437_v62  ;;  %v1443_v51 = vpop.permute.xlu0 %1442  ;;  %v564_v45 = vadd.f32 %v3467_v2, %v563_v44  ;;  %v3989_v44 = vld [vmem:[#allocation2 + $0x176] sm:$0xff] }
 0x18c   : > { %2213 = vrot.lane.b32.xlu1 %v998_v39, %s3168_s21 }
 0x18d   : > { %2219 = vrot.lane.b32.xlu0 %v3780_v52, %s3168_s21  ;;  %v618_v62 = vmax.f32 %v564_v45, 0.0  ;;  %v3995_v45 = vld [vmem:[#allocation2 + $0x16b] sm:$0xff] }
 0x18e   : > { %v1630_v53 = vpop.permute.xlu1 %1629 }
 0x18f   : > { %1724 = vst.msk [vmem:[#allocation3 + $0x10] sm:$0xff] %vm1721_vm7, %v1630_v53  ;;  %v874_v54 = vpop.permute.xlu0 %873 }
 0x190   : > { %960 = vst.msk [vmem:[#allocation3 + $0x50] sm:$0xff] %vm949_vm3, %v874_v54  ;;  %1452 = vrot.lane.b32.xlu1 %v805_v34, %s3164_s15 }
 0x191   : > { %1458 = vrot.lane.b32.xlu0 %v1955_v49, %s3164_s15  ;;  %719 = vst.msk [vmem:[#allocation2 + $0x183] sm:$0xff] %vm624_vm0, %v618_v62  ;;  %v4005_v62 = vld [vmem:[#allocation2 + $0x16e] sm:$0xff] }
 0x192   : > { %v876_v63 = vpop.permute.xlu1 %875 }
 0x193   : > { %961 = vst.msk [vmem:[#allocation3 + $0x58] sm:$0xff] %vm949_vm3, %v876_v63  ;;  %v1067_v55 = vpop.permute.xlu0 %1066 }
 0x194   : > { %1153 = vst.msk [vmem:[#allocation3 + $0x50] sm:$0xff] %vm1142_vm4, %v1067_v55  ;;  %1645 = vrot.lane.b32.xlu1 %v998_v39, %s3166_s17 }
 0x195   : > { %889 = vrot.lane.b32.xlu0 %v807_v56, %s3162_s11 }
 0x196   : > { %v1069_v57 = vpop.permute.xlu1 %1068 }
 0x197   : > { %1154 = vst.msk [vmem:[#allocation3 + $0x58] sm:$0xff] %vm1142_vm4, %v1069_v57  ;;  %v1248_v58 = vpop.permute.xlu0 %1247 }
 0x198   : > { %1340 = vst.msk [vmem:[#allocation3 + $0x20] sm:$0xff] %vm1335_vm5, %v1248_v58  ;;  %891 = vrot.lane.b32.xlu1 %v1955_v49, %s3162_s11  ;;  %v619_v49 = vmax.f32 %v569_v43, 0.0 }
 0x199   : > { %1082 = vrot.lane.b32.xlu0 %v1000_v60, %s3163_s12 }
 0x19a   : > { %v1636_v0 = vpop.permute.xlu1 %1635  ;;  %720 = vst.msk [vmem:[#allocation2 + $0x18b] sm:$0xff] %vm624_vm0, %v619_v49 }
 0x19b   : > { %v2015_v1 = vpop.permute.xlu0 %2014 }
 0x19c   : > { %1084 = vrot.lane.b32.xlu1 %v3780_v52, %s3163_s12 }
 0x19d   : > { %1263 = vrot.lane.b32.xlu0 %v3556_v3, %s3165_s16 }
 0x19e   : > { %v1250_v4 = vpop.permute.xlu1 %1249 }
 0x19f   : > { %1341 = vst.msk [vmem:[#allocation3 + $0x28] sm:$0xff] %vm1335_vm5, %v1250_v4  ;;  %v2208_v6 = vpop.permute.xlu0 %2207 }
 0x1a0   : > { %1534 = vst.msk [vmem:[#allocation3 + $0x28] sm:$0xff] %vm1528_vm6, %v1443_v51  ;;  %1265 = vrot.lane.b32.xlu1 %v3560_v5, %s3165_s16  ;;  %v3892_v51 = vld [vmem:[#allocation2 + $0x10e] sm:$0xff] }
 0x1a1   : > { %1727 = vst.msk [vmem:[#allocation3 + $0x28] sm:$0xff] %vm1721_vm7, %v1636_v0  ;;  %1831 = vrot.lane.b32.xlu0 %v3556_v3, %s3169_s23  ;;  %v3930_v0 = vld [vmem:[#allocation2 + $0x123] sm:$0xff] }
 0x1a2   : > { %v1441_v9 = vpop.permute.xlu1 %1440 }
 0x1a3   : > { %1533 = vst.msk [vmem:[#allocation3 + $0x20] sm:$0xff] %vm1528_vm6, %v1441_v9  ;;  %v1447_v10 = vpop.permute.xlu0 %1446 }
 0x1a4   : > { %1833 = vrot.lane.b32.xlu1 %v3560_v5, %s3169_s23  ;;  %v3821_v5 = vld [vmem:[#allocation2 + $0xfe] sm:$0xff] }
 0x1a5   : > { %2024 = vrot.lane.b32.xlu0 %v807_v56, %s3167_s20 }
 0x1a6   : > { %v1634_v11 = vpop.permute.xlu1 %1633 }
 0x1a7   : > { %1726 = vst.msk [vmem:[#allocation3 + $0x20] sm:$0xff] %vm1721_vm7, %v1634_v11  ;;  %v878_v13 = vpop.permute.xlu0 %877 }
 0x1a8   : > { %962 = vst.msk [vmem:[#allocation3 + $0x60] sm:$0xff] %vm949_vm3, %v878_v13  ;;  %2217 = vrot.lane.b32.xlu1 %v1000_v60, %s3168_s21 }
 0x1a9   : > { %2030 = vrot.lane.b32.xlu0 %v3811_v12, %s3167_s20 }
 0x1aa   : > { %v880_v3 = vpop.permute.xlu1 %879 }
 0x1ab   : > { %963 = vst.msk [vmem:[#allocation3 + $0x68] sm:$0xff] %vm949_vm3, %v880_v3  ;;  %v1071_v14 = vpop.permute.xlu0 %1070 }
 0x1ac   : > { %1155 = vst.msk [vmem:[#allocation3 + $0x60] sm:$0xff] %vm1142_vm4, %v1071_v14  ;;  %1456 = vrot.lane.b32.xlu1 %v807_v56, %s3164_s15 }
 0x1ad   : > { %2223 = vrot.lane.b32.xlu0 %v3821_v5, %s3168_s21 }
 0x1ae   : > { %v1073_v15 = vpop.permute.xlu1 %1072 }
 0x1af   : > { %1156 = vst.msk [vmem:[#allocation3 + $0x68] sm:$0xff] %vm1142_vm4, %v1073_v15  ;;  %v1252_v16 = vpop.permute.xlu0 %1251 }
 0x1b0   : > { %1342 = vst.msk [vmem:[#allocation3 + $0x30] sm:$0xff] %vm1335_vm5, %v1252_v16  ;;  %1649 = vrot.lane.b32.xlu1 %v1000_v60, %s3166_s17  ;;  %v3926_v60 = vld [vmem:[#allocation2 + $0x12e] sm:$0xff] }
 0x1b1   : > { %893 = vrot.lane.b32.xlu0 %v3828_v59, %s3162_s11 }
 0x1b2   : > { %v1640_v19 = vpop.permute.xlu1 %1639 }
 0x1b3   : > { %v1820_v20 = vpop.permute.xlu0 %1819 }
 0x1b4   : > { %1916 = vst.msk [vmem:[#allocation3] sm:$0xff] %vm1915_vm8, %v1820_v20  ;;  %895 = vrot.lane.b32.xlu1 %v3811_v12, %s3162_s11  ;;  %v3947_v20 = vld [vmem:[#allocation2 + $0x146] sm:$0xff] }
 0x1b5   : > { %1086 = vrot.lane.b32.xlu0 %v3835_v23, %s3163_s12 }
 0x1b6   : > { %v1254_v24 = vpop.permute.xlu1 %1253 }
 0x1b7   : > { %1343 = vst.msk [vmem:[#allocation3 + $0x38] sm:$0xff] %vm1335_vm5, %v1254_v24  ;;  %v2013_v25 = vpop.permute.xlu0 %2012 }
 0x1b8   : > { %1536 = vst.msk [vmem:[#allocation3 + $0x38] sm:$0xff] %vm1528_vm6, %v1447_v10  ;;  %1088 = vrot.lane.b32.xlu1 %v3821_v5, %s3163_s12  ;;  %v3939_v10 = vld [vmem:[#allocation2 + $0x126] sm:$0xff] }
 0x1b9   : > { %2109 = vst.msk [vmem:[#allocation3] sm:$0xff] %vm2108_vm9, %v2013_v25  ;;  %1267 = vrot.lane.b32.xlu0 %v3594_v21, %s3165_s16 }
 0x1ba   : > { %1729 = vst.msk [vmem:[#allocation3 + $0x38] sm:$0xff] %vm1721_vm7, %v1640_v19  ;;  %v1822_v26 = vpop.permute.xlu1 %1821 }
 0x1bb   : > { %1917 = vst.msk [vmem:[#allocation3 + $0x8] sm:$0xff] %vm1915_vm8, %v1822_v26  ;;  %v3848_v27 = vpop.permute.xlu0 %2018  ;;  %v3958_v26 = vld [vmem:[#allocation2 + $0x15b] sm:$0xff] }
 0x1bc   : > { %2110 = vst.msk [vmem:[#allocation3 + $0x8] sm:$0xff] %vm2108_vm9, %v2015_v1  ;;  %1269 = vrot.lane.b32.xlu1 %v3596_v22, %s3165_s16  ;;  %v3934_v1 = vld [vmem:[#allocation2 + $0x143] sm:$0xff] }
 0x1bd   : > { %2303 = vst.msk [vmem:[#allocation3 + $0x8] sm:$0xff] %vm2301_vm10, %v2208_v6  ;;  %1835 = vrot.lane.b32.xlu0 %v3594_v21, %s3169_s23 }
 0x1be   : > { %v2206_v61 = vpop.permute.xlu1 %2205 }
 0x1bf   : > { %2302 = vst.msk [vmem:[#allocation3] sm:$0xff] %vm2301_vm10, %v2206_v61  ;;  %v2212_v28 = vpop.permute.xlu0 %2211  ;;  %v3037_v9 = vpop.f32.mrb[28].mxu0 }
 0x1c0   : > { %1837 = vrot.lane.b32.xlu1 %v3596_v22, %s3169_s23  ;;  %v579_v11 = vadd.f32 %v3037_v9, %v3467_v2  ;;  %v573_v13 = vpop.f32.mrb[29].mxu0 }
 0x1c1   : > { %2028 = vrot.lane.b32.xlu0 %v3828_v59, %s3167_s20  ;;  %v574_v3 = vadd.f32 %v3467_v2, %v573_v13  ;;  %v3953_v2 = vld [vmem:[#allocation2 + $0x13b] sm:$0xff] }
 0x1c2   : > { %v1445_v29 = vpop.permute.xlu1 %1444  ;;  %v621_v16 = vmax.f32 %v579_v11, 0.0 }
 0x1c3   : > { %1535 = vst.msk [vmem:[#allocation3 + $0x30] sm:$0xff] %vm1528_vm6, %v1445_v29  ;;  %v1451_v33 = vpop.permute.xlu0 %1450  ;;  %v620_v25 = vmax.f32 %v574_v3, 0.0 }
 0x1c4   : > { %2221 = vrot.lane.b32.xlu1 %v3835_v23, %s3168_s21  ;;  %v2335_v35 = vld [vmem:[#allocation3 + $0x8] sm:$0xff]  ;;  %722 = vst.msk [vmem:[#allocation2 + $0x1a3] sm:$0xff] %vm624_vm0, %v621_v16 }
 0x1c5   : > { %2034 = vrot.lane.b32.xlu0 %v3861_v32, %s3167_s20  ;;  %721 = vst.msk [vmem:[#allocation2 + $0x19b] sm:$0xff] %vm624_vm0, %v620_v25 }
 0x1c6   : > { %v1638_v21 = vpop.permute.xlu1 %1637  ;;  %v2334_v34 = vld [vmem:[#allocation3] sm:$0xff] }
 0x1c7   : > { %1728 = vst.msk [vmem:[#allocation3 + $0x30] sm:$0xff] %vm1721_vm7, %v1638_v21  ;;  %3059 = vmatprep.mubr.msk.f32.mxu1 %vm2382_vm11, %v2334_v34  ;;  %v882_v22 = vpop.permute.xlu0 %881  ;;  %v3970_v21 = vld [vmem:[#allocation2 + $0x15e] sm:$0xff]  ;;  %v3975_v34 = vld [vmem:[#allocation2 + $0x153] sm:$0xff] }
 0x1c8   : > { %964 = vst.msk [vmem:[#allocation3 + $0x70] sm:$0xff] %vm949_vm3, %v882_v22  ;;  %899 = vrot.lane.b32.xlu1 %v3861_v32, %s3162_s11  ;;  %3060 = vmatmul.mubr.msk.f32.vlgmr.msra.gmra.mrb[0].mxu1 %vm2382_vm11, %v2335_v35  ;;  %v3979_v22 = vld [vmem:[#allocation2 + $0x173] sm:$0xff] }
 0x1c9   : > { %2227 = vrot.lane.b32.xlu0 %v3874_v36, %s3168_s21 }
 0x1ca   : > { %v884_v39 = vpop.permute.xlu1 %883 }
 0x1cb   : > { %965 = vst.msk [vmem:[#allocation3 + $0x78] sm:$0xff] %vm949_vm3, %v884_v39  ;;  %v1075_v40 = vpop.permute.xlu0 %1074 }
 0x1cc   : > { %1157 = vst.msk [vmem:[#allocation3 + $0x70] sm:$0xff] %vm1142_vm4, %v1075_v40  ;;  %1092 = vrot.lane.b32.xlu1 %v3874_v36, %s3163_s12  ;;  %v3984_v40 = vld [vmem:[#allocation2 + $0x156] sm:$0xff] }
 0x1cd   : > { %897 = vrot.lane.b32.xlu0 %v3882_v42, %s3162_s11 }
 0x1ce   : > { %v1077_v48 = vpop.permute.xlu1 %1076 }
 0x1cf   : > { %1158 = vst.msk [vmem:[#allocation3 + $0x78] sm:$0xff] %vm1142_vm4, %v1077_v48  ;;  %v1256_v50 = vpop.permute.xlu0 %1255 }
 0x1d0   : > { %1344 = vst.msk [vmem:[#allocation3 + $0x40] sm:$0xff] %vm1335_vm5, %v1256_v50  ;;  %1273 = vrot.lane.b32.xlu1 %v3651_v46, %s3165_s16 }
 0x1d1   : > { %1090 = vrot.lane.b32.xlu0 %v3892_v51, %s3163_s12 }
 0x1d2   : > { %v1644_v53 = vpop.permute.xlu1 %1643 }
 0x1d3   : > { %v1824_v54 = vpop.permute.xlu0 %1823 }
 0x1d4   : > { %1918 = vst.msk [vmem:[#allocation3 + $0x10] sm:$0xff] %vm1915_vm8, %v1824_v54  ;;  %1841 = vrot.lane.b32.xlu1 %v3651_v46, %s3169_s23  ;;  %v3911_v46 = vld [vmem:[#allocation2 + $0x12b] sm:$0xff] }
 0x1d5   : > { %1271 = vrot.lane.b32.xlu0 %v3653_v47, %s3165_s16  ;;  %v3040_v50 = vpop.f32.mrb[30].mxu0 }
 0x1d6   : > { %v1258_v63 = vpop.permute.xlu1 %1257 }
 0x1d7   : > { %1345 = vst.msk [vmem:[#allocation3 + $0x48] sm:$0xff] %vm1335_vm5, %v1258_v63  ;;  %v2017_v55 = vpop.permute.xlu0 %2016  ;;  %v583_v63 = vpop.f32.mrb[31].mxu0 }
 0x1d8   : > { %1538 = vst.msk [vmem:[#allocation3 + $0x48] sm:$0xff] %vm1528_vm6, %v1451_v33  ;;  %2225 = vrot.lane.b32.xlu1 %v3892_v51, %s3168_s21 }
 0x1d9   : > { %2111 = vst.msk [vmem:[#allocation3 + $0x10] sm:$0xff] %vm2108_vm9, %v2017_v55  ;;  %1839 = vrot.lane.b32.xlu0 %v3653_v47, %s3169_s23 }
 0x1da   : > { %1731 = vst.msk [vmem:[#allocation3 + $0x48] sm:$0xff] %vm1721_vm7, %v1644_v53  ;;  %v1826_v56 = vpop.permute.xlu1 %1825  ;;  %v3152_v53 = vld [vmem:[%s4564_s2] ss:$0 sm:$0xff] }
 0x1db   : > { %1919 = vst.msk [vmem:[#allocation3 + $0x18] sm:$0xff] %vm1915_vm8, %v1826_v56  ;;  %v3914_v57 = vpop.permute.xlu0 %2022  ;;  %v589_v54 = vadd.f32 %v3152_v53, %v3040_v50  ;;  %v584_v55 = vadd.f32 %v3152_v53, %v583_v63 }
 0x1dc   : > { %2112 = vst.msk [vmem:[#allocation3 + $0x18] sm:$0xff] %vm2108_vm9, %v3848_v27  ;;  %903 = vrot.lane.b32.xlu1 %v3911_v46, %s3162_s11 }
 0x1dd   : > { %2305 = vst.msk [vmem:[#allocation3 + $0x18] sm:$0xff] %vm2301_vm10, %v2212_v28  ;;  %2032 = vrot.lane.b32.xlu0 %v3882_v42, %s3167_s20  ;;  %v3965_v28 = vld [vmem:[#allocation2 + $0x13e] sm:$0xff] }
 0x1de   : > { %v2210_v58 = vpop.permute.xlu1 %2209 }
 0x1df   : > { %2304 = vst.msk [vmem:[#allocation3 + $0x10] sm:$0xff] %vm2301_vm10, %v2210_v58  ;;  %v3924_v47 = vpop.permute.xlu0 %2215  ;;  %v622_v58 = vmax.f32 %v584_v55, 0.0 }
 0x1e0   : > { %1096 = vrot.lane.b32.xlu1 %v3926_v60, %s3163_s12 }
 0x1e1   : > { %901 = vrot.lane.b32.xlu0 %v3930_v0, %s3162_s11  ;;  %723 = vst.msk [vmem:[#allocation2 + $0x1b3] sm:$0xff] %vm624_vm0, %v622_v58 }
 0x1e2   : > { %v1449_v4 = vpop.permute.xlu1 %1448 }
 0x1e3   : > { %1537 = vst.msk [vmem:[#allocation3 + $0x40] sm:$0xff] %vm1528_vm6, %v1449_v4  ;;  %v1455_v6 = vpop.permute.xlu0 %1454 }
 0x1e4   : > { %907 = vrot.lane.b32.xlu1 %v3934_v1, %s3162_s11  ;;  %v2337_v24 = vld [vmem:[#allocation3 + $0x18] sm:$0xff] }
 0x1e5   : > { %1094 = vrot.lane.b32.xlu0 %v3939_v10, %s3163_s12 }
 0x1e6   : > { %v1642_v14 = vpop.permute.xlu1 %1641  ;;  %v2336_v15 = vld [vmem:[#allocation3 + $0x10] sm:$0xff] }
 0x1e7   : > { %1730 = vst.msk [vmem:[#allocation3 + $0x40] sm:$0xff] %vm1721_vm7, %v1642_v14  ;;  %3062 = vmatprep.mubr.msk.f32.mxu1 %vm2382_vm11, %v2336_v15  ;;  %v886_v19 = vpop.permute.xlu0 %885 }
 0x1e8   : > { %966 = vst.msk [vmem:[#allocation3 + $0x80] sm:$0xff] %vm949_vm3, %v886_v19  ;;  %1100 = vrot.lane.b32.xlu1 %v3947_v20, %s3163_s12  ;;  %3063 = vmatmul.mubr.msk.f32.gmra.mrb[2].mxu1 %vm2382_vm11, %v2337_v24 }
 0x1e9   : > { %905 = vrot.lane.b32.xlu0 %v3953_v2, %s3162_s11 }
 0x1ea   : > { %v888_v27 = vpop.permute.xlu1 %887 }
 0x1eb   : > { %967 = vst.msk [vmem:[#allocation3 + $0x88] sm:$0xff] %vm949_vm3, %v888_v27  ;;  %v1079_v61 = vpop.permute.xlu0 %1078 }
 0x1ec   : > { %1159 = vst.msk [vmem:[#allocation3 + $0x80] sm:$0xff] %vm1142_vm4, %v1079_v61  ;;  %911 = vrot.lane.b32.xlu1 %v3958_v26, %s3162_s11 }
 0x1ed   : > { %1098 = vrot.lane.b32.xlu0 %v3965_v28, %s3163_s12 }
 0x1ee   : > { %v1081_v29 = vpop.permute.xlu1 %1080 }
 0x1ef   : > { %1160 = vst.msk [vmem:[#allocation3 + $0x88] sm:$0xff] %vm1142_vm4, %v1081_v29  ;;  %v1260_v33 = vpop.permute.xlu0 %1259 }
 0x1f0   : > { %1346 = vst.msk [vmem:[#allocation3 + $0x50] sm:$0xff] %vm1335_vm5, %v1260_v33  ;;  %1104 = vrot.lane.b32.xlu1 %v3970_v21, %s3163_s12 }
 0x1f1   : > { %909 = vrot.lane.b32.xlu0 %v3975_v34, %s3162_s11 }
 0x1f2   : > { %v1648_v35 = vpop.permute.xlu1 %1647 }
 0x1f3   : > { %v1828_v39 = vpop.permute.xlu0 %1827 }
 0x1f4   : > { %1920 = vst.msk [vmem:[#allocation3 + $0x20] sm:$0xff] %vm1915_vm8, %v1828_v39  ;;  %915 = vrot.lane.b32.xlu1 %v3979_v22, %s3162_s11 }
 0x1f5   : > { %1102 = vrot.lane.b32.xlu0 %v3984_v40, %s3163_s12 }
 0x1f6   : > { %v1262_v41 = vpop.permute.xlu1 %1261 }
 0x1f7   : > { %1347 = vst.msk [vmem:[#allocation3 + $0x58] sm:$0xff] %vm1335_vm5, %v1262_v41  ;;  %v2021_v43 = vpop.permute.xlu0 %2020 }
 0x1f8   : > { %1540 = vst.msk [vmem:[#allocation3 + $0x58] sm:$0xff] %vm1528_vm6, %v1455_v6  ;;  %1108 = vrot.lane.b32.xlu1 %v3989_v44, %s3163_s12 }
 0x1f9   : > { %2113 = vst.msk [vmem:[#allocation3 + $0x20] sm:$0xff] %vm2108_vm9, %v2021_v43  ;;  %913 = vrot.lane.b32.xlu0 %v3995_v45, %s3162_s11 }
 0x1fa   : > { %1733 = vst.msk [vmem:[#allocation3 + $0x58] sm:$0xff] %vm1721_vm7, %v1648_v35  ;;  %v1830_v48 = vpop.permute.xlu1 %1829 }
 0x1fb   : > { %1921 = vst.msk [vmem:[#allocation3 + $0x28] sm:$0xff] %vm1915_vm8, %v1830_v48  ;;  %v2027_v49 = vpop.permute.xlu0 %2026 }
 0x1fc   : > { %2114 = vst.msk [vmem:[#allocation3 + $0x28] sm:$0xff] %vm2108_vm9, %v3914_v57  ;;  %1651 = vrot.lane.b32.xlu1 %v3780_v52, %s3166_s17  ;;  %v623_v57 = vmax.f32 %v589_v54, 0.0 }
 0x1fd   : > { %2307 = vst.msk [vmem:[#allocation3 + $0x28] sm:$0xff] %vm2301_vm10, %v3924_v47  ;;  %1106 = vrot.lane.b32.xlu0 %v4005_v62, %s3163_s12 }
 0x1fe   : > { %v2214_v56 = vpop.permute.xlu1 %2213  ;;  %724 = vst.msk [vmem:[#allocation2 + $0x1bb] sm:$0xff] %vm624_vm0, %v623_v57 }
 0x1ff   : > { %2306 = vst.msk [vmem:[#allocation3 + $0x20] sm:$0xff] %vm2301_vm10, %v2214_v56  ;;  %v2220_v52 = vpop.permute.xlu0 %2219 }
 0x200   : > { %1845 = vrot.lane.b32.xlu1 %v3687_v7, %s3169_s23 }
 0x201   : > { %1843 = vrot.lane.b32.xlu0 %v3689_v8, %s3169_s23 }
 0x202   : > { %v1453_v47 = vpop.permute.xlu1 %1452 }
 0x203   : > { %1539 = vst.msk [vmem:[#allocation3 + $0x50] sm:$0xff] %vm1528_vm6, %v1453_v47  ;;  %v1459_v4 = vpop.permute.xlu0 %1458  ;;  %v4155_v47 = vld [vmem:[#allocation2 + $0x180] sm:$0xff] }
 0x204   : > { %1460 = vrot.lane.b32.xlu1 %v3828_v59, %s3164_s15  ;;  %v2339_v13 = vld [vmem:[#allocation3 + $0x28] sm:$0xff] }
 0x205   : > { %2036 = vrot.lane.b32.xlu0 %v3930_v0, %s3167_s20 }
 0x206   : > { %v1646_v6 = vpop.permute.xlu1 %1645  ;;  %v2338_v9 = vld [vmem:[#allocation3 + $0x20] sm:$0xff] }
 0x207   : > { %1732 = vst.msk [vmem:[#allocation3 + $0x50] sm:$0xff] %vm1721_vm7, %v1646_v6  ;;  %3065 = vmatprep.mubr.msk.f32.mxu1 %vm2382_vm11, %v2338_v9  ;;  %v890_v11 = vpop.permute.xlu0 %889  ;;  %v4166_v9 = vld [vmem:[#allocation2 + $0x183] sm:$0xff] }
 0x208   : > { %968 = vst.msk [vmem:[#allocation3 + $0x90] sm:$0xff] %vm949_vm3, %v890_v11  ;;  %2229 = vrot.lane.b32.xlu1 %v3939_v10, %s3168_s21  ;;  %3066 = vmatmul.mubr.msk.f32.gmra.mrb[4].mxu1 %vm2382_vm11, %v2339_v13 }
 0x209   : > { %2038 = vrot.lane.b32.xlu0 %v3911_v46, %s3167_s20 }
 0x20a   : > { %v892_v59 = vpop.permute.xlu1 %891 }
 0x20b   : > { %969 = vst.msk [vmem:[#allocation3 + $0x98] sm:$0xff] %vm949_vm3, %v892_v59  ;;  %v1083_v3 = vpop.permute.xlu0 %1082 }
 0x20c   : > { %1161 = vst.msk [vmem:[#allocation3 + $0x90] sm:$0xff] %vm1142_vm4, %v1083_v3  ;;  %1653 = vrot.lane.b32.xlu1 %v3835_v23, %s3166_s17 }
 0x20d   : > { %1462 = vrot.lane.b32.xlu0 %v3811_v12, %s3164_s15 }
 0x20e   : > { %v1085_v14 = vpop.permute.xlu1 %1084 }
 0x20f   : > { %1162 = vst.msk [vmem:[#allocation3 + $0x98] sm:$0xff] %vm1142_vm4, %v1085_v14  ;;  %v1264_v15 = vpop.permute.xlu0 %1263  ;;  %v4182_v14 = vld [vmem:[#allocation2 + $0x186] sm:$0xff] }
 0x210   : > { %1348 = vst.msk [vmem:[#allocation3 + $0x60] sm:$0xff] %vm1335_vm5, %v1264_v15  ;;  %1655 = vrot.lane.b32.xlu1 %v3821_v5, %s3166_s17  ;;  %v4187_v15 = vld [vmem:[#allocation2 + $0x18b] sm:$0xff] }
 0x211   : > { %2231 = vrot.lane.b32.xlu0 %v3926_v60, %s3168_s21 }
 0x212   : > { %v1266_v16 = vpop.permute.xlu1 %1265 }
 0x213   : > { %1349 = vst.msk [vmem:[#allocation3 + $0x68] sm:$0xff] %vm1335_vm5, %v1266_v16  ;;  %v1832_v19 = vpop.permute.xlu0 %1831 }
 0x214   : > { %1542 = vst.msk [vmem:[#allocation3 + $0x68] sm:$0xff] %vm1528_vm6, %v1459_v4  ;;  %1849 = vrot.lane.b32.xlu1 %v3707_v17, %s3169_s23 }
 0x215   : > { %1922 = vst.msk [vmem:[#allocation3 + $0x30] sm:$0xff] %vm1915_vm8, %v1832_v19  ;;  %1847 = vrot.lane.b32.xlu0 %v3709_v18, %s3169_s23 }
 0x216   : > { %v1834_v12 = vpop.permute.xlu1 %1833 }
 0x217   : > { %1923 = vst.msk [vmem:[#allocation3 + $0x38] sm:$0xff] %vm1915_vm8, %v1834_v12  ;;  %v2025_v5 = vpop.permute.xlu0 %2024  ;;  %v4201_v12 = vld [vmem:[#allocation2 + $0x18e] sm:$0xff] }
 0x218   : > { %2116 = vst.msk [vmem:[#allocation3 + $0x38] sm:$0xff] %vm2108_vm9, %v2027_v49  ;;  %2115 = vst.msk [vmem:[#allocation3 + $0x30] sm:$0xff] %vm2108_vm9, %v2025_v5  ;;  %1464 = vrot.lane.b32.xlu1 %v3882_v42, %s3164_s15 }
 0x219   : > { %2309 = vst.msk [vmem:[#allocation3 + $0x38] sm:$0xff] %vm2301_vm10, %v2220_v52  ;;  %2040 = vrot.lane.b32.xlu0 %v3953_v2, %s3167_s20 }
 0x21a   : > { %v2218_v23 = vpop.permute.xlu1 %2217 }
 0x21b   : > { %2308 = vst.msk [vmem:[#allocation3 + $0x30] sm:$0xff] %vm2301_vm10, %v2218_v23  ;;  %v2031_v24 = vpop.permute.xlu0 %2030  ;;  %v4205_v23 = vld [vmem:[#allocation2 + $0x198] sm:$0xff] }
 0x21c   : > { %2233 = vrot.lane.b32.xlu1 %v3965_v28, %s3168_s21 }
 0x21d   : > { %2042 = vrot.lane.b32.xlu0 %v3934_v1, %s3167_s20 }
 0x21e   : > { %v1457_v25 = vpop.permute.xlu1 %1456 }
 0x21f   : > { %1541 = vst.msk [vmem:[#allocation3 + $0x60] sm:$0xff] %vm1528_vm6, %v1457_v25  ;;  %v2224_v27 = vpop.permute.xlu0 %2223  ;;  %v4219_v25 = vld [vmem:[#allocation2 + $0x1a0] sm:$0xff] }
 0x220   : > { %1657 = vrot.lane.b32.xlu1 %v3892_v51, %s3166_s17  ;;  %v2341_v33 = vld [vmem:[#allocation3 + $0x38] sm:$0xff] }
 0x221   : > { %1466 = vrot.lane.b32.xlu0 %v3861_v32, %s3164_s15 }
 0x222   : > { %v1650_v42 = vpop.permute.xlu1 %1649  ;;  %v2340_v61 = vld [vmem:[#allocation3 + $0x30] sm:$0xff] }
 0x223   : > { %1734 = vst.msk [vmem:[#allocation3 + $0x60] sm:$0xff] %vm1721_vm7, %v1650_v42  ;;  %v894_v29 = vpop.permute.xlu0 %893  ;;  %3068 = vmatprep.mubr.msk.f32.mxu1 %vm2382_vm11, %v2340_v61 }
 0x224   : > { %970 = vst.msk [vmem:[#allocation3 + $0xa0] sm:$0xff] %vm949_vm3, %v894_v29  ;;  %1659 = vrot.lane.b32.xlu1 %v3874_v36, %s3166_s17  ;;  %3069 = vmatmul.mubr.msk.f32.gmra.mrb[6].mxu1 %vm2382_vm11, %v2341_v33  ;;  %v4230_v29 = vld [vmem:[#allocation2 + $0x19e] sm:$0xff] }
 0x225   : > { %2235 = vrot.lane.b32.xlu0 %v3947_v20, %s3168_s21  ;;  %v4235_v33 = vld [vmem:[#allocation2 + $0x1a3] sm:$0xff] }
 0x226   : > { %v896_v51 = vpop.permute.xlu1 %895 }
 0x227   : > { %971 = vst.msk [vmem:[#allocation3 + $0xa8] sm:$0xff] %vm949_vm3, %v896_v51  ;;  %v1087_v32 = vpop.permute.xlu0 %1086 }
 0x228   : > { %1163 = vst.msk [vmem:[#allocation3 + $0xa0] sm:$0xff] %vm1142_vm4, %v1087_v32  ;;  %1275 = vrot.lane.b32.xlu1 %v3689_v8, %s3165_s16 }
 0x229   : > { %1851 = vrot.lane.b32.xlu0 %v3728_v30, %s3169_s23 }
 0x22a   : > { %v1089_v35 = vpop.permute.xlu1 %1088 }
 0x22b   : > { %1164 = vst.msk [vmem:[#allocation3 + $0xa8] sm:$0xff] %vm1142_vm4, %v1089_v35  ;;  %v1268_v36 = vpop.permute.xlu0 %1267 }
 0x22c   : > { %1350 = vst.msk [vmem:[#allocation3 + $0x70] sm:$0xff] %vm1335_vm5, %v1268_v36  ;;  %2044 = vrot.lane.b32.xlu1 %v3975_v34, %s3167_s20  ;;  %v4250_v36 = vld [vmem:[#allocation2 + $0x1a6] sm:$0xff] }
 0x22d   : > { %1853 = vrot.lane.b32.xlu0 %v3730_v31, %s3169_s23 }
 0x22e   : > { %v1270_v39 = vpop.permute.xlu1 %1269 }
 0x22f   : > { %1351 = vst.msk [vmem:[#allocation3 + $0x78] sm:$0xff] %vm1335_vm5, %v1270_v39  ;;  %v1836_v41 = vpop.permute.xlu0 %1835  ;;  %v4254_v39 = vld [vmem:[#allocation2 + $0x1b0] sm:$0xff] }
 0x230   : > { %1924 = vst.msk [vmem:[#allocation3 + $0x40] sm:$0xff] %vm1915_vm8, %v1836_v41  ;;  %1468 = vrot.lane.b32.xlu1 %v3930_v0, %s3164_s15 }
 0x231   : > { %1277 = vrot.lane.b32.xlu0 %v3687_v7, %s3165_s16 }
 0x232   : > { %v1838_v8 = vpop.permute.xlu1 %1837 }
 0x233   : > { %1925 = vst.msk [vmem:[#allocation3 + $0x48] sm:$0xff] %vm1915_vm8, %v1838_v8  ;;  %v2029_v43 = vpop.permute.xlu0 %2028  ;;  %v4263_v8 = vld [vmem:[#allocation2 + $0x1b3] sm:$0xff] }
 0x234   : > { %2118 = vst.msk [vmem:[#allocation3 + $0x48] sm:$0xff] %vm2108_vm9, %v2031_v24  ;;  %2117 = vst.msk [vmem:[#allocation3 + $0x40] sm:$0xff] %vm2108_vm9, %v2029_v43  ;;  %2237 = vrot.lane.b32.xlu1 %v3984_v40, %s3168_s21  ;;  %v4214_v24 = vld [vmem:[#allocation2 + $0x19b] sm:$0xff] }
 0x235   : > { %2311 = vst.msk [vmem:[#allocation3 + $0x48] sm:$0xff] %vm2301_vm10, %v2224_v27  ;;  %2046 = vrot.lane.b32.xlu0 %v3958_v26, %s3167_s20 }
 0x236   : > { %v2222_v0 = vpop.permute.xlu1 %2221 }
 0x237   : > { %2310 = vst.msk [vmem:[#allocation3 + $0x40] sm:$0xff] %vm2301_vm10, %v2222_v0  ;;  %v2035_v7 = vpop.permute.xlu0 %2034  ;;  %v4269_v0 = vld [vmem:[#allocation2 + $0x1b8] sm:$0xff] }
 0x238   : > { %1661 = vrot.lane.b32.xlu1 %v3939_v10, %s3166_s17 }
 0x239   : > { %1470 = vrot.lane.b32.xlu0 %v3911_v46, %s3164_s15 }
 0x23a   : > { %v900_v48 = vpop.permute.xlu1 %899 }
 0x23b   : > { %973 = vst.msk [vmem:[#allocation3 + $0xb8] sm:$0xff] %vm949_vm3, %v900_v48  ;;  %v2228_v49 = vpop.permute.xlu0 %2227 }
 0x23c   : > { %1663 = vrot.lane.b32.xlu1 %v3926_v60, %s3166_s17  ;;  %v2343_v10 = vld [vmem:[#allocation3 + $0x48] sm:$0xff] }
 0x23d   : > { %2239 = vrot.lane.b32.xlu0 %v3970_v21, %s3168_s21 }
 0x23e   : > { %v1093_v50 = vpop.permute.xlu1 %1092  ;;  %v2342_v53 = vld [vmem:[#allocation3 + $0x40] sm:$0xff] }
 0x23f   : > { %1166 = vst.msk [vmem:[#allocation3 + $0xb8] sm:$0xff] %vm1142_vm4, %v1093_v50  ;;  %v898_v54 = vpop.permute.xlu0 %897  ;;  %3071 = vmatprep.mubr.msk.f32.mxu1 %vm2382_vm11, %v2342_v53  ;;  %v4280_v53 = vld [vmem:[#allocation2 + $0x1b6] sm:$0xff] }
 0x240   : > { %972 = vst.msk [vmem:[#allocation3 + $0xb0] sm:$0xff] %vm949_vm3, %v898_v54  ;;  %1279 = vrot.lane.b32.xlu1 %v3709_v18, %s3165_s16  ;;  %3072 = vmatmul.mubr.msk.f32.gmra.mrb[8].mxu1 %vm2382_vm11, %v2343_v10  ;;  %v4285_v54 = vld [vmem:[#allocation2 + $0x1bb] sm:$0xff] }
 0x241   : > { %1855 = vrot.lane.b32.xlu0 %v3745_v37, %s3169_s23 }
 0x242   : > { %v1274_v46 = vpop.permute.xlu1 %1273 }
 0x243   : > { %1353 = vst.msk [vmem:[#allocation3 + $0x88] sm:$0xff] %vm1335_vm5, %v1274_v46  ;;  %v1091_v60 = vpop.permute.xlu0 %1090 }
 0x244   : > { %1165 = vst.msk [vmem:[#allocation3 + $0xb0] sm:$0xff] %vm1142_vm4, %v1091_v60  ;;  %2048 = vrot.lane.b32.xlu1 %v3995_v45, %s3167_s20 }
 0x245   : > { %1857 = vrot.lane.b32.xlu0 %v3747_v38, %s3169_s23 }
 0x246   : > { %v1842_v63 = vpop.permute.xlu1 %1841 }
 0x247   : > { %1927 = vst.msk [vmem:[#allocation3 + $0x58] sm:$0xff] %vm1915_vm8, %v1842_v63  ;;  %v1272_v18 = vpop.permute.xlu0 %1271  ;;  %v4299_v63 = vld [vmem:[%s4566_s4] ss:$0 sm:$0xff] }
 0x248   : > { %2120 = vst.msk [vmem:[#allocation3 + $0x58] sm:$0xff] %vm2108_vm9, %v2035_v7  ;;  %1472 = vrot.lane.b32.xlu1 %v3953_v2, %s3164_s15 }
 0x249   : > { %1352 = vst.msk [vmem:[#allocation3 + $0x80] sm:$0xff] %vm1335_vm5, %v1272_v18  ;;  %1281 = vrot.lane.b32.xlu0 %v3707_v17, %s3165_s16 }
 0x24a   : > { %2313 = vst.msk [vmem:[#allocation3 + $0x58] sm:$0xff] %vm2301_vm10, %v2228_v49  ;;  %v2226_v55 = vpop.permute.xlu1 %2225 }
 0x24b   : > { %v1840_v56 = vpop.permute.xlu0 %1839 }
 0x24c   : > { %1926 = vst.msk [vmem:[#allocation3 + $0x50] sm:$0xff] %vm1915_vm8, %v1840_v56  ;;  %2241 = vrot.lane.b32.xlu1 %v4005_v62, %s3168_s21 }
 0x24d   : > { %2050 = vrot.lane.b32.xlu0 %v3979_v22, %s3167_s20 }
 0x24e   : > { %v904_v57 = vpop.permute.xlu1 %903 }
 0x24f   : > { %975 = vst.msk [vmem:[#allocation3 + $0xc8] sm:$0xff] %vm949_vm3, %v904_v57  ;;  %v2033_v52 = vpop.permute.xlu0 %2032 }
 0x250   : > { %2119 = vst.msk [vmem:[#allocation3 + $0x50] sm:$0xff] %vm2108_vm9, %v2033_v52  ;;  %1665 = vrot.lane.b32.xlu1 %v3965_v28, %s3166_s17 }
 0x251   : > { %2312 = vst.msk [vmem:[#allocation3 + $0x50] sm:$0xff] %vm2301_vm10, %v2226_v55  ;;  %1474 = vrot.lane.b32.xlu0 %v3934_v1, %s3164_s15 }
 0x252   : > { %v1097_v17 = vpop.permute.xlu1 %1096 }
 0x253   : > { %1168 = vst.msk [vmem:[#allocation3 + $0xc8] sm:$0xff] %vm1142_vm4, %v1097_v17  ;;  %v902_v2 = vpop.permute.xlu0 %901  ;;  %v4306_v17 = vld [vmem:[#allocation2 + $0x1be] sm:$0xff] }
 0x254   : > { %974 = vst.msk [vmem:[#allocation3 + $0xc0] sm:$0xff] %vm949_vm3, %v902_v2  ;;  %1667 = vrot.lane.b32.xlu1 %v3947_v20, %s3166_s17  ;;  %v2345_v20 = vld [vmem:[#allocation3 + $0x58] sm:$0xff] }
 0x255   : > { %2243 = vrot.lane.b32.xlu0 %v3989_v44, %s3168_s21 }
 0x256   : > { %v908_v58 = vpop.permute.xlu1 %907 }
 0x257   : > { %977 = vst.msk [vmem:[#allocation3 + $0xd8] sm:$0xff] %vm949_vm3, %v908_v58  ;;  %v1095_v28 = vpop.permute.xlu0 %1094 }
 0x258   : > { %1167 = vst.msk [vmem:[#allocation3 + $0xc0] sm:$0xff] %vm1142_vm4, %v1095_v28  ;;  %1283 = vrot.lane.b32.xlu1 %v3728_v30, %s3165_s16  ;;  %v2344_v1 = vld [vmem:[#allocation3 + $0x50] sm:$0xff]  ;;  %v4171_v30 = vld [vmem:[#allocation2 + $0x188] sm:$0xff] }
 0x259   : > { %1859 = vrot.lane.b32.xlu0 %v4155_v47, %s3169_s23  ;;  %3074 = vmatprep.mubr.msk.f32.mxu1 %vm2382_vm11, %v2344_v1  ;;  %v1781_v28 = vld [vmem:[#allocation2 + $0x1c8] sm:$0xff] }
 0x25a   : > { %v1101_v4 = vpop.permute.xlu1 %1100  ;;  %3075 = vmatmul.mubr.msk.f32.gmra.mrb[10].mxu1 %vm2382_vm11, %v2345_v20 }
 0x25b   : > { %1170 = vst.msk [vmem:[#allocation3 + $0xd8] sm:$0xff] %vm1142_vm4, %v1101_v4  ;;  %v906_v6 = vpop.permute.xlu0 %905 }
 0x25c   : > { %976 = vst.msk [vmem:[#allocation3 + $0xd0] sm:$0xff] %vm949_vm3, %v906_v6  ;;  %2052 = vrot.lane.b32.xlu1 %v4166_v9, %s3167_s20  ;;  %v1974_v6 = vld [vmem:[#allocation2 + $0x1cb] sm:$0xff] }
 0x25d   : > { %1861 = vrot.lane.b32.xlu0 %v4171_v30, %s3169_s23 }
 0x25e   : > { %v912_v11 = vpop.permute.xlu1 %911 }
 0x25f   : > { %979 = vst.msk [vmem:[#allocation3 + $0xe8] sm:$0xff] %vm949_vm3, %v912_v11  ;;  %v1099_v13 = vpop.permute.xlu0 %1098 }
 0x260   : > { %1169 = vst.msk [vmem:[#allocation3 + $0xd0] sm:$0xff] %vm1142_vm4, %v1099_v13  ;;  %1476 = vrot.lane.b32.xlu1 %v3975_v34, %s3164_s15 }
 0x261   : > { %1285 = vrot.lane.b32.xlu0 %v3730_v31, %s3165_s16 }
 0x262   : > { %v1105_v59 = vpop.permute.xlu1 %1104 }
 0x263   : > { %1172 = vst.msk [vmem:[#allocation3 + $0xe8] sm:$0xff] %vm1142_vm4, %v1105_v59  ;;  %v910_v3 = vpop.permute.xlu0 %909 }
 0x264   : > { %978 = vst.msk [vmem:[#allocation3 + $0xe0] sm:$0xff] %vm949_vm3, %v910_v3  ;;  %2245 = vrot.lane.b32.xlu1 %v4182_v14, %s3168_s21  ;;  %v2167_v3 = vld [vmem:[#allocation2 + $0x1ce] sm:$0xff] }
 0x265   : > { %2054 = vrot.lane.b32.xlu0 %v4187_v15, %s3167_s20 }
 0x266   : > { %v916_v34 = vpop.permute.xlu1 %915 }
 0x267   : > { %981 = vst.msk [vmem:[#allocation3 + $0xf8] sm:$0xff] %vm949_vm3, %v916_v34  ;;  %v1103_v31 = vpop.permute.xlu0 %1102 }
 0x268   : > { %1171 = vst.msk [vmem:[#allocation3 + $0xe0] sm:$0xff] %vm1142_vm4, %v1103_v31  ;;  %1669 = vrot.lane.b32.xlu1 %v3984_v40, %s3166_s17 }
 0x269   : > { %1478 = vrot.lane.b32.xlu0 %v3958_v26, %s3164_s15 }
 0x26a   : > { %v1109_v16 = vpop.permute.xlu1 %1108 }
 0x26b   : > { %1174 = vst.msk [vmem:[#allocation3 + $0xf8] sm:$0xff] %vm1142_vm4, %v1109_v16  ;;  %v914_v19 = vpop.permute.xlu0 %913 }
 0x26c   : > { %980 = vst.msk [vmem:[#allocation3 + $0xf0] sm:$0xff] %vm949_vm3, %v914_v19  ;;  %1671 = vrot.lane.b32.xlu1 %v3970_v21, %s3166_s17 }
 0x26d   : > { %2247 = vrot.lane.b32.xlu0 %v4201_v12, %s3168_s21 }
 0x26e   : > { %v1652_v5 = vpop.permute.xlu1 %1651 }
 0x26f   : > { %1735 = vst.msk [vmem:[#allocation3 + $0x68] sm:$0xff] %vm1721_vm7, %v1652_v5  ;;  %v1107_v26 = vpop.permute.xlu0 %1106  ;;  %v2168_v5 = vld [vmem:[#allocation2 + $0x1d6] sm:$0xff] }
 0x270   : > { %1173 = vst.msk [vmem:[#allocation3 + $0xf0] sm:$0xff] %vm1142_vm4, %v1107_v26  ;;  %1287 = vrot.lane.b32.xlu1 %v3745_v37, %s3165_s16 }
 0x271   : > { %1863 = vrot.lane.b32.xlu0 %v4205_v23, %s3169_s23 }
 0x272   : > { %v1846_v21 = vpop.permute.xlu1 %1845 }
 0x273   : > { %1929 = vst.msk [vmem:[#allocation3 + $0x68] sm:$0xff] %vm1915_vm8, %v1846_v21  ;;  %v1844_v40 = vpop.permute.xlu0 %1843  ;;  %v1783_v21 = vld [vmem:[#allocation2 + $0x1e0] sm:$0xff] }
 0x274   : > { %1928 = vst.msk [vmem:[#allocation3 + $0x60] sm:$0xff] %vm1915_vm8, %v1844_v40  ;;  %2056 = vrot.lane.b32.xlu1 %v4214_v24, %s3167_s20 }
 0x275   : > { %1865 = vrot.lane.b32.xlu0 %v4219_v25, %s3169_s23 }
 0x276   : > { %v1461_v37 = vpop.permute.xlu1 %1460 }
 0x277   : > { %1543 = vst.msk [vmem:[#allocation3 + $0x70] sm:$0xff] %vm1528_vm6, %v1461_v37  ;;  %v2037_v27 = vpop.permute.xlu0 %2036 }
 0x278   : > { %2121 = vst.msk [vmem:[#allocation3 + $0x60] sm:$0xff] %vm2108_vm9, %v2037_v27  ;;  %1480 = vrot.lane.b32.xlu1 %v3995_v45, %s3164_s15  ;;  %v1784_v27 = vld [vmem:[#allocation2 + $0x1e8] sm:$0xff] }
 0x279   : > { %1289 = vrot.lane.b32.xlu0 %v3747_v38, %s3165_s16 }
 0x27a   : > { %v2230_v42 = vpop.permute.xlu1 %2229 }
 0x27b   : > { %2314 = vst.msk [vmem:[#allocation3 + $0x60] sm:$0xff] %vm2301_vm10, %v2230_v42  ;;  %v2039_v61 = vpop.permute.xlu0 %2038 }
 0x27c   : > { %2122 = vst.msk [vmem:[#allocation3 + $0x68] sm:$0xff] %vm2108_vm9, %v2039_v61  ;;  %2249 = vrot.lane.b32.xlu1 %v4230_v29, %s3168_s21 }
 0x27d   : > { %2058 = vrot.lane.b32.xlu0 %v4235_v33, %s3167_s20 }
 0x27e   : > { %v1654_v45 = vpop.permute.xlu1 %1653 }
 0x27f   : > { %1736 = vst.msk [vmem:[#allocation3 + $0x70] sm:$0xff] %vm1721_vm7, %v1654_v45  ;;  %v1463_v38 = vpop.permute.xlu0 %1462 }
 0x280   : > { %1544 = vst.msk [vmem:[#allocation3 + $0x78] sm:$0xff] %vm1528_vm6, %v1463_v38  ;;  %1673 = vrot.lane.b32.xlu1 %v4005_v62, %s3166_s17 }
 0x281   : > { %1482 = vrot.lane.b32.xlu0 %v3979_v22, %s3164_s15 }
 0x282   : > { %v1656_v51 = vpop.permute.xlu1 %1655  ;;  %v2346_v32 = vld [vmem:[#allocation3 + $0x60] sm:$0xff] }
 0x283   : > { %1737 = vst.msk [vmem:[#allocation3 + $0x78] sm:$0xff] %vm1721_vm7, %v1656_v51  ;;  %v2232_v35 = vpop.permute.xlu0 %2231  ;;  %3077 = vmatprep.mubr.msk.f32.mxu1 %vm2382_vm11, %v2346_v32 }
 0x284   : > { %2315 = vst.msk [vmem:[#allocation3 + $0x68] sm:$0xff] %vm2301_vm10, %v2232_v35  ;;  %1675 = vrot.lane.b32.xlu1 %v3989_v44, %s3166_s17 }
 0x285   : > { %2251 = vrot.lane.b32.xlu0 %v4250_v36, %s3168_s21 }
 0x286   : > { %v1850_v62 = vpop.permute.xlu1 %1849 }
 0x287   : > { %1931 = vst.msk [vmem:[#allocation3 + $0x78] sm:$0xff] %vm1915_vm8, %v1850_v62  ;;  %v1848_v22 = vpop.permute.xlu0 %1847 }
 0x288   : > { %1930 = vst.msk [vmem:[#allocation3 + $0x70] sm:$0xff] %vm1915_vm8, %v1848_v22  ;;  %1291 = vrot.lane.b32.xlu1 %v4155_v47, %s3165_s16 }
 0x289   : > { %1867 = vrot.lane.b32.xlu0 %v4254_v39, %s3169_s23 }
 0x28a   : > { %v1465_v44 = vpop.permute.xlu1 %1464 }
 0x28b   : > { %1545 = vst.msk [vmem:[#allocation3 + $0x80] sm:$0xff] %vm1528_vm6, %v1465_v44  ;;  %v2041_v41 = vpop.permute.xlu0 %2040  ;;  %v2347_v43 = vld [vmem:[#allocation3 + $0x68] sm:$0xff] }
 0x28c   : > { %2123 = vst.msk [vmem:[#allocation3 + $0x70] sm:$0xff] %vm2108_vm9, %v2041_v41  ;;  %2060 = vrot.lane.b32.xlu1 %v4263_v8, %s3167_s20  ;;  %3078 = vmatmul.mubr.msk.f32.gmra.mrb[12].mxu1 %vm2382_vm11, %v2347_v43 }
 0x28d   : > { %1869 = vrot.lane.b32.xlu0 %v4269_v0, %s3169_s23 }
 0x28e   : > { %v2234_v7 = vpop.permute.xlu1 %2233 }
 0x28f   : > { %2316 = vst.msk [vmem:[#allocation3 + $0x70] sm:$0xff] %vm2301_vm10, %v2234_v7  ;;  %v2043_v48 = vpop.permute.xlu0 %2042 }
 0x290   : > { %2124 = vst.msk [vmem:[#allocation3 + $0x78] sm:$0xff] %vm2108_vm9, %v2043_v48  ;;  %1484 = vrot.lane.b32.xlu1 %v4166_v9, %s3164_s15  ;;  %v1786_v48 = vld [vmem:[#allocation2 + $0x200] sm:$0xff] }
 0x291   : > { %1293 = vrot.lane.b32.xlu0 %v4171_v30, %s3165_s16  ;;  %v1782_v30 = vld [vmem:[#allocation2 + $0x1d0] sm:$0xff] }
 0x292   : > { %v1658_v49 = vpop.permute.xlu1 %1657 }
 0x293   : > { %1738 = vst.msk [vmem:[#allocation3 + $0x80] sm:$0xff] %vm1721_vm7, %v1658_v49  ;;  %v1467_v50 = vpop.permute.xlu0 %1466 }
 0x294   : > { %1546 = vst.msk [vmem:[#allocation3 + $0x88] sm:$0xff] %vm1528_vm6, %v1467_v50  ;;  %2253 = vrot.lane.b32.xlu1 %v4280_v53, %s3168_s21  ;;  %v1785_v50 = vld [vmem:[#allocation2 + $0x1f8] sm:$0xff] }
 0x295   : > { %2062 = vrot.lane.b32.xlu0 %v4285_v54, %s3167_s20 }
 0x296   : > { %v1660_v10 = vpop.permute.xlu1 %1659  ;;  %v2348_v46 = vld [vmem:[#allocation3 + $0x70] sm:$0xff] }
 0x297   : > { %1739 = vst.msk [vmem:[#allocation3 + $0x88] sm:$0xff] %vm1721_vm7, %v1660_v10  ;;  %v2236_v60 = vpop.permute.xlu0 %2235  ;;  %3080 = vmatprep.mubr.msk.f32.mxu1 %vm2382_vm11, %v2348_v46 }
 0x298   : > { %2317 = vst.msk [vmem:[#allocation3 + $0x78] sm:$0xff] %vm2301_vm10, %v2236_v60  ;;  %1677 = vrot.lane.b32.xlu1 %v4182_v14, %s3166_s17  ;;  %v1978_v60 = vld [vmem:[#allocation2 + $0x1fb] sm:$0xff] }
 0x299   : > { %1486 = vrot.lane.b32.xlu0 %v4187_v15, %s3164_s15  ;;  %v1975_v15 = vld [vmem:[#allocation2 + $0x1d3] sm:$0xff] }
 0x29a   : > { %v1276_v18 = vpop.permute.xlu1 %1275 }
 0x29b   : > { %1354 = vst.msk [vmem:[#allocation3 + $0x90] sm:$0xff] %vm1335_vm5, %v1276_v18  ;;  %v3061_v55 = vpop.f32.mrb[0].mxu1  ;;  %v1852_v56 = vpop.permute.xlu0 %1851 }
 0x29c   : > { %v2551_v57 = vadd.f32 %v3061_v55, %v4299_v63  ;;  %1932 = vst.msk [vmem:[#allocation3 + $0x80] sm:$0xff] %vm1915_vm8, %v1852_v56  ;;  %1679 = vrot.lane.b32.xlu1 %v4201_v12, %s3166_s17  ;;  %v2545_v52 = vpop.f32.mrb[1].mxu1  ;;  %v2172_v55 = vld [vmem:[#allocation2 + $0x206] sm:$0xff] }
 0x29d   : > { %v2546_v2 = vadd.f32 %v4299_v63, %v2545_v52  ;;  %2255 = vrot.lane.b32.xlu0 %v4306_v17, %s3168_s21 }
 0x29e   : > { %v2705_v58 = vmax.f32 %v2551_v57, 0.0  ;;  %v2045_v47 = vpop.permute.xlu1 %2044  ;;  %v2171_v57 = vld [vmem:[#allocation2 + $0x1fe] sm:$0xff] }
 0x29f   : > { %v2704_v1 = vmax.f32 %v2546_v2, 0.0  ;;  %2125 = vst.msk [vmem:[#allocation3 + $0x80] sm:$0xff] %vm2108_vm9, %v2045_v47  ;;  %v1854_v20 = vpop.permute.xlu0 %1853  ;;  %v2349_v4 = vld [vmem:[#allocation3 + $0x78] sm:$0xff] }
 0x2a0   : > { %2737 = vst.msk [vmem:[%s4313_s30 + $0x8] sm:$0xff] %vm624_vm0, %v2705_v58  ;;  %1295 = vrot.lane.b32.xlu1 %v4205_v23, %s3165_s16  ;;  %3081 = vmatmul.mubr.msk.f32.gmra.mrb[14].mxu1 %vm2382_vm11, %v2349_v4 }
 0x2a1   : > { %1933 = vst.msk [vmem:[#allocation3 + $0x88] sm:$0xff] %vm1915_vm8, %v1854_v20  ;;  %1871 = vrot.lane.b32.xlu0 %v1781_v28, %s3169_s23 }
 0x2a2   : > { %2736 = vst.msk [vmem:[%s4313_s30] sm:$0xff] %vm624_vm0, %v2704_v1  ;;  %v1469_v9 = vpop.permute.xlu1 %1468 }
 0x2a3   : > { %1547 = vst.msk [vmem:[#allocation3 + $0x90] sm:$0xff] %vm1528_vm6, %v1469_v9  ;;  %v1278_v11 = vpop.permute.xlu0 %1277 }
 0x2a4   : > { %1355 = vst.msk [vmem:[#allocation3 + $0x98] sm:$0xff] %vm1335_vm5, %v1278_v11  ;;  %2064 = vrot.lane.b32.xlu1 %v1974_v6, %s3167_s20 }
 0x2a5   : > { %1873 = vrot.lane.b32.xlu0 %v1782_v30, %s3169_s23 }
 0x2a6   : > { %v2238_v13 = vpop.permute.xlu1 %2237 }
 0x2a7   : > { %2318 = vst.msk [vmem:[#allocation3 + $0x80] sm:$0xff] %vm2301_vm10, %v2238_v13  ;;  %v2047_v59 = vpop.permute.xlu0 %2046 }
 0x2a8   : > { %2126 = vst.msk [vmem:[#allocation3 + $0x88] sm:$0xff] %vm2108_vm9, %v2047_v59  ;;  %1488 = vrot.lane.b32.xlu1 %v4214_v24, %s3164_s15 }
 0x2a9   : > { %1297 = vrot.lane.b32.xlu0 %v4219_v25, %s3165_s16  ;;  %v1976_v25 = vld [vmem:[#allocation2 + $0x1e3] sm:$0xff] }
 0x2aa   : > { %v1662_v14 = vpop.permute.xlu1 %1661 }
 0x2ab   : > { %1740 = vst.msk [vmem:[#allocation3 + $0x90] sm:$0xff] %vm1721_vm7, %v1662_v14  ;;  %v1471_v34 = vpop.permute.xlu0 %1470 }
 0x2ac   : > { %1548 = vst.msk [vmem:[#allocation3 + $0x98] sm:$0xff] %vm1528_vm6, %v1471_v34  ;;  %2257 = vrot.lane.b32.xlu1 %v2167_v3, %s3168_s21 }
 0x2ad   : > { %2066 = vrot.lane.b32.xlu0 %v1975_v15, %s3167_s20 }
 0x2ae   : > { %v1664_v31 = vpop.permute.xlu1 %1663  ;;  %v2350_v16 = vld [vmem:[#allocation3 + $0x80] sm:$0xff] }
 0x2af   : > { %1741 = vst.msk [vmem:[#allocation3 + $0x98] sm:$0xff] %vm1721_vm7, %v1664_v31  ;;  %v2240_v19 = vpop.permute.xlu0 %2239  ;;  %3083 = vmatprep.mubr.msk.f32.mxu1 %vm2382_vm11, %v2350_v16 }
 0x2b0   : > { %2319 = vst.msk [vmem:[#allocation3 + $0x88] sm:$0xff] %vm2301_vm10, %v2240_v19  ;;  %1681 = vrot.lane.b32.xlu1 %v4230_v29, %s3166_s17 }
 0x2b1   : > { %1490 = vrot.lane.b32.xlu0 %v4235_v33, %s3164_s15 }
 0x2b2   : > { %v1280_v12 = vpop.permute.xlu1 %1279 }
 0x2b3   : > { %1356 = vst.msk [vmem:[#allocation3 + $0xa0] sm:$0xff] %vm1335_vm5, %v1280_v12  ;;  %v1856_v23 = vpop.permute.xlu0 %1855 }
 0x2b4   : > { %1934 = vst.msk [vmem:[#allocation3 + $0x90] sm:$0xff] %vm1915_vm8, %v1856_v23  ;;  %1683 = vrot.lane.b32.xlu1 %v4250_v36, %s3166_s17  ;;  %v2169_v36 = vld [vmem:[#allocation2 + $0x1e6] sm:$0xff] }
 0x2b5   : > { %2259 = vrot.lane.b32.xlu0 %v2168_v5, %s3168_s21 }
 0x2b6   : > { %v2049_v26 = vpop.permute.xlu1 %2048 }
 0x2b7   : > { %2127 = vst.msk [vmem:[#allocation3 + $0x90] sm:$0xff] %vm2108_vm9, %v2049_v26  ;;  %v1858_v40 = vpop.permute.xlu0 %1857  ;;  %v2351_v24 = vld [vmem:[#allocation3 + $0x88] sm:$0xff] }
 0x2b8   : > { %1935 = vst.msk [vmem:[#allocation3 + $0x98] sm:$0xff] %vm1915_vm8, %v1858_v40  ;;  %1299 = vrot.lane.b32.xlu1 %v4254_v39, %s3165_s16  ;;  %3084 = vmatmul.mubr.msk.f32.gmra.mrb[16].mxu1 %vm2382_vm11, %v2351_v24  ;;  %v1977_v39 = vld [vmem:[#allocation2 + $0x1eb] sm:$0xff] }
 0x2b9   : > { %1875 = vrot.lane.b32.xlu0 %v1783_v21, %s3169_s23 }
 0x2ba   : > { %v1473_v37 = vpop.permute.xlu1 %1472 }
 0x2bb   : > { %1549 = vst.msk [vmem:[#allocation3 + $0xa0] sm:$0xff] %vm1528_vm6, %v1473_v37  ;;  %v3064_v42 = vpop.f32.mrb[2].mxu1  ;;  %v1282_v61 = vpop.permute.xlu0 %1281 }
 0x2bc   : > { %v2561_v29 = vadd.f32 %v3064_v42, %v4299_v63  ;;  %1357 = vst.msk [vmem:[#allocation3 + $0xa8] sm:$0xff] %vm1335_vm5, %v1282_v61  ;;  %2068 = vrot.lane.b32.xlu1 %v1976_v25, %s3167_s20  ;;  %v2555_v33 = vpop.f32.mrb[3].mxu1 }
 0x2bd   : > { %v2556_v45 = vadd.f32 %v4299_v63, %v2555_v33  ;;  %1877 = vrot.lane.b32.xlu0 %v1784_v27, %s3169_s23 }
 0x2be   : > { %v2707_v38 = vmax.f32 %v2561_v29, 0.0  ;;  %v2242_v51 = vpop.permute.xlu1 %2241 }
 0x2bf   : > { %v2706_v32 = vmax.f32 %v2556_v45, 0.0  ;;  %2320 = vst.msk [vmem:[#allocation3 + $0x90] sm:$0xff] %vm2301_vm10, %v2242_v51  ;;  %v2051_v35 = vpop.permute.xlu0 %2050 }
 0x2c0   : > { %2739 = vst.msk [vmem:[%s4313_s30 + $0x18] sm:$0xff] %vm624_vm0, %v2707_v38  ;;  %1492 = vrot.lane.b32.xlu1 %v4263_v8, %s3164_s15 }
 0x2c1   : > { %2128 = vst.msk [vmem:[#allocation3 + $0x98] sm:$0xff] %vm2108_vm9, %v2051_v35  ;;  %1301 = vrot.lane.b32.xlu0 %v4269_v0, %s3165_s16  ;;  %v2170_v0 = vld [vmem:[#allocation2 + $0x1ee] sm:$0xff] }
 0x2c2   : > { %2738 = vst.msk [vmem:[%s4313_s30 + $0x10] sm:$0xff] %vm624_vm0, %v2706_v32  ;;  %v1666_v62 = vpop.permute.xlu1 %1665 }
 0x2c3   : > { %1742 = vst.msk [vmem:[#allocation3 + $0xa0] sm:$0xff] %vm1721_vm7, %v1666_v62  ;;  %v1475_v22 = vpop.permute.xlu0 %1474 }
 0x2c4   : > { %1550 = vst.msk [vmem:[#allocation3 + $0xa8] sm:$0xff] %vm1528_vm6, %v1475_v22  ;;  %2261 = vrot.lane.b32.xlu1 %v2169_v36, %s3168_s21 }
 0x2c5   : > { %2070 = vrot.lane.b32.xlu0 %v1977_v39, %s3167_s20 }
 0x2c6   : > { %v1668_v44 = vpop.permute.xlu1 %1667  ;;  %v2352_v41 = vld [vmem:[#allocation3 + $0x90] sm:$0xff] }
 0x2c7   : > { %1743 = vst.msk [vmem:[#allocation3 + $0xa8] sm:$0xff] %vm1721_vm7, %v1668_v44  ;;  %v2244_v8 = vpop.permute.xlu0 %2243  ;;  %3086 = vmatprep.mubr.msk.f32.mxu1 %vm2382_vm11, %v2352_v41 }
 0x2c8   : > { %2321 = vst.msk [vmem:[#allocation3 + $0x98] sm:$0xff] %vm2301_vm10, %v2244_v8  ;;  %1685 = vrot.lane.b32.xlu1 %v4280_v53, %s3166_s17 }
 0x2c9   : > { %1494 = vrot.lane.b32.xlu0 %v4285_v54, %s3164_s15  ;;  %v1979_v54 = vld [vmem:[#allocation2 + $0x203] sm:$0xff] }
 0x2ca   : > { %v1284_v43 = vpop.permute.xlu1 %1283 }
 0x2cb   : > { %1358 = vst.msk [vmem:[#allocation3 + $0xb0] sm:$0xff] %vm1335_vm5, %v1284_v43  ;;  %v1860_v7 = vpop.permute.xlu0 %1859 }
 0x2cc   : > { %1936 = vst.msk [vmem:[#allocation3 + $0xa0] sm:$0xff] %vm1915_vm8, %v1860_v7  ;;  %1687 = vrot.lane.b32.xlu1 %v4306_v17, %s3166_s17 }
 0x2cd   : > { %2263 = vrot.lane.b32.xlu0 %v2170_v0, %s3168_s21 }
 0x2ce   : > { %v2053_v49 = vpop.permute.xlu1 %2052 }
 0x2cf   : > { %2129 = vst.msk [vmem:[#allocation3 + $0xa0] sm:$0xff] %vm2108_vm9, %v2053_v49  ;;  %v1862_v53 = vpop.permute.xlu0 %1861  ;;  %v2353_v10 = vld [vmem:[#allocation3 + $0x98] sm:$0xff] }
 0x2d0   : > { %1937 = vst.msk [vmem:[#allocation3 + $0xa8] sm:$0xff] %vm1915_vm8, %v1862_v53  ;;  %3087 = vmatmul.mubr.msk.f32.gmra.mrb[18].mxu1 %vm2382_vm11, %v2353_v10  ;;  %1881 = vrot.lane.b32.xlu1 %v1786_v48, %s3169_s23 }
 0x2d1   : > { %1879 = vrot.lane.b32.xlu0 %v1785_v50, %s3169_s23 }
 0x2d2   : > { %v1477_v46 = vpop.permute.xlu1 %1476 }
 0x2d3   : > { %1551 = vst.msk [vmem:[#allocation3 + $0xb0] sm:$0xff] %vm1528_vm6, %v1477_v46  ;;  %v1286_v18 = vpop.permute.xlu0 %1285 }
 0x2d4   : > { %1359 = vst.msk [vmem:[#allocation3 + $0xb8] sm:$0xff] %vm1335_vm5, %v1286_v18  ;;  %2074 = vrot.lane.b32.xlu1 %v1979_v54, %s3167_s20 }
 0x2d5   : > { %2072 = vrot.lane.b32.xlu0 %v1978_v60, %s3167_s20 }
 0x2d6   : > { %v2246_v56 = vpop.permute.xlu1 %2245 }
 0x2d7   : > { %2322 = vst.msk [vmem:[#allocation3 + $0xa0] sm:$0xff] %vm2301_vm10, %v2246_v56  ;;  %v2055_v52 = vpop.permute.xlu0 %2054 }
 0x2d8   : > { %2130 = vst.msk [vmem:[#allocation3 + $0xa8] sm:$0xff] %vm2108_vm9, %v2055_v52  ;;  %2267 = vrot.lane.b32.xlu1 %v2172_v55, %s3168_s21 }
 0x2d9   : > { %2265 = vrot.lane.b32.xlu0 %v2171_v57, %s3168_s21 }
 0x2da   : > { %v1670_v17 = vpop.permute.xlu1 %1669 }
 0x2db   : > { %1744 = vst.msk [vmem:[#allocation3 + $0xb0] sm:$0xff] %vm1721_vm7, %v1670_v17  ;;  %v3067_v2 = vpop.f32.mrb[4].mxu1  ;;  %v1479_v58 = vpop.permute.xlu0 %1478 }
 0x2dc   : > { %v2571_v47 = vadd.f32 %v3067_v2, %v4299_v63  ;;  %1552 = vst.msk [vmem:[#allocation3 + $0xb8] sm:$0xff] %vm1528_vm6, %v1479_v58  ;;  %v2565_v28 = vpop.f32.mrb[5].mxu1 }
 0x2dd   : > { %v2566_v1 = vadd.f32 %v4299_v63, %v2565_v28 }
 0x2de   : > { %v2709_v20 = vmax.f32 %v2571_v47, 0.0  ;;  %v1672_v4 = vpop.permute.xlu1 %1671  ;;  %v2354_v6 = vld [vmem:[#allocation3 + $0xa0] sm:$0xff] }
 0x2df   : > { %v2708_v9 = vmax.f32 %v2566_v1, 0.0  ;;  %1745 = vst.msk [vmem:[#allocation3 + $0xb8] sm:$0xff] %vm1721_vm7, %v1672_v4  ;;  %v2248_v30 = vpop.permute.xlu0 %2247  ;;  %3089 = vmatprep.mubr.msk.f32.mxu1 %vm2382_vm11, %v2354_v6 }
 0x2e0   : > { %2741 = vst.msk [vmem:[%s4313_s30 + $0x28] sm:$0xff] %vm624_vm0, %v2709_v20 }
 0x2e1   : > { %2323 = vst.msk [vmem:[#allocation3 + $0xa8] sm:$0xff] %vm2301_vm10, %v2248_v30 }
 0x2e2   : > { %2740 = vst.msk [vmem:[%s4313_s30 + $0x20] sm:$0xff] %vm624_vm0, %v2708_v9  ;;  %v1288_v11 = vpop.permute.xlu1 %1287 }
 0x2e3   : > { %1360 = vst.msk [vmem:[#allocation3 + $0xc0] sm:$0xff] %vm1335_vm5, %v1288_v11  ;;  %v1864_v13 = vpop.permute.xlu0 %1863 }
 0x2e4   : > { %1938 = vst.msk [vmem:[#allocation3 + $0xb0] sm:$0xff] %vm1915_vm8, %v1864_v13 }
 0x2e6   : > { %v2057_v59 = vpop.permute.xlu1 %2056 }
 0x2e7   : > { %2131 = vst.msk [vmem:[#allocation3 + $0xb0] sm:$0xff] %vm2108_vm9, %v2057_v59  ;;  %v1866_v3 = vpop.permute.xlu0 %1865 }
 0x2e8   : > { %v2355_v14 = vld [vmem:[#allocation3 + $0xa8] sm:$0xff]  ;;  %1939 = vst.msk [vmem:[#allocation3 + $0xb8] sm:$0xff] %vm1915_vm8, %v1866_v3 }
 0x2e9   : > { %3090 = vmatmul.mubr.msk.f32.gmra.mrb[20].mxu1 %vm2382_vm11, %v2355_v14 }
 0x2ea   : > { %v1481_v15 = vpop.permute.xlu1 %1480 }
 0x2eb   : > { %1553 = vst.msk [vmem:[#allocation3 + $0xc0] sm:$0xff] %vm1528_vm6, %v1481_v15  ;;  %v1290_v34 = vpop.permute.xlu0 %1289 }
 0x2ec   : > { %1361 = vst.msk [vmem:[#allocation3 + $0xc8] sm:$0xff] %vm1335_vm5, %v1290_v34 }
 0x2ee   : > { %v2250_v31 = vpop.permute.xlu1 %2249 }
 0x2ef   : > { %2324 = vst.msk [vmem:[#allocation3 + $0xb0] sm:$0xff] %vm2301_vm10, %v2250_v31  ;;  %v2059_v16 = vpop.permute.xlu0 %2058 }
 0x2f0   : > { %2132 = vst.msk [vmem:[#allocation3 + $0xb8] sm:$0xff] %vm2108_vm9, %v2059_v16 }
 0x2f2   : > { %v1674_v19 = vpop.permute.xlu1 %1673 }
 0x2f3   : > { %1746 = vst.msk [vmem:[#allocation3 + $0xc0] sm:$0xff] %vm1721_vm7, %v1674_v19  ;;  %v1483_v12 = vpop.permute.xlu0 %1482 }
 0x2f4   : > { %1554 = vst.msk [vmem:[#allocation3 + $0xc8] sm:$0xff] %vm1528_vm6, %v1483_v12 }
 0x2f6   : > { %v1676_v5 = vpop.permute.xlu1 %1675  ;;  %v2356_v23 = vld [vmem:[#allocation3 + $0xb0] sm:$0xff] }
 0x2f7   : > { %1747 = vst.msk [vmem:[#allocation3 + $0xc8] sm:$0xff] %vm1721_vm7, %v1676_v5  ;;  %v2252_v26 = vpop.permute.xlu0 %2251  ;;  %v3070_v21 = vpop.f32.mrb[6].mxu1  ;;  %3092 = vmatprep.mubr.msk.f32.mxu1 %vm2382_vm11, %v2356_v23 }
 0x2f8   : > { %2325 = vst.msk [vmem:[#allocation3 + $0xb8] sm:$0xff] %vm2301_vm10, %v2252_v26  ;;  %v2581_v40 = vadd.f32 %v3070_v21, %v4299_v63  ;;  %v2575_v24 = vpop.f32.mrb[7].mxu1 }
 0x2f9   : > { %v2576_v25 = vadd.f32 %v4299_v63, %v2575_v24 }
 0x2fa   : > { %v2711_v37 = vmax.f32 %v2581_v40, 0.0  ;;  %v1292_v27 = vpop.permute.xlu1 %1291 }
 0x2fb   : > { %v2710_v42 = vmax.f32 %v2576_v25, 0.0  ;;  %1362 = vst.msk [vmem:[#allocation3 + $0xd0] sm:$0xff] %vm1335_vm5, %v1292_v27  ;;  %v1868_v61 = vpop.permute.xlu0 %1867 }
 0x2fc   : > { %2743 = vst.msk [vmem:[%s4313_s30 + $0x38] sm:$0xff] %vm624_vm0, %v2711_v37 }
 0x2fd   : > { %1940 = vst.msk [vmem:[#allocation3 + $0xc0] sm:$0xff] %vm1915_vm8, %v1868_v61 }
 0x2fe   : > { %2742 = vst.msk [vmem:[%s4313_s30 + $0x30] sm:$0xff] %vm624_vm0, %v2710_v42  ;;  %v2061_v29 = vpop.permute.xlu1 %2060 }
 0x2ff   : > { %2133 = vst.msk [vmem:[#allocation3 + $0xc0] sm:$0xff] %vm2108_vm9, %v2061_v29  ;;  %v1870_v33 = vpop.permute.xlu0 %1869  ;;  %v2357_v45 = vld [vmem:[#allocation3 + $0xb8] sm:$0xff] }
 0x300   : > { %1941 = vst.msk [vmem:[#allocation3 + $0xc8] sm:$0xff] %vm1915_vm8, %v1870_v33  ;;  %3093 = vmatmul.mubr.msk.f32.gmra.mrb[22].mxu1 %vm2382_vm11, %v2357_v45 }
 0x302   : > { %v1485_v38 = vpop.permute.xlu1 %1484 }
 0x303   : > { %1555 = vst.msk [vmem:[#allocation3 + $0xd0] sm:$0xff] %vm1528_vm6, %v1485_v38  ;;  %v1294_v51 = vpop.permute.xlu0 %1293 }
 0x304   : > { %1363 = vst.msk [vmem:[#allocation3 + $0xd8] sm:$0xff] %vm1335_vm5, %v1294_v51 }
 0x306   : > { %v2254_v32 = vpop.permute.xlu1 %2253 }
 0x307   : > { %2326 = vst.msk [vmem:[#allocation3 + $0xc0] sm:$0xff] %vm2301_vm10, %v2254_v32  ;;  %v2063_v35 = vpop.permute.xlu0 %2062 }
 0x308   : > { %2134 = vst.msk [vmem:[#allocation3 + $0xc8] sm:$0xff] %vm2108_vm9, %v2063_v35 }
 0x30a   : > { %v1678_v36 = vpop.permute.xlu1 %1677 }
 0x30b   : > { %1748 = vst.msk [vmem:[#allocation3 + $0xd0] sm:$0xff] %vm1721_vm7, %v1678_v36  ;;  %v1487_v62 = vpop.permute.xlu0 %1486 }
 0x30c   : > { %1556 = vst.msk [vmem:[#allocation3 + $0xd8] sm:$0xff] %vm1528_vm6, %v1487_v62 }
 0x30e   : > { %v1680_v39 = vpop.permute.xlu1 %1679  ;;  %v2358_v22 = vld [vmem:[#allocation3 + $0xc0] sm:$0xff] }
 0x30f   : > { %1749 = vst.msk [vmem:[#allocation3 + $0xd8] sm:$0xff] %vm1721_vm7, %v1680_v39  ;;  %v2256_v44 = vpop.permute.xlu0 %2255  ;;  %3095 = vmatprep.mubr.msk.f32.mxu1 %vm2382_vm11, %v2358_v22 }
 0x310   : > { %2327 = vst.msk [vmem:[#allocation3 + $0xc8] sm:$0xff] %vm2301_vm10, %v2256_v44 }
 0x312   : > { %v1296_v41 = vpop.permute.xlu1 %1295 }
 0x313   : > { %1364 = vst.msk [vmem:[#allocation3 + $0xe0] sm:$0xff] %vm1335_vm5, %v1296_v41  ;;  %v1872_v8 = vpop.permute.xlu0 %1871  ;;  %v3073_v43 = vpop.f32.mrb[8].mxu1 }
 0x314   : > { %1942 = vst.msk [vmem:[#allocation3 + $0xd0] sm:$0xff] %vm1915_vm8, %v1872_v8  ;;  %v2591_v0 = vadd.f32 %v3073_v43, %v4299_v63  ;;  %v2585_v7 = vpop.f32.mrb[9].mxu1 }
 0x315   : > { %v2586_v48 = vadd.f32 %v4299_v63, %v2585_v7 }
 0x316   : > { %v2713_v49 = vmax.f32 %v2591_v0, 0.0  ;;  %v2065_v50 = vpop.permute.xlu1 %2064 }
 0x317   : > { %v2712_v53 = vmax.f32 %v2586_v48, 0.0  ;;  %2135 = vst.msk [vmem:[#allocation3 + $0xd0] sm:$0xff] %vm2108_vm9, %v2065_v50  ;;  %v1874_v10 = vpop.permute.xlu0 %1873  ;;  %v2359_v54 = vld [vmem:[#allocation3 + $0xc8] sm:$0xff] }
 0x318   : > { %2745 = vst.msk [vmem:[%s4313_s30 + $0x48] sm:$0xff] %vm624_vm0, %v2713_v49  ;;  %3096 = vmatmul.mubr.msk.f32.gmra.mrb[24].mxu1 %vm2382_vm11, %v2359_v54 }
 0x319   : > { %1943 = vst.msk [vmem:[#allocation3 + $0xd8] sm:$0xff] %vm1915_vm8, %v1874_v10 }
 0x31a   : > { %2744 = vst.msk [vmem:[%s4313_s30 + $0x40] sm:$0xff] %vm624_vm0, %v2712_v53  ;;  %v1489_v46 = vpop.permute.xlu1 %1488 }
 0x31b   : > { %1557 = vst.msk [vmem:[#allocation3 + $0xe0] sm:$0xff] %vm1528_vm6, %v1489_v46  ;;  %v1298_v60 = vpop.permute.xlu0 %1297 }
 0x31c   : > { %1365 = vst.msk [vmem:[#allocation3 + $0xe8] sm:$0xff] %vm1335_vm5, %v1298_v60 }
 0x31e   : > { %v2258_v18 = vpop.permute.xlu1 %2257 }
 0x31f   : > { %2328 = vst.msk [vmem:[#allocation3 + $0xd0] sm:$0xff] %vm2301_vm10, %v2258_v18  ;;  %v2067_v55 = vpop.permute.xlu0 %2066 }
 0x320   : > { %2136 = vst.msk [vmem:[#allocation3 + $0xd8] sm:$0xff] %vm2108_vm9, %v2067_v55 }
 0x322   : > { %v1682_v56 = vpop.permute.xlu1 %1681 }
 0x323   : > { %1750 = vst.msk [vmem:[#allocation3 + $0xe0] sm:$0xff] %vm1721_vm7, %v1682_v56  ;;  %v1491_v57 = vpop.permute.xlu0 %1490 }
 0x324   : > { %1558 = vst.msk [vmem:[#allocation3 + $0xe8] sm:$0xff] %vm1528_vm6, %v1491_v57 }
 0x326   : > { %v1684_v52 = vpop.permute.xlu1 %1683  ;;  %v2360_v17 = vld [vmem:[#allocation3 + $0xd0] sm:$0xff] }
 0x327   : > { %1751 = vst.msk [vmem:[#allocation3 + $0xe8] sm:$0xff] %vm1721_vm7, %v1684_v52  ;;  %v2260_v2 = vpop.permute.xlu0 %2259  ;;  %3098 = vmatprep.mubr.msk.f32.mxu1 %vm2382_vm11, %v2360_v17 }
 0x328   : > { %2329 = vst.msk [vmem:[#allocation3 + $0xd8] sm:$0xff] %vm2301_vm10, %v2260_v2 }
 0x32a   : > { %v1300_v58 = vpop.permute.xlu1 %1299 }
 0x32b   : > { %1366 = vst.msk [vmem:[#allocation3 + $0xf0] sm:$0xff] %vm1335_vm5, %v1300_v58  ;;  %v1876_v47 = vpop.permute.xlu0 %1875 }
 0x32c   : > { %1944 = vst.msk [vmem:[#allocation3 + $0xe0] sm:$0xff] %vm1915_vm8, %v1876_v47 }
 0x32d   : > { %v3076_v28 = vpop.f32.mrb[10].mxu1 }
 0x32e   : > { %v2601_v1 = vadd.f32 %v3076_v28, %v4299_v63  ;;  %v2069_v20 = vpop.permute.xlu1 %2068  ;;  %v2595_v4 = vpop.f32.mrb[11].mxu1 }
 0x32f   : > { %2137 = vst.msk [vmem:[#allocation3 + $0xe0] sm:$0xff] %vm2108_vm9, %v2069_v20  ;;  %v2596_v6 = vadd.f32 %v4299_v63, %v2595_v4  ;;  %v1878_v9 = vpop.permute.xlu0 %1877  ;;  %v2361_v30 = vld [vmem:[#allocation3 + $0xd8] sm:$0xff] }
 0x330   : > { %v2715_v11 = vmax.f32 %v2601_v1, 0.0  ;;  %1945 = vst.msk [vmem:[#allocation3 + $0xe8] sm:$0xff] %vm1915_vm8, %v1878_v9  ;;  %3099 = vmatmul.mubr.msk.f32.gmra.mrb[26].mxu1 %vm2382_vm11, %v2361_v30 }
 0x331   : > { %v2714_v13 = vmax.f32 %v2596_v6, 0.0 }
 0x332   : > { %2747 = vst.msk [vmem:[%s4313_s30 + $0x58] sm:$0xff] %vm624_vm0, %v2715_v11  ;;  %v1493_v59 = vpop.permute.xlu1 %1492 }
 0x333   : > { %2746 = vst.msk [vmem:[%s4313_s30 + $0x50] sm:$0xff] %vm624_vm0, %v2714_v13  ;;  %v1302_v3 = vpop.permute.xlu0 %1301 }
 0x334   : > { %1559 = vst.msk [vmem:[#allocation3 + $0xf0] sm:$0xff] %vm1528_vm6, %v1493_v59 }
 0x335   : > { %1367 = vst.msk [vmem:[#allocation3 + $0xf8] sm:$0xff] %vm1335_vm5, %v1302_v3 }
 0x336   : > { %v2262_v14 = vpop.permute.xlu1 %2261 }
 0x337   : > { %2330 = vst.msk [vmem:[#allocation3 + $0xe0] sm:$0xff] %vm2301_vm10, %v2262_v14  ;;  %v2071_v15 = vpop.permute.xlu0 %2070 }
 0x338   : > { %2138 = vst.msk [vmem:[#allocation3 + $0xe8] sm:$0xff] %vm2108_vm9, %v2071_v15 }
 0x33a   : > { %v1686_v34 = vpop.permute.xlu1 %1685 }
 0x33b   : > { %1752 = vst.msk [vmem:[#allocation3 + $0xf0] sm:$0xff] %vm1721_vm7, %v1686_v34  ;;  %v1495_v31 = vpop.permute.xlu0 %1494 }
 0x33c   : > { %1560 = vst.msk [vmem:[#allocation3 + $0xf8] sm:$0xff] %vm1528_vm6, %v1495_v31 }
 0x33e   : > { %v1688_v16 = vpop.permute.xlu1 %1687  ;;  %v2362_v19 = vld [vmem:[#allocation3 + $0xe0] sm:$0xff] }
 0x33f   : > { %1753 = vst.msk [vmem:[#allocation3 + $0xf8] sm:$0xff] %vm1721_vm7, %v1688_v16  ;;  %v2264_v12 = vpop.permute.xlu0 %2263  ;;  %3101 = vmatprep.mubr.msk.f32.mxu1 %vm2382_vm11, %v2362_v19 }
 0x340   : > { %2331 = vst.msk [vmem:[#allocation3 + $0xe8] sm:$0xff] %vm2301_vm10, %v2264_v12 }
 0x342   : > { %v1882_v5 = vpop.permute.xlu1 %1881 }
 0x343   : > { %v1880_v23 = vpop.permute.xlu0 %1879  ;;  %1947 = vst.msk [vmem:[#allocation3 + $0xf8] sm:$0xff] %vm1915_vm8, %v1882_v5 }
 0x344   : > { %1946 = vst.msk [vmem:[#allocation3 + $0xf0] sm:$0xff] %vm1915_vm8, %v1880_v23 }
 0x346   : > { %v2075_v26 = vpop.permute.xlu1 %2074 }
 0x347   : > { %v2073_v21 = vpop.permute.xlu0 %2072  ;;  %2140 = vst.msk [vmem:[#allocation3 + $0xf8] sm:$0xff] %vm2108_vm9, %v2075_v26  ;;  %v2363_v40 = vld [vmem:[#allocation3 + $0xe8] sm:$0xff] }
 0x348   : > { %2139 = vst.msk [vmem:[#allocation3 + $0xf0] sm:$0xff] %vm2108_vm9, %v2073_v21  ;;  %3102 = vmatmul.mubr.msk.f32.gmra.mrb[28].mxu1 %vm2382_vm11, %v2363_v40 }
 0x34a   : > { %v2268_v24 = vpop.permute.xlu1 %2267 }
 0x34b   : > { %v2266_v25 = vpop.permute.xlu0 %2265  ;;  %2333 = vst.msk [vmem:[#allocation3 + $0xf8] sm:$0xff] %vm2301_vm10, %v2268_v24 }
 0x34c   : > { %2332 = vst.msk [vmem:[#allocation3 + $0xf0] sm:$0xff] %vm2301_vm10, %v2266_v25 }
 0x352   : > { %v2365_v37 = vld [vmem:[#allocation3 + $0xf8] sm:$0xff] }
 0x353   : > { %v2364_v27 = vld [vmem:[#allocation3 + $0xf0] sm:$0xff] }
 0x354   : > { %3104 = vmatprep.mubr.msk.f32.mxu1 %vm2382_vm11, %v2364_v27 }
 0x355   : > { %3105 = vmatmul.mubr.msk.f32.gmra.mrb[30].mxu1 %vm2382_vm11, %v2365_v37 }
 0x35f   : > { %v3079_v42 = vpop.f32.mrb[12].mxu1 }
 0x360   : > { %v2611_v61 = vadd.f32 %v3079_v42, %v4299_v63  ;;  %v2605_v29 = vpop.f32.mrb[13].mxu1 }
 0x361   : > { %v2606_v33 = vadd.f32 %v4299_v63, %v2605_v29 }
 0x362   : > { %v2717_v45 = vmax.f32 %v2611_v61, 0.0 }
 0x363   : > { %v2716_v38 = vmax.f32 %v2606_v33, 0.0 }
 0x364   : > { %2749 = vst.msk [vmem:[%s4313_s30 + $0x68] sm:$0xff] %vm624_vm0, %v2717_v45 }
 0x365   : > { %2748 = vst.msk [vmem:[%s4313_s30 + $0x60] sm:$0xff] %vm624_vm0, %v2716_v38 }
 0x373   : > { %v3082_v51 = vpop.f32.mrb[14].mxu1 }
 0x374   : > { %v2621_v32 = vadd.f32 %v3082_v51, %v4299_v63  ;;  %v2615_v35 = vpop.f32.mrb[15].mxu1 }
 0x375   : > { %v2616_v36 = vadd.f32 %v4299_v63, %v2615_v35 }
 0x376   : > { %v2719_v62 = vmax.f32 %v2621_v32, 0.0 }
 0x377   : > { %v2718_v39 = vmax.f32 %v2616_v36, 0.0 }
 0x378   : > { %2751 = vst.msk [vmem:[%s4313_s30 + $0x78] sm:$0xff] %vm624_vm0, %v2719_v62 }
 0x379   : > { %2750 = vst.msk [vmem:[%s4313_s30 + $0x70] sm:$0xff] %vm624_vm0, %v2718_v39 }
 0x38b   : > { %v3085_v22 = vpop.f32.mrb[16].mxu1 }
 0x38c   : > { %v2631_v44 = vadd.f32 %v3085_v22, %v4299_v63  ;;  %v2625_v41 = vpop.f32.mrb[17].mxu1 }
 0x38d   : > { %v2626_v8 = vadd.f32 %v4299_v63, %v2625_v41 }
 0x38e   : > { %v2721_v43 = vmax.f32 %v2631_v44, 0.0 }
 0x38f   : > { %v2720_v0 = vmax.f32 %v2626_v8, 0.0 }
 0x390   : > { %2753 = vst.msk [vmem:[%s4313_s30 + $0x88] sm:$0xff] %vm624_vm0, %v2721_v43 }
 0x391   : > { %2752 = vst.msk [vmem:[%s4313_s30 + $0x80] sm:$0xff] %vm624_vm0, %v2720_v0 }
 0x3a3   : > { %v3088_v7 = vpop.f32.mrb[18].mxu1 }
 0x3a4   : > { %v2641_v48 = vadd.f32 %v3088_v7, %v4299_v63  ;;  %v2635_v49 = vpop.f32.mrb[19].mxu1 }
 0x3a5   : > { %v2636_v50 = vadd.f32 %v4299_v63, %v2635_v49 }
 0x3a6   : > { %v2723_v53 = vmax.f32 %v2641_v48, 0.0 }
 0x3a7   : > { %v2722_v10 = vmax.f32 %v2636_v50, 0.0 }
 0x3a8   : > { %2755 = vst.msk [vmem:[%s4313_s30 + $0x98] sm:$0xff] %vm624_vm0, %v2723_v53 }
 0x3a9   : > { %2754 = vst.msk [vmem:[%s4313_s30 + $0x90] sm:$0xff] %vm624_vm0, %v2722_v10 }
 0x3bc   : > { %v3091_v54 = vpop.f32.mrb[20].mxu1 }
 0x3bd   : > { %v2651_v46 = vadd.f32 %v3091_v54, %v4299_v63  ;;  %v2645_v60 = vpop.f32.mrb[21].mxu1 }
 0x3be   : > { %v2646_v18 = vadd.f32 %v4299_v63, %v2645_v60 }
 0x3bf   : > { %v2725_v55 = vmax.f32 %v2651_v46, 0.0 }
 0x3c0   : > { %v2724_v56 = vmax.f32 %v2646_v18, 0.0 }
 0x3c1   : > { %2757 = vst.msk [vmem:[%s4313_s30 + $0xa8] sm:$0xff] %vm624_vm0, %v2725_v55 }
 0x3c2   : > { %2756 = vst.msk [vmem:[%s4313_s30 + $0xa0] sm:$0xff] %vm624_vm0, %v2724_v56 }
 0x3d3   : > { %v3094_v57 = vpop.f32.mrb[22].mxu1 }
 0x3d4   : > { %v2661_v52 = vadd.f32 %v3094_v57, %v4299_v63  ;;  %v2655_v17 = vpop.f32.mrb[23].mxu1 }
 0x3d5   : > { %v2656_v2 = vadd.f32 %v4299_v63, %v2655_v17 }
 0x3d6   : > { %v2727_v58 = vmax.f32 %v2661_v52, 0.0 }
 0x3d7   : > { %v2726_v47 = vmax.f32 %v2656_v2, 0.0 }
 0x3d8   : > { %2759 = vst.msk [vmem:[%s4313_s30 + $0xb8] sm:$0xff] %vm624_vm0, %v2727_v58 }
 0x3d9   : > { %2758 = vst.msk [vmem:[%s4313_s30 + $0xb0] sm:$0xff] %vm624_vm0, %v2726_v47 }
 0x3eb   : > { %v3097_v28 = vpop.f32.mrb[24].mxu1 }
 0x3ec   : > { %v2671_v1 = vadd.f32 %v3097_v28, %v4299_v63  ;;  %v2665_v20 = vpop.f32.mrb[25].mxu1 }
 0x3ed   : > { %v2666_v4 = vadd.f32 %v4299_v63, %v2665_v20 }
 0x3ee   : > { %v2729_v6 = vmax.f32 %v2671_v1, 0.0 }
 0x3ef   : > { %v2728_v9 = vmax.f32 %v2666_v4, 0.0 }
 0x3f0   : > { %2761 = vst.msk [vmem:[%s4313_s30 + $0xc8] sm:$0xff] %vm624_vm0, %v2729_v6 }
 0x3f1   : > { %2760 = vst.msk [vmem:[%s4313_s30 + $0xc0] sm:$0xff] %vm624_vm0, %v2728_v9 }
 0x403   : > { %v3100_v30 = vpop.f32.mrb[26].mxu1 }
 0x404   : > { %v2681_v11 = vadd.f32 %v3100_v30, %v4299_v63  ;;  %v2675_v13 = vpop.f32.mrb[27].mxu1 }
 0x405   : > { %v2676_v59 = vadd.f32 %v4299_v63, %v2675_v13 }
 0x406   : > { %v2731_v3 = vmax.f32 %v2681_v11, 0.0 }
 0x407   : > { %v2730_v14 = vmax.f32 %v2676_v59, 0.0 }
 0x408   : > { %2763 = vst.msk [vmem:[%s4313_s30 + $0xd8] sm:$0xff] %vm624_vm0, %v2731_v3 }
 0x409   : > { %2762 = vst.msk [vmem:[%s4313_s30 + $0xd0] sm:$0xff] %vm624_vm0, %v2730_v14 }
 0x41b   : > { %v3103_v15 = vpop.f32.mrb[28].mxu1 }
 0x41c   : > { %v2691_v34 = vadd.f32 %v3103_v15, %v4299_v63  ;;  %v2685_v31 = vpop.f32.mrb[29].mxu1 }
 0x41d   : > { %v2686_v16 = vadd.f32 %v4299_v63, %v2685_v31 }
 0x41e   : > { %v2733_v19 = vmax.f32 %v2691_v34, 0.0 }
 0x41f   : > { %v2732_v12 = vmax.f32 %v2686_v16, 0.0 }
 0x420   : > { %2765 = vst.msk [vmem:[%s4313_s30 + $0xe8] sm:$0xff] %vm624_vm0, %v2733_v19 }
 0x421   : > { %2764 = vst.msk [vmem:[%s4313_s30 + $0xe0] sm:$0xff] %vm624_vm0, %v2732_v12 }
 0x428   : > { %v3106_v5 = vpop.f32.mrb[30].mxu1 }
 0x429   : > { %v2701_v23 = vadd.f32 %v3106_v5, %v4299_v63  ;;  %v2695_v26 = vpop.f32.mrb[31].mxu1 }
 0x42a   : > { %v2696_v21 = vadd.f32 %v4299_v63, %v2695_v26 }
 0x42b   : > { %v2735_v40 = vmax.f32 %v2701_v23, 0.0 }
 0x42c   : > { %v2734_v24 = vmax.f32 %v2696_v21, 0.0 }
 0x42d   : > { %2767 = vst.msk [vmem:[%s4313_s30 + $0xf8] sm:$0xff] %vm624_vm0, %v2735_v40 }
 0x42e   : > { %2766 = vst.msk [vmem:[%s4313_s30 + $0xf0] sm:$0xff] %vm624_vm0, %v2734_v24 }
 0x42f PF: > { %s15_s18 = sadd.s32 1, %s3159_s18  }
 0x430   : > { %p12_p4 = scmp.ge.s32.totalorder %s15_s18, 4  }
 0x432   :  { %14 = sbr.rel (!%p12_p4) target bundleno = 1 (0x1), region = 72 }

// kernel: dense_aspp_block.6
= control target key start
LH: loop header
LB: loop body
LE: loop exit
PB: predicated region body
PF: predicated region fallthrough
CT: control target
= control target key end

     0   :  { %s3245_s18 = smov 0   ;;  %s4702_s0 = inlined_call_operand.vmem [shape: f32[2,16,16,48], index: 0, kind: input, shape index: {}]   ;;  %s4703_s1 = inlined_call_operand.vmem [shape: f32[48,8], index: 1, kind: input, shape index: {}]   ;;  %s4704_s2 = inlined_call_operand.vmem [shape: f32[1,8], index: 2, kind: input, shape index: {}]   ;;  %s4705_s3 = inlined_call_operand.vmem [shape: f32[72,8], index: 3, kind: input, shape index: {}]   ;;  %s4706_s4 = inlined_call_operand.vmem [shape: f32[1,8], index: 4, kind: input, shape index: {}]   ;;  %s4707_s5 = inlined_call_operand.vmem [shape: f32[2,256,8], index: 5, kind: output, shape index: {}]  }
   0x1 LB: > { %s2869_s19 = sadd.s32 4294967295, %s3204_s18   ;;  %p2873_p0 = scmp.ge.s32.totalorder %s3204_s18, 1  ;;  %s3204_s18 = sphi %s3245_s18, %s15_s18  }
   0x2   : > { %p187_p1 = scmp.lt.s32.totalorder %s3204_s18, 3 }
   0x4   : > { %p188_p2 = pnand %p2873_p0, %p187_p1 }
   0x5   : > { %v257_v0 = vld [vmem:[%s4703_s1] sm:$0xff] (!%p188_p2)  ;;  %v258_v1 = vld [vmem:[%s4703_s1 + $0x8] sm:$0xff] (!%p188_p2)  ;;  %v259_v2 = vld [vmem:[%s4703_s1 + $0x10] sm:$0xff] (!%p188_p2)  ;;  %p215_p3 = scmp.lt.s32.totalorder (!%p188_p2), %s2869_s19, 1  ;;  %vm624_vm0 = vcmask (!%p188_p2), 64512   ;;  %vm628_vm1 = vcmask (!%p188_p2), 60416  }
   0x6   : > { %191 = sbr.rel (%p188_p2) target bundleno = 1047 (0x417), region = 40  ;;  %v3262_v3 = vpack.c.bf16 (!%p188_p2), %v258_v1, %v257_v0  ;;  %v260_v4 = vld [vmem:[%s4703_s1 + $0x18] sm:$0xff] (!%p188_p2)  ;;  %v3272_v6 = vld [vmem:[%s4703_s1 + $0x20] sm:$0xff] (!%p188_p2)  ;;  %v3277_v7 = vld [vmem:[%s4703_s1 + $0x28] sm:$0xff] (!%p188_p2)  ;;  %v3206_v8 = vmov (!%p188_p2), 0.0   ;;  %vm270_vm2 = vcmask (!%p188_p2), 392192  }
   0x7   : > { %v3267_v5 = vpack.c.bf16 (!%p188_p2), %v260_v4, %v259_v2  ;;  %630 = vst.msk [vmem:[#allocation2 + $0x20] sm:$0xff] (!%p188_p2), %vm624_vm0, %v3206_v8  ;;  %631 = vst.msk [vmem:[#allocation2 + $0x28] sm:$0xff] (!%p188_p2), %vm624_vm0, %v3206_v8  ;;  %v3161_v9 = vpack.c.bf16 (!%p188_p2), %v3277_v7, %v3272_v6  ;;  %s3207_s11 = smov (!%p188_p2), 8   ;;  %s3208_s12 = smov (!%p188_p2), 16   ;;  %vm995_vm3 = vcmask (!%p188_p2), 130112   ;;  %vm1188_vm4 = vcmask (!%p188_p2), 195712  }
   0x8   : > { %625 = vst.msk [vmem:[#allocation2] sm:$0xff] (!%p188_p2), %vm624_vm0, %v3206_v8  ;;  %626 = vst.msk [vmem:[#allocation2 + $0x8] sm:$0xff] (!%p188_p2), %vm624_vm0, %v3206_v8  ;;  %3154 = vmatprep.subr.bf16.mxu0 (!%p188_p2), %v3262_v3  ;;  %s3209_s15 = smov (!%p188_p2), 32   ;;  %s3210_s16 = smov (!%p188_p2), 24   ;;  %vm1381_vm5 = vcmask (!%p188_p2), 261312   ;;  %vm1574_vm6 = vcmask (!%p188_p2), 326912  }
   0x9   : > { %627 = vst.msk [vmem:[#allocation2 + $0x10] sm:$0xff] (!%p188_p2), %vm624_vm0, %v3206_v8  ;;  %632 = vst.msk [vmem:[#allocation2 + $0x30] sm:$0xff] (!%p188_p2), %vm624_vm0, %v3206_v8  ;;  %3156 = vmatpush3.bf16.msra.mxu0 (!%p188_p2), %v3262_v3  ;;  %s3211_s17 = smov (!%p188_p2), 40   ;;  %s3212_s20 = smov (!%p188_p2), 56   ;;  %vm1767_vm7 = vcmask (!%p188_p2), 392512   ;;  %vm1961_vm8 = vcmask (!%p188_p2), 458112  }
   0xa   : > { %634 = vst.msk [vmem:[#allocation2 + $0x40] sm:$0xff] (!%p188_p2), %vm624_vm0, %v3206_v8  ;;  %635 = vst.msk [vmem:[#allocation2 + $0x48] sm:$0xff] (!%p188_p2), %vm624_vm0, %v3206_v8  ;;  %3158 = vmatprep.subr.bf16.mxu0 (!%p188_p2), %v3267_v5  ;;  %s3213_s21 = smov (!%p188_p2), 64   ;;  %s3214_s22 = smov (!%p188_p2), 48   ;;  %vm2154_vm9 = vcmask (!%p188_p2), 523712   ;;  %vm2347_vm10 = vcmask (!%p188_p2), 589312  }
   0xb   : > { %636 = vst.msk [vmem:[#allocation2 + $0x50] sm:$0xff] (!%p188_p2), %vm624_vm0, %v3206_v8  ;;  %638 = vst.msk [vmem:[#allocation2 + $0x60] sm:$0xff] (!%p188_p2), %vm624_vm0, %v3206_v8  ;;  %vm2428_vm11 = vcmask (!%p188_p2), 588800  }
   0xc   : > { %639 = vst.msk [vmem:[#allocation2 + $0x68] sm:$0xff] (!%p188_p2), %vm624_vm0, %v3206_v8  ;;  %640 = vst.msk [vmem:[#allocation2 + $0x70] sm:$0xff] (!%p188_p2), %vm624_vm0, %v3206_v8 }
   0xd   : > { %s4709_s19 = smov (!%p215_p3, %s2869_s19), 1  ;;  %642 = vst.msk [vmem:[#allocation2 + $0x80] sm:$0xff] %vm624_vm0, %v3206_v8  ;;  %643 = vst.msk [vmem:[#allocation2 + $0x88] sm:$0xff] %vm624_vm0, %v3206_v8  ;;  %3160 = vmatpush3.bf16.msra.mxu0 %v3267_v5 }
   0xe   : > { %644 = vst.msk [vmem:[#allocation2 + $0x90] sm:$0xff] %vm624_vm0, %v3206_v8  ;;  %646 = vst.msk [vmem:[#allocation2 + $0xa0] sm:$0xff] %vm624_vm0, %v3206_v8  ;;  %s2946_s7 = sshll.u32 %s4709_s19, 8  ;;  %3162 = vmatprep.subr.bf16.mxu0 %v3161_v9  ;;  %v837_v12 = vld [vmem:[#allocation2 + $0x26] sm:$0xff] }
   0xf   : > { %647 = vst.msk [vmem:[#allocation2 + $0xa8] sm:$0xff] %vm624_vm0, %v3206_v8  ;;  %648 = vst.msk [vmem:[#allocation2 + $0xb0] sm:$0xff] %vm624_vm0, %v3206_v8  ;;  %s3516_s10 = scalar_lea.vmem %s4702_s0, %s2946_s7  ;;  %v835_v13 = vld [vmem:[#allocation2 + $0x6] sm:$0xff]  ;;  %903 = vrot.lane.b32.xlu1 %v837_v12, %s3207_s11 }
  0x10   : > { %650 = vst.msk [vmem:[#allocation2 + $0xc0] sm:$0xff] %vm624_vm0, %v3206_v8  ;;  %651 = vst.msk [vmem:[#allocation2 + $0xc8] sm:$0xff] %vm624_vm0, %v3206_v8  ;;  %v225_v10 = vld [vmem:[%s3516_s10] sm:$0xff]  ;;  %v226_v11 = vld [vmem:[%s3516_s10 + $0x8] sm:$0xff]  ;;  %899 = vrot.lane.b32.xlu0 %v835_v13, %s3207_s11 }
  0x11   : > { %652 = vst.msk [vmem:[#allocation2 + $0xd0] sm:$0xff] %vm624_vm0, %v3206_v8  ;;  %654 = vst.msk [vmem:[#allocation2 + $0xe0] sm:$0xff] %vm624_vm0, %v3206_v8  ;;  %3039 = vmatprep.mubr.msk.f32.mxu0 %vm270_vm2, %v225_v10  ;;  %3164 = vmatpush3.bf16.msra.mxu0 %v3161_v9  ;;  %v227_v14 = vld [vmem:[%s3516_s10 + $0x10] sm:$0xff]  ;;  %v228_v17 = vld [vmem:[%s3516_s10 + $0x18] sm:$0xff] }
  0x12   : > { %655 = vst.msk [vmem:[#allocation2 + $0xe8] sm:$0xff] %vm624_vm0, %v3206_v8  ;;  %656 = vst.msk [vmem:[#allocation2 + $0xf0] sm:$0xff] %vm624_vm0, %v3206_v8  ;;  %v838_v15 = vld [vmem:[#allocation2 + $0x2e] sm:$0xff]  ;;  %v229_v18 = vld [vmem:[%s3516_s10 + $0x20] sm:$0xff] }
  0x13   : > { %658 = vst.msk [vmem:[#allocation2 + $0x100] sm:$0xff] %vm624_vm0, %v3206_v8  ;;  %659 = vst.msk [vmem:[#allocation2 + $0x108] sm:$0xff] %vm624_vm0, %v3206_v8  ;;  %v836_v16 = vld [vmem:[#allocation2 + $0xe] sm:$0xff]  ;;  %905 = vrot.lane.b32.xlu1 %v838_v15, %s3207_s11  ;;  %v839_v20 = vld [vmem:[#allocation2 + $0x46] sm:$0xff] }
  0x14   : > { %660 = vst.msk [vmem:[#allocation2 + $0x110] sm:$0xff] %vm624_vm0, %v3206_v8  ;;  %662 = vst.msk [vmem:[#allocation2 + $0x120] sm:$0xff] %vm624_vm0, %v3206_v8  ;;  %3040 = vmatmul.mubr.msk.f32.vlgmr.msra.gmra.mrb[0].mxu0 %vm270_vm2, %v226_v11  ;;  %901 = vrot.lane.b32.xlu0 %v836_v16, %s3207_s11  ;;  %v840_v19 = vld [vmem:[#allocation2 + $0x4e] sm:$0xff]  ;;  %v841_v24 = vld [vmem:[#allocation2 + $0x66] sm:$0xff] }
  0x15   : > { %663 = vst.msk [vmem:[#allocation2 + $0x128] sm:$0xff] %vm624_vm0, %v3206_v8  ;;  %664 = vst.msk [vmem:[#allocation2 + $0x130] sm:$0xff] %vm624_vm0, %v3206_v8  ;;  %3042 = vmatprep.mubr.msk.f32.mxu0 %vm270_vm2, %v227_v14  ;;  %v230_v21 = vld [vmem:[%s3516_s10 + $0x28] sm:$0xff]  ;;  %v231_v22 = vld [vmem:[%s3516_s10 + $0x30] sm:$0xff] }
  0x16   : > { %666 = vst.msk [vmem:[#allocation2 + $0x140] sm:$0xff] %vm624_vm0, %v3206_v8  ;;  %667 = vst.msk [vmem:[#allocation2 + $0x148] sm:$0xff] %vm624_vm0, %v3206_v8  ;;  %v842_v23 = vld [vmem:[#allocation2 + $0x6e] sm:$0xff]  ;;  %v232_v25 = vld [vmem:[%s3516_s10 + $0x38] sm:$0xff] }
  0x17   : > { %668 = vst.msk [vmem:[#allocation2 + $0x150] sm:$0xff] %vm624_vm0, %v3206_v8  ;;  %670 = vst.msk [vmem:[#allocation2 + $0x160] sm:$0xff] %vm624_vm0, %v3206_v8  ;;  %909 = vrot.lane.b32.xlu1 %v840_v19, %s3207_s11  ;;  %v233_v26 = vld [vmem:[%s3516_s10 + $0x40] sm:$0xff]  ;;  %v844_v27 = vld [vmem:[#allocation2 + $0x8e] sm:$0xff] }
  0x18   : > { %671 = vst.msk [vmem:[#allocation2 + $0x168] sm:$0xff] %vm624_vm0, %v3206_v8  ;;  %672 = vst.msk [vmem:[#allocation2 + $0x170] sm:$0xff] %vm624_vm0, %v3206_v8  ;;  %3043 = vmatmul.mubr.msk.f32.gmra.mrb[2].mxu0 %vm270_vm2, %v228_v17  ;;  %907 = vrot.lane.b32.xlu0 %v839_v20, %s3207_s11  ;;  %v843_v28 = vld [vmem:[#allocation2 + $0x86] sm:$0xff]  ;;  %v235_v30 = vld [vmem:[%s3516_s10 + $0x50] sm:$0xff] }
  0x19   : > { %674 = vst.msk [vmem:[#allocation2 + $0x180] sm:$0xff] %vm624_vm0, %v3206_v8  ;;  %675 = vst.msk [vmem:[#allocation2 + $0x188] sm:$0xff] %vm624_vm0, %v3206_v8  ;;  %3045 = vmatprep.mubr.msk.f32.mxu0 %vm270_vm2, %v229_v18  ;;  %v234_v29 = vld [vmem:[%s3516_s10 + $0x48] sm:$0xff]  ;;  %v236_v33 = vld [vmem:[%s3516_s10 + $0x58] sm:$0xff] }
  0x1a   : > { %676 = vst.msk [vmem:[#allocation2 + $0x190] sm:$0xff] %vm624_vm0, %v3206_v8  ;;  %678 = vst.msk [vmem:[#allocation2 + $0x1a0] sm:$0xff] %vm624_vm0, %v3206_v8  ;;  %v846_v31 = vld [vmem:[#allocation2 + $0xae] sm:$0xff]  ;;  %v845_v32 = vld [vmem:[#allocation2 + $0xa6] sm:$0xff] }
  0x1b   : > { %679 = vst.msk [vmem:[#allocation2 + $0x1a8] sm:$0xff] %vm624_vm0, %v3206_v8  ;;  %680 = vst.msk [vmem:[#allocation2 + $0x1b0] sm:$0xff] %vm624_vm0, %v3206_v8  ;;  %913 = vrot.lane.b32.xlu1 %v842_v23, %s3207_s11  ;;  %v237_v34 = vld [vmem:[%s3516_s10 + $0x60] sm:$0xff]  ;;  %v1028_v36 = vld [vmem:[#allocation2 + $0xc] sm:$0xff] }
  0x1c   : > { %682 = vst.msk [vmem:[#allocation2 + $0x1c0] sm:$0xff] %vm624_vm0, %v3206_v8  ;;  %683 = vst.msk [vmem:[#allocation2 + $0x1c8] sm:$0xff] %vm624_vm0, %v3206_v8  ;;  %3046 = vmatmul.mubr.msk.f32.gmra.mrb[4].mxu0 %vm270_vm2, %v230_v21  ;;  %911 = vrot.lane.b32.xlu0 %v841_v24, %s3207_s11  ;;  %v238_v37 = vld [vmem:[%s3516_s10 + $0x68] sm:$0xff]  ;;  %v239_v38 = vld [vmem:[%s3516_s10 + $0x70] sm:$0xff] }
  0x1d   : > { %684 = vst.msk [vmem:[#allocation2 + $0x1d0] sm:$0xff] %vm624_vm0, %v3206_v8  ;;  %686 = vst.msk [vmem:[#allocation2 + $0x1e0] sm:$0xff] %vm624_vm0, %v3206_v8  ;;  %3048 = vmatprep.mubr.msk.f32.mxu0 %vm270_vm2, %v231_v22  ;;  %v1030_v40 = vld [vmem:[#allocation2 + $0x2c] sm:$0xff]  ;;  %v240_v41 = vld [vmem:[%s3516_s10 + $0x78] sm:$0xff] }
  0x1e   : > { %687 = vst.msk [vmem:[#allocation2 + $0x1e8] sm:$0xff] %vm624_vm0, %v3206_v8  ;;  %688 = vst.msk [vmem:[#allocation2 + $0x1f0] sm:$0xff] %vm624_vm0, %v3206_v8  ;;  %v241_v42 = vld [vmem:[%s3516_s10 + $0x80] sm:$0xff]  ;;  %v1032_v44 = vld [vmem:[#allocation2 + $0x4c] sm:$0xff] }
  0x1f   : > { %690 = vst.msk [vmem:[#allocation2 + $0x200] sm:$0xff] %vm624_vm0, %v3206_v8  ;;  %691 = vst.msk [vmem:[#allocation2 + $0x208] sm:$0xff] %vm624_vm0, %v3206_v8  ;;  %917 = vrot.lane.b32.xlu1 %v844_v27, %s3207_s11  ;;  %v242_v45 = vld [vmem:[%s3516_s10 + $0x88] sm:$0xff]  ;;  %v243_v46 = vld [vmem:[%s3516_s10 + $0x90] sm:$0xff] }
  0x20   : > { %692 = vst.msk [vmem:[#allocation2 + $0x210] sm:$0xff] %vm624_vm0, %v3206_v8  ;;  %694 = vst.msk [vmem:[#allocation2 + $0x220] sm:$0xff] %vm624_vm0, %v3206_v8  ;;  %3049 = vmatmul.mubr.msk.f32.gmra.mrb[6].mxu0 %vm270_vm2, %v232_v25  ;;  %915 = vrot.lane.b32.xlu0 %v843_v28, %s3207_s11  ;;  %v244_v47 = vld [vmem:[%s3516_s10 + $0x98] sm:$0xff]  ;;  %v245_v48 = vld [vmem:[%s3516_s10 + $0xa0] sm:$0xff] }
  0x21   : > { %695 = vst.msk [vmem:[#allocation2 + $0x228] sm:$0xff] %vm624_vm0, %v3206_v8  ;;  %696 = vst.msk [vmem:[#allocation2 + $0x230] sm:$0xff] %vm624_vm0, %v3206_v8  ;;  %3051 = vmatprep.mubr.msk.f32.mxu0 %vm270_vm2, %v233_v26  ;;  %v246_v50 = vld [vmem:[%s3516_s10 + $0xa8] sm:$0xff]  ;;  %v247_v56 = vld [vmem:[%s3516_s10 + $0xb0] sm:$0xff] }
  0x22   : > { %698 = vst.msk [vmem:[#allocation2 + $0x240] sm:$0xff] %vm624_vm0, %v3206_v8  ;;  %699 = vst.msk [vmem:[#allocation2 + $0x248] sm:$0xff] %vm624_vm0, %v3206_v8  ;;  %v1034_v51 = vld [vmem:[#allocation2 + $0x6c] sm:$0xff]  ;;  %v248_v57 = vld [vmem:[%s3516_s10 + $0xb8] sm:$0xff] }
  0x23   : > { %700 = vst.msk [vmem:[#allocation2 + $0x250] sm:$0xff] %vm624_vm0, %v3206_v8  ;;  %702 = vst.msk [vmem:[#allocation2 + $0x260] sm:$0xff] %vm624_vm0, %v3206_v8  ;;  %921 = vrot.lane.b32.xlu1 %v846_v31, %s3207_s11  ;;  %v1036_v53 = vld [vmem:[#allocation2 + $0x8c] sm:$0xff]  ;;  %v249_v58 = vld [vmem:[%s3516_s10 + $0xc0] sm:$0xff] }
  0x24   : > { %703 = vst.msk [vmem:[#allocation2 + $0x268] sm:$0xff] %vm624_vm0, %v3206_v8  ;;  %704 = vst.msk [vmem:[#allocation2 + $0x270] sm:$0xff] %vm624_vm0, %v3206_v8  ;;  %3052 = vmatmul.mubr.msk.f32.gmra.mrb[8].mxu0 %vm270_vm2, %v234_v29  ;;  %919 = vrot.lane.b32.xlu0 %v845_v32, %s3207_s11  ;;  %v1038_v55 = vld [vmem:[#allocation2 + $0xac] sm:$0xff]  ;;  %v252_v61 = vld [vmem:[%s3516_s10 + $0xd8] sm:$0xff] }
  0x25   : > { %706 = vst.msk [vmem:[#allocation2 + $0x280] sm:$0xff] %vm624_vm0, %v3206_v8  ;;  %707 = vst.msk [vmem:[#allocation2 + $0x288] sm:$0xff] %vm624_vm0, %v3206_v8  ;;  %3054 = vmatprep.mubr.msk.f32.mxu0 %vm270_vm2, %v235_v30  ;;  %v250_v59 = vld [vmem:[%s3516_s10 + $0xc8] sm:$0xff]  ;;  %v251_v60 = vld [vmem:[%s3516_s10 + $0xd0] sm:$0xff] }
  0x26   : > { %708 = vst.msk [vmem:[#allocation2 + $0x290] sm:$0xff] %vm624_vm0, %v3206_v8  ;;  %710 = vst.msk [vmem:[#allocation2 + $0x2a0] sm:$0xff] %vm624_vm0, %v3206_v8  ;;  %v253_v62 = vld [vmem:[%s3516_s10 + $0xe0] sm:$0xff]  ;;  %v254_v63 = vld [vmem:[%s3516_s10 + $0xe8] sm:$0xff] }
  0x27   : > { %711 = vst.msk [vmem:[#allocation2 + $0x2a8] sm:$0xff] %vm624_vm0, %v3206_v8  ;;  %712 = vst.msk [vmem:[#allocation2 + $0x2b0] sm:$0xff] %vm624_vm0, %v3206_v8  ;;  %v773_v1 = vld [vmem:[#allocation2 + $0x20] sm:$0xff]  ;;  %v774_v4 = vld [vmem:[#allocation2 + $0x28] sm:$0xff] }
  0x28   : > { %714 = vst.msk [vmem:[#allocation2 + $0x2c0] sm:$0xff] %vm624_vm0, %v3206_v8  ;;  %715 = vst.msk [vmem:[#allocation2 + $0x2c8] sm:$0xff] %vm624_vm0, %v3206_v8  ;;  %3055 = vmatmul.mubr.msk.f32.gmra.mrb[10].mxu0 %vm270_vm2, %v236_v33  ;;  %1092 = vrot.lane.b32.xlu0 %v1028_v36, %s3208_s12  ;;  %v771_v3 = vld [vmem:[#allocation2] sm:$0xff]  ;;  %v772_v6 = vld [vmem:[#allocation2 + $0x8] sm:$0xff] }
  0x29   : > { %716 = vst.msk [vmem:[#allocation2 + $0x2d0] sm:$0xff] %vm624_vm0, %v3206_v8  ;;  %718 = vst.msk [vmem:[#allocation2 + $0x2e0] sm:$0xff] %vm624_vm0, %v3206_v8  ;;  %3057 = vmatprep.mubr.msk.f32.mxu0 %vm270_vm2, %v237_v34  ;;  %v775_v10 = vld [vmem:[#allocation2 + $0x40] sm:$0xff]  ;;  %v778_v12 = vld [vmem:[#allocation2 + $0x68] sm:$0xff] }
  0x2a   : > { %719 = vst.msk [vmem:[#allocation2 + $0x2e8] sm:$0xff] %vm624_vm0, %v3206_v8  ;;  %720 = vst.msk [vmem:[#allocation2 + $0x2f0] sm:$0xff] %vm624_vm0, %v3206_v8  ;;  %v777_v14 = vld [vmem:[#allocation2 + $0x60] sm:$0xff]  ;;  %v780_v16 = vld [vmem:[#allocation2 + $0x88] sm:$0xff] }
  0x2b   : > { %722 = vst.msk [vmem:[#allocation2 + $0x300] sm:$0xff] %vm624_vm0, %v3206_v8  ;;  %723 = vst.msk [vmem:[#allocation2 + $0x308] sm:$0xff] %vm624_vm0, %v3206_v8  ;;  %v255_v18 = vld [vmem:[%s3516_s10 + $0xf0] sm:$0xff]  ;;  %v779_v19 = vld [vmem:[#allocation2 + $0x80] sm:$0xff] }
  0x2c   : > { %724 = vst.msk [vmem:[#allocation2 + $0x310] sm:$0xff] %vm624_vm0, %v3206_v8  ;;  %726 = vst.msk [vmem:[#allocation2 + $0x320] sm:$0xff] %vm624_vm0, %v3206_v8  ;;  %3058 = vmatmul.mubr.msk.f32.gmra.mrb[12].mxu0 %vm270_vm2, %v238_v37  ;;  %1096 = vrot.lane.b32.xlu0 %v1030_v40, %s3208_s12  ;;  %v256_v21 = vld [vmem:[%s3516_s10 + $0xf8] sm:$0xff]  ;;  %v782_v22 = vld [vmem:[#allocation2 + $0xa8] sm:$0xff] }
  0x2d   : > { %727 = vst.msk [vmem:[#allocation2 + $0x328] sm:$0xff] %vm624_vm0, %v3206_v8  ;;  %728 = vst.msk [vmem:[#allocation2 + $0x330] sm:$0xff] %vm624_vm0, %v3206_v8  ;;  %3060 = vmatprep.mubr.msk.f32.mxu0 %vm270_vm2, %v239_v38  ;;  %v781_v24 = vld [vmem:[#allocation2 + $0xa0] sm:$0xff] }
  0x2e   : > { %730 = vst.msk [vmem:[#allocation2 + $0x340] sm:$0xff] %vm624_vm0, %v3206_v8  ;;  %731 = vst.msk [vmem:[#allocation2 + $0x348] sm:$0xff] %vm624_vm0, %v3206_v8  ;;  %v3646_v38 = vld [vmem:[%s4704_s2] ss:$0 sm:$0xff] }
  0x2f   : > { %732 = vst.msk [vmem:[#allocation2 + $0x350] sm:$0xff] %vm624_vm0, %v3206_v8  ;;  %734 = vst.msk [vmem:[#allocation2 + $0x360] sm:$0xff] %vm624_vm0, %v3206_v8 }
  0x30   : > { %735 = vst.msk [vmem:[#allocation2 + $0x368] sm:$0xff] %vm624_vm0, %v3206_v8  ;;  %736 = vst.msk [vmem:[#allocation2 + $0x370] sm:$0xff] %vm624_vm0, %v3206_v8  ;;  %3061 = vmatmul.mubr.msk.f32.gmra.mrb[14].mxu0 %vm270_vm2, %v240_v41  ;;  %1100 = vrot.lane.b32.xlu0 %v1032_v44, %s3208_s12 }
  0x31   : > { %629 = vst.msk [vmem:[#allocation2 + $0x18] sm:$0xf] %vm628_vm1, %v3206_v8  ;;  %633 = vst.msk [vmem:[#allocation2 + $0x38] sm:$0xf] %vm628_vm1, %v3206_v8  ;;  %3063 = vmatprep.mubr.msk.f32.mxu0 %vm270_vm2, %v241_v42 }
  0x32   : > { %637 = vst.msk [vmem:[#allocation2 + $0x58] sm:$0xf] %vm628_vm1, %v3206_v8  ;;  %641 = vst.msk [vmem:[#allocation2 + $0x78] sm:$0xf] %vm628_vm1, %v3206_v8 }
  0x33   : > { %645 = vst.msk [vmem:[#allocation2 + $0x98] sm:$0xf] %vm628_vm1, %v3206_v8  ;;  %649 = vst.msk [vmem:[#allocation2 + $0xb8] sm:$0xf] %vm628_vm1, %v3206_v8 }
  0x34   : > { %653 = vst.msk [vmem:[#allocation2 + $0xd8] sm:$0xf] %vm628_vm1, %v3206_v8  ;;  %657 = vst.msk [vmem:[#allocation2 + $0xf8] sm:$0xf] %vm628_vm1, %v3206_v8  ;;  %3064 = vmatmul.mubr.msk.f32.gmra.mrb[16].mxu0 %vm270_vm2, %v242_v45  ;;  %1104 = vrot.lane.b32.xlu0 %v1034_v51, %s3208_s12 }
  0x35   : > { %661 = vst.msk [vmem:[#allocation2 + $0x118] sm:$0xf] %vm628_vm1, %v3206_v8  ;;  %665 = vst.msk [vmem:[#allocation2 + $0x138] sm:$0xf] %vm628_vm1, %v3206_v8  ;;  %3066 = vmatprep.mubr.msk.f32.mxu0 %vm270_vm2, %v243_v46 }
  0x36   : > { %669 = vst.msk [vmem:[#allocation2 + $0x158] sm:$0xf] %vm628_vm1, %v3206_v8  ;;  %673 = vst.msk [vmem:[#allocation2 + $0x178] sm:$0xf] %vm628_vm1, %v3206_v8 }
  0x37   : > { %677 = vst.msk [vmem:[#allocation2 + $0x198] sm:$0xf] %vm628_vm1, %v3206_v8  ;;  %681 = vst.msk [vmem:[#allocation2 + $0x1b8] sm:$0xf] %vm628_vm1, %v3206_v8 }
  0x38   : > { %685 = vst.msk [vmem:[#allocation2 + $0x1d8] sm:$0xf] %vm628_vm1, %v3206_v8  ;;  %689 = vst.msk [vmem:[#allocation2 + $0x1f8] sm:$0xf] %vm628_vm1, %v3206_v8  ;;  %v1029_v35 = vld [vmem:[#allocation2 + $0x14] sm:$0xff]  ;;  %3067 = vmatmul.mubr.msk.f32.gmra.mrb[18].mxu0 %vm270_vm2, %v244_v47  ;;  %1108 = vrot.lane.b32.xlu0 %v1036_v53, %s3208_s12 }
  0x39   : > { %693 = vst.msk [vmem:[#allocation2 + $0x218] sm:$0xf] %vm628_vm1, %v3206_v8  ;;  %697 = vst.msk [vmem:[#allocation2 + $0x238] sm:$0xf] %vm628_vm1, %v3206_v8  ;;  %1094 = vrot.lane.b32.xlu1 %v1029_v35, %s3208_s12  ;;  %v1031_v39 = vld [vmem:[#allocation2 + $0x34] sm:$0xff]  ;;  %3069 = vmatprep.mubr.msk.f32.mxu0 %vm270_vm2, %v245_v48 }
  0x3a   : > { %701 = vst.msk [vmem:[#allocation2 + $0x258] sm:$0xf] %vm628_vm1, %v3206_v8  ;;  %705 = vst.msk [vmem:[#allocation2 + $0x278] sm:$0xf] %vm628_vm1, %v3206_v8  ;;  %v1033_v43 = vld [vmem:[#allocation2 + $0x54] sm:$0xff] }
  0x3b   : > { %709 = vst.msk [vmem:[#allocation2 + $0x298] sm:$0xf] %vm628_vm1, %v3206_v8  ;;  %713 = vst.msk [vmem:[#allocation2 + $0x2b8] sm:$0xf] %vm628_vm1, %v3206_v8  ;;  %v1035_v49 = vld [vmem:[#allocation2 + $0x74] sm:$0xff] }
  0x3c   : > { %717 = vst.msk [vmem:[#allocation2 + $0x2d8] sm:$0xf] %vm628_vm1, %v3206_v8  ;;  %721 = vst.msk [vmem:[#allocation2 + $0x2f8] sm:$0xf] %vm628_vm1, %v3206_v8  ;;  %3070 = vmatmul.mubr.msk.f32.gmra.mrb[20].mxu0 %vm270_vm2, %v246_v50  ;;  %v1037_v52 = vld [vmem:[#allocation2 + $0x94] sm:$0xff]  ;;  %1112 = vrot.lane.b32.xlu0 %v1038_v55, %s3208_s12 }
  0x3d   : > { %725 = vst.msk [vmem:[#allocation2 + $0x318] sm:$0xf] %vm628_vm1, %v3206_v8  ;;  %729 = vst.msk [vmem:[#allocation2 + $0x338] sm:$0xf] %vm628_vm1, %v3206_v8  ;;  %1098 = vrot.lane.b32.xlu1 %v1031_v39, %s3208_s12  ;;  %v1039_v54 = vld [vmem:[#allocation2 + $0xb4] sm:$0xff]  ;;  %3072 = vmatprep.mubr.msk.f32.mxu0 %vm270_vm2, %v247_v56 }
  0x3e   : > { %733 = vst.msk [vmem:[#allocation2 + $0x358] sm:$0xf] %vm628_vm1, %v3206_v8  ;;  %737 = vst.msk [vmem:[#allocation2 + $0x378] sm:$0xf] %vm628_vm1, %v3206_v8  ;;  %v776_v8 = vld [vmem:[#allocation2 + $0x48] sm:$0xff] }
  0x3f   : > { %805 = vst.msk [vmem:[#allocation3 + $0x10] sm:$0xff] %vm624_vm0, %v773_v1  ;;  %803 = vst.msk [vmem:[#allocation3] sm:$0xff] %vm624_vm0, %v771_v3 }
  0x40   : > { %3073 = vmatmul.mubr.msk.f32.gmra.mrb[22].mxu0 %vm270_vm2, %v248_v57  ;;  %806 = vst.msk [vmem:[#allocation3 + $0x18] sm:$0xff] %vm624_vm0, %v774_v4  ;;  %804 = vst.msk [vmem:[#allocation3 + $0x8] sm:$0xff] %vm624_vm0, %v772_v6 }
  0x41   : > { %1102 = vrot.lane.b32.xlu1 %v1033_v43, %s3208_s12  ;;  %3075 = vmatprep.mubr.msk.f32.mxu0 %vm270_vm2, %v249_v58  ;;  %808 = vst.msk [vmem:[#allocation3 + $0x28] sm:$0xff] %vm624_vm0, %v776_v8  ;;  %807 = vst.msk [vmem:[#allocation3 + $0x20] sm:$0xff] %vm624_vm0, %v775_v10 }
  0x42   : > { %810 = vst.msk [vmem:[#allocation3 + $0x38] sm:$0xff] %vm624_vm0, %v778_v12  ;;  %809 = vst.msk [vmem:[#allocation3 + $0x30] sm:$0xff] %vm624_vm0, %v777_v14 }
  0x43   : > { %812 = vst.msk [vmem:[#allocation3 + $0x48] sm:$0xff] %vm624_vm0, %v780_v16  ;;  %811 = vst.msk [vmem:[#allocation3 + $0x40] sm:$0xff] %vm624_vm0, %v779_v19 }
  0x44   : > { %3076 = vmatmul.mubr.msk.f32.gmra.mrb[24].mxu0 %vm270_vm2, %v250_v59  ;;  %814 = vst.msk [vmem:[#allocation3 + $0x58] sm:$0xff] %vm624_vm0, %v782_v22  ;;  %813 = vst.msk [vmem:[#allocation3 + $0x50] sm:$0xff] %vm624_vm0, %v781_v24 }
  0x45   : > { %1106 = vrot.lane.b32.xlu1 %v1035_v49, %s3208_s12  ;;  %3078 = vmatprep.mubr.msk.f32.mxu0 %vm270_vm2, %v251_v60 }
  0x48   : > { %3079 = vmatmul.mubr.msk.f32.gmra.mrb[26].mxu0 %vm270_vm2, %v252_v61 }
  0x49   : > { %1110 = vrot.lane.b32.xlu1 %v1037_v52, %s3208_s12  ;;  %3081 = vmatprep.mubr.msk.f32.mxu0 %vm270_vm2, %v253_v62 }
  0x4c   : > { %3082 = vmatmul.mubr.msk.f32.gmra.mrb[28].mxu0 %vm270_vm2, %v254_v63 }
  0x4d   : > { %1114 = vrot.lane.b32.xlu1 %v1039_v54, %s3208_s12  ;;  %3084 = vmatprep.mubr.msk.f32.mxu0 %vm270_vm2, %v255_v18 }
  0x50   : > { %3085 = vmatmul.mubr.msk.f32.gmra.mrb[30].mxu0 %vm270_vm2, %v256_v21 }
  0x81   : > { %v904_v0 = vpop.permute.xlu1 %903 }
  0x82   : > { %v900_v2 = vpop.permute.xlu0 %899  ;;  %998 = vst.msk [vmem:[#allocation3 + $0x10] sm:$0xff] %vm995_vm3, %v904_v0 }
  0x83   : > { %996 = vst.msk [vmem:[#allocation3] sm:$0xff] %vm995_vm3, %v900_v2 }
  0x85   : > { %v906_v5 = vpop.permute.xlu1 %905 }
  0x86   : > { %v902_v7 = vpop.permute.xlu0 %901  ;;  %999 = vst.msk [vmem:[#allocation3 + $0x18] sm:$0xff] %vm995_vm3, %v906_v5 }
  0x87   : > { %997 = vst.msk [vmem:[#allocation3 + $0x8] sm:$0xff] %vm995_vm3, %v902_v7 }
  0x89   : > { %v910_v9 = vpop.permute.xlu1 %909 }
  0x8a   : > { %v908_v11 = vpop.permute.xlu0 %907  ;;  %1001 = vst.msk [vmem:[#allocation3 + $0x28] sm:$0xff] %vm995_vm3, %v910_v9 }
  0x8b   : > { %1000 = vst.msk [vmem:[#allocation3 + $0x20] sm:$0xff] %vm995_vm3, %v908_v11 }
  0x8d   : > { %v914_v13 = vpop.permute.xlu1 %913 }
  0x8e   : > { %v912_v15 = vpop.permute.xlu0 %911  ;;  %1003 = vst.msk [vmem:[#allocation3 + $0x38] sm:$0xff] %vm995_vm3, %v914_v13 }
  0x8f   : > { %1002 = vst.msk [vmem:[#allocation3 + $0x30] sm:$0xff] %vm995_vm3, %v912_v15 }
  0x91   : > { %v918_v17 = vpop.permute.xlu1 %917 }
  0x92   : > { %v916_v20 = vpop.permute.xlu0 %915  ;;  %1005 = vst.msk [vmem:[#allocation3 + $0x48] sm:$0xff] %vm995_vm3, %v918_v17 }
  0x93   : > { %1004 = vst.msk [vmem:[#allocation3 + $0x40] sm:$0xff] %vm995_vm3, %v916_v20 }
  0x95   : > { %v922_v23 = vpop.permute.xlu1 %921 }
  0x96   : > { %v920_v25 = vpop.permute.xlu0 %919  ;;  %1007 = vst.msk [vmem:[#allocation3 + $0x58] sm:$0xff] %vm995_vm3, %v922_v23 }
  0x97   : > { %1006 = vst.msk [vmem:[#allocation3 + $0x50] sm:$0xff] %vm995_vm3, %v920_v25 }
  0x9a   : > { %v1093_v27 = vpop.permute.xlu0 %1092 }
  0x9b   : > { %1189 = vst.msk [vmem:[#allocation3] sm:$0xff] %vm1188_vm4, %v1093_v27 }
  0x9e   : > { %v1097_v29 = vpop.permute.xlu0 %1096 }
  0x9f   : > { %1191 = vst.msk [vmem:[#allocation3 + $0x10] sm:$0xff] %vm1188_vm4, %v1097_v29 }
  0xa2   : > { %v1101_v31 = vpop.permute.xlu0 %1100 }
  0xa3   : > { %1193 = vst.msk [vmem:[#allocation3 + $0x20] sm:$0xff] %vm1188_vm4, %v1101_v31 }
  0xa6   : > { %v1105_v33 = vpop.permute.xlu0 %1104 }
  0xa7   : > { %1195 = vst.msk [vmem:[#allocation3 + $0x30] sm:$0xff] %vm1188_vm4, %v1105_v33 }
  0xaa   : > { %v1109_v35 = vpop.permute.xlu0 %1108 }
  0xab   : > { %v1095_v26 = vpop.permute.xlu1 %1094  ;;  %1197 = vst.msk [vmem:[#allocation3 + $0x40] sm:$0xff] %vm1188_vm4, %v1109_v35 }
  0xac   : > { %1190 = vst.msk [vmem:[#allocation3 + $0x8] sm:$0xff] %vm1188_vm4, %v1095_v26 }
  0xae   : > { %v1113_v37 = vpop.permute.xlu0 %1112 }
  0xaf   : > { %v1099_v28 = vpop.permute.xlu1 %1098  ;;  %1199 = vst.msk [vmem:[#allocation3 + $0x50] sm:$0xff] %vm1188_vm4, %v1113_v37 }
  0xb0   : > { %1192 = vst.msk [vmem:[#allocation3 + $0x18] sm:$0xff] %vm1188_vm4, %v1099_v28 }
  0xb3   : > { %v1103_v30 = vpop.permute.xlu1 %1102 }
  0xb4   : > { %1194 = vst.msk [vmem:[#allocation3 + $0x28] sm:$0xff] %vm1188_vm4, %v1103_v30 }
  0xb7   : > { %v1107_v32 = vpop.permute.xlu1 %1106 }
  0xb8   : > { %1196 = vst.msk [vmem:[#allocation3 + $0x38] sm:$0xff] %vm1188_vm4, %v1107_v32 }
  0xbb   : > { %v1111_v34 = vpop.permute.xlu1 %1110 }
  0xbc   : > { %1198 = vst.msk [vmem:[#allocation3 + $0x48] sm:$0xff] %vm1188_vm4, %v1111_v34 }
  0xbf   : > { %v1115_v36 = vpop.permute.xlu1 %1114 }
  0xc0   : > { %1200 = vst.msk [vmem:[#allocation3 + $0x58] sm:$0xff] %vm1188_vm4, %v1115_v36 }
  0xe7   : > { %v3041_v39 = vpop.f32.mrb[0].mxu0 }
  0xe8   : > { %v439_v40 = vadd.f32 %v3041_v39, %v3646_v38  ;;  %v433_v41 = vpop.f32.mrb[1].mxu0 }
  0xe9   : > { %v434_v42 = vadd.f32 %v3646_v38, %v433_v41 }
  0xea   : > { %v593_v43 = vmax.f32 %v439_v40, 0.0 }
  0xeb   : > { %v592_v44 = vmax.f32 %v434_v42, 0.0  ;;  %v3044_v45 = vpop.f32.mrb[2].mxu0 }
  0xec   : > { %740 = vst.msk [vmem:[#allocation2 + $0xce] sm:$0xff] %vm624_vm0, %v593_v43  ;;  %v449_v46 = vadd.f32 %v3044_v45, %v3646_v38  ;;  %v443_v47 = vpop.f32.mrb[3].mxu0 }
  0xed   : > { %739 = vst.msk [vmem:[#allocation2 + $0xc6] sm:$0xff] %vm624_vm0, %v592_v44  ;;  %v444_v48 = vadd.f32 %v3646_v38, %v443_v47 }
  0xee   : > { %v595_v49 = vmax.f32 %v449_v46, 0.0 }
  0xef   : > { %v594_v50 = vmax.f32 %v444_v48, 0.0  ;;  %v3047_v51 = vpop.f32.mrb[4].mxu0 }
  0xf0   : > { %742 = vst.msk [vmem:[#allocation2 + $0xee] sm:$0xff] %vm624_vm0, %v595_v49  ;;  %v459_v52 = vadd.f32 %v3047_v51, %v3646_v38  ;;  %v453_v53 = vpop.f32.mrb[5].mxu0 }
  0xf1   : > { %741 = vst.msk [vmem:[#allocation2 + $0xe6] sm:$0xff] %vm624_vm0, %v594_v50  ;;  %v454_v54 = vadd.f32 %v3646_v38, %v453_v53 }
  0xf2   : > { %v597_v55 = vmax.f32 %v459_v52, 0.0 }
  0xf3   : > { %v848_v56 = vld [vmem:[#allocation2 + $0xce] sm:$0xff]  ;;  %v596_v57 = vmax.f32 %v454_v54, 0.0  ;;  %v3050_v58 = vpop.f32.mrb[6].mxu0 }
  0xf4   : > { %925 = vrot.lane.b32.xlu1 %v848_v56, %s3207_s11  ;;  %v847_v59 = vld [vmem:[#allocation2 + $0xc6] sm:$0xff]  ;;  %744 = vst.msk [vmem:[#allocation2 + $0x10e] sm:$0xff] %vm624_vm0, %v597_v55  ;;  %v469_v61 = vadd.f32 %v3050_v58, %v3646_v38  ;;  %v463_v62 = vpop.f32.mrb[7].mxu0  ;;  %v1041_v2 = vld [vmem:[#allocation2 + $0xd4] sm:$0xff] }
  0xf5   : > { %v1221_v60 = vld [vmem:[#allocation2 + $0xc0] sm:$0xff]  ;;  %923 = vrot.lane.b32.xlu0 %v847_v59, %s3207_s11  ;;  %v1222_v63 = vld [vmem:[#allocation2 + $0xc8] sm:$0xff]  ;;  %743 = vst.msk [vmem:[#allocation2 + $0x106] sm:$0xff] %vm624_vm0, %v596_v57  ;;  %v464_v0 = vadd.f32 %v3646_v38, %v463_v62 }
  0xf6   : > { %815 = vst.msk [vmem:[#allocation3 + $0x60] sm:$0xff] %vm624_vm0, %v1221_v60  ;;  %v599_v1 = vmax.f32 %v469_v61, 0.0  ;;  %816 = vst.msk [vmem:[#allocation3 + $0x68] sm:$0xff] %vm624_vm0, %v1222_v63  ;;  %v1040_v5 = vld [vmem:[#allocation2 + $0xcc] sm:$0xff] }
  0xf7   : > { %v598_v3 = vmax.f32 %v464_v0, 0.0  ;;  %v3053_v4 = vpop.f32.mrb[8].mxu0  ;;  %v850_v33 = vld [vmem:[#allocation2 + $0xee] sm:$0xff] }
  0xf8   : > { %1118 = vrot.lane.b32.xlu1 %v1041_v2, %s3208_s12  ;;  %v3667_v6 = vld [vmem:[#allocation2 + $0xe8] sm:$0xff]  ;;  %746 = vst.msk [vmem:[#allocation2 + $0x12e] sm:$0xff] %vm624_vm0, %v599_v1  ;;  %v479_v7 = vadd.f32 %v3053_v4, %v3646_v38  ;;  %v473_v8 = vpop.f32.mrb[9].mxu0  ;;  %v3672_v9 = vld [vmem:[#allocation2 + $0xe0] sm:$0xff]  ;;  %v1043_v45 = vld [vmem:[#allocation2 + $0xf4] sm:$0xff] }
  0xf9   : > { %1116 = vrot.lane.b32.xlu0 %v1040_v5, %s3208_s12  ;;  %745 = vst.msk [vmem:[#allocation2 + $0x126] sm:$0xff] %vm624_vm0, %v598_v3  ;;  %v474_v10 = vadd.f32 %v3646_v38, %v473_v8  ;;  %818 = vst.msk [vmem:[#allocation3 + $0x78] sm:$0xff] %vm624_vm0, %v3667_v6  ;;  %v849_v47 = vld [vmem:[#allocation2 + $0xe6] sm:$0xff] }
  0xfa   : > { %v601_v11 = vmax.f32 %v479_v7, 0.0  ;;  %817 = vst.msk [vmem:[#allocation3 + $0x70] sm:$0xff] %vm624_vm0, %v3672_v9  ;;  %v1042_v51 = vld [vmem:[#allocation2 + $0xec] sm:$0xff] }
  0xfb   : > { %v600_v12 = vmax.f32 %v474_v10, 0.0  ;;  %v3056_v13 = vpop.f32.mrb[10].mxu0  ;;  %v1419_v54 = vld [vmem:[#allocation2 + $0x10e] sm:$0xff] }
  0xfc   : > { %1480 = vrot.lane.b32.xlu1 %v848_v56, %s3209_s15  ;;  %v3681_v14 = vld [vmem:[#allocation2 + $0x100] sm:$0xff]  ;;  %748 = vst.msk [vmem:[#allocation2 + $0x14e] sm:$0xff] %vm624_vm0, %v601_v11  ;;  %v489_v15 = vadd.f32 %v3056_v13, %v3646_v38  ;;  %v483_v16 = vpop.f32.mrb[11].mxu0  ;;  %v3687_v17 = vld [vmem:[#allocation2 + $0x108] sm:$0xff] }
  0xfd   : > { %1285 = vrot.lane.b32.xlu0 %v1221_v60, %s3210_s16  ;;  %747 = vst.msk [vmem:[#allocation2 + $0x146] sm:$0xff] %vm624_vm0, %v600_v12  ;;  %v484_v18 = vadd.f32 %v3646_v38, %v483_v16  ;;  %819 = vst.msk [vmem:[#allocation3 + $0x80] sm:$0xff] %vm624_vm0, %v3681_v14  ;;  %v851_v57 = vld [vmem:[#allocation2 + $0x106] sm:$0xff] }
  0xfe   : > { %v603_v19 = vmax.f32 %v489_v15, 0.0  ;;  %820 = vst.msk [vmem:[#allocation3 + $0x88] sm:$0xff] %vm624_vm0, %v3687_v17  ;;  %v1044_v58 = vld [vmem:[#allocation2 + $0x10c] sm:$0xff] }
  0xff   : > { %v602_v20 = vmax.f32 %v484_v18, 0.0  ;;  %v3059_v21 = vpop.f32.mrb[12].mxu0  ;;  %v1421_v0 = vld [vmem:[#allocation2 + $0x12e] sm:$0xff] }
 0x100   : > { %1673 = vrot.lane.b32.xlu1 %v1041_v2, %s3211_s17  ;;  %v3695_v22 = vld [vmem:[#allocation2 + $0x120] sm:$0xff]  ;;  %750 = vst.msk [vmem:[#allocation2 + $0x16e] sm:$0xff] %vm624_vm0, %v603_v19  ;;  %v499_v23 = vadd.f32 %v3059_v21, %v3646_v38  ;;  %v493_v24 = vpop.f32.mrb[13].mxu0  ;;  %v3701_v25 = vld [vmem:[#allocation2 + $0x128] sm:$0xff]  ;;  %v1047_v8 = vld [vmem:[#allocation2 + $0x134] sm:$0xff] }
 0x101   : > { %1478 = vrot.lane.b32.xlu0 %v847_v59, %s3209_s15  ;;  %749 = vst.msk [vmem:[#allocation2 + $0x166] sm:$0xff] %vm624_vm0, %v602_v20  ;;  %v494_v26 = vadd.f32 %v3646_v38, %v493_v24  ;;  %821 = vst.msk [vmem:[#allocation3 + $0x90] sm:$0xff] %vm624_vm0, %v3695_v22  ;;  %v1045_v59 = vld [vmem:[#allocation2 + $0x114] sm:$0xff]  ;;  %v853_v3 = vld [vmem:[#allocation2 + $0x126] sm:$0xff] }
 0x102   : > { %v605_v27 = vmax.f32 %v499_v23, 0.0  ;;  %822 = vst.msk [vmem:[#allocation3 + $0x98] sm:$0xff] %vm624_vm0, %v3701_v25  ;;  %v1046_v4 = vld [vmem:[#allocation2 + $0x12c] sm:$0xff] }
 0x103   : > { %v604_v28 = vmax.f32 %v494_v26, 0.0  ;;  %v3062_v29 = vpop.f32.mrb[14].mxu0  ;;  %v1423_v7 = vld [vmem:[#allocation2 + $0x14e] sm:$0xff] }
 0x104   : > { %1287 = vrot.lane.b32.xlu1 %v1222_v63, %s3210_s16  ;;  %v3709_v30 = vld [vmem:[#allocation2 + $0x140] sm:$0xff]  ;;  %752 = vst.msk [vmem:[#allocation2 + $0x18e] sm:$0xff] %vm624_vm0, %v605_v27  ;;  %v509_v31 = vadd.f32 %v3062_v29, %v3646_v38  ;;  %v503_v32 = vpop.f32.mrb[15].mxu0  ;;  %v3715_v34 = vld [vmem:[#allocation2 + $0x148] sm:$0xff]  ;;  %v1049_v26 = vld [vmem:[#allocation2 + $0x154] sm:$0xff] }
 0x105   : > { %1671 = vrot.lane.b32.xlu0 %v1040_v5, %s3211_s17  ;;  %751 = vst.msk [vmem:[#allocation2 + $0x186] sm:$0xff] %vm624_vm0, %v604_v28  ;;  %v504_v35 = vadd.f32 %v3646_v38, %v503_v32  ;;  %823 = vst.msk [vmem:[#allocation3 + $0xa0] sm:$0xff] %vm624_vm0, %v3709_v30  ;;  %v855_v10 = vld [vmem:[#allocation2 + $0x146] sm:$0xff] }
 0x106   : > { %v607_v36 = vmax.f32 %v509_v31, 0.0  ;;  %824 = vst.msk [vmem:[#allocation3 + $0xa8] sm:$0xff] %vm624_vm0, %v3715_v34  ;;  %v1048_v16 = vld [vmem:[#allocation2 + $0x14c] sm:$0xff] }
 0x107   : > { %v606_v37 = vmax.f32 %v504_v35, 0.0  ;;  %v3065_v40 = vpop.f32.mrb[16].mxu0 }
 0x108   : > { %929 = vrot.lane.b32.xlu1 %v850_v33, %s3207_s11  ;;  %v3723_v39 = vld [vmem:[#allocation2 + $0x160] sm:$0xff]  ;;  %754 = vst.msk [vmem:[#allocation2 + $0x1ae] sm:$0xff] %vm624_vm0, %v607_v36  ;;  %v3728_v41 = vld [vmem:[#allocation2 + $0x168] sm:$0xff]  ;;  %v519_v42 = vadd.f32 %v3065_v40, %v3646_v38  ;;  %v513_v43 = vpop.f32.mrb[17].mxu0 }
 0x109   : > { %1484 = vrot.lane.b32.xlu0 %v850_v33, %s3209_s15  ;;  %753 = vst.msk [vmem:[#allocation2 + $0x1a6] sm:$0xff] %vm624_vm0, %v606_v37  ;;  %825 = vst.msk [vmem:[#allocation3 + $0xb0] sm:$0xff] %vm624_vm0, %v3723_v39  ;;  %v514_v44 = vadd.f32 %v3646_v38, %v513_v43  ;;  %v3819_v21 = vld [vmem:[#allocation2 + $0x166] sm:$0xff]  ;;  %v1051_v43 = vld [vmem:[#allocation2 + $0x174] sm:$0xff] }
 0x10a   : > { %826 = vst.msk [vmem:[#allocation3 + $0xb8] sm:$0xff] %vm624_vm0, %v3728_v41  ;;  %v609_v46 = vmax.f32 %v519_v42, 0.0 }
 0x10b   : > { %v608_v49 = vmax.f32 %v514_v44, 0.0  ;;  %v3068_v60 = vpop.f32.mrb[18].mxu0  ;;  %v3834_v27 = vld [vmem:[#allocation2 + $0x18e] sm:$0xff] }
 0x10c   : > { %1122 = vrot.lane.b32.xlu1 %v1043_v45, %s3208_s12  ;;  %v3737_v48 = vld [vmem:[#allocation2 + $0x180] sm:$0xff]  ;;  %756 = vst.msk [vmem:[#allocation2 + $0x1ce] sm:$0xff] %vm624_vm0, %v609_v46  ;;  %v3741_v50 = vld [vmem:[#allocation2 + $0x188] sm:$0xff]  ;;  %v529_v61 = vadd.f32 %v3068_v60, %v3646_v38  ;;  %v523_v62 = vpop.f32.mrb[19].mxu0  ;;  %v3842_v31 = vld [vmem:[#allocation2 + $0x194] sm:$0xff] }
 0x10d   : > { %927 = vrot.lane.b32.xlu0 %v849_v47, %s3207_s11  ;;  %827 = vst.msk [vmem:[#allocation3 + $0xc0] sm:$0xff] %vm624_vm0, %v3737_v48  ;;  %755 = vst.msk [vmem:[#allocation2 + $0x1c6] sm:$0xff] %vm624_vm0, %v608_v49  ;;  %v524_v63 = vadd.f32 %v3646_v38, %v523_v62  ;;  %v2413_v62 = vld [vmem:[%s4705_s3 + $0x8] sm:$0xff] }
 0x10e   : > { %828 = vst.msk [vmem:[#allocation3 + $0xc8] sm:$0xff] %vm624_vm0, %v3741_v50  ;;  %v611_v1 = vmax.f32 %v529_v61, 0.0 }
 0x10f   : > { %v610_v2 = vmax.f32 %v524_v63, 0.0 }
 0x110   : > { %1677 = vrot.lane.b32.xlu1 %v1043_v45, %s3211_s17  ;;  %v3749_v52 = vld [vmem:[#allocation2 + $0x1a0] sm:$0xff]  ;;  %v3752_v53 = vld [vmem:[#allocation2 + $0x1a8] sm:$0xff]  ;;  %758 = vst.msk [vmem:[#allocation2 + $0x1ee] sm:$0xff] %vm624_vm0, %v611_v1 }
 0x111   : > { %1120 = vrot.lane.b32.xlu0 %v1042_v51, %s3208_s12  ;;  %829 = vst.msk [vmem:[#allocation3 + $0xd0] sm:$0xff] %vm624_vm0, %v3749_v52  ;;  %830 = vst.msk [vmem:[#allocation3 + $0xd8] sm:$0xff] %vm624_vm0, %v3752_v53 }
 0x112   : > { %757 = vst.msk [vmem:[#allocation2 + $0x1e6] sm:$0xff] %vm624_vm0, %v610_v2  ;;  %v3901_v2 = vld [vmem:[#allocation2 + $0x1b4] sm:$0xff] }
 0x114   : > { %1291 = vrot.lane.b32.xlu1 %v3667_v6, %s3210_s16  ;;  %v3762_v55 = vld [vmem:[#allocation2 + $0x1c0] sm:$0xff]  ;;  %v3764_v56 = vld [vmem:[#allocation2 + $0x1c8] sm:$0xff] }
 0x115   : > { %1289 = vrot.lane.b32.xlu0 %v3672_v9, %s3210_s16  ;;  %831 = vst.msk [vmem:[#allocation3 + $0xe0] sm:$0xff] %vm624_vm0, %v3762_v55  ;;  %832 = vst.msk [vmem:[#allocation3 + $0xe8] sm:$0xff] %vm624_vm0, %v3764_v56  ;;  %v3071_v9 = vpop.f32.mrb[20].mxu0 }
 0x116   : > { %v539_v11 = vadd.f32 %v3071_v9, %v3646_v38  ;;  %v533_v12 = vpop.f32.mrb[21].mxu0 }
 0x117   : > { %v534_v13 = vadd.f32 %v3646_v38, %v533_v12  ;;  %v3074_v18 = vpop.f32.mrb[22].mxu0  ;;  %v2417_v12 = vld [vmem:[%s4705_s3 + $0x28] sm:$0xff] }
 0x118   : > { %1482 = vrot.lane.b32.xlu1 %v849_v47, %s3209_s15  ;;  %v549_v19 = vadd.f32 %v3074_v18, %v3646_v38  ;;  %v543_v20 = vpop.f32.mrb[23].mxu0 }
 0x119   : > { %1488 = vrot.lane.b32.xlu0 %v1419_v54, %s3209_s15  ;;  %v3790_v5 = vld [vmem:[#allocation2 + $0x1e0] sm:$0xff]  ;;  %v3792_v6 = vld [vmem:[#allocation2 + $0x1e8] sm:$0xff]  ;;  %v612_v15 = vmax.f32 %v534_v13, 0.0  ;;  %v3077_v28 = vpop.f32.mrb[24].mxu0 }
 0x11a   : > { %833 = vst.msk [vmem:[#allocation3 + $0xf0] sm:$0xff] %vm624_vm0, %v3790_v5  ;;  %834 = vst.msk [vmem:[#allocation3 + $0xf8] sm:$0xff] %vm624_vm0, %v3792_v6  ;;  %v615_v23 = vmax.f32 %v549_v19, 0.0  ;;  %v559_v29 = vadd.f32 %v3077_v28, %v3646_v38  ;;  %v3929_v19 = vld [vmem:[#allocation2 + $0x1ac] sm:$0xff]  ;;  %v2420_v28 = vld [vmem:[%s4705_s3 + $0x40] sm:$0xff] }
 0x11b   : > { %759 = vst.msk [vmem:[#allocation2 + $0x206] sm:$0xff] %vm624_vm0, %v612_v15 }
 0x11c   : > { %1675 = vrot.lane.b32.xlu1 %v1042_v51, %s3211_s17  ;;  %762 = vst.msk [vmem:[#allocation2 + $0x22e] sm:$0xff] %vm624_vm0, %v615_v23  ;;  %v617_v33 = vmax.f32 %v559_v29, 0.0 }
 0x11d   : > { %931 = vrot.lane.b32.xlu0 %v851_v57, %s3207_s11 }
 0x11e   : > { %764 = vst.msk [vmem:[#allocation2 + $0x24e] sm:$0xff] %vm624_vm0, %v617_v33 }
 0x120   : > { %933 = vrot.lane.b32.xlu1 %v1419_v54, %s3207_s11 }
 0x121   : > { %1124 = vrot.lane.b32.xlu0 %v1044_v58, %s3208_s12 }
 0x124   : > { %1126 = vrot.lane.b32.xlu1 %v1045_v59, %s3208_s12 }
 0x125   : > { %1293 = vrot.lane.b32.xlu0 %v3681_v14, %s3210_s16  ;;  %v613_v14 = vmax.f32 %v539_v11, 0.0  ;;  %v2416_v11 = vld [vmem:[%s4705_s3 + $0x20] sm:$0xff] }
 0x126   : > { %v3173_v13 = vpack.c.bf16 %v2417_v12, %v2416_v11  ;;  %v4047_v11 = vld [vmem:[#allocation2 + $0x1ec] sm:$0xff] }
 0x127   : > { %760 = vst.msk [vmem:[#allocation2 + $0x20e] sm:$0xff] %vm624_vm0, %v613_v14 }
 0x128   : > { %1681 = vrot.lane.b32.xlu1 %v1045_v59, %s3211_s17 }
 0x129   : > { %1492 = vrot.lane.b32.xlu0 %v1421_v0, %s3209_s15 }
 0x12c   : > { %1295 = vrot.lane.b32.xlu1 %v3687_v17, %s3210_s16  ;;  %v1425_v17 = vld [vmem:[#allocation2 + $0x16e] sm:$0xff] }
 0x12d   : > { %935 = vrot.lane.b32.xlu0 %v853_v3, %s3207_s11 }
 0x130   : > { %1486 = vrot.lane.b32.xlu1 %v851_v57, %s3209_s15 }
 0x131   : > { %1128 = vrot.lane.b32.xlu0 %v1046_v4, %s3208_s12 }
 0x134   : > { %1679 = vrot.lane.b32.xlu1 %v1044_v58, %s3211_s17 }
 0x135   : > { %1297 = vrot.lane.b32.xlu0 %v3695_v22, %s3210_s16  ;;  %v544_v22 = vadd.f32 %v3646_v38, %v543_v20 }
 0x137   : > { %v614_v24 = vmax.f32 %v544_v22, 0.0  ;;  %v2419_v22 = vld [vmem:[%s4705_s3 + $0x38] sm:$0xff] }
 0x138   : > { %937 = vrot.lane.b32.xlu1 %v1421_v0, %s3207_s11 }
 0x139   : > { %1496 = vrot.lane.b32.xlu0 %v1423_v7, %s3209_s15  ;;  %761 = vst.msk [vmem:[#allocation2 + $0x226] sm:$0xff] %vm624_vm0, %v614_v24 }
 0x13c   : > { %1130 = vrot.lane.b32.xlu1 %v1047_v8, %s3208_s12 }
 0x13d   : > { %939 = vrot.lane.b32.xlu0 %v855_v10, %s3207_s11 }
 0x140   : > { %1685 = vrot.lane.b32.xlu1 %v1047_v8, %s3211_s17 }
 0x141   : > { %1132 = vrot.lane.b32.xlu0 %v1048_v16, %s3208_s12 }
 0x144   : > { %1299 = vrot.lane.b32.xlu1 %v3701_v25, %s3210_s16  ;;  %v3826_v25 = vld [vmem:[#allocation2 + $0x16c] sm:$0xff] }
 0x145   : > { %1301 = vrot.lane.b32.xlu0 %v3709_v30, %s3210_s16  ;;  %v553_v30 = vpop.f32.mrb[25].mxu0 }
 0x146   : > { %v554_v32 = vadd.f32 %v3646_v38, %v553_v30  ;;  %v3080_v45 = vpop.f32.mrb[26].mxu0 }
 0x147   : > { %v569_v47 = vadd.f32 %v3080_v45, %v3646_v38  ;;  %v563_v49 = vpop.f32.mrb[27].mxu0  ;;  %v3983_v45 = vld [vmem:[#allocation2 + $0x1c6] sm:$0xff] }
 0x148   : > { %1490 = vrot.lane.b32.xlu1 %v853_v3, %s3209_s15  ;;  %v616_v35 = vmax.f32 %v554_v32, 0.0  ;;  %v564_v51 = vadd.f32 %v3646_v38, %v563_v49  ;;  %v2414_v3 = vld [vmem:[%s4705_s3 + $0x10] sm:$0xff]  ;;  %v3083_v15 = vpop.f32.mrb[28].mxu0 }
 0x149   : > { %1500 = vrot.lane.b32.xlu0 %v1425_v17, %s3209_s15  ;;  %v619_v54 = vmax.f32 %v569_v47, 0.0  ;;  %v573_v18 = vpop.f32.mrb[29].mxu0 }
 0x14a   : > { %763 = vst.msk [vmem:[#allocation2 + $0x246] sm:$0xff] %vm624_vm0, %v616_v35  ;;  %v618_v58 = vmax.f32 %v564_v51, 0.0  ;;  %v574_v20 = vadd.f32 %v3646_v38, %v573_v18 }
 0x14b   : > { %766 = vst.msk [vmem:[#allocation2 + $0x26e] sm:$0xff] %vm624_vm0, %v619_v54 }
 0x14c   : > { %1683 = vrot.lane.b32.xlu1 %v1046_v4, %s3211_s17  ;;  %765 = vst.msk [vmem:[#allocation2 + $0x266] sm:$0xff] %vm624_vm0, %v618_v58  ;;  %v2415_v4 = vld [vmem:[%s4705_s3 + $0x18] sm:$0xff] }
 0x14d   : > { %943 = vrot.lane.b32.xlu0 %v3819_v21, %s3207_s11  ;;  %v3169_v8 = vpack.c.bf16 %v2415_v4, %v2414_v3 }
 0x150   : > { %941 = vrot.lane.b32.xlu1 %v1423_v7, %s3207_s11 }
 0x151   : > { %1136 = vrot.lane.b32.xlu0 %v3826_v25, %s3208_s12 }
 0x154   : > { %1134 = vrot.lane.b32.xlu1 %v1049_v26, %s3208_s12 }
 0x155   : > { %1305 = vrot.lane.b32.xlu0 %v3723_v39, %s3210_s16  ;;  %v3860_v39 = vld [vmem:[#allocation2 + $0x18c] sm:$0xff] }
 0x158   : > { %1689 = vrot.lane.b32.xlu1 %v1049_v26, %s3211_s17  ;;  %v620_v26 = vmax.f32 %v574_v20, 0.0 }
 0x159   : > { %2060 = vrot.lane.b32.xlu0 %v3834_v27, %s3212_s20 }
 0x15a   : > { %767 = vst.msk [vmem:[#allocation2 + $0x286] sm:$0xff] %vm624_vm0, %v620_v26 }
 0x15c   : > { %1303 = vrot.lane.b32.xlu1 %v3715_v34, %s3210_s16  ;;  %v3853_v34 = vld [vmem:[#allocation2 + $0x186] sm:$0xff] }
 0x15d   : > { %2253 = vrot.lane.b32.xlu0 %v3842_v31, %s3213_s21 }
 0x160   : > { %1494 = vrot.lane.b32.xlu1 %v855_v10, %s3209_s15  ;;  %v3915_v10 = vld [vmem:[#allocation2 + $0x1a6] sm:$0xff] }
 0x161   : > { %1504 = vrot.lane.b32.xlu0 %v3834_v27, %s3209_s15 }
 0x164   : > { %1687 = vrot.lane.b32.xlu1 %v1048_v16, %s3211_s17 }
 0x165   : > { %947 = vrot.lane.b32.xlu0 %v3853_v34, %s3207_s11 }
 0x166   : > { %v926_v36 = vpop.permute.xlu1 %925 }
 0x167   : > { %1009 = vst.msk [vmem:[#allocation3 + $0x68] sm:$0xff] %vm995_vm3, %v926_v36  ;;  %v924_v37 = vpop.permute.xlu0 %923  ;;  %v3964_v36 = vld [vmem:[#allocation2 + $0x1ce] sm:$0xff] }
 0x168   : > { %1008 = vst.msk [vmem:[#allocation3 + $0x60] sm:$0xff] %vm995_vm3, %v924_v37  ;;  %945 = vrot.lane.b32.xlu1 %v1425_v17, %s3207_s11  ;;  %v579_v17 = vadd.f32 %v3083_v15, %v3646_v38 }
 0x169   : > { %1140 = vrot.lane.b32.xlu0 %v3860_v39, %s3208_s12 }
 0x16a   : > { %v1119_v40 = vpop.permute.xlu1 %1118  ;;  %v621_v23 = vmax.f32 %v579_v17, 0.0 }
 0x16b   : > { %1202 = vst.msk [vmem:[#allocation3 + $0x68] sm:$0xff] %vm1188_vm4, %v1119_v40  ;;  %v1117_v42 = vpop.permute.xlu0 %1116  ;;  %v3976_v40 = vld [vmem:[#allocation2 + $0x1d4] sm:$0xff] }
 0x16c   : > { %1201 = vst.msk [vmem:[#allocation3 + $0x60] sm:$0xff] %vm1188_vm4, %v1117_v42  ;;  %1138 = vrot.lane.b32.xlu1 %v1051_v43, %s3208_s12 }
 0x16d   : > { %1309 = vrot.lane.b32.xlu0 %v3737_v48, %s3210_s16  ;;  %768 = vst.msk [vmem:[#allocation2 + $0x28e] sm:$0xff] %vm624_vm0, %v621_v23 }
 0x16e   : > { %v1481_v44 = vpop.permute.xlu1 %1480 }
 0x16f   : > { %v1286_v46 = vpop.permute.xlu0 %1285 }
 0x170   : > { %1382 = vst.msk [vmem:[#allocation3] sm:$0xff] %vm1381_vm5, %v1286_v46  ;;  %1693 = vrot.lane.b32.xlu1 %v1051_v43, %s3211_s17  ;;  %v3086_v43 = vpop.f32.mrb[30].mxu0 }
 0x171   : > { %1865 = vrot.lane.b32.xlu0 %v3737_v48, %s3214_s22  ;;  %v3882_v48 = vld [vmem:[#allocation2 + $0x1ae] sm:$0xff]  ;;  %v583_v46 = vpop.f32.mrb[31].mxu0 }
 0x172   : > { %v1674_v57 = vpop.permute.xlu1 %1673  ;;  %v584_v47 = vadd.f32 %v3646_v38, %v583_v46 }
 0x173   : > { %v1479_v59 = vpop.permute.xlu0 %1478 }
 0x174   : > { %1575 = vst.msk [vmem:[#allocation3] sm:$0xff] %vm1574_vm6, %v1479_v59  ;;  %1307 = vrot.lane.b32.xlu1 %v3728_v41, %s3210_s16  ;;  %v2412_v41 = vld [vmem:[%s4705_s3] sm:$0xff]  ;;  %v622_v54 = vmax.f32 %v584_v47, 0.0  ;;  %v4134_v47 = vld [vmem:[#allocation2 + $0x234] sm:$0xff] }
 0x175   : > { %2058 = vrot.lane.b32.xlu0 %v3853_v34, %s3212_s20  ;;  %v3165_v63 = vpack.c.bf16 %v2413_v62, %v2412_v41 }
 0x176   : > { %v1288_v60 = vpop.permute.xlu1 %1287  ;;  %769 = vst.msk [vmem:[#allocation2 + $0x2a6] sm:$0xff] %vm624_vm0, %v622_v54  ;;  %v4140_v54 = vld [vmem:[#allocation2 + $0x240] sm:$0xff] }
 0x177   : > { %1383 = vst.msk [vmem:[#allocation3 + $0x8] sm:$0xff] %vm1381_vm5, %v1288_v60  ;;  %v1672_v61 = vpop.permute.xlu0 %1671  ;;  %3166 = vmatprep.subr.bf16.mxu1 %v3165_v63 }
 0x178   : > { %1576 = vst.msk [vmem:[#allocation3 + $0x8] sm:$0xff] %vm1574_vm6, %v1481_v44  ;;  %1498 = vrot.lane.b32.xlu1 %v3819_v21, %s3209_s15  ;;  %3168 = vmatpush3.bf16.msra.mxu1 %v3165_v63  ;;  %v2418_v21 = vld [vmem:[%s4705_s3 + $0x30] sm:$0xff]  ;;  %v589_v44 = vadd.f32 %v3086_v43, %v3646_v38 }
 0x179   : > { %1768 = vst.msk [vmem:[#allocation3] sm:$0xff] %vm1767_vm7, %v1672_v61  ;;  %1769 = vst.msk [vmem:[#allocation3 + $0x8] sm:$0xff] %vm1767_vm7, %v1674_v57  ;;  %2064 = vrot.lane.b32.xlu0 %v3882_v48, %s3212_s20  ;;  %3170 = vmatprep.subr.bf16.mxu1 %v3169_v8  ;;  %v3177_v24 = vpack.c.bf16 %v2419_v22, %v2418_v21  ;;  %v3994_v57 = vld [vmem:[#allocation2 + $0x1cc] sm:$0xff]  ;;  %v4075_v21 = vld [vmem:[#allocation2 + $0x214] sm:$0xff] }
 0x17a   : > { %v930_v0 = vpop.permute.xlu1 %929  ;;  %v4017_v63 = vld [vmem:[#allocation2 + $0x1ee] sm:$0xff] }
 0x17b   : > { %1011 = vst.msk [vmem:[#allocation3 + $0x78] sm:$0xff] %vm995_vm3, %v930_v0  ;;  %v1485_v1 = vpop.permute.xlu0 %1484 }
 0x17c   : > { %1691 = vrot.lane.b32.xlu1 %v3826_v25, %s3211_s17  ;;  %3172 = vmatpush3.bf16.msra.mxu1 %v3169_v8 }
 0x17d   : > { %2257 = vrot.lane.b32.xlu0 %v3901_v2, %s3213_s21  ;;  %3174 = vmatprep.subr.bf16.mxu1 %v3173_v13 }
 0x17e   : > { %v1123_v7 = vpop.permute.xlu1 %1122 }
 0x17f   : > { %1204 = vst.msk [vmem:[#allocation3 + $0x78] sm:$0xff] %vm1188_vm4, %v1123_v7  ;;  %v928_v9 = vpop.permute.xlu0 %927  ;;  %v4037_v7 = vld [vmem:[#allocation2 + $0x1e6] sm:$0xff] }
 0x180   : > { %1010 = vst.msk [vmem:[#allocation3 + $0x70] sm:$0xff] %vm995_vm3, %v928_v9  ;;  %949 = vrot.lane.b32.xlu1 %v3834_v27, %s3207_s11  ;;  %3176 = vmatpush3.bf16.msra.mxu1 %v3173_v13 }
 0x181   : > { %951 = vrot.lane.b32.xlu0 %v3915_v10, %s3207_s11  ;;  %3178 = vmatprep.subr.bf16.mxu1 %v3177_v24 }
 0x182   : > { %v1678_v14 = vpop.permute.xlu1 %1677 }
 0x183   : > { %v1121_v16 = vpop.permute.xlu0 %1120 }
 0x184   : > { %1203 = vst.msk [vmem:[#allocation3 + $0x70] sm:$0xff] %vm1188_vm4, %v1121_v16  ;;  %1142 = vrot.lane.b32.xlu1 %v3842_v31, %s3208_s12  ;;  %3180 = vmatpush3.bf16.msra.mxu1 %v3177_v24  ;;  %v4063_v16 = vld [vmem:[#allocation2 + $0x20e] sm:$0xff]  ;;  %v4085_v24 = vld [vmem:[#allocation2 + $0x200] sm:$0xff] }
 0x185   : > { %1144 = vrot.lane.b32.xlu0 %v3929_v19, %s3208_s12  ;;  %3103 = vmatprep.subr.mxu1 %v2420_v28 }
 0x186   : > { %v1292_v25 = vpop.permute.xlu1 %1291 }
 0x187   : > { %1385 = vst.msk [vmem:[#allocation3 + $0x18] sm:$0xff] %vm1381_vm5, %v1292_v25  ;;  %v1290_v27 = vpop.permute.xlu0 %1289 }
 0x188   : > { %1578 = vst.msk [vmem:[#allocation3 + $0x18] sm:$0xff] %vm1574_vm6, %v1485_v1  ;;  %1311 = vrot.lane.b32.xlu1 %v3741_v50, %s3210_s16  ;;  %3104 = vmatpush3.msra.mxu1 %v2420_v28  ;;  %v4028_v1 = vld [vmem:[#allocation2 + $0x1f4] sm:$0xff]  ;;  %v4097_v28 = vld [vmem:[#allocation2 + $0x206] sm:$0xff] }
 0x189   : > { %1384 = vst.msk [vmem:[#allocation3 + $0x10] sm:$0xff] %vm1381_vm5, %v1290_v27  ;;  %1313 = vrot.lane.b32.xlu0 %v3749_v52, %s3210_s16  ;;  %v4093_v27 = vld [vmem:[#allocation2 + $0x208] sm:$0xff] }
 0x18a   : > { %1771 = vst.msk [vmem:[#allocation3 + $0x18] sm:$0xff] %vm1767_vm7, %v1678_v14  ;;  %v1483_v29 = vpop.permute.xlu1 %1482 }
 0x18b   : > { %1577 = vst.msk [vmem:[#allocation3 + $0x10] sm:$0xff] %vm1574_vm6, %v1483_v29  ;;  %v1489_v30 = vpop.permute.xlu0 %1488 }
 0x18c   : > { %1867 = vrot.lane.b32.xlu1 %v3741_v50, %s3214_s22 }
 0x18d   : > { %1869 = vrot.lane.b32.xlu0 %v3749_v52, %s3214_s22 }
 0x18e   : > { %v1676_v32 = vpop.permute.xlu1 %1675 }
 0x18f   : > { %1770 = vst.msk [vmem:[#allocation3 + $0x10] sm:$0xff] %vm1767_vm7, %v1676_v32  ;;  %v932_v33 = vpop.permute.xlu0 %931 }
 0x190   : > { %1012 = vst.msk [vmem:[#allocation3 + $0x80] sm:$0xff] %vm995_vm3, %v932_v33  ;;  %2251 = vrot.lane.b32.xlu1 %v3860_v39, %s3213_s21  ;;  %v4104_v33 = vld [vmem:[#allocation2 + $0x20c] sm:$0xff] }
 0x191   : > { %2062 = vrot.lane.b32.xlu0 %v3915_v10, %s3212_s20 }
 0x192   : > { %v934_v35 = vpop.permute.xlu1 %933 }
 0x193   : > { %1013 = vst.msk [vmem:[#allocation3 + $0x88] sm:$0xff] %vm995_vm3, %v934_v35  ;;  %v1125_v50 = vpop.permute.xlu0 %1124 }
 0x194   : > { %1205 = vst.msk [vmem:[#allocation3 + $0x80] sm:$0xff] %vm1188_vm4, %v1125_v50  ;;  %1502 = vrot.lane.b32.xlu1 %v3853_v34, %s3209_s15 }
 0x195   : > { %2068 = vrot.lane.b32.xlu0 %v3964_v36, %s3212_s20 }
 0x196   : > { %v1127_v52 = vpop.permute.xlu1 %1126 }
 0x197   : > { %1206 = vst.msk [vmem:[#allocation3 + $0x88] sm:$0xff] %vm1188_vm4, %v1127_v52  ;;  %v1294_v37 = vpop.permute.xlu0 %1293  ;;  %v4112_v52 = vld [vmem:[#allocation2 + $0x228] sm:$0xff] }
 0x198   : > { %1386 = vst.msk [vmem:[#allocation3 + $0x20] sm:$0xff] %vm1381_vm5, %v1294_v37  ;;  %1695 = vrot.lane.b32.xlu1 %v3860_v39, %s3211_s17  ;;  %v623_v39 = vmax.f32 %v589_v44, 0.0  ;;  %v4117_v37 = vld [vmem:[#allocation2 + $0x220] sm:$0xff] }
 0x199   : > { %2261 = vrot.lane.b32.xlu0 %v3976_v40, %s3213_s21  ;;  %v4127_v44 = vld [vmem:[#allocation2 + $0x226] sm:$0xff] }
 0x19a   : > { %v1682_v42 = vpop.permute.xlu1 %1681  ;;  %770 = vst.msk [vmem:[#allocation2 + $0x2ae] sm:$0xff] %vm624_vm0, %v623_v39 }
 0x19b   : > { %v1493_v34 = vpop.permute.xlu0 %1492 }
 0x19c   : > { %953 = vrot.lane.b32.xlu1 %v3882_v48, %s3207_s11 }
 0x19d   : > { %955 = vrot.lane.b32.xlu0 %v3983_v45, %s3207_s11 }
 0x19e   : > { %v1296_v49 = vpop.permute.xlu1 %1295 }
 0x19f   : > { %1387 = vst.msk [vmem:[#allocation3 + $0x28] sm:$0xff] %vm1381_vm5, %v1296_v49  ;;  %v936_v51 = vpop.permute.xlu0 %935  ;;  %v4138_v49 = vld [vmem:[#allocation2 + $0x248] sm:$0xff] }
 0x1a0   : > { %1580 = vst.msk [vmem:[#allocation3 + $0x28] sm:$0xff] %vm1574_vm6, %v1489_v30  ;;  %1146 = vrot.lane.b32.xlu1 %v3901_v2, %s3208_s12  ;;  %v4101_v30 = vld [vmem:[#allocation2 + $0x22e] sm:$0xff] }
 0x1a1   : > { %1014 = vst.msk [vmem:[#allocation3 + $0x90] sm:$0xff] %vm995_vm3, %v936_v51  ;;  %1148 = vrot.lane.b32.xlu0 %v3994_v57, %s3208_s12 }
 0x1a2   : > { %1773 = vst.msk [vmem:[#allocation3 + $0x28] sm:$0xff] %vm1767_vm7, %v1682_v42  ;;  %v1487_v38 = vpop.permute.xlu1 %1486 }
 0x1a3   : > { %1579 = vst.msk [vmem:[#allocation3 + $0x20] sm:$0xff] %vm1574_vm6, %v1487_v38  ;;  %v1129_v58 = vpop.permute.xlu0 %1128 }
 0x1a4   : > { %1207 = vst.msk [vmem:[#allocation3 + $0x90] sm:$0xff] %vm1188_vm4, %v1129_v58  ;;  %1315 = vrot.lane.b32.xlu1 %v3752_v53, %s3210_s16 }
 0x1a5   : > { %1317 = vrot.lane.b32.xlu0 %v3762_v55, %s3210_s16 }
 0x1a6   : > { %v1680_v59 = vpop.permute.xlu1 %1679 }
 0x1a7   : > { %1772 = vst.msk [vmem:[#allocation3 + $0x20] sm:$0xff] %vm1767_vm7, %v1680_v59  ;;  %v1298_v60 = vpop.permute.xlu0 %1297  ;;  %v4156_v59 = vld [vmem:[#allocation2 + $0x246] sm:$0xff] }
 0x1a8   : > { %1388 = vst.msk [vmem:[#allocation3 + $0x30] sm:$0xff] %vm1381_vm5, %v1298_v60  ;;  %1871 = vrot.lane.b32.xlu1 %v3752_v53, %s3214_s22 }
 0x1a9   : > { %1873 = vrot.lane.b32.xlu0 %v3762_v55, %s3214_s22 }
 0x1aa   : > { %v938_v61 = vpop.permute.xlu1 %937 }
 0x1ab   : > { %1015 = vst.msk [vmem:[#allocation3 + $0x98] sm:$0xff] %vm995_vm3, %v938_v61  ;;  %v1497_v41 = vpop.permute.xlu0 %1496 }
 0x1ac   : > { %2255 = vrot.lane.b32.xlu1 %v3929_v19, %s3213_s21 }
 0x1ad   : > { %2066 = vrot.lane.b32.xlu0 %v3983_v45, %s3212_s20 }
 0x1ae   : > { %v1131_v62 = vpop.permute.xlu1 %1130 }
 0x1af   : > { %1208 = vst.msk [vmem:[#allocation3 + $0x98] sm:$0xff] %vm1188_vm4, %v1131_v62  ;;  %v940_v0 = vpop.permute.xlu0 %939  ;;  %v4167_v62 = vld [vmem:[#allocation2 + $0x24e] sm:$0xff] }
 0x1b0   : > { %1016 = vst.msk [vmem:[#allocation3 + $0xa0] sm:$0xff] %vm995_vm3, %v940_v0  ;;  %957 = vrot.lane.b32.xlu1 %v3964_v36, %s3207_s11 }
 0x1b1   : > { %2072 = vrot.lane.b32.xlu0 %v4017_v63, %s3212_s20 }
 0x1b2   : > { %v1686_v53 = vpop.permute.xlu1 %1685 }
 0x1b3   : > { %v1133_v55 = vpop.permute.xlu0 %1132 }
 0x1b4   : > { %1209 = vst.msk [vmem:[#allocation3 + $0xa0] sm:$0xff] %vm1188_vm4, %v1133_v55  ;;  %1150 = vrot.lane.b32.xlu1 %v3976_v40, %s3208_s12 }
 0x1b5   : > { %2265 = vrot.lane.b32.xlu0 %v4028_v1, %s3213_s21 }
 0x1b6   : > { %v1300_v3 = vpop.permute.xlu1 %1299 }
 0x1b7   : > { %1389 = vst.msk [vmem:[#allocation3 + $0x38] sm:$0xff] %vm1381_vm5, %v1300_v3  ;;  %v1302_v4 = vpop.permute.xlu0 %1301  ;;  %v4181_v3 = vld [vmem:[#allocation2 + $0x254] sm:$0xff] }
 0x1b8   : > { %1582 = vst.msk [vmem:[#allocation3 + $0x38] sm:$0xff] %vm1574_vm6, %v1493_v34  ;;  %1319 = vrot.lane.b32.xlu1 %v3764_v56, %s3210_s16  ;;  %v4122_v34 = vld [vmem:[#allocation2 + $0x22c] sm:$0xff] }
 0x1b9   : > { %1390 = vst.msk [vmem:[#allocation3 + $0x40] sm:$0xff] %vm1381_vm5, %v1302_v4  ;;  %959 = vrot.lane.b32.xlu0 %v4037_v7, %s3207_s11  ;;  %v4185_v4 = vld [vmem:[#allocation2 + $0x268] sm:$0xff] }
 0x1ba   : > { %1775 = vst.msk [vmem:[#allocation3 + $0x38] sm:$0xff] %vm1767_vm7, %v1686_v53  ;;  %v1491_v8 = vpop.permute.xlu1 %1490 }
 0x1bb   : > { %1581 = vst.msk [vmem:[#allocation3 + $0x30] sm:$0xff] %vm1574_vm6, %v1491_v8  ;;  %v4043_v9 = vpop.permute.xlu0 %1500  ;;  %v4187_v8 = vld [vmem:[#allocation2 + $0x260] sm:$0xff] }
 0x1bc   : > { %1875 = vrot.lane.b32.xlu1 %v3764_v56, %s3214_s22 }
 0x1bd   : > { %1152 = vrot.lane.b32.xlu0 %v4047_v11, %s3208_s12 }
 0x1be   : > { %v1684_v12 = vpop.permute.xlu1 %1683 }
 0x1bf   : > { %1774 = vst.msk [vmem:[#allocation3 + $0x30] sm:$0xff] %vm1767_vm7, %v1684_v12  ;;  %v944_v13 = vpop.permute.xlu0 %943  ;;  %v4203_v12 = vld [vmem:[#allocation2 + $0x266] sm:$0xff] }
 0x1c0   : > { %1018 = vst.msk [vmem:[#allocation3 + $0xb0] sm:$0xff] %vm995_vm3, %v944_v13  ;;  %2259 = vrot.lane.b32.xlu1 %v3994_v57, %s3213_s21 }
 0x1c1   : > { %1877 = vrot.lane.b32.xlu0 %v3790_v5, %s3214_s22 }
 0x1c2   : > { %v942_v14 = vpop.permute.xlu1 %941 }
 0x1c3   : > { %1017 = vst.msk [vmem:[#allocation3 + $0xa8] sm:$0xff] %vm995_vm3, %v942_v14  ;;  %v1137_v56 = vpop.permute.xlu0 %1136 }
 0x1c4   : > { %1211 = vst.msk [vmem:[#allocation3 + $0xb0] sm:$0xff] %vm1188_vm4, %v1137_v56  ;;  %961 = vrot.lane.b32.xlu1 %v4017_v63, %s3207_s11  ;;  %v4210_v56 = vld [vmem:[#allocation2 + $0x26c] sm:$0xff] }
 0x1c5   : > { %2070 = vrot.lane.b32.xlu0 %v4037_v7, %s3212_s20 }
 0x1c6   : > { %v1135_v15 = vpop.permute.xlu1 %1134 }
 0x1c7   : > { %1210 = vst.msk [vmem:[#allocation3 + $0xa8] sm:$0xff] %vm1188_vm4, %v1135_v15  ;;  %v1306_v17 = vpop.permute.xlu0 %1305 }
 0x1c8   : > { %1392 = vst.msk [vmem:[#allocation3 + $0x50] sm:$0xff] %vm1381_vm5, %v1306_v17  ;;  %1154 = vrot.lane.b32.xlu1 %v4028_v1, %s3208_s12 }
 0x1c9   : > { %2076 = vrot.lane.b32.xlu0 %v4063_v16, %s3212_s20 }
 0x1ca   : > { %v1690_v18 = vpop.permute.xlu1 %1689 }
 0x1cb   : > { %v4071_v20 = vpop.permute.xlu0 %2060 }
 0x1cc   : > { %1879 = vrot.lane.b32.xlu1 %v3792_v6, %s3214_s22 }
 0x1cd   : > { %2269 = vrot.lane.b32.xlu0 %v4075_v21, %s3213_s21 }
 0x1ce   : > { %v1304_v22 = vpop.permute.xlu1 %1303 }
 0x1cf   : > { %1391 = vst.msk [vmem:[#allocation3 + $0x48] sm:$0xff] %vm1381_vm5, %v1304_v22  ;;  %v4080_v23 = vpop.permute.xlu0 %2253 }
 0x1d0   : > { %1584 = vst.msk [vmem:[#allocation3 + $0x48] sm:$0xff] %vm1574_vm6, %v1497_v41  ;;  %2263 = vrot.lane.b32.xlu1 %v4047_v11, %s3213_s21  ;;  %v4163_v41 = vld [vmem:[#allocation2 + $0x24c] sm:$0xff] }
 0x1d1   : > { %1777 = vst.msk [vmem:[#allocation3 + $0x48] sm:$0xff] %vm1767_vm7, %v1690_v18  ;;  %1881 = vrot.lane.b32.xlu0 %v4085_v24, %s3214_s22 }
 0x1d2   : > { %v1495_v25 = vpop.permute.xlu1 %1494 }
 0x1d3   : > { %1583 = vst.msk [vmem:[#allocation3 + $0x40] sm:$0xff] %vm1574_vm6, %v1495_v25  ;;  %v4091_v26 = vpop.permute.xlu0 %1504  ;;  %v4233_v25 = vld [vmem:[#allocation2 + $0x274] sm:$0xff] }
 0x1d4   : > { %1883 = vrot.lane.b32.xlu1 %v4093_v27, %s3214_s22 }
 0x1d5   : > { %2074 = vrot.lane.b32.xlu0 %v4097_v28, %s3212_s20 }
 0x1d6   : > { %v1688_v29 = vpop.permute.xlu1 %1687 }
 0x1d7   : > { %1776 = vst.msk [vmem:[#allocation3 + $0x40] sm:$0xff] %vm1767_vm7, %v1688_v29  ;;  %v948_v32 = vpop.permute.xlu0 %947 }
 0x1d8   : > { %1020 = vst.msk [vmem:[#allocation3 + $0xc0] sm:$0xff] %vm995_vm3, %v948_v32  ;;  %2267 = vrot.lane.b32.xlu1 %v4104_v33, %s3213_s21  ;;  %v4246_v32 = vld [vmem:[#allocation2 + $0x286] sm:$0xff] }
 0x1d9   : > { %2080 = vrot.lane.b32.xlu0 %v4101_v30, %s3212_s20 }
 0x1da   : > { %v946_v35 = vpop.permute.xlu1 %945 }
 0x1db   : > { %1019 = vst.msk [vmem:[#allocation3 + $0xb8] sm:$0xff] %vm995_vm3, %v946_v35  ;;  %v1141_v50 = vpop.permute.xlu0 %1140  ;;  %v4251_v35 = vld [vmem:[#allocation2 + $0x288] sm:$0xff] }
 0x1dc   : > { %1213 = vst.msk [vmem:[#allocation3 + $0xc0] sm:$0xff] %vm1188_vm4, %v1141_v50  ;;  %1887 = vrot.lane.b32.xlu1 %v4112_v52, %s3214_s22 }
 0x1dd   : > { %1885 = vrot.lane.b32.xlu0 %v4117_v37, %s3214_s22 }
 0x1de   : > { %v1139_v42 = vpop.permute.xlu1 %1138 }
 0x1df   : > { %1212 = vst.msk [vmem:[#allocation3 + $0xb8] sm:$0xff] %vm1188_vm4, %v1139_v42  ;;  %v1310_v43 = vpop.permute.xlu0 %1309 }
 0x1e0   : > { %1394 = vst.msk [vmem:[#allocation3 + $0x60] sm:$0xff] %vm1381_vm5, %v1310_v43  ;;  %2271 = vrot.lane.b32.xlu1 %v4122_v34, %s3213_s21 }
 0x1e1   : > { %2078 = vrot.lane.b32.xlu0 %v4127_v44, %s3212_s20 }
 0x1e2   : > { %v1694_v46 = vpop.permute.xlu1 %1693 }
 0x1e3   : > { %v1866_v39 = vpop.permute.xlu0 %1865 }
 0x1e4   : > { %1962 = vst.msk [vmem:[#allocation3] sm:$0xff] %vm1961_vm8, %v1866_v39  ;;  %1697 = vrot.lane.b32.xlu1 %v3842_v31, %s3211_s17  ;;  %v4269_v39 = vld [vmem:[#allocation2 + $0x28e] sm:$0xff] }
 0x1e5   : > { %2273 = vrot.lane.b32.xlu0 %v4134_v47, %s3213_s21 }
 0x1e6   : > { %v1308_v51 = vpop.permute.xlu1 %1307 }
 0x1e7   : > { %1393 = vst.msk [vmem:[#allocation3 + $0x58] sm:$0xff] %vm1381_vm5, %v1308_v51  ;;  %v2059_v38 = vpop.permute.xlu0 %2058 }
 0x1e8   : > { %1586 = vst.msk [vmem:[#allocation3 + $0x58] sm:$0xff] %vm1574_vm6, %v4043_v9  ;;  %1891 = vrot.lane.b32.xlu1 %v4138_v49, %s3214_s22 }
 0x1e9   : > { %2155 = vst.msk [vmem:[#allocation3] sm:$0xff] %vm2154_vm9, %v2059_v38  ;;  %1889 = vrot.lane.b32.xlu0 %v4140_v54, %s3214_s22 }
 0x1ea   : > { %1779 = vst.msk [vmem:[#allocation3 + $0x58] sm:$0xff] %vm1767_vm7, %v1694_v46  ;;  %v1499_v31 = vpop.permute.xlu1 %1498  ;;  %v4262_v46 = vld [vmem:[#allocation2 + $0x28c] sm:$0xff] }
 0x1eb   : > { %1585 = vst.msk [vmem:[#allocation3 + $0x50] sm:$0xff] %vm1574_vm6, %v1499_v31  ;;  %v4152_v58 = vpop.permute.xlu0 %2064  ;;  %v4284_v31 = vld [vmem:[#allocation2 + $0x294] sm:$0xff] }
 0x1ec   : > { %1506 = vrot.lane.b32.xlu1 %v3915_v10, %s3209_s15 }
 0x1ed   : > { %2082 = vrot.lane.b32.xlu0 %v4156_v59, %s3212_s20 }
 0x1ee   : > { %v1692_v60 = vpop.permute.xlu1 %1691 }
 0x1ef   : > { %1778 = vst.msk [vmem:[#allocation3 + $0x50] sm:$0xff] %vm1767_vm7, %v1692_v60  ;;  %v4161_v61 = vpop.permute.xlu0 %2257 }
 0x1f0   : > { %2275 = vrot.lane.b32.xlu1 %v4163_v41, %s3213_s21 }
 0x1f1   : > { %2084 = vrot.lane.b32.xlu0 %v4167_v62, %s3212_s20 }
 0x1f2   : > { %v950_v10 = vpop.permute.xlu1 %949 }
 0x1f3   : > { %1021 = vst.msk [vmem:[#allocation3 + $0xc8] sm:$0xff] %vm995_vm3, %v950_v10  ;;  %v952_v0 = vpop.permute.xlu0 %951 }
 0x1f4   : > { %1022 = vst.msk [vmem:[#allocation3 + $0xd0] sm:$0xff] %vm995_vm3, %v952_v0  ;;  %1699 = vrot.lane.b32.xlu1 %v3929_v19, %s3211_s17  ;;  %v4298_v0 = vld [vmem:[#allocation2 + $0x2a6] sm:$0xff] }
 0x1f5   : > { %1508 = vrot.lane.b32.xlu0 %v3882_v48, %s3209_s15 }
 0x1f6   : > { %v1143_v53 = vpop.permute.xlu1 %1142 }
 0x1f7   : > { %1214 = vst.msk [vmem:[#allocation3 + $0xc8] sm:$0xff] %vm1188_vm4, %v1143_v53  ;;  %v1145_v55 = vpop.permute.xlu0 %1144  ;;  %v4303_v53 = vld [vmem:[#allocation2 + $0x2a8] sm:$0xff] }
 0x1f8   : > { %1215 = vst.msk [vmem:[#allocation3 + $0xd0] sm:$0xff] %vm1188_vm4, %v1145_v55  ;;  %1701 = vrot.lane.b32.xlu1 %v3901_v2, %s3211_s17 }
 0x1f9   : > { %2277 = vrot.lane.b32.xlu0 %v4181_v3, %s3213_s21 }
 0x1fa   : > { %v1312_v19 = vpop.permute.xlu1 %1311 }
 0x1fb   : > { %1395 = vst.msk [vmem:[#allocation3 + $0x68] sm:$0xff] %vm1381_vm5, %v1312_v19  ;;  %v1314_v48 = vpop.permute.xlu0 %1313 }
 0x1fc   : > { %1588 = vst.msk [vmem:[#allocation3 + $0x68] sm:$0xff] %vm1574_vm6, %v4091_v26  ;;  %1895 = vrot.lane.b32.xlu1 %v4185_v4, %s3214_s22 }
 0x1fd   : > { %1396 = vst.msk [vmem:[#allocation3 + $0x70] sm:$0xff] %vm1381_vm5, %v1314_v48  ;;  %1893 = vrot.lane.b32.xlu0 %v4187_v8, %s3214_s22 }
 0x1fe   : > { %v1868_v2 = vpop.permute.xlu1 %1867 }
 0x1ff   : > { %1963 = vst.msk [vmem:[#allocation3 + $0x8] sm:$0xff] %vm1961_vm8, %v1868_v2  ;;  %v1870_v9 = vpop.permute.xlu0 %1869  ;;  %v4318_v2 = vld [vmem:[#allocation2 + $0x2ac] sm:$0xff] }
 0x200   : > { %2156 = vst.msk [vmem:[#allocation3 + $0x8] sm:$0xff] %vm2154_vm9, %v4071_v20  ;;  %1510 = vrot.lane.b32.xlu1 %v3983_v45, %s3209_s15  ;;  %v4215_v45 = vld [vmem:[#allocation2 + $0x26e] sm:$0xff] }
 0x201   : > { %1964 = vst.msk [vmem:[#allocation3 + $0x10] sm:$0xff] %vm1961_vm8, %v1870_v9  ;;  %2086 = vrot.lane.b32.xlu0 %v4203_v12, %s3212_s20  ;;  %v4323_v9 = vld [vmem:[#allocation2 + $0x2ae] sm:$0xff] }
 0x202   : > { %2349 = vst.msk [vmem:[#allocation3 + $0x8] sm:$0xff] %vm2347_vm10, %v4080_v23  ;;  %v2252_v13 = vpop.permute.xlu1 %2251 }
 0x203   : > { %2348 = vst.msk [vmem:[#allocation3] sm:$0xff] %vm2347_vm10, %v2252_v13  ;;  %v2063_v14 = vpop.permute.xlu0 %2062 }
 0x204   : > { %2157 = vst.msk [vmem:[#allocation3 + $0x10] sm:$0xff] %vm2154_vm9, %v2063_v14  ;;  %2279 = vrot.lane.b32.xlu1 %v4210_v56, %s3213_s21 }
 0x205   : > { %2088 = vrot.lane.b32.xlu0 %v4215_v45, %s3212_s20 }
 0x206   : > { %v1503_v15 = vpop.permute.xlu1 %1502 }
 0x207   : > { %1587 = vst.msk [vmem:[#allocation3 + $0x60] sm:$0xff] %vm1574_vm6, %v1503_v15  ;;  %v4220_v17 = vpop.permute.xlu0 %2068 }
 0x208   : > { %1703 = vrot.lane.b32.xlu1 %v3994_v57, %s3211_s17  ;;  %v4237_v57 = vld [vmem:[#allocation2 + $0x280] sm:$0xff] }
 0x209   : > { %1512 = vrot.lane.b32.xlu0 %v3964_v36, %s3209_s15  ;;  %v2381_v23 = vld [vmem:[#allocation3 + $0x8] sm:$0xff] }
 0x20a   : > { %v1696_v18 = vpop.permute.xlu1 %1695  ;;  %v2380_v20 = vld [vmem:[#allocation3] sm:$0xff] }
 0x20b   : > { %1780 = vst.msk [vmem:[#allocation3 + $0x60] sm:$0xff] %vm1767_vm7, %v1696_v18  ;;  %3105 = vmatprep.mubr.msk.f32.mxu1 %vm2428_vm11, %v2380_v20  ;;  %v4228_v22 = vpop.permute.xlu0 %2261  ;;  %v4338_v18 = vld [vmem:[#allocation2 + $0x2b4] sm:$0xff] }
 0x20c   : > { %1705 = vrot.lane.b32.xlu1 %v3976_v40, %s3211_s17  ;;  %3106 = vmatmul.mubr.msk.f32.vlgmr.msra.gmra.mrb[0].mxu1 %vm2428_vm11, %v2381_v23  ;;  %v1822_v23 = vld [vmem:[#allocation2 + $0x2c8] sm:$0xff] }
 0x20d   : > { %2281 = vrot.lane.b32.xlu0 %v4233_v25, %s3213_s21 }
 0x20e   : > { %v954_v36 = vpop.permute.xlu1 %953 }
 0x20f   : > { %1023 = vst.msk [vmem:[#allocation3 + $0xd8] sm:$0xff] %vm995_vm3, %v954_v36  ;;  %v956_v26 = vpop.permute.xlu0 %955 }
 0x210   : > { %1024 = vst.msk [vmem:[#allocation3 + $0xe0] sm:$0xff] %vm995_vm3, %v956_v26  ;;  %1321 = vrot.lane.b32.xlu1 %v3790_v5, %s3210_s16 }
 0x211   : > { %1897 = vrot.lane.b32.xlu0 %v4237_v57, %s3214_s22 }
 0x212   : > { %v1147_v40 = vpop.permute.xlu1 %1146 }
 0x213   : > { %1216 = vst.msk [vmem:[#allocation3 + $0xd8] sm:$0xff] %vm1188_vm4, %v1147_v40  ;;  %v1149_v29 = vpop.permute.xlu0 %1148  ;;  %v2207_v40 = vld [vmem:[#allocation2 + $0x2cc] sm:$0xff] }
 0x214   : > { %1217 = vst.msk [vmem:[#allocation3 + $0xe0] sm:$0xff] %vm1188_vm4, %v1149_v29  ;;  %2090 = vrot.lane.b32.xlu1 %v4246_v32, %s3212_s20 }
 0x215   : > { %1899 = vrot.lane.b32.xlu0 %v4251_v35, %s3214_s22 }
 0x216   : > { %v1316_v5 = vpop.permute.xlu1 %1315 }
 0x217   : > { %1397 = vst.msk [vmem:[#allocation3 + $0x78] sm:$0xff] %vm1381_vm5, %v1316_v5  ;;  %v1318_v50 = vpop.permute.xlu0 %1317 }
 0x218   : > { %1398 = vst.msk [vmem:[#allocation3 + $0x80] sm:$0xff] %vm1381_vm5, %v1318_v50  ;;  %1514 = vrot.lane.b32.xlu1 %v4037_v7, %s3209_s15  ;;  %v2015_v50 = vld [vmem:[#allocation2 + $0x2ce] sm:$0xff] }
 0x219   : > { %1323 = vrot.lane.b32.xlu0 %v3792_v6, %s3210_s16 }
 0x21a   : > { %v1872_v42 = vpop.permute.xlu1 %1871 }
 0x21b   : > { %1965 = vst.msk [vmem:[#allocation3 + $0x18] sm:$0xff] %vm1961_vm8, %v1872_v42  ;;  %v1874_v43 = vpop.permute.xlu0 %1873 }
 0x21c   : > { %2158 = vst.msk [vmem:[#allocation3 + $0x18] sm:$0xff] %vm2154_vm9, %v4152_v58  ;;  %2283 = vrot.lane.b32.xlu1 %v4262_v46, %s3213_s21 }
 0x21d   : > { %1966 = vst.msk [vmem:[#allocation3 + $0x20] sm:$0xff] %vm1961_vm8, %v1874_v43  ;;  %2092 = vrot.lane.b32.xlu0 %v4269_v39, %s3212_s20 }
 0x21e   : > { %2351 = vst.msk [vmem:[#allocation3 + $0x18] sm:$0xff] %vm2347_vm10, %v4161_v61  ;;  %v2256_v6 = vpop.permute.xlu1 %2255  ;;  %v4288_v61 = vld [vmem:[#allocation2 + $0x2a0] sm:$0xff] }
 0x21f   : > { %2350 = vst.msk [vmem:[#allocation3 + $0x10] sm:$0xff] %vm2347_vm10, %v2256_v6  ;;  %v2067_v7 = vpop.permute.xlu0 %2066 }
 0x220   : > { %2159 = vst.msk [vmem:[#allocation3 + $0x20] sm:$0xff] %vm2154_vm9, %v2067_v7  ;;  %1707 = vrot.lane.b32.xlu1 %v4047_v11, %s3211_s17 }
 0x221   : > { %1516 = vrot.lane.b32.xlu0 %v4017_v63, %s3209_s15 }
 0x222   : > { %v958_v51 = vpop.permute.xlu1 %957 }
 0x223   : > { %1025 = vst.msk [vmem:[#allocation3 + $0xe8] sm:$0xff] %vm995_vm3, %v958_v51  ;;  %v2073_v38 = vpop.permute.xlu0 %2072  ;;  %v2208_v51 = vld [vmem:[#allocation2 + $0x2d4] sm:$0xff] }
 0x224   : > { %1709 = vrot.lane.b32.xlu1 %v4028_v1, %s3211_s17 }
 0x225   : > { %2285 = vrot.lane.b32.xlu0 %v4284_v31, %s3213_s21  ;;  %v2383_v11 = vld [vmem:[#allocation3 + $0x18] sm:$0xff] }
 0x226   : > { %v1151_v58 = vpop.permute.xlu1 %1150  ;;  %v2382_v60 = vld [vmem:[#allocation3 + $0x10] sm:$0xff] }
 0x227   : > { %1218 = vst.msk [vmem:[#allocation3 + $0xe8] sm:$0xff] %vm1188_vm4, %v1151_v58  ;;  %3108 = vmatprep.mubr.msk.f32.mxu1 %vm2428_vm11, %v2382_v60  ;;  %v2266_v63 = vpop.permute.xlu0 %2265 }
 0x228   : > { %1325 = vrot.lane.b32.xlu1 %v4085_v24, %s3210_s16  ;;  %3109 = vmatmul.mubr.msk.f32.gmra.mrb[2].mxu1 %vm2428_vm11, %v2383_v11  ;;  %v1824_v11 = vld [vmem:[#allocation2 + $0x2e8] sm:$0xff] }
 0x229   : > { %1901 = vrot.lane.b32.xlu0 %v4288_v61, %s3214_s22 }
 0x22a   : > { %v1320_v1 = vpop.permute.xlu1 %1319 }
 0x22b   : > { %1399 = vst.msk [vmem:[#allocation3 + $0x88] sm:$0xff] %vm1381_vm5, %v1320_v1  ;;  %v960_v10 = vpop.permute.xlu0 %959 }
 0x22c   : > { %1026 = vst.msk [vmem:[#allocation3 + $0xf0] sm:$0xff] %vm995_vm3, %v960_v10  ;;  %2094 = vrot.lane.b32.xlu1 %v4298_v0, %s3212_s20 }
 0x22d   : > { %1903 = vrot.lane.b32.xlu0 %v4303_v53, %s3214_s22 }
 0x22e   : > { %v1876_v24 = vpop.permute.xlu1 %1875 }
 0x22f   : > { %1967 = vst.msk [vmem:[#allocation3 + $0x28] sm:$0xff] %vm1961_vm8, %v1876_v24  ;;  %v1153_v55 = vpop.permute.xlu0 %1152 }
 0x230   : > { %2160 = vst.msk [vmem:[#allocation3 + $0x28] sm:$0xff] %vm2154_vm9, %v4220_v17  ;;  %1518 = vrot.lane.b32.xlu1 %v4097_v28, %s3209_s15 }
 0x231   : > { %1219 = vst.msk [vmem:[#allocation3 + $0xf0] sm:$0xff] %vm1188_vm4, %v1153_v55  ;;  %1327 = vrot.lane.b32.xlu0 %v4093_v27, %s3210_s16 }
 0x232   : > { %2353 = vst.msk [vmem:[#allocation3 + $0x28] sm:$0xff] %vm2347_vm10, %v4228_v22  ;;  %v2260_v19 = vpop.permute.xlu1 %2259 }
 0x233   : > { %2352 = vst.msk [vmem:[#allocation3 + $0x20] sm:$0xff] %vm2347_vm10, %v2260_v19  ;;  %v1878_v48 = vpop.permute.xlu0 %1877  ;;  %v2209_v19 = vld [vmem:[#allocation2 + $0x2ec] sm:$0xff] }
 0x234   : > { %1968 = vst.msk [vmem:[#allocation3 + $0x30] sm:$0xff] %vm1961_vm8, %v1878_v48  ;;  %2287 = vrot.lane.b32.xlu1 %v4318_v2, %s3213_s21 }
 0x235   : > { %2096 = vrot.lane.b32.xlu0 %v4323_v9, %s3212_s20 }
 0x236   : > { %v962_v28 = vpop.permute.xlu1 %961 }
 0x237   : > { %1027 = vst.msk [vmem:[#allocation3 + $0xf8] sm:$0xff] %vm995_vm3, %v962_v28  ;;  %v2071_v27 = vpop.permute.xlu0 %2070  ;;  %v2017_v28 = vld [vmem:[#allocation2 + $0x2ee] sm:$0xff] }
 0x238   : > { %2161 = vst.msk [vmem:[#allocation3 + $0x30] sm:$0xff] %vm2154_vm9, %v2071_v27  ;;  %1711 = vrot.lane.b32.xlu1 %v4104_v33, %s3211_s17 }
 0x239   : > { %1520 = vrot.lane.b32.xlu0 %v4063_v16, %s3209_s15  ;;  %v2385_v17 = vld [vmem:[#allocation3 + $0x28] sm:$0xff]  ;;  %v1821_v16 = vld [vmem:[#allocation2 + $0x2c0] sm:$0xff] }
 0x23a   : > { %v1155_v13 = vpop.permute.xlu1 %1154  ;;  %v2384_v14 = vld [vmem:[#allocation3 + $0x20] sm:$0xff] }
 0x23b   : > { %1220 = vst.msk [vmem:[#allocation3 + $0xf8] sm:$0xff] %vm1188_vm4, %v1155_v13  ;;  %3111 = vmatprep.mubr.msk.f32.mxu1 %vm2428_vm11, %v2384_v14  ;;  %v2077_v15 = vpop.permute.xlu0 %2076 }
 0x23c   : > { %1713 = vrot.lane.b32.xlu1 %v4075_v21, %s3211_s17  ;;  %3112 = vmatmul.mubr.msk.f32.gmra.mrb[4].mxu1 %vm2428_vm11, %v2385_v17  ;;  %v2014_v21 = vld [vmem:[#allocation2 + $0x2c6] sm:$0xff] }
 0x23d   : > { %2289 = vrot.lane.b32.xlu0 %v4338_v18, %s3213_s21 }
 0x23e   : > { %v1880_v33 = vpop.permute.xlu1 %1879 }
 0x23f   : > { %1969 = vst.msk [vmem:[#allocation3 + $0x38] sm:$0xff] %vm1961_vm8, %v1880_v33  ;;  %v2270_v20 = vpop.permute.xlu0 %2269 }
 0x240   : > { %2162 = vst.msk [vmem:[#allocation3 + $0x38] sm:$0xff] %vm2154_vm9, %v2073_v38  ;;  %1329 = vrot.lane.b32.xlu1 %v4117_v37, %s3210_s16 }
 0x241   : > { %2355 = vst.msk [vmem:[#allocation3 + $0x38] sm:$0xff] %vm2347_vm10, %v2266_v63  ;;  %1905 = vrot.lane.b32.xlu0 %v1821_v16, %s3214_s22  ;;  %v2016_v63 = vld [vmem:[#allocation2 + $0x2e6] sm:$0xff] }
 0x242   : > { %v2264_v22 = vpop.permute.xlu1 %2263  ;;  %v2018_v16 = vld [vmem:[#allocation2 + $0x306] sm:$0xff] }
 0x243   : > { %2354 = vst.msk [vmem:[#allocation3 + $0x30] sm:$0xff] %vm2347_vm10, %v2264_v22  ;;  %v1882_v36 = vpop.permute.xlu0 %1881 }
 0x244   : > { %1970 = vst.msk [vmem:[#allocation3 + $0x40] sm:$0xff] %vm1961_vm8, %v1882_v36  ;;  %2098 = vrot.lane.b32.xlu1 %v2014_v21, %s3212_s20  ;;  %v1826_v21 = vld [vmem:[#allocation2 + $0x308] sm:$0xff] }
 0x245   : > { %1907 = vrot.lane.b32.xlu0 %v1822_v23, %s3214_s22  ;;  %v2211_v36 = vld [vmem:[#allocation2 + $0x30c] sm:$0xff] }
 0x246   : > { %v1884_v26 = vpop.permute.xlu1 %1883 }
 0x247   : > { %1971 = vst.msk [vmem:[#allocation3 + $0x48] sm:$0xff] %vm1961_vm8, %v1884_v26  ;;  %v2075_v37 = vpop.permute.xlu0 %2074 }
 0x248   : > { %2164 = vst.msk [vmem:[#allocation3 + $0x48] sm:$0xff] %vm2154_vm9, %v2077_v15  ;;  %2163 = vst.msk [vmem:[#allocation3 + $0x40] sm:$0xff] %vm2154_vm9, %v2075_v37  ;;  %1522 = vrot.lane.b32.xlu1 %v4127_v44, %s3209_s15  ;;  %v2387_v43 = vld [vmem:[#allocation3 + $0x38] sm:$0xff]  ;;  %v2019_v37 = vld [vmem:[#allocation2 + $0x30e] sm:$0xff] }
 0x249   : > { %2357 = vst.msk [vmem:[#allocation3 + $0x48] sm:$0xff] %vm2347_vm10, %v2270_v20  ;;  %1331 = vrot.lane.b32.xlu0 %v4112_v52, %s3210_s16  ;;  %v2210_v15 = vld [vmem:[#allocation2 + $0x2f4] sm:$0xff] }
 0x24a   : > { %v2268_v29 = vpop.permute.xlu1 %2267  ;;  %v2386_v5 = vld [vmem:[#allocation3 + $0x30] sm:$0xff] }
 0x24b   : > { %2356 = vst.msk [vmem:[#allocation3 + $0x40] sm:$0xff] %vm2347_vm10, %v2268_v29  ;;  %3114 = vmatprep.mubr.msk.f32.mxu1 %vm2428_vm11, %v2386_v5  ;;  %v2081_v42 = vpop.permute.xlu0 %2080 }
 0x24c   : > { %2291 = vrot.lane.b32.xlu1 %v2207_v40, %s3213_s21  ;;  %3115 = vmatmul.mubr.msk.f32.gmra.mrb[6].mxu1 %vm2428_vm11, %v2387_v43 }
 0x24d   : > { %2100 = vrot.lane.b32.xlu0 %v2015_v50, %s3212_s20  ;;  %v2212_v50 = vld [vmem:[#allocation2 + $0x314] sm:$0xff] }
 0x24e   : > { %v1888_v44 = vpop.permute.xlu1 %1887 }
 0x24f   : > { %1973 = vst.msk [vmem:[#allocation3 + $0x58] sm:$0xff] %vm1961_vm8, %v1888_v44  ;;  %v1886_v52 = vpop.permute.xlu0 %1885  ;;  %v1827_v44 = vld [vmem:[#allocation2 + $0x320] sm:$0xff] }
 0x250   : > { %2166 = vst.msk [vmem:[#allocation3 + $0x58] sm:$0xff] %vm2154_vm9, %v2081_v42  ;;  %1715 = vrot.lane.b32.xlu1 %v4122_v34, %s3211_s17  ;;  %v2389_v58 = vld [vmem:[#allocation3 + $0x48] sm:$0xff] }
 0x251   : > { %1972 = vst.msk [vmem:[#allocation3 + $0x50] sm:$0xff] %vm1961_vm8, %v1886_v52  ;;  %1524 = vrot.lane.b32.xlu0 %v4101_v30, %s3209_s15  ;;  %v1823_v30 = vld [vmem:[#allocation2 + $0x2e0] sm:$0xff] }
 0x252   : > { %v2272_v6 = vpop.permute.xlu1 %2271  ;;  %v2388_v7 = vld [vmem:[#allocation3 + $0x40] sm:$0xff] }
 0x253   : > { %3117 = vmatprep.mubr.msk.f32.mxu1 %vm2428_vm11, %v2388_v7  ;;  %v2079_v38 = vpop.permute.xlu0 %2078 }
 0x254   : > { %2165 = vst.msk [vmem:[#allocation3 + $0x50] sm:$0xff] %vm2154_vm9, %v2079_v38  ;;  %1717 = vrot.lane.b32.xlu1 %v4134_v47, %s3211_s17  ;;  %3118 = vmatmul.mubr.msk.f32.gmra.mrb[8].mxu1 %vm2428_vm11, %v2389_v58  ;;  %v2213_v38 = vld [vmem:[#allocation2 + $0x32c] sm:$0xff] }
 0x255   : > { %2358 = vst.msk [vmem:[#allocation3 + $0x50] sm:$0xff] %vm2347_vm10, %v2272_v6  ;;  %2293 = vrot.lane.b32.xlu0 %v2208_v51, %s3213_s21 }
 0x256   : > { %v1698_v34 = vpop.permute.xlu1 %1697 }
 0x257   : > { %1781 = vst.msk [vmem:[#allocation3 + $0x68] sm:$0xff] %vm1767_vm7, %v1698_v34  ;;  %v2274_v60 = vpop.permute.xlu0 %2273  ;;  %v2021_v34 = vld [vmem:[#allocation2 + $0x32e] sm:$0xff] }
 0x258   : > { %2359 = vst.msk [vmem:[#allocation3 + $0x58] sm:$0xff] %vm2347_vm10, %v2274_v60  ;;  %1333 = vrot.lane.b32.xlu1 %v4140_v54, %s3210_s16 }
 0x259   : > { %1909 = vrot.lane.b32.xlu0 %v1823_v30, %s3214_s22 }
 0x25a   : > { %v1892_v47 = vpop.permute.xlu1 %1891 }
 0x25b   : > { %1975 = vst.msk [vmem:[#allocation3 + $0x68] sm:$0xff] %vm1961_vm8, %v1892_v47  ;;  %v1890_v1 = vpop.permute.xlu0 %1889  ;;  %v2214_v47 = vld [vmem:[#allocation2 + $0x334] sm:$0xff] }
 0x25c   : > { %1974 = vst.msk [vmem:[#allocation3 + $0x60] sm:$0xff] %vm1961_vm8, %v1890_v1  ;;  %2102 = vrot.lane.b32.xlu1 %v2016_v63, %s3212_s20  ;;  %v2390_v10 = vld [vmem:[#allocation3 + $0x50] sm:$0xff] }
 0x25d   : > { %1911 = vrot.lane.b32.xlu0 %v1824_v11, %s3214_s22  ;;  %3120 = vmatprep.mubr.msk.f32.mxu1 %vm2428_vm11, %v2390_v10  ;;  %v1829_v10 = vld [vmem:[#allocation2 + $0x340] sm:$0xff] }
 0x25e   : > { %v1507_v24 = vpop.permute.xlu1 %1506 }
 0x25f   : > { %1589 = vst.msk [vmem:[#allocation3 + $0x70] sm:$0xff] %vm1574_vm6, %v1507_v24  ;;  %v2083_v54 = vpop.permute.xlu0 %2082  ;;  %v2391_v55 = vld [vmem:[#allocation3 + $0x58] sm:$0xff] }
 0x260   : > { %2167 = vst.msk [vmem:[#allocation3 + $0x60] sm:$0xff] %vm2154_vm9, %v2083_v54  ;;  %1526 = vrot.lane.b32.xlu1 %v4156_v59, %s3209_s15  ;;  %3121 = vmatmul.mubr.msk.f32.gmra.mrb[10].mxu1 %vm2428_vm11, %v2391_v55 }
 0x261   : > { %1335 = vrot.lane.b32.xlu0 %v4138_v49, %s3210_s16 }
 0x262   : > { %v2276_v48 = vpop.permute.xlu1 %2275 }
 0x263   : > { %2360 = vst.msk [vmem:[#allocation3 + $0x60] sm:$0xff] %vm2347_vm10, %v2276_v48  ;;  %v2085_v27 = vpop.permute.xlu0 %2084  ;;  %v2215_v48 = vld [vmem:[#allocation2 + $0x34c] sm:$0xff] }
 0x264   : > { %2168 = vst.msk [vmem:[#allocation3 + $0x68] sm:$0xff] %vm2154_vm9, %v2085_v27  ;;  %2295 = vrot.lane.b32.xlu1 %v2209_v19, %s3213_s21  ;;  %v2023_v27 = vld [vmem:[#allocation2 + $0x34e] sm:$0xff] }
 0x265   : > { %2104 = vrot.lane.b32.xlu0 %v2017_v28, %s3212_s20 }
 0x266   : > { %v1700_v13 = vpop.permute.xlu1 %1699 }
 0x267   : > { %1782 = vst.msk [vmem:[#allocation3 + $0x70] sm:$0xff] %vm1767_vm7, %v1700_v13  ;;  %v1509_v59 = vpop.permute.xlu0 %1508 }
 0x268   : > { %1590 = vst.msk [vmem:[#allocation3 + $0x78] sm:$0xff] %vm1574_vm6, %v1509_v59  ;;  %1719 = vrot.lane.b32.xlu1 %v4163_v41, %s3211_s17  ;;  %v1825_v41 = vld [vmem:[#allocation2 + $0x300] sm:$0xff] }
 0x269   : > { %1528 = vrot.lane.b32.xlu0 %v4167_v62, %s3209_s15 }
 0x26a   : > { %v1702_v49 = vpop.permute.xlu1 %1701  ;;  %v2392_v14 = vld [vmem:[#allocation3 + $0x60] sm:$0xff] }
 0x26b   : > { %1783 = vst.msk [vmem:[#allocation3 + $0x78] sm:$0xff] %vm1767_vm7, %v1702_v49  ;;  %v2278_v17 = vpop.permute.xlu0 %2277  ;;  %3123 = vmatprep.mubr.msk.f32.mxu1 %vm2428_vm11, %v2392_v14  ;;  %v2216_v14 = vld [vmem:[#allocation2 + $0x354] sm:$0xff] }
 0x26c   : > { %2361 = vst.msk [vmem:[#allocation3 + $0x68] sm:$0xff] %vm2347_vm10, %v2278_v17  ;;  %1721 = vrot.lane.b32.xlu1 %v4181_v3, %s3211_s17  ;;  %v1832_v17 = vld [vmem:[#allocation2 + $0x368] sm:$0xff] }
 0x26d   : > { %2297 = vrot.lane.b32.xlu0 %v2210_v15, %s3213_s21 }
 0x26e   : > { %v1896_v33 = vpop.permute.xlu1 %1895 }
 0x26f   : > { %1977 = vst.msk [vmem:[#allocation3 + $0x78] sm:$0xff] %vm1961_vm8, %v1896_v33  ;;  %v1894_v62 = vpop.permute.xlu0 %1893 }
 0x270   : > { %1976 = vst.msk [vmem:[#allocation3 + $0x70] sm:$0xff] %vm1961_vm8, %v1894_v62  ;;  %1337 = vrot.lane.b32.xlu1 %v4187_v8, %s3210_s16 }
 0x271   : > { %1913 = vrot.lane.b32.xlu0 %v1825_v41, %s3214_s22  ;;  %v1831_v41 = vld [vmem:[#allocation2 + $0x360] sm:$0xff] }
 0x272   : > { %v1511_v20 = vpop.permute.xlu1 %1510 }
 0x273   : > { %1591 = vst.msk [vmem:[#allocation3 + $0x80] sm:$0xff] %vm1574_vm6, %v1511_v20  ;;  %v2087_v3 = vpop.permute.xlu0 %2086  ;;  %v2393_v22 = vld [vmem:[#allocation3 + $0x68] sm:$0xff] }
 0x274   : > { %2169 = vst.msk [vmem:[#allocation3 + $0x70] sm:$0xff] %vm2154_vm9, %v2087_v3  ;;  %2106 = vrot.lane.b32.xlu1 %v2018_v16, %s3212_s20  ;;  %3124 = vmatmul.mubr.msk.f32.gmra.mrb[12].mxu1 %vm2428_vm11, %v2393_v22  ;;  %v2217_v22 = vld [vmem:[#allocation2 + $0x36c] sm:$0xff] }
 0x275   : > { %1915 = vrot.lane.b32.xlu0 %v1826_v21, %s3214_s22  ;;  %v2218_v21 = vld [vmem:[#allocation2 + $0x374] sm:$0xff] }
 0x276   : > { %v2280_v23 = vpop.permute.xlu1 %2279 }
 0x277   : > { %2362 = vst.msk [vmem:[#allocation3 + $0x70] sm:$0xff] %vm2347_vm10, %v2280_v23  ;;  %v2089_v8 = vpop.permute.xlu0 %2088 }
 0x278   : > { %2170 = vst.msk [vmem:[#allocation3 + $0x78] sm:$0xff] %vm2154_vm9, %v2089_v8  ;;  %1530 = vrot.lane.b32.xlu1 %v4203_v12, %s3209_s15 }
 0x279   : > { %1339 = vrot.lane.b32.xlu0 %v4185_v4, %s3210_s16 }
 0x27a   : > { %v1704_v26 = vpop.permute.xlu1 %1703 }
 0x27b   : > { %1784 = vst.msk [vmem:[#allocation3 + $0x80] sm:$0xff] %vm1767_vm7, %v1704_v26  ;;  %v1513_v40 = vpop.permute.xlu0 %1512 }
 0x27c   : > { %1592 = vst.msk [vmem:[#allocation3 + $0x88] sm:$0xff] %vm1574_vm6, %v1513_v40  ;;  %2299 = vrot.lane.b32.xlu1 %v2211_v36, %s3213_s21 }
 0x27d   : > { %2108 = vrot.lane.b32.xlu0 %v2019_v37, %s3212_s20 }
 0x27e   : > { %v1706_v29 = vpop.permute.xlu1 %1705  ;;  %v2394_v5 = vld [vmem:[#allocation3 + $0x70] sm:$0xff] }
 0x27f   : > { %1785 = vst.msk [vmem:[#allocation3 + $0x88] sm:$0xff] %vm1767_vm7, %v1706_v29  ;;  %v2282_v12 = vpop.permute.xlu0 %2281  ;;  %3126 = vmatprep.mubr.msk.f32.mxu1 %vm2428_vm11, %v2394_v5 }
 0x280   : > { %2363 = vst.msk [vmem:[#allocation3 + $0x78] sm:$0xff] %vm2347_vm10, %v2282_v12  ;;  %1723 = vrot.lane.b32.xlu1 %v4210_v56, %s3211_s17 }
 0x281   : > { %1532 = vrot.lane.b32.xlu0 %v4215_v45, %s3209_s15  ;;  %v2020_v45 = vld [vmem:[#allocation2 + $0x326] sm:$0xff] }
 0x282   : > { %v1322_v4 = vpop.permute.xlu1 %1321 }
 0x283   : > { %1400 = vst.msk [vmem:[#allocation3 + $0x90] sm:$0xff] %vm1381_vm5, %v1322_v4  ;;  %v1898_v42 = vpop.permute.xlu0 %1897 }
 0x284   : > { %1978 = vst.msk [vmem:[#allocation3 + $0x80] sm:$0xff] %vm1961_vm8, %v1898_v42  ;;  %1725 = vrot.lane.b32.xlu1 %v4233_v25, %s3211_s17  ;;  %v1828_v25 = vld [vmem:[#allocation2 + $0x328] sm:$0xff] }
 0x285   : > { %2301 = vrot.lane.b32.xlu0 %v2212_v50, %s3213_s21 }
 0x286   : > { %v2091_v43 = vpop.permute.xlu1 %2090 }
 0x287   : > { %2171 = vst.msk [vmem:[#allocation3 + $0x80] sm:$0xff] %vm2154_vm9, %v2091_v43  ;;  %v1900_v56 = vpop.permute.xlu0 %1899  ;;  %v2395_v52 = vld [vmem:[#allocation3 + $0x78] sm:$0xff] }
 0x288   : > { %1979 = vst.msk [vmem:[#allocation3 + $0x88] sm:$0xff] %vm1961_vm8, %v1900_v56  ;;  %1341 = vrot.lane.b32.xlu1 %v4237_v57, %s3210_s16  ;;  %3127 = vmatmul.mubr.msk.f32.gmra.mrb[14].mxu1 %vm2428_vm11, %v2395_v52 }
 0x289   : > { %1917 = vrot.lane.b32.xlu0 %v1827_v44, %s3214_s22 }
 0x28a   : > { %v1515_v6 = vpop.permute.xlu1 %1514 }
 0x28b   : > { %1593 = vst.msk [vmem:[#allocation3 + $0x90] sm:$0xff] %vm1574_vm6, %v1515_v6  ;;  %v1324_v7 = vpop.permute.xlu0 %1323  ;;  %v4540_v6 = vld [vmem:[%s4706_s4] ss:$0 sm:$0xff] }
 0x28c   : > { %1401 = vst.msk [vmem:[#allocation3 + $0x98] sm:$0xff] %vm1381_vm5, %v1324_v7  ;;  %2110 = vrot.lane.b32.xlu1 %v2020_v45, %s3212_s20 }
 0x28d   : > { %1919 = vrot.lane.b32.xlu0 %v1828_v25, %s3214_s22 }
 0x28e   : > { %v2284_v51 = vpop.permute.xlu1 %2283 }
 0x28f   : > { %2364 = vst.msk [vmem:[#allocation3 + $0x80] sm:$0xff] %vm2347_vm10, %v2284_v51  ;;  %v2093_v57 = vpop.permute.xlu0 %2092 }
 0x290   : > { %2172 = vst.msk [vmem:[#allocation3 + $0x88] sm:$0xff] %vm2154_vm9, %v2093_v57  ;;  %1534 = vrot.lane.b32.xlu1 %v4246_v32, %s3209_s15 }
 0x291   : > { %1343 = vrot.lane.b32.xlu0 %v4251_v35, %s3210_s16 }
 0x292   : > { %v1708_v58 = vpop.permute.xlu1 %1707 }
 0x293   : > { %1786 = vst.msk [vmem:[#allocation3 + $0x90] sm:$0xff] %vm1767_vm7, %v1708_v58  ;;  %v1517_v30 = vpop.permute.xlu0 %1516 }
 0x294   : > { %1594 = vst.msk [vmem:[#allocation3 + $0x98] sm:$0xff] %vm1574_vm6, %v1517_v30  ;;  %2303 = vrot.lane.b32.xlu1 %v2213_v38, %s3213_s21 }
 0x295   : > { %2112 = vrot.lane.b32.xlu0 %v2021_v34, %s3212_s20 }
 0x296   : > { %v1710_v60 = vpop.permute.xlu1 %1709  ;;  %v2396_v63 = vld [vmem:[#allocation3 + $0x80] sm:$0xff] }
 0x297   : > { %1787 = vst.msk [vmem:[#allocation3 + $0x98] sm:$0xff] %vm1767_vm7, %v1710_v60  ;;  %v2286_v32 = vpop.permute.xlu0 %2285  ;;  %3129 = vmatprep.mubr.msk.f32.mxu1 %vm2428_vm11, %v2396_v63 }
 0x298   : > { %2365 = vst.msk [vmem:[#allocation3 + $0x88] sm:$0xff] %vm2347_vm10, %v2286_v32  ;;  %1727 = vrot.lane.b32.xlu1 %v4262_v46, %s3211_s17 }
 0x299   : > { %1536 = vrot.lane.b32.xlu0 %v4269_v39, %s3209_s15  ;;  %v2022_v39 = vld [vmem:[#allocation2 + $0x346] sm:$0xff] }
 0x29a   : > { %v1326_v35 = vpop.permute.xlu1 %1325 }
 0x29b   : > { %1402 = vst.msk [vmem:[#allocation3 + $0xa0] sm:$0xff] %vm1381_vm5, %v1326_v35  ;;  %v1902_v11 = vpop.permute.xlu0 %1901 }
 0x29c   : > { %1980 = vst.msk [vmem:[#allocation3 + $0x90] sm:$0xff] %vm1961_vm8, %v1902_v11  ;;  %1729 = vrot.lane.b32.xlu1 %v4284_v31, %s3211_s17  ;;  %v1830_v31 = vld [vmem:[#allocation2 + $0x348] sm:$0xff] }
 0x29d   : > { %2305 = vrot.lane.b32.xlu0 %v2214_v47, %s3213_s21 }
 0x29e   : > { %v2095_v1 = vpop.permute.xlu1 %2094 }
 0x29f   : > { %2173 = vst.msk [vmem:[#allocation3 + $0x90] sm:$0xff] %vm2154_vm9, %v2095_v1  ;;  %v1904_v46 = vpop.permute.xlu0 %1903  ;;  %v2397_v24 = vld [vmem:[#allocation3 + $0x88] sm:$0xff] }
 0x2a0   : > { %1981 = vst.msk [vmem:[#allocation3 + $0x98] sm:$0xff] %vm1961_vm8, %v1904_v46  ;;  %1345 = vrot.lane.b32.xlu1 %v4288_v61, %s3210_s16  ;;  %3130 = vmatmul.mubr.msk.f32.gmra.mrb[16].mxu1 %vm2428_vm11, %v2397_v24 }
 0x2a1   : > { %1921 = vrot.lane.b32.xlu0 %v1829_v10, %s3214_s22 }
 0x2a2   : > { %v1519_v54 = vpop.permute.xlu1 %1518 }
 0x2a3   : > { %1595 = vst.msk [vmem:[#allocation3 + $0xa0] sm:$0xff] %vm1574_vm6, %v1519_v54  ;;  %v1328_v55 = vpop.permute.xlu0 %1327 }
 0x2a4   : > { %1403 = vst.msk [vmem:[#allocation3 + $0xa8] sm:$0xff] %vm1381_vm5, %v1328_v55  ;;  %2114 = vrot.lane.b32.xlu1 %v2022_v39, %s3212_s20 }
 0x2a5   : > { %1923 = vrot.lane.b32.xlu0 %v1830_v31, %s3214_s22 }
 0x2a6   : > { %v2288_v19 = vpop.permute.xlu1 %2287 }
 0x2a7   : > { %2366 = vst.msk [vmem:[#allocation3 + $0x90] sm:$0xff] %vm2347_vm10, %v2288_v19  ;;  %v2097_v61 = vpop.permute.xlu0 %2096 }
 0x2a8   : > { %2174 = vst.msk [vmem:[#allocation3 + $0x98] sm:$0xff] %vm2154_vm9, %v2097_v61  ;;  %1538 = vrot.lane.b32.xlu1 %v4298_v0, %s3209_s15 }
 0x2a9   : > { %1347 = vrot.lane.b32.xlu0 %v4303_v53, %s3210_s16 }
 0x2aa   : > { %v1712_v28 = vpop.permute.xlu1 %1711 }
 0x2ab   : > { %1788 = vst.msk [vmem:[#allocation3 + $0xa0] sm:$0xff] %vm1767_vm7, %v1712_v28  ;;  %v1521_v13 = vpop.permute.xlu0 %1520 }
 0x2ac   : > { %1596 = vst.msk [vmem:[#allocation3 + $0xa8] sm:$0xff] %vm1574_vm6, %v1521_v13  ;;  %2307 = vrot.lane.b32.xlu1 %v2215_v48, %s3213_s21 }
 0x2ad   : > { %2116 = vrot.lane.b32.xlu0 %v2023_v27, %s3212_s20 }
 0x2ae   : > { %v1714_v59 = vpop.permute.xlu1 %1713  ;;  %v2398_v49 = vld [vmem:[#allocation3 + $0x90] sm:$0xff] }
 0x2af   : > { %1789 = vst.msk [vmem:[#allocation3 + $0xa8] sm:$0xff] %vm1767_vm7, %v1714_v59  ;;  %v2290_v0 = vpop.permute.xlu0 %2289  ;;  %3132 = vmatprep.mubr.msk.f32.mxu1 %vm2428_vm11, %v2398_v49 }
 0x2b0   : > { %2367 = vst.msk [vmem:[#allocation3 + $0x98] sm:$0xff] %vm2347_vm10, %v2290_v0  ;;  %1731 = vrot.lane.b32.xlu1 %v4318_v2, %s3211_s17 }
 0x2b1   : > { %1540 = vrot.lane.b32.xlu0 %v4323_v9, %s3209_s15  ;;  %v2025_v9 = vld [vmem:[#allocation2 + $0x36e] sm:$0xff] }
 0x2b2   : > { %v1330_v53 = vpop.permute.xlu1 %1329 }
 0x2b3   : > { %1404 = vst.msk [vmem:[#allocation3 + $0xb0] sm:$0xff] %vm1381_vm5, %v1330_v53  ;;  %v1906_v15 = vpop.permute.xlu0 %1905 }
 0x2b4   : > { %1982 = vst.msk [vmem:[#allocation3 + $0xa0] sm:$0xff] %vm1961_vm8, %v1906_v15  ;;  %1733 = vrot.lane.b32.xlu1 %v4338_v18, %s3211_s17  ;;  %v2024_v18 = vld [vmem:[#allocation2 + $0x366] sm:$0xff]  ;;  %s4551_s17 = scalar_lea.vmem %s4707_s5, %s2946_s7 }
 0x2b5   : > { %2309 = vrot.lane.b32.xlu0 %v2216_v14, %s3213_s21 }
 0x2b6   : > { %v2099_v33 = vpop.permute.xlu1 %2098 }
 0x2b7   : > { %2175 = vst.msk [vmem:[#allocation3 + $0xa0] sm:$0xff] %vm2154_vm9, %v2099_v33  ;;  %v1908_v2 = vpop.permute.xlu0 %1907  ;;  %v2399_v62 = vld [vmem:[#allocation3 + $0x98] sm:$0xff] }
 0x2b8   : > { %1983 = vst.msk [vmem:[#allocation3 + $0xa8] sm:$0xff] %vm1961_vm8, %v1908_v2  ;;  %3133 = vmatmul.mubr.msk.f32.gmra.mrb[18].mxu1 %vm2428_vm11, %v2399_v62  ;;  %1927 = vrot.lane.b32.xlu1 %v1832_v17, %s3214_s22 }
 0x2b9   : > { %1925 = vrot.lane.b32.xlu0 %v1831_v41, %s3214_s22 }
 0x2ba   : > { %v1523_v16 = vpop.permute.xlu1 %1522 }
 0x2bb   : > { %1597 = vst.msk [vmem:[#allocation3 + $0xb0] sm:$0xff] %vm1574_vm6, %v1523_v16  ;;  %v1332_v20 = vpop.permute.xlu0 %1331 }
 0x2bc   : > { %1405 = vst.msk [vmem:[#allocation3 + $0xb8] sm:$0xff] %vm1381_vm5, %v1332_v20  ;;  %2120 = vrot.lane.b32.xlu1 %v2025_v9, %s3212_s20 }
 0x2bd   : > { %2118 = vrot.lane.b32.xlu0 %v2024_v18, %s3212_s20 }
 0x2be   : > { %v2292_v3 = vpop.permute.xlu1 %2291 }
 0x2bf   : > { %2368 = vst.msk [vmem:[#allocation3 + $0xa0] sm:$0xff] %vm2347_vm10, %v2292_v3  ;;  %v2101_v23 = vpop.permute.xlu0 %2100 }
 0x2c0   : > { %2176 = vst.msk [vmem:[#allocation3 + $0xa8] sm:$0xff] %vm2154_vm9, %v2101_v23  ;;  %2313 = vrot.lane.b32.xlu1 %v2218_v21, %s3213_s21 }
 0x2c1   : > { %2311 = vrot.lane.b32.xlu0 %v2217_v22, %s3213_s21 }
 0x2c2   : > { %v1716_v8 = vpop.permute.xlu1 %1715 }
 0x2c3   : > { %1790 = vst.msk [vmem:[#allocation3 + $0xb0] sm:$0xff] %vm1767_vm7, %v1716_v8  ;;  %v1525_v36 = vpop.permute.xlu0 %1524 }
 0x2c4   : > { %1598 = vst.msk [vmem:[#allocation3 + $0xb8] sm:$0xff] %vm1574_vm6, %v1525_v36 }
 0x2c6   : > { %v1718_v26 = vpop.permute.xlu1 %1717  ;;  %v2400_v37 = vld [vmem:[#allocation3 + $0xa0] sm:$0xff] }
 0x2c7   : > { %1791 = vst.msk [vmem:[#allocation3 + $0xb8] sm:$0xff] %vm1767_vm7, %v1718_v26  ;;  %v2294_v40 = vpop.permute.xlu0 %2293  ;;  %3135 = vmatprep.mubr.msk.f32.mxu1 %vm2428_vm11, %v2400_v37 }
 0x2c8   : > { %2369 = vst.msk [vmem:[#allocation3 + $0xa8] sm:$0xff] %vm2347_vm10, %v2294_v40 }
 0x2ca   : > { %v1334_v29 = vpop.permute.xlu1 %1333 }
 0x2cb   : > { %1406 = vst.msk [vmem:[#allocation3 + $0xc0] sm:$0xff] %vm1381_vm5, %v1334_v29  ;;  %v1910_v5 = vpop.permute.xlu0 %1909 }
 0x2cc   : > { %1984 = vst.msk [vmem:[#allocation3 + $0xb0] sm:$0xff] %vm1961_vm8, %v1910_v5 }
 0x2ce   : > { %v2103_v12 = vpop.permute.xlu1 %2102 }
 0x2cf   : > { %2177 = vst.msk [vmem:[#allocation3 + $0xb0] sm:$0xff] %vm2154_vm9, %v2103_v12  ;;  %v1912_v4 = vpop.permute.xlu0 %1911  ;;  %v2401_v50 = vld [vmem:[#allocation3 + $0xa8] sm:$0xff] }
 0x2d0   : > { %1985 = vst.msk [vmem:[#allocation3 + $0xb8] sm:$0xff] %vm1961_vm8, %v1912_v4  ;;  %3136 = vmatmul.mubr.msk.f32.gmra.mrb[20].mxu1 %vm2428_vm11, %v2401_v50 }
 0x2d2   : > { %v1527_v42 = vpop.permute.xlu1 %1526 }
 0x2d3   : > { %1599 = vst.msk [vmem:[#allocation3 + $0xc0] sm:$0xff] %vm1574_vm6, %v1527_v42  ;;  %v1336_v43 = vpop.permute.xlu0 %1335 }
 0x2d4   : > { %1407 = vst.msk [vmem:[#allocation3 + $0xc8] sm:$0xff] %vm1381_vm5, %v1336_v43 }
 0x2d6   : > { %v2296_v44 = vpop.permute.xlu1 %2295 }
 0x2d7   : > { %2370 = vst.msk [vmem:[#allocation3 + $0xb0] sm:$0xff] %vm2347_vm10, %v2296_v44  ;;  %v2105_v56 = vpop.permute.xlu0 %2104 }
 0x2d8   : > { %2178 = vst.msk [vmem:[#allocation3 + $0xb8] sm:$0xff] %vm2154_vm9, %v2105_v56 }
 0x2da   : > { %v1720_v52 = vpop.permute.xlu1 %1719 }
 0x2db   : > { %1792 = vst.msk [vmem:[#allocation3 + $0xc0] sm:$0xff] %vm1767_vm7, %v1720_v52  ;;  %v1529_v45 = vpop.permute.xlu0 %1528 }
 0x2dc   : > { %1600 = vst.msk [vmem:[#allocation3 + $0xc8] sm:$0xff] %vm1574_vm6, %v1529_v45 }
 0x2de   : > { %v1722_v25 = vpop.permute.xlu1 %1721  ;;  %v2402_v7 = vld [vmem:[#allocation3 + $0xb0] sm:$0xff] }
 0x2df   : > { %1793 = vst.msk [vmem:[#allocation3 + $0xc8] sm:$0xff] %vm1767_vm7, %v1722_v25  ;;  %v3107_v51 = vpop.f32.mrb[0].mxu1  ;;  %v2298_v57 = vpop.permute.xlu0 %2297  ;;  %3138 = vmatprep.mubr.msk.f32.mxu1 %vm2428_vm11, %v2402_v7 }
 0x2e0   : > { %v2597_v38 = vadd.f32 %v3107_v51, %v4540_v6  ;;  %2371 = vst.msk [vmem:[#allocation3 + $0xb8] sm:$0xff] %vm2347_vm10, %v2298_v57  ;;  %v2591_v58 = vpop.f32.mrb[1].mxu1 }
 0x2e1   : > { %v2592_v34 = vadd.f32 %v4540_v6, %v2591_v58 }
 0x2e2   : > { %v2751_v30 = vmax.f32 %v2597_v38, 0.0  ;;  %v1338_v60 = vpop.permute.xlu1 %1337 }
 0x2e3   : > { %v2750_v63 = vmax.f32 %v2592_v34, 0.0  ;;  %1408 = vst.msk [vmem:[#allocation3 + $0xd0] sm:$0xff] %vm1381_vm5, %v1338_v60  ;;  %v1914_v32 = vpop.permute.xlu0 %1913 }
 0x2e4   : > { %2783 = vst.msk [vmem:[%s4551_s17 + $0x8] sm:$0xff] %vm624_vm0, %v2751_v30 }
 0x2e5   : > { %1986 = vst.msk [vmem:[#allocation3 + $0xc0] sm:$0xff] %vm1961_vm8, %v1914_v32 }
 0x2e6   : > { %2782 = vst.msk [vmem:[%s4551_s17] sm:$0xff] %vm624_vm0, %v2750_v63  ;;  %v2107_v35 = vpop.permute.xlu1 %2106 }
 0x2e7   : > { %2179 = vst.msk [vmem:[#allocation3 + $0xc0] sm:$0xff] %vm2154_vm9, %v2107_v35  ;;  %v1916_v47 = vpop.permute.xlu0 %1915  ;;  %v2403_v11 = vld [vmem:[#allocation3 + $0xb8] sm:$0xff] }
 0x2e8   : > { %1987 = vst.msk [vmem:[#allocation3 + $0xc8] sm:$0xff] %vm1961_vm8, %v1916_v47  ;;  %3139 = vmatmul.mubr.msk.f32.gmra.mrb[22].mxu1 %vm2428_vm11, %v2403_v11 }
 0x2ea   : > { %v1531_v1 = vpop.permute.xlu1 %1530 }
 0x2eb   : > { %1601 = vst.msk [vmem:[#allocation3 + $0xd0] sm:$0xff] %vm1574_vm6, %v1531_v1  ;;  %v1340_v10 = vpop.permute.xlu0 %1339 }
 0x2ec   : > { %1409 = vst.msk [vmem:[#allocation3 + $0xd8] sm:$0xff] %vm1381_vm5, %v1340_v10 }
 0x2ee   : > { %v2300_v46 = vpop.permute.xlu1 %2299 }
 0x2ef   : > { %2372 = vst.msk [vmem:[#allocation3 + $0xc0] sm:$0xff] %vm2347_vm10, %v2300_v46  ;;  %v2109_v24 = vpop.permute.xlu0 %2108 }
 0x2f0   : > { %2180 = vst.msk [vmem:[#allocation3 + $0xc8] sm:$0xff] %vm2154_vm9, %v2109_v24 }
 0x2f2   : > { %v1724_v39 = vpop.permute.xlu1 %1723 }
 0x2f3   : > { %1794 = vst.msk [vmem:[#allocation3 + $0xd0] sm:$0xff] %vm1767_vm7, %v1724_v39  ;;  %v1533_v54 = vpop.permute.xlu0 %1532 }
 0x2f4   : > { %1602 = vst.msk [vmem:[#allocation3 + $0xd8] sm:$0xff] %vm1574_vm6, %v1533_v54 }
 0x2f6   : > { %v1726_v31 = vpop.permute.xlu1 %1725  ;;  %v2404_v55 = vld [vmem:[#allocation3 + $0xc0] sm:$0xff] }
 0x2f7   : > { %1795 = vst.msk [vmem:[#allocation3 + $0xd8] sm:$0xff] %vm1767_vm7, %v1726_v31  ;;  %v2302_v19 = vpop.permute.xlu0 %2301  ;;  %3141 = vmatprep.mubr.msk.f32.mxu1 %vm2428_vm11, %v2404_v55 }
 0x2f8   : > { %2373 = vst.msk [vmem:[#allocation3 + $0xc8] sm:$0xff] %vm2347_vm10, %v2302_v19 }
 0x2fa   : > { %v1342_v61 = vpop.permute.xlu1 %1341 }
 0x2fb   : > { %1410 = vst.msk [vmem:[#allocation3 + $0xe0] sm:$0xff] %vm1381_vm5, %v1342_v61  ;;  %v3110_v48 = vpop.f32.mrb[2].mxu1  ;;  %v1918_v28 = vpop.permute.xlu0 %1917 }
 0x2fc   : > { %v2607_v27 = vadd.f32 %v3110_v48, %v4540_v6  ;;  %1988 = vst.msk [vmem:[#allocation3 + $0xd0] sm:$0xff] %vm1961_vm8, %v1918_v28  ;;  %v2601_v13 = vpop.f32.mrb[3].mxu1 }
 0x2fd   : > { %v2602_v59 = vadd.f32 %v4540_v6, %v2601_v13 }
 0x2fe   : > { %v2753_v49 = vmax.f32 %v2607_v27, 0.0  ;;  %v2111_v0 = vpop.permute.xlu1 %2110 }
 0x2ff   : > { %v2752_v53 = vmax.f32 %v2602_v59, 0.0  ;;  %2181 = vst.msk [vmem:[#allocation3 + $0xd0] sm:$0xff] %vm2154_vm9, %v2111_v0  ;;  %v1920_v14 = vpop.permute.xlu0 %1919  ;;  %v2405_v15 = vld [vmem:[#allocation3 + $0xc8] sm:$0xff] }
 0x300   : > { %2785 = vst.msk [vmem:[%s4551_s17 + $0x18] sm:$0xff] %vm624_vm0, %v2753_v49  ;;  %3142 = vmatmul.mubr.msk.f32.gmra.mrb[24].mxu1 %vm2428_vm11, %v2405_v15 }
 0x301   : > { %1989 = vst.msk [vmem:[#allocation3 + $0xd8] sm:$0xff] %vm1961_vm8, %v1920_v14 }
 0x302   : > { %2784 = vst.msk [vmem:[%s4551_s17 + $0x10] sm:$0xff] %vm624_vm0, %v2752_v53  ;;  %v1535_v17 = vpop.permute.xlu1 %1534 }
 0x303   : > { %1603 = vst.msk [vmem:[#allocation3 + $0xe0] sm:$0xff] %vm1574_vm6, %v1535_v17  ;;  %v1344_v33 = vpop.permute.xlu0 %1343 }
 0x304   : > { %1411 = vst.msk [vmem:[#allocation3 + $0xe8] sm:$0xff] %vm1381_vm5, %v1344_v33 }
 0x306   : > { %v2304_v41 = vpop.permute.xlu1 %2303 }
 0x307   : > { %2374 = vst.msk [vmem:[#allocation3 + $0xd0] sm:$0xff] %vm2347_vm10, %v2304_v41  ;;  %v2113_v2 = vpop.permute.xlu0 %2112 }
 0x308   : > { %2182 = vst.msk [vmem:[#allocation3 + $0xd8] sm:$0xff] %vm2154_vm9, %v2113_v2 }
 0x30a   : > { %v1728_v62 = vpop.permute.xlu1 %1727 }
 0x30b   : > { %1796 = vst.msk [vmem:[#allocation3 + $0xe0] sm:$0xff] %vm1767_vm7, %v1728_v62  ;;  %v1537_v9 = vpop.permute.xlu0 %1536 }
 0x30c   : > { %1604 = vst.msk [vmem:[#allocation3 + $0xe8] sm:$0xff] %vm1574_vm6, %v1537_v9 }
 0x30e   : > { %v1730_v16 = vpop.permute.xlu1 %1729  ;;  %v2406_v18 = vld [vmem:[#allocation3 + $0xd0] sm:$0xff] }
 0x30f   : > { %1797 = vst.msk [vmem:[#allocation3 + $0xe8] sm:$0xff] %vm1767_vm7, %v1730_v16  ;;  %v3113_v20 = vpop.f32.mrb[4].mxu1  ;;  %v2306_v21 = vpop.permute.xlu0 %2305  ;;  %3144 = vmatprep.mubr.msk.f32.mxu1 %vm2428_vm11, %v2406_v18 }
 0x310   : > { %v2617_v3 = vadd.f32 %v3113_v20, %v4540_v6  ;;  %2375 = vst.msk [vmem:[#allocation3 + $0xd8] sm:$0xff] %vm2347_vm10, %v2306_v21  ;;  %v2611_v22 = vpop.f32.mrb[5].mxu1 }
 0x311   : > { %v2612_v23 = vadd.f32 %v4540_v6, %v2611_v22 }
 0x312   : > { %v2755_v8 = vmax.f32 %v2617_v3, 0.0  ;;  %v1346_v36 = vpop.permute.xlu1 %1345 }
 0x313   : > { %v2754_v26 = vmax.f32 %v2612_v23, 0.0  ;;  %1412 = vst.msk [vmem:[#allocation3 + $0xf0] sm:$0xff] %vm1381_vm5, %v1346_v36  ;;  %v1922_v37 = vpop.permute.xlu0 %1921 }
 0x314   : > { %2787 = vst.msk [vmem:[%s4551_s17 + $0x28] sm:$0xff] %vm624_vm0, %v2755_v8 }
 0x315   : > { %1990 = vst.msk [vmem:[#allocation3 + $0xe0] sm:$0xff] %vm1961_vm8, %v1922_v37 }
 0x316   : > { %2786 = vst.msk [vmem:[%s4551_s17 + $0x20] sm:$0xff] %vm624_vm0, %v2754_v26  ;;  %v2115_v40 = vpop.permute.xlu1 %2114 }
 0x317   : > { %2183 = vst.msk [vmem:[#allocation3 + $0xe0] sm:$0xff] %vm2154_vm9, %v2115_v40  ;;  %v1924_v29 = vpop.permute.xlu0 %1923  ;;  %v2407_v5 = vld [vmem:[#allocation3 + $0xd8] sm:$0xff] }
 0x318   : > { %1991 = vst.msk [vmem:[#allocation3 + $0xe8] sm:$0xff] %vm1961_vm8, %v1924_v29  ;;  %3145 = vmatmul.mubr.msk.f32.gmra.mrb[26].mxu1 %vm2428_vm11, %v2407_v5 }
 0x31a   : > { %v1539_v12 = vpop.permute.xlu1 %1538 }
 0x31b   : > { %1605 = vst.msk [vmem:[#allocation3 + $0xf0] sm:$0xff] %vm1574_vm6, %v1539_v12  ;;  %v1348_v4 = vpop.permute.xlu0 %1347 }
 0x31c   : > { %1413 = vst.msk [vmem:[#allocation3 + $0xf8] sm:$0xff] %vm1381_vm5, %v1348_v4 }
 0x31e   : > { %v2308_v50 = vpop.permute.xlu1 %2307 }
 0x31f   : > { %2376 = vst.msk [vmem:[#allocation3 + $0xe0] sm:$0xff] %vm2347_vm10, %v2308_v50  ;;  %v3116_v42 = vpop.f32.mrb[6].mxu1  ;;  %v2117_v43 = vpop.permute.xlu0 %2116 }
 0x320   : > { %v2627_v44 = vadd.f32 %v3116_v42, %v4540_v6  ;;  %2184 = vst.msk [vmem:[#allocation3 + $0xe8] sm:$0xff] %vm2154_vm9, %v2117_v43  ;;  %v2621_v56 = vpop.f32.mrb[7].mxu1 }
 0x321   : > { %v2622_v52 = vadd.f32 %v4540_v6, %v2621_v56 }
 0x322   : > { %v2757_v45 = vmax.f32 %v2627_v44, 0.0  ;;  %v1732_v25 = vpop.permute.xlu1 %1731 }
 0x323   : > { %v2756_v7 = vmax.f32 %v2622_v52, 0.0  ;;  %1798 = vst.msk [vmem:[#allocation3 + $0xf0] sm:$0xff] %vm1767_vm7, %v1732_v25  ;;  %v1541_v51 = vpop.permute.xlu0 %1540 }
 0x324   : > { %2789 = vst.msk [vmem:[%s4551_s17 + $0x38] sm:$0xff] %vm624_vm0, %v2757_v45 }
 0x325   : > { %1606 = vst.msk [vmem:[#allocation3 + $0xf8] sm:$0xff] %vm1574_vm6, %v1541_v51 }
 0x326   : > { %2788 = vst.msk [vmem:[%s4551_s17 + $0x30] sm:$0xff] %vm624_vm0, %v2756_v7  ;;  %v1734_v57 = vpop.permute.xlu1 %1733  ;;  %v2408_v38 = vld [vmem:[#allocation3 + $0xe0] sm:$0xff] }
 0x327   : > { %1799 = vst.msk [vmem:[#allocation3 + $0xf8] sm:$0xff] %vm1767_vm7, %v1734_v57  ;;  %v3119_v58 = vpop.f32.mrb[8].mxu1  ;;  %v2310_v34 = vpop.permute.xlu0 %2309  ;;  %3147 = vmatprep.mubr.msk.f32.mxu1 %vm2428_vm11, %v2408_v38 }
 0x328   : > { %v2637_v30 = vadd.f32 %v3119_v58, %v4540_v6  ;;  %2377 = vst.msk [vmem:[#allocation3 + $0xe8] sm:$0xff] %vm2347_vm10, %v2310_v34  ;;  %v2631_v60 = vpop.f32.mrb[9].mxu1 }
 0x329   : > { %v2632_v63 = vadd.f32 %v4540_v6, %v2631_v60 }
 0x32a   : > { %v2759_v32 = vmax.f32 %v2637_v30, 0.0  ;;  %v1928_v35 = vpop.permute.xlu1 %1927 }
 0x32b   : > { %v2758_v47 = vmax.f32 %v2632_v63, 0.0  ;;  %v1926_v11 = vpop.permute.xlu0 %1925  ;;  %1993 = vst.msk [vmem:[#allocation3 + $0xf8] sm:$0xff] %vm1961_vm8, %v1928_v35 }
 0x32c   : > { %2791 = vst.msk [vmem:[%s4551_s17 + $0x48] sm:$0xff] %vm624_vm0, %v2759_v32 }
 0x32d   : > { %1992 = vst.msk [vmem:[#allocation3 + $0xf0] sm:$0xff] %vm1961_vm8, %v1926_v11 }
 0x32e   : > { %2790 = vst.msk [vmem:[%s4551_s17 + $0x40] sm:$0xff] %vm624_vm0, %v2758_v47  ;;  %v2121_v1 = vpop.permute.xlu1 %2120 }
 0x32f   : > { %v2119_v10 = vpop.permute.xlu0 %2118  ;;  %2186 = vst.msk [vmem:[#allocation3 + $0xf8] sm:$0xff] %vm2154_vm9, %v2121_v1  ;;  %v2409_v46 = vld [vmem:[#allocation3 + $0xe8] sm:$0xff] }
 0x330   : > { %2185 = vst.msk [vmem:[#allocation3 + $0xf0] sm:$0xff] %vm2154_vm9, %v2119_v10  ;;  %3148 = vmatmul.mubr.msk.f32.gmra.mrb[28].mxu1 %vm2428_vm11, %v2409_v46 }
 0x332   : > { %v2314_v24 = vpop.permute.xlu1 %2313 }
 0x333   : > { %v3122_v39 = vpop.f32.mrb[10].mxu1  ;;  %v2312_v54 = vpop.permute.xlu0 %2311  ;;  %2379 = vst.msk [vmem:[#allocation3 + $0xf8] sm:$0xff] %vm2347_vm10, %v2314_v24 }
 0x334   : > { %v2647_v31 = vadd.f32 %v3122_v39, %v4540_v6  ;;  %2378 = vst.msk [vmem:[#allocation3 + $0xf0] sm:$0xff] %vm2347_vm10, %v2312_v54  ;;  %v2641_v55 = vpop.f32.mrb[11].mxu1 }
 0x335   : > { %v2642_v19 = vadd.f32 %v4540_v6, %v2641_v55 }
 0x336   : > { %v2761_v61 = vmax.f32 %v2647_v31, 0.0 }
 0x337   : > { %v2760_v48 = vmax.f32 %v2642_v19, 0.0 }
 0x338   : > { %2793 = vst.msk [vmem:[%s4551_s17 + $0x58] sm:$0xff] %vm624_vm0, %v2761_v61 }
 0x339   : > { %2792 = vst.msk [vmem:[%s4551_s17 + $0x50] sm:$0xff] %vm624_vm0, %v2760_v48 }
 0x33a   : > { %v2411_v28 = vld [vmem:[#allocation3 + $0xf8] sm:$0xff] }
 0x33b   : > { %v2410_v27 = vld [vmem:[#allocation3 + $0xf0] sm:$0xff] }
 0x33c   : > { %3150 = vmatprep.mubr.msk.f32.mxu1 %vm2428_vm11, %v2410_v27 }
 0x33d   : > { %3151 = vmatmul.mubr.msk.f32.gmra.mrb[30].mxu1 %vm2428_vm11, %v2411_v28 }
 0x347   : > { %v3125_v13 = vpop.f32.mrb[12].mxu1 }
 0x348   : > { %v2657_v59 = vadd.f32 %v3125_v13, %v4540_v6  ;;  %v2651_v49 = vpop.f32.mrb[13].mxu1 }
 0x349   : > { %v2652_v0 = vadd.f32 %v4540_v6, %v2651_v49 }
 0x34a   : > { %v2763_v53 = vmax.f32 %v2657_v59, 0.0 }
 0x34b   : > { %v2762_v14 = vmax.f32 %v2652_v0, 0.0 }
 0x34c   : > { %2795 = vst.msk [vmem:[%s4551_s17 + $0x68] sm:$0xff] %vm624_vm0, %v2763_v53 }
 0x34d   : > { %2794 = vst.msk [vmem:[%s4551_s17 + $0x60] sm:$0xff] %vm624_vm0, %v2762_v14 }
 0x35b   : > { %v3128_v15 = vpop.f32.mrb[14].mxu1 }
 0x35c   : > { %v2667_v17 = vadd.f32 %v3128_v15, %v4540_v6  ;;  %v2661_v33 = vpop.f32.mrb[15].mxu1 }
 0x35d   : > { %v2662_v41 = vadd.f32 %v4540_v6, %v2661_v33 }
 0x35e   : > { %v2765_v2 = vmax.f32 %v2667_v17, 0.0 }
 0x35f   : > { %v2764_v62 = vmax.f32 %v2662_v41, 0.0 }
 0x360   : > { %2797 = vst.msk [vmem:[%s4551_s17 + $0x78] sm:$0xff] %vm624_vm0, %v2765_v2 }
 0x361   : > { %2796 = vst.msk [vmem:[%s4551_s17 + $0x70] sm:$0xff] %vm624_vm0, %v2764_v62 }
 0x373   : > { %v3131_v9 = vpop.f32.mrb[16].mxu1 }
 0x374   : > { %v2677_v16 = vadd.f32 %v3131_v9, %v4540_v6  ;;  %v2671_v18 = vpop.f32.mrb[17].mxu1 }
 0x375   : > { %v2672_v20 = vadd.f32 %v4540_v6, %v2671_v18 }
 0x376   : > { %v2767_v21 = vmax.f32 %v2677_v16, 0.0 }
 0x377   : > { %v2766_v3 = vmax.f32 %v2672_v20, 0.0 }
 0x378   : > { %2799 = vst.msk [vmem:[%s4551_s17 + $0x88] sm:$0xff] %vm624_vm0, %v2767_v21 }
 0x379   : > { %2798 = vst.msk [vmem:[%s4551_s17 + $0x80] sm:$0xff] %vm624_vm0, %v2766_v3 }
 0x38b   : > { %v3134_v22 = vpop.f32.mrb[18].mxu1 }
 0x38c   : > { %v2687_v23 = vadd.f32 %v3134_v22, %v4540_v6  ;;  %v2681_v8 = vpop.f32.mrb[19].mxu1 }
 0x38d   : > { %v2682_v36 = vadd.f32 %v4540_v6, %v2681_v8 }
 0x38e   : > { %v2769_v26 = vmax.f32 %v2687_v23, 0.0 }
 0x38f   : > { %v2768_v37 = vmax.f32 %v2682_v36, 0.0 }
 0x390   : > { %2801 = vst.msk [vmem:[%s4551_s17 + $0x98] sm:$0xff] %vm624_vm0, %v2769_v26 }
 0x391   : > { %2800 = vst.msk [vmem:[%s4551_s17 + $0x90] sm:$0xff] %vm624_vm0, %v2768_v37 }
 0x3a3   : > { %v3137_v40 = vpop.f32.mrb[20].mxu1 }
 0x3a4   : > { %v2697_v29 = vadd.f32 %v3137_v40, %v4540_v6  ;;  %v2691_v5 = vpop.f32.mrb[21].mxu1 }
 0x3a5   : > { %v2692_v12 = vadd.f32 %v4540_v6, %v2691_v5 }
 0x3a6   : > { %v2771_v4 = vmax.f32 %v2697_v29, 0.0 }
 0x3a7   : > { %v2770_v50 = vmax.f32 %v2692_v12, 0.0 }
 0x3a8   : > { %2803 = vst.msk [vmem:[%s4551_s17 + $0xa8] sm:$0xff] %vm624_vm0, %v2771_v4 }
 0x3a9   : > { %2802 = vst.msk [vmem:[%s4551_s17 + $0xa0] sm:$0xff] %vm624_vm0, %v2770_v50 }
 0x3bb   : > { %v3140_v42 = vpop.f32.mrb[22].mxu1 }
 0x3bc   : > { %v2707_v43 = vadd.f32 %v3140_v42, %v4540_v6  ;;  %v2701_v44 = vpop.f32.mrb[23].mxu1 }
 0x3bd   : > { %v2702_v56 = vadd.f32 %v4540_v6, %v2701_v44 }
 0x3be   : > { %v2773_v52 = vmax.f32 %v2707_v43, 0.0 }
 0x3bf   : > { %v2772_v45 = vmax.f32 %v2702_v56, 0.0 }
 0x3c0   : > { %2805 = vst.msk [vmem:[%s4551_s17 + $0xb8] sm:$0xff] %vm624_vm0, %v2773_v52 }
 0x3c1   : > { %2804 = vst.msk [vmem:[%s4551_s17 + $0xb0] sm:$0xff] %vm624_vm0, %v2772_v45 }
 0x3d3   : > { %v3143_v25 = vpop.f32.mrb[24].mxu1 }
 0x3d4   : > { %v2717_v7 = vadd.f32 %v3143_v25, %v4540_v6  ;;  %v2711_v51 = vpop.f32.mrb[25].mxu1 }
 0x3d5   : > { %v2712_v57 = vadd.f32 %v4540_v6, %v2711_v51 }
 0x3d6   : > { %v2775_v38 = vmax.f32 %v2717_v7, 0.0 }
 0x3d7   : > { %v2774_v58 = vmax.f32 %v2712_v57, 0.0 }
 0x3d8   : > { %2807 = vst.msk [vmem:[%s4551_s17 + $0xc8] sm:$0xff] %vm624_vm0, %v2775_v38 }
 0x3d9   : > { %2806 = vst.msk [vmem:[%s4551_s17 + $0xc0] sm:$0xff] %vm624_vm0, %v2774_v58 }
 0x3eb   : > { %v3146_v34 = vpop.f32.mrb[26].mxu1 }
 0x3ec   : > { %v2727_v30 = vadd.f32 %v3146_v34, %v4540_v6  ;;  %v2721_v60 = vpop.f32.mrb[27].mxu1 }
 0x3ed   : > { %v2722_v63 = vadd.f32 %v4540_v6, %v2721_v60 }
 0x3ee   : > { %v2777_v32 = vmax.f32 %v2727_v30, 0.0 }
 0x3ef   : > { %v2776_v35 = vmax.f32 %v2722_v63, 0.0 }
 0x3f0   : > { %2809 = vst.msk [vmem:[%s4551_s17 + $0xd8] sm:$0xff] %vm624_vm0, %v2777_v32 }
 0x3f1   : > { %2808 = vst.msk [vmem:[%s4551_s17 + $0xd0] sm:$0xff] %vm624_vm0, %v2776_v35 }
 0x403   : > { %v3149_v47 = vpop.f32.mrb[28].mxu1 }
 0x404   : > { %v2737_v11 = vadd.f32 %v3149_v47, %v4540_v6  ;;  %v2731_v1 = vpop.f32.mrb[29].mxu1 }
 0x405   : > { %v2732_v10 = vadd.f32 %v4540_v6, %v2731_v1 }
 0x406   : > { %v2779_v46 = vmax.f32 %v2737_v11, 0.0 }
 0x407   : > { %v2778_v24 = vmax.f32 %v2732_v10, 0.0 }
 0x408   : > { %2811 = vst.msk [vmem:[%s4551_s17 + $0xe8] sm:$0xff] %vm624_vm0, %v2779_v46 }
 0x409   : > { %2810 = vst.msk [vmem:[%s4551_s17 + $0xe0] sm:$0xff] %vm624_vm0, %v2778_v24 }
 0x410   : > { %v3152_v39 = vpop.f32.mrb[30].mxu1 }
 0x411   : > { %v2747_v54 = vadd.f32 %v3152_v39, %v4540_v6  ;;  %v2741_v31 = vpop.f32.mrb[31].mxu1 }
 0x412   : > { %v2742_v55 = vadd.f32 %v4540_v6, %v2741_v31 }
 0x413   : > { %v2781_v19 = vmax.f32 %v2747_v54, 0.0 }
 0x414   : > { %v2780_v61 = vmax.f32 %v2742_v55, 0.0 }
 0x415   : > { %2813 = vst.msk [vmem:[%s4551_s17 + $0xf8] sm:$0xff] %vm624_vm0, %v2781_v19 }
 0x416   : > { %2812 = vst.msk [vmem:[%s4551_s17 + $0xf0] sm:$0xff] %vm624_vm0, %v2780_v61 }
 0x417 PF: > { %s15_s18 = sadd.s32 1, %s3204_s18  }
 0x418   : > { %p12_p4 = scmp.ge.s32.totalorder %s15_s18, 4  }
 0x41a   :  { %14 = sbr.rel (!%p12_p4) target bundleno = 1 (0x1), region = 72 }

// kernel: dense_aspp_block.8
= control target key start
LH: loop header
LB: loop body
LE: loop exit
PB: predicated region body
PF: predicated region fallthrough
CT: control target
= control target key end

     0   :  { %s1519_s18 = smov 0   ;;  %s1866_s0 = inlined_call_operand.vmem [shape: f32[2,16,16,48], index: 0, kind: input, shape index: {}]   ;;  %s1867_s1 = inlined_call_operand.vmem [shape: f32[48,8], index: 1, kind: input, shape index: {}]   ;;  %s1868_s2 = inlined_call_operand.vmem [shape: f32[1,8], index: 2, kind: input, shape index: {}]   ;;  %s1869_s3 = inlined_call_operand.vmem [shape: f32[8,8], index: 3, kind: input, shape index: {}]   ;;  %s1870_s4 = inlined_call_operand.vmem [shape: f32[1,8], index: 4, kind: input, shape index: {}]   ;;  %s1871_s5 = inlined_call_operand.vmem [shape: f32[2,256,8], index: 5, kind: output, shape index: {}]  }
   0x1 LB: > { %s1201_s19 = sadd.s32 4294967295, %s1487_s18   ;;  %p1205_p0 = scmp.ge.s32.totalorder %s1487_s18, 1  ;;  %s1487_s18 = sphi %s1519_s18, %s15_s18  }
   0x2   : > { %p187_p1 = scmp.lt.s32.totalorder %s1487_s18, 3 }
   0x4   : > { %p188_p2 = pnand %p1205_p0, %p187_p1 }
   0x5   : > { %v257_v0 = vld [vmem:[%s1867_s1] sm:$0xff] (!%p188_p2)  ;;  %v258_v1 = vld [vmem:[%s1867_s1 + $0x8] sm:$0xff] (!%p188_p2)  ;;  %v259_v2 = vld [vmem:[%s1867_s1 + $0x10] sm:$0xff] (!%p188_p2)  ;;  %p215_p3 = scmp.lt.s32.totalorder (!%p188_p2), %s1201_s19, 1  ;;  %vm270_vm0 = vcmask (!%p188_p2), 392192   ;;  %vm624_vm1 = vcmask (!%p188_p2), 64512  }
   0x6   : > { %191 = sbr.rel (%p188_p2) target bundleno = 533 (0x215), region = 40  ;;  %v1461_v3 = vpack.c.bf16 (!%p188_p2), %v258_v1, %v257_v0  ;;  %v260_v4 = vld [vmem:[%s1867_s1 + $0x18] sm:$0xff] (!%p188_p2)  ;;  %v261_v6 = vld [vmem:[%s1867_s1 + $0x20] sm:$0xff] (!%p188_p2)  ;;  %v262_v7 = vld [vmem:[%s1867_s1 + $0x28] sm:$0xff] (!%p188_p2) }
   0x7   : > { %v1465_v5 = vpack.c.bf16 (!%p188_p2), %v260_v4, %v259_v2  ;;  %v1469_v8 = vpack.c.bf16 (!%p188_p2), %v262_v7, %v261_v6  ;;  %v753_v41 = vld [vmem:[%s1869_s3] sm:$0xff] (!%p188_p2) }
   0x8   : > { %1462 = vmatprep.subr.bf16.mxu0 (!%p188_p2), %v1461_v3  ;;  %1411 = vmatprep.subr.mxu1 (!%p188_p2), %v753_v41  ;;  %v1625_v42 = vld [vmem:[%s1868_s2] ss:$0 sm:$0xff] (!%p188_p2) }
   0x9   : > { %1464 = vmatpush3.bf16.msra.mxu0 (!%p188_p2), %v1461_v3  ;;  %1412 = vmatpush3.msra.mxu1 (!%p188_p2), %v753_v41 }
   0xa   : > { %1466 = vmatprep.subr.bf16.mxu0 (!%p188_p2), %v1465_v5 }
   0xd   : > { %s1873_s19 = smov (!%p215_p3, %s1201_s19), 1  ;;  %1468 = vmatpush3.bf16.msra.mxu0 %v1465_v5 }
   0xe   : > { %s1278_s7 = sshll.u32 %s1873_s19, 8  ;;  %1470 = vmatprep.subr.bf16.mxu0 %v1469_v8 }
   0xf   : > { %s1553_s10 = scalar_lea.vmem %s1866_s0, %s1278_s7  ;;  %s1766_s21 = scalar_lea.vmem %s1871_s5, %s1278_s7 }
  0x10   : > { %v225_v9 = vld [vmem:[%s1553_s10] sm:$0xff]  ;;  %v226_v10 = vld [vmem:[%s1553_s10 + $0x8] sm:$0xff]  ;;  %v227_v11 = vld [vmem:[%s1553_s10 + $0x10] sm:$0xff] }
  0x11   : > { %1363 = vmatprep.mubr.msk.f32.mxu0 %vm270_vm0, %v225_v9  ;;  %1472 = vmatpush3.bf16.msra.mxu0 %v1469_v8  ;;  %v228_v12 = vld [vmem:[%s1553_s10 + $0x18] sm:$0xff]  ;;  %v229_v13 = vld [vmem:[%s1553_s10 + $0x20] sm:$0xff]  ;;  %v230_v14 = vld [vmem:[%s1553_s10 + $0x28] sm:$0xff] }
  0x12   : > { %v231_v15 = vld [vmem:[%s1553_s10 + $0x30] sm:$0xff]  ;;  %v232_v16 = vld [vmem:[%s1553_s10 + $0x38] sm:$0xff]  ;;  %v233_v17 = vld [vmem:[%s1553_s10 + $0x40] sm:$0xff] }
  0x13   : > { %v234_v18 = vld [vmem:[%s1553_s10 + $0x48] sm:$0xff]  ;;  %v235_v19 = vld [vmem:[%s1553_s10 + $0x50] sm:$0xff]  ;;  %v236_v20 = vld [vmem:[%s1553_s10 + $0x58] sm:$0xff] }
  0x14   : > { %1364 = vmatmul.mubr.msk.f32.vlgmr.msra.gmra.mrb[0].mxu0 %vm270_vm0, %v226_v10  ;;  %v237_v21 = vld [vmem:[%s1553_s10 + $0x60] sm:$0xff]  ;;  %v238_v22 = vld [vmem:[%s1553_s10 + $0x68] sm:$0xff]  ;;  %v239_v23 = vld [vmem:[%s1553_s10 + $0x70] sm:$0xff] }
  0x15   : > { %1366 = vmatprep.mubr.msk.f32.mxu0 %vm270_vm0, %v227_v11  ;;  %v240_v24 = vld [vmem:[%s1553_s10 + $0x78] sm:$0xff]  ;;  %v241_v25 = vld [vmem:[%s1553_s10 + $0x80] sm:$0xff]  ;;  %v242_v26 = vld [vmem:[%s1553_s10 + $0x88] sm:$0xff] }
  0x16   : > { %v243_v27 = vld [vmem:[%s1553_s10 + $0x90] sm:$0xff]  ;;  %v244_v28 = vld [vmem:[%s1553_s10 + $0x98] sm:$0xff]  ;;  %v245_v29 = vld [vmem:[%s1553_s10 + $0xa0] sm:$0xff] }
  0x17   : > { %v246_v30 = vld [vmem:[%s1553_s10 + $0xa8] sm:$0xff]  ;;  %v247_v31 = vld [vmem:[%s1553_s10 + $0xb0] sm:$0xff]  ;;  %v248_v32 = vld [vmem:[%s1553_s10 + $0xb8] sm:$0xff] }
  0x18   : > { %1367 = vmatmul.mubr.msk.f32.gmra.mrb[2].mxu0 %vm270_vm0, %v228_v12  ;;  %v249_v33 = vld [vmem:[%s1553_s10 + $0xc0] sm:$0xff]  ;;  %v250_v34 = vld [vmem:[%s1553_s10 + $0xc8] sm:$0xff]  ;;  %v251_v35 = vld [vmem:[%s1553_s10 + $0xd0] sm:$0xff] }
  0x19   : > { %1369 = vmatprep.mubr.msk.f32.mxu0 %vm270_vm0, %v229_v13  ;;  %v252_v36 = vld [vmem:[%s1553_s10 + $0xd8] sm:$0xff]  ;;  %v253_v37 = vld [vmem:[%s1553_s10 + $0xe0] sm:$0xff]  ;;  %v254_v38 = vld [vmem:[%s1553_s10 + $0xe8] sm:$0xff] }
  0x1a   : > { %v255_v39 = vld [vmem:[%s1553_s10 + $0xf0] sm:$0xff]  ;;  %v256_v40 = vld [vmem:[%s1553_s10 + $0xf8] sm:$0xff] }
  0x1c   : > { %1370 = vmatmul.mubr.msk.f32.gmra.mrb[4].mxu0 %vm270_vm0, %v230_v14 }
  0x1d   : > { %1372 = vmatprep.mubr.msk.f32.mxu0 %vm270_vm0, %v231_v15 }
  0x20   : > { %1373 = vmatmul.mubr.msk.f32.gmra.mrb[6].mxu0 %vm270_vm0, %v232_v16 }
  0x21   : > { %1375 = vmatprep.mubr.msk.f32.mxu0 %vm270_vm0, %v233_v17 }
  0x24   : > { %1376 = vmatmul.mubr.msk.f32.gmra.mrb[8].mxu0 %vm270_vm0, %v234_v18 }
  0x25   : > { %1378 = vmatprep.mubr.msk.f32.mxu0 %vm270_vm0, %v235_v19 }
  0x28   : > { %1379 = vmatmul.mubr.msk.f32.gmra.mrb[10].mxu0 %vm270_vm0, %v236_v20 }
  0x29   : > { %1381 = vmatprep.mubr.msk.f32.mxu0 %vm270_vm0, %v237_v21 }
  0x2c   : > { %1382 = vmatmul.mubr.msk.f32.gmra.mrb[12].mxu0 %vm270_vm0, %v238_v22 }
  0x2d   : > { %1384 = vmatprep.mubr.msk.f32.mxu0 %vm270_vm0, %v239_v23 }
  0x30   : > { %1385 = vmatmul.mubr.msk.f32.gmra.mrb[14].mxu0 %vm270_vm0, %v240_v24 }
  0x31   : > { %1387 = vmatprep.mubr.msk.f32.mxu0 %vm270_vm0, %v241_v25 }
  0x34   : > { %1388 = vmatmul.mubr.msk.f32.gmra.mrb[16].mxu0 %vm270_vm0, %v242_v26 }
  0x35   : > { %1390 = vmatprep.mubr.msk.f32.mxu0 %vm270_vm0, %v243_v27 }
  0x38   : > { %1391 = vmatmul.mubr.msk.f32.gmra.mrb[18].mxu0 %vm270_vm0, %v244_v28 }
  0x39   : > { %1393 = vmatprep.mubr.msk.f32.mxu0 %vm270_vm0, %v245_v29 }
  0x3c   : > { %1394 = vmatmul.mubr.msk.f32.gmra.mrb[20].mxu0 %vm270_vm0, %v246_v30 }
  0x3d   : > { %1396 = vmatprep.mubr.msk.f32.mxu0 %vm270_vm0, %v247_v31 }
  0x40   : > { %1397 = vmatmul.mubr.msk.f32.gmra.mrb[22].mxu0 %vm270_vm0, %v248_v32 }
  0x41   : > { %1399 = vmatprep.mubr.msk.f32.mxu0 %vm270_vm0, %v249_v33 }
  0x44   : > { %1400 = vmatmul.mubr.msk.f32.gmra.mrb[24].mxu0 %vm270_vm0, %v250_v34 }
  0x45   : > { %1402 = vmatprep.mubr.msk.f32.mxu0 %vm270_vm0, %v251_v35 }
  0x48   : > { %1403 = vmatmul.mubr.msk.f32.gmra.mrb[26].mxu0 %vm270_vm0, %v252_v36 }
  0x49   : > { %1405 = vmatprep.mubr.msk.f32.mxu0 %vm270_vm0, %v253_v37 }
  0x4c   : > { %1406 = vmatmul.mubr.msk.f32.gmra.mrb[28].mxu0 %vm270_vm0, %v254_v38 }
  0x4d   : > { %1408 = vmatprep.mubr.msk.f32.mxu0 %vm270_vm0, %v255_v39 }
  0x50   : > { %1409 = vmatmul.mubr.msk.f32.gmra.mrb[30].mxu0 %vm270_vm0, %v256_v40 }
  0xe7   : > { %v1365_v43 = vpop.f32.mrb[0].mxu0 }
  0xe8   : > { %v439_v44 = vadd.f32 %v1365_v43, %v1625_v42  ;;  %v433_v45 = vpop.f32.mrb[1].mxu0 }
  0xe9   : > { %v434_v46 = vadd.f32 %v1625_v42, %v433_v45 }
  0xea   : > { %v593_v47 = vmax.f32 %v439_v44, 0.0 }
  0xeb   : > { %v592_v48 = vmax.f32 %v434_v46, 0.0  ;;  %v1368_v49 = vpop.f32.mrb[2].mxu0 }
  0xec   : > { %626 = vst.msk [vmem:[#allocation2 + $0x8] sm:$0xff] %vm624_vm1, %v593_v47  ;;  %v449_v50 = vadd.f32 %v1368_v49, %v1625_v42  ;;  %v443_v51 = vpop.f32.mrb[3].mxu0 }
  0xed   : > { %625 = vst.msk [vmem:[#allocation2] sm:$0xff] %vm624_vm1, %v592_v48  ;;  %v444_v52 = vadd.f32 %v1625_v42, %v443_v51 }
  0xee   : > { %v595_v53 = vmax.f32 %v449_v50, 0.0 }
  0xef   : > { %v594_v54 = vmax.f32 %v444_v52, 0.0  ;;  %v1371_v55 = vpop.f32.mrb[4].mxu0 }
  0xf0   : > { %628 = vst.msk [vmem:[#allocation2 + $0x18] sm:$0xff] %vm624_vm1, %v595_v53  ;;  %v459_v56 = vadd.f32 %v1371_v55, %v1625_v42  ;;  %v453_v57 = vpop.f32.mrb[5].mxu0 }
  0xf1   : > { %627 = vst.msk [vmem:[#allocation2 + $0x10] sm:$0xff] %vm624_vm1, %v594_v54  ;;  %v454_v58 = vadd.f32 %v1625_v42, %v453_v57 }
  0xf2   : > { %v597_v59 = vmax.f32 %v459_v56, 0.0 }
  0xf3   : > { %v658_v60 = vld [vmem:[#allocation2 + $0x8] sm:$0xff]  ;;  %v596_v61 = vmax.f32 %v454_v58, 0.0  ;;  %v1374_v62 = vpop.f32.mrb[6].mxu0 }
  0xf4   : > { %690 = vst.msk [vmem:[#allocation3 + $0x8] sm:$0xff] %vm624_vm1, %v658_v60  ;;  %630 = vst.msk [vmem:[#allocation2 + $0x28] sm:$0xff] %vm624_vm1, %v597_v59  ;;  %v469_v63 = vadd.f32 %v1374_v62, %v1625_v42  ;;  %v463_v0 = vpop.f32.mrb[7].mxu0  ;;  %v657_v1 = vld [vmem:[#allocation2] sm:$0xff] }
  0xf5   : > { %629 = vst.msk [vmem:[#allocation2 + $0x20] sm:$0xff] %vm624_vm1, %v596_v61  ;;  %v464_v2 = vadd.f32 %v1625_v42, %v463_v0  ;;  %689 = vst.msk [vmem:[#allocation3] sm:$0xff] %vm624_vm1, %v657_v1 }
  0xf6   : > { %v599_v3 = vmax.f32 %v469_v63, 0.0 }
  0xf7   : > { %v660_v4 = vld [vmem:[#allocation2 + $0x18] sm:$0xff]  ;;  %v598_v5 = vmax.f32 %v464_v2, 0.0  ;;  %v1377_v6 = vpop.f32.mrb[8].mxu0 }
  0xf8   : > { %692 = vst.msk [vmem:[#allocation3 + $0x18] sm:$0xff] %vm624_vm1, %v660_v4  ;;  %v659_v7 = vld [vmem:[#allocation2 + $0x10] sm:$0xff]  ;;  %632 = vst.msk [vmem:[#allocation2 + $0x38] sm:$0xff] %vm624_vm1, %v599_v3  ;;  %v479_v8 = vadd.f32 %v1377_v6, %v1625_v42  ;;  %v473_v9 = vpop.f32.mrb[9].mxu0 }
  0xf9   : > { %691 = vst.msk [vmem:[#allocation3 + $0x10] sm:$0xff] %vm624_vm1, %v659_v7  ;;  %631 = vst.msk [vmem:[#allocation2 + $0x30] sm:$0xff] %vm624_vm1, %v598_v5  ;;  %v474_v10 = vadd.f32 %v1625_v42, %v473_v9 }
  0xfa   : > { %v601_v11 = vmax.f32 %v479_v8, 0.0 }
  0xfb   : > { %v662_v12 = vld [vmem:[#allocation2 + $0x28] sm:$0xff]  ;;  %v600_v13 = vmax.f32 %v474_v10, 0.0  ;;  %v1380_v14 = vpop.f32.mrb[10].mxu0 }
  0xfc   : > { %694 = vst.msk [vmem:[#allocation3 + $0x28] sm:$0xff] %vm624_vm1, %v662_v12  ;;  %v661_v15 = vld [vmem:[#allocation2 + $0x20] sm:$0xff]  ;;  %634 = vst.msk [vmem:[#allocation2 + $0x48] sm:$0xff] %vm624_vm1, %v601_v11  ;;  %v489_v16 = vadd.f32 %v1380_v14, %v1625_v42  ;;  %v483_v17 = vpop.f32.mrb[11].mxu0  ;;  %v722_v20 = vld [vmem:[#allocation3 + $0x8] sm:$0xff] }
  0xfd   : > { %v721_v18 = vld [vmem:[#allocation3] sm:$0xff]  ;;  %693 = vst.msk [vmem:[#allocation3 + $0x20] sm:$0xff] %vm624_vm1, %v661_v15  ;;  %633 = vst.msk [vmem:[#allocation2 + $0x40] sm:$0xff] %vm624_vm1, %v600_v13  ;;  %v484_v19 = vadd.f32 %v1625_v42, %v483_v17 }
  0xfe   : > { %1413 = vmatprep.mubr.msk.f32.mxu1 %vm624_vm1, %v721_v18  ;;  %v603_v21 = vmax.f32 %v489_v16, 0.0 }
  0xff   : > { %1414 = vmatmul.mubr.msk.f32.vlgmr.msra.gmra.mrb[0].mxu1 %vm624_vm1, %v722_v20  ;;  %v664_v22 = vld [vmem:[#allocation2 + $0x38] sm:$0xff]  ;;  %v602_v23 = vmax.f32 %v484_v19, 0.0  ;;  %v1383_v24 = vpop.f32.mrb[12].mxu0 }
 0x100   : > { %696 = vst.msk [vmem:[#allocation3 + $0x38] sm:$0xff] %vm624_vm1, %v664_v22  ;;  %v663_v25 = vld [vmem:[#allocation2 + $0x30] sm:$0xff]  ;;  %636 = vst.msk [vmem:[#allocation2 + $0x58] sm:$0xff] %vm624_vm1, %v603_v21  ;;  %v499_v26 = vadd.f32 %v1383_v24, %v1625_v42  ;;  %v493_v27 = vpop.f32.mrb[13].mxu0  ;;  %v724_v30 = vld [vmem:[#allocation3 + $0x18] sm:$0xff] }
 0x101   : > { %v723_v28 = vld [vmem:[#allocation3 + $0x10] sm:$0xff]  ;;  %695 = vst.msk [vmem:[#allocation3 + $0x30] sm:$0xff] %vm624_vm1, %v663_v25  ;;  %635 = vst.msk [vmem:[#allocation2 + $0x50] sm:$0xff] %vm624_vm1, %v602_v23  ;;  %v494_v29 = vadd.f32 %v1625_v42, %v493_v27 }
 0x102   : > { %1416 = vmatprep.mubr.msk.f32.mxu1 %vm624_vm1, %v723_v28  ;;  %v605_v31 = vmax.f32 %v499_v26, 0.0 }
 0x103   : > { %1417 = vmatmul.mubr.msk.f32.gmra.mrb[2].mxu1 %vm624_vm1, %v724_v30  ;;  %v666_v32 = vld [vmem:[#allocation2 + $0x48] sm:$0xff]  ;;  %v604_v33 = vmax.f32 %v494_v29, 0.0  ;;  %v1386_v34 = vpop.f32.mrb[14].mxu0 }
 0x104   : > { %698 = vst.msk [vmem:[#allocation3 + $0x48] sm:$0xff] %vm624_vm1, %v666_v32  ;;  %v665_v35 = vld [vmem:[#allocation2 + $0x40] sm:$0xff]  ;;  %638 = vst.msk [vmem:[#allocation2 + $0x68] sm:$0xff] %vm624_vm1, %v605_v31  ;;  %v509_v36 = vadd.f32 %v1386_v34, %v1625_v42  ;;  %v503_v37 = vpop.f32.mrb[15].mxu0  ;;  %v726_v40 = vld [vmem:[#allocation3 + $0x28] sm:$0xff] }
 0x105   : > { %v725_v38 = vld [vmem:[#allocation3 + $0x20] sm:$0xff]  ;;  %697 = vst.msk [vmem:[#allocation3 + $0x40] sm:$0xff] %vm624_vm1, %v665_v35  ;;  %637 = vst.msk [vmem:[#allocation2 + $0x60] sm:$0xff] %vm624_vm1, %v604_v33  ;;  %v504_v39 = vadd.f32 %v1625_v42, %v503_v37 }
 0x106   : > { %1419 = vmatprep.mubr.msk.f32.mxu1 %vm624_vm1, %v725_v38  ;;  %v607_v41 = vmax.f32 %v509_v36, 0.0 }
 0x107   : > { %1420 = vmatmul.mubr.msk.f32.gmra.mrb[4].mxu1 %vm624_vm1, %v726_v40  ;;  %v668_v43 = vld [vmem:[#allocation2 + $0x58] sm:$0xff]  ;;  %v606_v44 = vmax.f32 %v504_v39, 0.0  ;;  %v1389_v45 = vpop.f32.mrb[16].mxu0 }
 0x108   : > { %700 = vst.msk [vmem:[#allocation3 + $0x58] sm:$0xff] %vm624_vm1, %v668_v43  ;;  %v667_v46 = vld [vmem:[#allocation2 + $0x50] sm:$0xff]  ;;  %640 = vst.msk [vmem:[#allocation2 + $0x78] sm:$0xff] %vm624_vm1, %v607_v41  ;;  %v519_v47 = vadd.f32 %v1389_v45, %v1625_v42  ;;  %v513_v48 = vpop.f32.mrb[17].mxu0  ;;  %v728_v51 = vld [vmem:[#allocation3 + $0x38] sm:$0xff] }
 0x109   : > { %v727_v49 = vld [vmem:[#allocation3 + $0x30] sm:$0xff]  ;;  %699 = vst.msk [vmem:[#allocation3 + $0x50] sm:$0xff] %vm624_vm1, %v667_v46  ;;  %639 = vst.msk [vmem:[#allocation2 + $0x70] sm:$0xff] %vm624_vm1, %v606_v44  ;;  %v514_v50 = vadd.f32 %v1625_v42, %v513_v48 }
 0x10a   : > { %1422 = vmatprep.mubr.msk.f32.mxu1 %vm624_vm1, %v727_v49  ;;  %v609_v52 = vmax.f32 %v519_v47, 0.0 }
 0x10b   : > { %1423 = vmatmul.mubr.msk.f32.gmra.mrb[6].mxu1 %vm624_vm1, %v728_v51  ;;  %v670_v53 = vld [vmem:[#allocation2 + $0x68] sm:$0xff]  ;;  %v608_v54 = vmax.f32 %v514_v50, 0.0  ;;  %v1392_v55 = vpop.f32.mrb[18].mxu0 }
 0x10c   : > { %702 = vst.msk [vmem:[#allocation3 + $0x68] sm:$0xff] %vm624_vm1, %v670_v53  ;;  %v669_v56 = vld [vmem:[#allocation2 + $0x60] sm:$0xff]  ;;  %642 = vst.msk [vmem:[#allocation2 + $0x88] sm:$0xff] %vm624_vm1, %v609_v52  ;;  %v529_v57 = vadd.f32 %v1392_v55, %v1625_v42  ;;  %v523_v58 = vpop.f32.mrb[19].mxu0  ;;  %v730_v61 = vld [vmem:[#allocation3 + $0x48] sm:$0xff] }
 0x10d   : > { %v729_v59 = vld [vmem:[#allocation3 + $0x40] sm:$0xff]  ;;  %701 = vst.msk [vmem:[#allocation3 + $0x60] sm:$0xff] %vm624_vm1, %v669_v56  ;;  %641 = vst.msk [vmem:[#allocation2 + $0x80] sm:$0xff] %vm624_vm1, %v608_v54  ;;  %v524_v60 = vadd.f32 %v1625_v42, %v523_v58 }
 0x10e   : > { %1425 = vmatprep.mubr.msk.f32.mxu1 %vm624_vm1, %v729_v59  ;;  %v611_v62 = vmax.f32 %v529_v57, 0.0 }
 0x10f   : > { %1426 = vmatmul.mubr.msk.f32.gmra.mrb[8].mxu1 %vm624_vm1, %v730_v61  ;;  %v672_v63 = vld [vmem:[#allocation2 + $0x78] sm:$0xff]  ;;  %v610_v0 = vmax.f32 %v524_v60, 0.0  ;;  %v1395_v1 = vpop.f32.mrb[20].mxu0 }
 0x110   : > { %704 = vst.msk [vmem:[#allocation3 + $0x78] sm:$0xff] %vm624_vm1, %v672_v63  ;;  %v671_v2 = vld [vmem:[#allocation2 + $0x70] sm:$0xff]  ;;  %644 = vst.msk [vmem:[#allocation2 + $0x98] sm:$0xff] %vm624_vm1, %v611_v62  ;;  %v539_v3 = vadd.f32 %v1395_v1, %v1625_v42  ;;  %v533_v4 = vpop.f32.mrb[21].mxu0  ;;  %v732_v7 = vld [vmem:[#allocation3 + $0x58] sm:$0xff] }
 0x111   : > { %v731_v5 = vld [vmem:[#allocation3 + $0x50] sm:$0xff]  ;;  %703 = vst.msk [vmem:[#allocation3 + $0x70] sm:$0xff] %vm624_vm1, %v671_v2  ;;  %643 = vst.msk [vmem:[#allocation2 + $0x90] sm:$0xff] %vm624_vm1, %v610_v0  ;;  %v534_v6 = vadd.f32 %v1625_v42, %v533_v4 }
 0x112   : > { %1428 = vmatprep.mubr.msk.f32.mxu1 %vm624_vm1, %v731_v5  ;;  %v613_v8 = vmax.f32 %v539_v3, 0.0 }
 0x113   : > { %1429 = vmatmul.mubr.msk.f32.gmra.mrb[10].mxu1 %vm624_vm1, %v732_v7  ;;  %v674_v9 = vld [vmem:[#allocation2 + $0x88] sm:$0xff]  ;;  %v612_v10 = vmax.f32 %v534_v6, 0.0  ;;  %v1398_v11 = vpop.f32.mrb[22].mxu0 }
 0x114   : > { %706 = vst.msk [vmem:[#allocation3 + $0x88] sm:$0xff] %vm624_vm1, %v674_v9  ;;  %v673_v12 = vld [vmem:[#allocation2 + $0x80] sm:$0xff]  ;;  %646 = vst.msk [vmem:[#allocation2 + $0xa8] sm:$0xff] %vm624_vm1, %v613_v8  ;;  %v549_v13 = vadd.f32 %v1398_v11, %v1625_v42  ;;  %v543_v14 = vpop.f32.mrb[23].mxu0  ;;  %v734_v17 = vld [vmem:[#allocation3 + $0x68] sm:$0xff] }
 0x115   : > { %v733_v15 = vld [vmem:[#allocation3 + $0x60] sm:$0xff]  ;;  %705 = vst.msk [vmem:[#allocation3 + $0x80] sm:$0xff] %vm624_vm1, %v673_v12  ;;  %645 = vst.msk [vmem:[#allocation2 + $0xa0] sm:$0xff] %vm624_vm1, %v612_v10  ;;  %v544_v16 = vadd.f32 %v1625_v42, %v543_v14 }
 0x116   : > { %1431 = vmatprep.mubr.msk.f32.mxu1 %vm624_vm1, %v733_v15  ;;  %v615_v18 = vmax.f32 %v549_v13, 0.0  ;;  %v1758_v12 = vld [vmem:[%s1870_s4] ss:$0 sm:$0xff] }
 0x117   : > { %1432 = vmatmul.mubr.msk.f32.gmra.mrb[12].mxu1 %vm624_vm1, %v734_v17  ;;  %v676_v19 = vld [vmem:[#allocation2 + $0x98] sm:$0xff]  ;;  %v614_v20 = vmax.f32 %v544_v16, 0.0  ;;  %v1401_v21 = vpop.f32.mrb[24].mxu0 }
 0x118   : > { %708 = vst.msk [vmem:[#allocation3 + $0x98] sm:$0xff] %vm624_vm1, %v676_v19  ;;  %v675_v22 = vld [vmem:[#allocation2 + $0x90] sm:$0xff]  ;;  %648 = vst.msk [vmem:[#allocation2 + $0xb8] sm:$0xff] %vm624_vm1, %v615_v18  ;;  %v559_v23 = vadd.f32 %v1401_v21, %v1625_v42  ;;  %v553_v24 = vpop.f32.mrb[25].mxu0  ;;  %v736_v27 = vld [vmem:[#allocation3 + $0x78] sm:$0xff] }
 0x119   : > { %v735_v25 = vld [vmem:[#allocation3 + $0x70] sm:$0xff]  ;;  %707 = vst.msk [vmem:[#allocation3 + $0x90] sm:$0xff] %vm624_vm1, %v675_v22  ;;  %647 = vst.msk [vmem:[#allocation2 + $0xb0] sm:$0xff] %vm624_vm1, %v614_v20  ;;  %v554_v26 = vadd.f32 %v1625_v42, %v553_v24 }
 0x11a   : > { %1434 = vmatprep.mubr.msk.f32.mxu1 %vm624_vm1, %v735_v25  ;;  %v617_v28 = vmax.f32 %v559_v23, 0.0 }
 0x11b   : > { %1435 = vmatmul.mubr.msk.f32.gmra.mrb[14].mxu1 %vm624_vm1, %v736_v27  ;;  %v678_v29 = vld [vmem:[#allocation2 + $0xa8] sm:$0xff]  ;;  %v616_v30 = vmax.f32 %v554_v26, 0.0  ;;  %v1404_v31 = vpop.f32.mrb[26].mxu0 }
 0x11c   : > { %710 = vst.msk [vmem:[#allocation3 + $0xa8] sm:$0xff] %vm624_vm1, %v678_v29  ;;  %v677_v32 = vld [vmem:[#allocation2 + $0xa0] sm:$0xff]  ;;  %650 = vst.msk [vmem:[#allocation2 + $0xc8] sm:$0xff] %vm624_vm1, %v617_v28  ;;  %v569_v33 = vadd.f32 %v1404_v31, %v1625_v42  ;;  %v563_v34 = vpop.f32.mrb[27].mxu0  ;;  %v738_v37 = vld [vmem:[#allocation3 + $0x88] sm:$0xff] }
 0x11d   : > { %v737_v35 = vld [vmem:[#allocation3 + $0x80] sm:$0xff]  ;;  %709 = vst.msk [vmem:[#allocation3 + $0xa0] sm:$0xff] %vm624_vm1, %v677_v32  ;;  %649 = vst.msk [vmem:[#allocation2 + $0xc0] sm:$0xff] %vm624_vm1, %v616_v30  ;;  %v564_v36 = vadd.f32 %v1625_v42, %v563_v34 }
 0x11e   : > { %1437 = vmatprep.mubr.msk.f32.mxu1 %vm624_vm1, %v737_v35  ;;  %v619_v38 = vmax.f32 %v569_v33, 0.0 }
 0x11f   : > { %1438 = vmatmul.mubr.msk.f32.gmra.mrb[16].mxu1 %vm624_vm1, %v738_v37  ;;  %v680_v39 = vld [vmem:[#allocation2 + $0xb8] sm:$0xff]  ;;  %v618_v40 = vmax.f32 %v564_v36, 0.0  ;;  %v1407_v41 = vpop.f32.mrb[28].mxu0 }
 0x120   : > { %712 = vst.msk [vmem:[#allocation3 + $0xb8] sm:$0xff] %vm624_vm1, %v680_v39  ;;  %v679_v43 = vld [vmem:[#allocation2 + $0xb0] sm:$0xff]  ;;  %652 = vst.msk [vmem:[#allocation2 + $0xd8] sm:$0xff] %vm624_vm1, %v619_v38  ;;  %v579_v44 = vadd.f32 %v1407_v41, %v1625_v42  ;;  %v573_v45 = vpop.f32.mrb[29].mxu0  ;;  %v740_v48 = vld [vmem:[#allocation3 + $0x98] sm:$0xff] }
 0x121   : > { %v739_v46 = vld [vmem:[#allocation3 + $0x90] sm:$0xff]  ;;  %711 = vst.msk [vmem:[#allocation3 + $0xb0] sm:$0xff] %vm624_vm1, %v679_v43  ;;  %651 = vst.msk [vmem:[#allocation2 + $0xd0] sm:$0xff] %vm624_vm1, %v618_v40  ;;  %v574_v47 = vadd.f32 %v1625_v42, %v573_v45 }
 0x122   : > { %1440 = vmatprep.mubr.msk.f32.mxu1 %vm624_vm1, %v739_v46  ;;  %v621_v49 = vmax.f32 %v579_v44, 0.0 }
 0x123   : > { %1441 = vmatmul.mubr.msk.f32.gmra.mrb[18].mxu1 %vm624_vm1, %v740_v48  ;;  %v682_v50 = vld [vmem:[#allocation2 + $0xc8] sm:$0xff]  ;;  %v620_v51 = vmax.f32 %v574_v47, 0.0  ;;  %v1410_v52 = vpop.f32.mrb[30].mxu0 }
 0x124   : > { %714 = vst.msk [vmem:[#allocation3 + $0xc8] sm:$0xff] %vm624_vm1, %v682_v50  ;;  %v681_v53 = vld [vmem:[#allocation2 + $0xc0] sm:$0xff]  ;;  %654 = vst.msk [vmem:[#allocation2 + $0xe8] sm:$0xff] %vm624_vm1, %v621_v49  ;;  %v589_v54 = vadd.f32 %v1410_v52, %v1625_v42  ;;  %v583_v55 = vpop.f32.mrb[31].mxu0  ;;  %v742_v58 = vld [vmem:[#allocation3 + $0xa8] sm:$0xff] }
 0x125   : > { %v741_v56 = vld [vmem:[#allocation3 + $0xa0] sm:$0xff]  ;;  %713 = vst.msk [vmem:[#allocation3 + $0xc0] sm:$0xff] %vm624_vm1, %v681_v53  ;;  %653 = vst.msk [vmem:[#allocation2 + $0xe0] sm:$0xff] %vm624_vm1, %v620_v51  ;;  %v584_v57 = vadd.f32 %v1625_v42, %v583_v55 }
 0x126   : > { %1443 = vmatprep.mubr.msk.f32.mxu1 %vm624_vm1, %v741_v56  ;;  %v623_v59 = vmax.f32 %v589_v54, 0.0 }
 0x127   : > { %1444 = vmatmul.mubr.msk.f32.gmra.mrb[20].mxu1 %vm624_vm1, %v742_v58  ;;  %v684_v60 = vld [vmem:[#allocation2 + $0xd8] sm:$0xff]  ;;  %v622_v61 = vmax.f32 %v584_v57, 0.0 }
 0x128   : > { %716 = vst.msk [vmem:[#allocation3 + $0xd8] sm:$0xff] %vm624_vm1, %v684_v60  ;;  %v683_v62 = vld [vmem:[#allocation2 + $0xd0] sm:$0xff]  ;;  %656 = vst.msk [vmem:[#allocation2 + $0xf8] sm:$0xff] %vm624_vm1, %v623_v59  ;;  %v744_v42 = vld [vmem:[#allocation3 + $0xb8] sm:$0xff] }
 0x129   : > { %v743_v63 = vld [vmem:[#allocation3 + $0xb0] sm:$0xff]  ;;  %715 = vst.msk [vmem:[#allocation3 + $0xd0] sm:$0xff] %vm624_vm1, %v683_v62  ;;  %655 = vst.msk [vmem:[#allocation2 + $0xf0] sm:$0xff] %vm624_vm1, %v622_v61 }
 0x12a   : > { %1446 = vmatprep.mubr.msk.f32.mxu1 %vm624_vm1, %v743_v63 }
 0x12b   : > { %1447 = vmatmul.mubr.msk.f32.gmra.mrb[22].mxu1 %vm624_vm1, %v744_v42  ;;  %v686_v0 = vld [vmem:[#allocation2 + $0xe8] sm:$0xff] }
 0x12c   : > { %718 = vst.msk [vmem:[#allocation3 + $0xe8] sm:$0xff] %vm624_vm1, %v686_v0  ;;  %v685_v1 = vld [vmem:[#allocation2 + $0xe0] sm:$0xff]  ;;  %v746_v3 = vld [vmem:[#allocation3 + $0xc8] sm:$0xff] }
 0x12d   : > { %v745_v2 = vld [vmem:[#allocation3 + $0xc0] sm:$0xff]  ;;  %717 = vst.msk [vmem:[#allocation3 + $0xe0] sm:$0xff] %vm624_vm1, %v685_v1 }
 0x12e   : > { %1449 = vmatprep.mubr.msk.f32.mxu1 %vm624_vm1, %v745_v2 }
 0x12f   : > { %1450 = vmatmul.mubr.msk.f32.gmra.mrb[24].mxu1 %vm624_vm1, %v746_v3  ;;  %v688_v4 = vld [vmem:[#allocation2 + $0xf8] sm:$0xff] }
 0x130   : > { %720 = vst.msk [vmem:[#allocation3 + $0xf8] sm:$0xff] %vm624_vm1, %v688_v4  ;;  %v687_v5 = vld [vmem:[#allocation2 + $0xf0] sm:$0xff]  ;;  %v748_v7 = vld [vmem:[#allocation3 + $0xd8] sm:$0xff] }
 0x131   : > { %v747_v6 = vld [vmem:[#allocation3 + $0xd0] sm:$0xff]  ;;  %719 = vst.msk [vmem:[#allocation3 + $0xf0] sm:$0xff] %vm624_vm1, %v687_v5 }
 0x132   : > { %1452 = vmatprep.mubr.msk.f32.mxu1 %vm624_vm1, %v747_v6 }
 0x133   : > { %1453 = vmatmul.mubr.msk.f32.gmra.mrb[26].mxu1 %vm624_vm1, %v748_v7  ;;  %v750_v9 = vld [vmem:[#allocation3 + $0xe8] sm:$0xff] }
 0x134   : > { %v749_v8 = vld [vmem:[#allocation3 + $0xe0] sm:$0xff] }
 0x135   : > { %1455 = vmatprep.mubr.msk.f32.mxu1 %vm624_vm1, %v749_v8 }
 0x137   : > { %1456 = vmatmul.mubr.msk.f32.gmra.mrb[28].mxu1 %vm624_vm1, %v750_v9  ;;  %v752_v11 = vld [vmem:[#allocation3 + $0xf8] sm:$0xff] }
 0x138   : > { %v751_v10 = vld [vmem:[#allocation3 + $0xf0] sm:$0xff] }
 0x139   : > { %1458 = vmatprep.mubr.msk.f32.mxu1 %vm624_vm1, %v751_v10 }
 0x13b   : > { %1459 = vmatmul.mubr.msk.f32.gmra.mrb[30].mxu1 %vm624_vm1, %v752_v11 }
 0x1d2   : > { %v1415_v13 = vpop.f32.mrb[0].mxu1 }
 0x1d3   : > { %v929_v14 = vadd.f32 %v1415_v13, %v1758_v12  ;;  %v923_v15 = vpop.f32.mrb[1].mxu1 }
 0x1d4   : > { %v924_v16 = vadd.f32 %v1758_v12, %v923_v15 }
 0x1d5   : > { %v1083_v17 = vmax.f32 %v929_v14, 0.0 }
 0x1d6   : > { %v1082_v18 = vmax.f32 %v924_v16, 0.0  ;;  %v1418_v19 = vpop.f32.mrb[2].mxu1 }
 0x1d7   : > { %1115 = vst.msk [vmem:[%s1766_s21 + $0x8] sm:$0xff] %vm624_vm1, %v1083_v17  ;;  %v939_v20 = vadd.f32 %v1418_v19, %v1758_v12  ;;  %v933_v21 = vpop.f32.mrb[3].mxu1 }
 0x1d8   : > { %1114 = vst.msk [vmem:[%s1766_s21] sm:$0xff] %vm624_vm1, %v1082_v18  ;;  %v934_v22 = vadd.f32 %v1758_v12, %v933_v21 }
 0x1d9   : > { %v1085_v23 = vmax.f32 %v939_v20, 0.0 }
 0x1da   : > { %v1084_v24 = vmax.f32 %v934_v22, 0.0  ;;  %v1421_v25 = vpop.f32.mrb[4].mxu1 }
 0x1db   : > { %1117 = vst.msk [vmem:[%s1766_s21 + $0x18] sm:$0xff] %vm624_vm1, %v1085_v23  ;;  %v949_v26 = vadd.f32 %v1421_v25, %v1758_v12  ;;  %v943_v27 = vpop.f32.mrb[5].mxu1 }
 0x1dc   : > { %1116 = vst.msk [vmem:[%s1766_s21 + $0x10] sm:$0xff] %vm624_vm1, %v1084_v24  ;;  %v944_v28 = vadd.f32 %v1758_v12, %v943_v27 }
 0x1dd   : > { %v1087_v29 = vmax.f32 %v949_v26, 0.0 }
 0x1de   : > { %v1086_v30 = vmax.f32 %v944_v28, 0.0  ;;  %v1424_v31 = vpop.f32.mrb[6].mxu1 }
 0x1df   : > { %1119 = vst.msk [vmem:[%s1766_s21 + $0x28] sm:$0xff] %vm624_vm1, %v1087_v29  ;;  %v959_v32 = vadd.f32 %v1424_v31, %v1758_v12  ;;  %v953_v33 = vpop.f32.mrb[7].mxu1 }
 0x1e0   : > { %1118 = vst.msk [vmem:[%s1766_s21 + $0x20] sm:$0xff] %vm624_vm1, %v1086_v30  ;;  %v954_v34 = vadd.f32 %v1758_v12, %v953_v33 }
 0x1e1   : > { %v1089_v35 = vmax.f32 %v959_v32, 0.0 }
 0x1e2   : > { %v1088_v36 = vmax.f32 %v954_v34, 0.0  ;;  %v1427_v37 = vpop.f32.mrb[8].mxu1 }
 0x1e3   : > { %1121 = vst.msk [vmem:[%s1766_s21 + $0x38] sm:$0xff] %vm624_vm1, %v1089_v35  ;;  %v969_v38 = vadd.f32 %v1427_v37, %v1758_v12  ;;  %v963_v39 = vpop.f32.mrb[9].mxu1 }
 0x1e4   : > { %1120 = vst.msk [vmem:[%s1766_s21 + $0x30] sm:$0xff] %vm624_vm1, %v1088_v36  ;;  %v964_v40 = vadd.f32 %v1758_v12, %v963_v39 }
 0x1e5   : > { %v1091_v41 = vmax.f32 %v969_v38, 0.0 }
 0x1e6   : > { %v1090_v43 = vmax.f32 %v964_v40, 0.0  ;;  %v1430_v44 = vpop.f32.mrb[10].mxu1 }
 0x1e7   : > { %1123 = vst.msk [vmem:[%s1766_s21 + $0x48] sm:$0xff] %vm624_vm1, %v1091_v41  ;;  %v979_v45 = vadd.f32 %v1430_v44, %v1758_v12  ;;  %v973_v46 = vpop.f32.mrb[11].mxu1 }
 0x1e8   : > { %1122 = vst.msk [vmem:[%s1766_s21 + $0x40] sm:$0xff] %vm624_vm1, %v1090_v43  ;;  %v974_v47 = vadd.f32 %v1758_v12, %v973_v46 }
 0x1e9   : > { %v1093_v48 = vmax.f32 %v979_v45, 0.0 }
 0x1ea   : > { %v1092_v49 = vmax.f32 %v974_v47, 0.0  ;;  %v1433_v50 = vpop.f32.mrb[12].mxu1 }
 0x1eb   : > { %1125 = vst.msk [vmem:[%s1766_s21 + $0x58] sm:$0xff] %vm624_vm1, %v1093_v48  ;;  %v989_v51 = vadd.f32 %v1433_v50, %v1758_v12  ;;  %v983_v52 = vpop.f32.mrb[13].mxu1 }
 0x1ec   : > { %1124 = vst.msk [vmem:[%s1766_s21 + $0x50] sm:$0xff] %vm624_vm1, %v1092_v49  ;;  %v984_v53 = vadd.f32 %v1758_v12, %v983_v52 }
 0x1ed   : > { %v1095_v54 = vmax.f32 %v989_v51, 0.0 }
 0x1ee   : > { %v1094_v55 = vmax.f32 %v984_v53, 0.0  ;;  %v1436_v56 = vpop.f32.mrb[14].mxu1 }
 0x1ef   : > { %1127 = vst.msk [vmem:[%s1766_s21 + $0x68] sm:$0xff] %vm624_vm1, %v1095_v54  ;;  %v999_v57 = vadd.f32 %v1436_v56, %v1758_v12  ;;  %v993_v58 = vpop.f32.mrb[15].mxu1 }
 0x1f0   : > { %1126 = vst.msk [vmem:[%s1766_s21 + $0x60] sm:$0xff] %vm624_vm1, %v1094_v55  ;;  %v994_v59 = vadd.f32 %v1758_v12, %v993_v58 }
 0x1f1   : > { %v1097_v60 = vmax.f32 %v999_v57, 0.0 }
 0x1f2   : > { %v1096_v61 = vmax.f32 %v994_v59, 0.0  ;;  %v1439_v62 = vpop.f32.mrb[16].mxu1 }
 0x1f3   : > { %1129 = vst.msk [vmem:[%s1766_s21 + $0x78] sm:$0xff] %vm624_vm1, %v1097_v60  ;;  %v1009_v63 = vadd.f32 %v1439_v62, %v1758_v12  ;;  %v1003_v42 = vpop.f32.mrb[17].mxu1 }
 0x1f4   : > { %1128 = vst.msk [vmem:[%s1766_s21 + $0x70] sm:$0xff] %vm624_vm1, %v1096_v61  ;;  %v1004_v0 = vadd.f32 %v1758_v12, %v1003_v42 }
 0x1f5   : > { %v1099_v1 = vmax.f32 %v1009_v63, 0.0 }
 0x1f6   : > { %v1098_v2 = vmax.f32 %v1004_v0, 0.0  ;;  %v1442_v3 = vpop.f32.mrb[18].mxu1 }
 0x1f7   : > { %1131 = vst.msk [vmem:[%s1766_s21 + $0x88] sm:$0xff] %vm624_vm1, %v1099_v1  ;;  %v1019_v4 = vadd.f32 %v1442_v3, %v1758_v12  ;;  %v1013_v5 = vpop.f32.mrb[19].mxu1 }
 0x1f8   : > { %1130 = vst.msk [vmem:[%s1766_s21 + $0x80] sm:$0xff] %vm624_vm1, %v1098_v2  ;;  %v1014_v6 = vadd.f32 %v1758_v12, %v1013_v5 }
 0x1f9   : > { %v1101_v7 = vmax.f32 %v1019_v4, 0.0 }
 0x1fa   : > { %v1100_v8 = vmax.f32 %v1014_v6, 0.0  ;;  %v1445_v9 = vpop.f32.mrb[20].mxu1 }
 0x1fb   : > { %1133 = vst.msk [vmem:[%s1766_s21 + $0x98] sm:$0xff] %vm624_vm1, %v1101_v7  ;;  %v1029_v10 = vadd.f32 %v1445_v9, %v1758_v12  ;;  %v1023_v11 = vpop.f32.mrb[21].mxu1 }
 0x1fc   : > { %1132 = vst.msk [vmem:[%s1766_s21 + $0x90] sm:$0xff] %vm624_vm1, %v1100_v8  ;;  %v1024_v13 = vadd.f32 %v1758_v12, %v1023_v11 }
 0x1fd   : > { %v1103_v14 = vmax.f32 %v1029_v10, 0.0 }
 0x1fe   : > { %v1102_v15 = vmax.f32 %v1024_v13, 0.0  ;;  %v1448_v16 = vpop.f32.mrb[22].mxu1 }
 0x1ff   : > { %1135 = vst.msk [vmem:[%s1766_s21 + $0xa8] sm:$0xff] %vm624_vm1, %v1103_v14  ;;  %v1039_v17 = vadd.f32 %v1448_v16, %v1758_v12  ;;  %v1033_v18 = vpop.f32.mrb[23].mxu1 }
 0x200   : > { %1134 = vst.msk [vmem:[%s1766_s21 + $0xa0] sm:$0xff] %vm624_vm1, %v1102_v15  ;;  %v1034_v19 = vadd.f32 %v1758_v12, %v1033_v18 }
 0x201   : > { %v1105_v20 = vmax.f32 %v1039_v17, 0.0 }
 0x202   : > { %v1104_v21 = vmax.f32 %v1034_v19, 0.0  ;;  %v1451_v22 = vpop.f32.mrb[24].mxu1 }
 0x203   : > { %1137 = vst.msk [vmem:[%s1766_s21 + $0xb8] sm:$0xff] %vm624_vm1, %v1105_v20  ;;  %v1049_v23 = vadd.f32 %v1451_v22, %v1758_v12  ;;  %v1043_v24 = vpop.f32.mrb[25].mxu1 }
 0x204   : > { %1136 = vst.msk [vmem:[%s1766_s21 + $0xb0] sm:$0xff] %vm624_vm1, %v1104_v21  ;;  %v1044_v25 = vadd.f32 %v1758_v12, %v1043_v24 }
 0x205   : > { %v1107_v26 = vmax.f32 %v1049_v23, 0.0 }
 0x206   : > { %v1106_v27 = vmax.f32 %v1044_v25, 0.0  ;;  %v1454_v28 = vpop.f32.mrb[26].mxu1 }
 0x207   : > { %1139 = vst.msk [vmem:[%s1766_s21 + $0xc8] sm:$0xff] %vm624_vm1, %v1107_v26  ;;  %v1059_v29 = vadd.f32 %v1454_v28, %v1758_v12  ;;  %v1053_v30 = vpop.f32.mrb[27].mxu1 }
 0x208   : > { %1138 = vst.msk [vmem:[%s1766_s21 + $0xc0] sm:$0xff] %vm624_vm1, %v1106_v27  ;;  %v1054_v31 = vadd.f32 %v1758_v12, %v1053_v30 }
 0x209   : > { %v1109_v32 = vmax.f32 %v1059_v29, 0.0 }
 0x20a   : > { %v1108_v33 = vmax.f32 %v1054_v31, 0.0  ;;  %v1457_v34 = vpop.f32.mrb[28].mxu1 }
 0x20b   : > { %1141 = vst.msk [vmem:[%s1766_s21 + $0xd8] sm:$0xff] %vm624_vm1, %v1109_v32  ;;  %v1069_v35 = vadd.f32 %v1457_v34, %v1758_v12  ;;  %v1063_v36 = vpop.f32.mrb[29].mxu1 }
 0x20c   : > { %1140 = vst.msk [vmem:[%s1766_s21 + $0xd0] sm:$0xff] %vm624_vm1, %v1108_v33  ;;  %v1064_v37 = vadd.f32 %v1758_v12, %v1063_v36 }
 0x20d   : > { %v1111_v38 = vmax.f32 %v1069_v35, 0.0 }
 0x20e   : > { %v1110_v39 = vmax.f32 %v1064_v37, 0.0  ;;  %v1460_v40 = vpop.f32.mrb[30].mxu1 }
 0x20f   : > { %1143 = vst.msk [vmem:[%s1766_s21 + $0xe8] sm:$0xff] %vm624_vm1, %v1111_v38  ;;  %v1079_v41 = vadd.f32 %v1460_v40, %v1758_v12  ;;  %v1073_v43 = vpop.f32.mrb[31].mxu1 }
 0x210   : > { %1142 = vst.msk [vmem:[%s1766_s21 + $0xe0] sm:$0xff] %vm624_vm1, %v1110_v39  ;;  %v1074_v44 = vadd.f32 %v1758_v12, %v1073_v43 }
 0x211   : > { %v1113_v45 = vmax.f32 %v1079_v41, 0.0 }
 0x212   : > { %v1112_v46 = vmax.f32 %v1074_v44, 0.0 }
 0x213   : > { %1145 = vst.msk [vmem:[%s1766_s21 + $0xf8] sm:$0xff] %vm624_vm1, %v1113_v45 }
 0x214   : > { %1144 = vst.msk [vmem:[%s1766_s21 + $0xf0] sm:$0xff] %vm624_vm1, %v1112_v46 }
 0x215 PF: > { %s15_s18 = sadd.s32 1, %s1487_s18  }
 0x216   : > { %p12_p4 = scmp.ge.s32.totalorder %s15_s18, 4  }
 0x218   :  { %14 = sbr.rel (!%p12_p4) target bundleno = 1 (0x1), region = 70 }

// kernel: dense_aspp_block.7
= control target key start
LH: loop header
LB: loop body
LE: loop exit
PB: predicated region body
PF: predicated region fallthrough
CT: control target
= control target key end

     0   :  { %s3332_s18 = smov 0   ;;  %s4844_s0 = inlined_call_operand.vmem [shape: f32[2,16,16,48], index: 0, kind: input, shape index: {}]   ;;  %s4845_s1 = inlined_call_operand.vmem [shape: f32[48,8], index: 1, kind: input, shape index: {}]   ;;  %s4846_s2 = inlined_call_operand.vmem [shape: f32[1,8], index: 2, kind: input, shape index: {}]   ;;  %s4847_s3 = inlined_call_operand.vmem [shape: f32[72,8], index: 3, kind: input, shape index: {}]   ;;  %s4848_s4 = inlined_call_operand.vmem [shape: f32[1,8], index: 4, kind: input, shape index: {}]   ;;  %s4849_s5 = inlined_call_operand.vmem [shape: f32[2,256,8], index: 5, kind: output, shape index: {}]  }
   0x1 LB: > { %s2956_s19 = sadd.s32 4294967295, %s3291_s18   ;;  %p2960_p0 = scmp.ge.s32.totalorder %s3291_s18, 1  ;;  %s3291_s18 = sphi %s3332_s18, %s15_s18  }
   0x2   : > { %p187_p1 = scmp.lt.s32.totalorder %s3291_s18, 3 }
   0x4   : > { %p188_p2 = pnand %p2960_p0, %p187_p1 }
   0x5   : > { %v257_v0 = vld [vmem:[%s4845_s1] sm:$0xff] (!%p188_p2)  ;;  %v258_v1 = vld [vmem:[%s4845_s1 + $0x8] sm:$0xff] (!%p188_p2)  ;;  %v259_v2 = vld [vmem:[%s4845_s1 + $0x10] sm:$0xff] (!%p188_p2)  ;;  %p215_p3 = scmp.lt.s32.totalorder (!%p188_p2), %s2956_s19, 1  ;;  %vm624_vm0 = vcmask (!%p188_p2), 64512   ;;  %v3293_v8 = vmov (!%p188_p2), 0.0  }
   0x6   : > { %191 = sbr.rel (%p188_p2) target bundleno = 934 (0x3a6), region = 40  ;;  %v3349_v3 = vpack.c.bf16 (!%p188_p2), %v258_v1, %v257_v0  ;;  %v260_v4 = vld [vmem:[%s4845_s1 + $0x18] sm:$0xff] (!%p188_p2)  ;;  %v3359_v6 = vld [vmem:[%s4845_s1 + $0x20] sm:$0xff] (!%p188_p2)  ;;  %v3364_v7 = vld [vmem:[%s4845_s1 + $0x28] sm:$0xff] (!%p188_p2)  ;;  %626 = vst.msk [vmem:[#allocation2 + $0x8] sm:$0xff] (!%p188_p2), %vm624_vm0, %v3293_v8  ;;  %vm270_vm1 = vcmask (!%p188_p2), 392192  }
   0x7   : > { %v3354_v5 = vpack.c.bf16 (!%p188_p2), %v260_v4, %v259_v2  ;;  %627 = vst.msk [vmem:[#allocation2 + $0x10] sm:$0xff] (!%p188_p2), %vm624_vm0, %v3293_v8  ;;  %625 = vst.msk [vmem:[#allocation2] sm:$0xff] (!%p188_p2), %vm624_vm0, %v3293_v8  ;;  %v3248_v9 = vpack.c.bf16 (!%p188_p2), %v3364_v7, %v3359_v6  ;;  %s3294_s11 = smov (!%p188_p2), 8   ;;  %s3295_s12 = smov (!%p188_p2), 16   ;;  %vm1082_vm2 = vcmask (!%p188_p2), 130112   ;;  %vm1275_vm3 = vcmask (!%p188_p2), 195712  }
   0x8   : > { %628 = vst.msk [vmem:[#allocation2 + $0x18] sm:$0xff] (!%p188_p2), %vm624_vm0, %v3293_v8  ;;  %629 = vst.msk [vmem:[#allocation2 + $0x20] sm:$0xff] (!%p188_p2), %vm624_vm0, %v3293_v8  ;;  %3241 = vmatprep.subr.bf16.mxu0 (!%p188_p2), %v3349_v3  ;;  %s3296_s13 = smov (!%p188_p2), 24   ;;  %s3297_s14 = smov (!%p188_p2), 40   ;;  %vm1468_vm4 = vcmask (!%p188_p2), 261312   ;;  %vm1661_vm5 = vcmask (!%p188_p2), 326912  }
   0x9   : > { %630 = vst.msk [vmem:[#allocation2 + $0x28] sm:$0xff] (!%p188_p2), %vm624_vm0, %v3293_v8  ;;  %631 = vst.msk [vmem:[#allocation2 + $0x30] sm:$0xff] (!%p188_p2), %vm624_vm0, %v3293_v8  ;;  %3243 = vmatpush3.bf16.msra.mxu0 (!%p188_p2), %v3349_v3  ;;  %s3298_s15 = smov (!%p188_p2), 48   ;;  %s3299_s16 = smov (!%p188_p2), 64   ;;  %vm1854_vm6 = vcmask (!%p188_p2), 392512   ;;  %vm2048_vm7 = vcmask (!%p188_p2), 458112  }
   0xa   : > { %632 = vst.msk [vmem:[#allocation2 + $0x38] sm:$0xff] (!%p188_p2), %vm624_vm0, %v3293_v8  ;;  %633 = vst.msk [vmem:[#allocation2 + $0x40] sm:$0xff] (!%p188_p2), %vm624_vm0, %v3293_v8  ;;  %3245 = vmatprep.subr.bf16.mxu0 (!%p188_p2), %v3354_v5  ;;  %s3300_s17 = smov (!%p188_p2), 56   ;;  %s3301_s22 = smov (!%p188_p2), 32   ;;  %vm2241_vm8 = vcmask (!%p188_p2), 523712   ;;  %vm2434_vm9 = vcmask (!%p188_p2), 589312  }
   0xb   : > { %634 = vst.msk [vmem:[#allocation2 + $0x48] sm:$0xff] (!%p188_p2), %vm624_vm0, %v3293_v8  ;;  %635 = vst.msk [vmem:[#allocation2 + $0x50] sm:$0xff] (!%p188_p2), %vm624_vm0, %v3293_v8  ;;  %vm2515_vm10 = vcmask (!%p188_p2), 588800  }
   0xc   : > { %636 = vst.msk [vmem:[#allocation2 + $0x58] sm:$0xff] (!%p188_p2), %vm624_vm0, %v3293_v8  ;;  %637 = vst.msk [vmem:[#allocation2 + $0x60] sm:$0xff] (!%p188_p2), %vm624_vm0, %v3293_v8 }
   0xd   : > { %s4851_s19 = smov (!%p215_p3, %s2956_s19), 1  ;;  %638 = vst.msk [vmem:[#allocation2 + $0x68] sm:$0xff] %vm624_vm0, %v3293_v8  ;;  %639 = vst.msk [vmem:[#allocation2 + $0x70] sm:$0xff] %vm624_vm0, %v3293_v8  ;;  %3247 = vmatpush3.bf16.msra.mxu0 %v3354_v5  ;;  %v859_v36 = vld [vmem:[#allocation2 + $0x8] sm:$0xff] }
   0xe   : > { %640 = vst.msk [vmem:[#allocation2 + $0x78] sm:$0xff] %vm624_vm0, %v3293_v8  ;;  %641 = vst.msk [vmem:[#allocation2 + $0x80] sm:$0xff] %vm624_vm0, %v3293_v8  ;;  %s3033_s7 = sshll.u32 %s4851_s19, 8  ;;  %3249 = vmatprep.subr.bf16.mxu0 %v3248_v9  ;;  %v922_v11 = vld [vmem:[#allocation2 + $0xc] sm:$0xff]  ;;  %v858_v34 = vld [vmem:[#allocation2] sm:$0xff] }
   0xf   : > { %642 = vst.msk [vmem:[#allocation2 + $0x88] sm:$0xff] %vm624_vm0, %v3293_v8  ;;  %643 = vst.msk [vmem:[#allocation2 + $0x90] sm:$0xff] %vm624_vm0, %v3293_v8  ;;  %s3779_s10 = scalar_lea.vmem %s4844_s0, %s3033_s7  ;;  %986 = vrot.lane.b32.xlu0 %v922_v11, %s3294_s11  ;;  %v923_v12 = vld [vmem:[#allocation2 + $0x14] sm:$0xff] }
  0x10   : > { %644 = vst.msk [vmem:[#allocation2 + $0x98] sm:$0xff] %vm624_vm0, %v3293_v8  ;;  %645 = vst.msk [vmem:[#allocation2 + $0xa0] sm:$0xff] %vm624_vm0, %v3293_v8  ;;  %v225_v10 = vld [vmem:[%s3779_s10] sm:$0xff]  ;;  %v226_v13 = vld [vmem:[%s3779_s10 + $0x8] sm:$0xff] }
  0x11   : > { %646 = vst.msk [vmem:[#allocation2 + $0xa8] sm:$0xff] %vm624_vm0, %v3293_v8  ;;  %647 = vst.msk [vmem:[#allocation2 + $0xb0] sm:$0xff] %vm624_vm0, %v3293_v8  ;;  %3126 = vmatprep.mubr.msk.f32.mxu0 %vm270_vm1, %v225_v10  ;;  %3251 = vmatpush3.bf16.msra.mxu0 %v3248_v9  ;;  %v227_v14 = vld [vmem:[%s3779_s10 + $0x10] sm:$0xff]  ;;  %v228_v16 = vld [vmem:[%s3779_s10 + $0x18] sm:$0xff] }
  0x12   : > { %648 = vst.msk [vmem:[#allocation2 + $0xb8] sm:$0xff] %vm624_vm0, %v3293_v8  ;;  %649 = vst.msk [vmem:[#allocation2 + $0xc0] sm:$0xff] %vm624_vm0, %v3293_v8  ;;  %v924_v17 = vld [vmem:[#allocation2 + $0x34] sm:$0xff]  ;;  %v229_v18 = vld [vmem:[%s3779_s10 + $0x20] sm:$0xff] }
  0x13   : > { %650 = vst.msk [vmem:[#allocation2 + $0xc8] sm:$0xff] %vm624_vm0, %v3293_v8  ;;  %651 = vst.msk [vmem:[#allocation2 + $0xd0] sm:$0xff] %vm624_vm0, %v3293_v8  ;;  %988 = vrot.lane.b32.xlu0 %v923_v12, %s3294_s11  ;;  %v926_v15 = vld [vmem:[#allocation2 + $0x5c] sm:$0xff]  ;;  %990 = vrot.lane.b32.xlu1 %v924_v17, %s3294_s11  ;;  %v230_v21 = vld [vmem:[%s3779_s10 + $0x28] sm:$0xff] }
  0x14   : > { %652 = vst.msk [vmem:[#allocation2 + $0xd8] sm:$0xff] %vm624_vm0, %v3293_v8  ;;  %653 = vst.msk [vmem:[#allocation2 + $0xe0] sm:$0xff] %vm624_vm0, %v3293_v8  ;;  %3127 = vmatmul.mubr.msk.f32.vlgmr.msra.gmra.mrb[0].mxu0 %vm270_vm1, %v226_v13  ;;  %v925_v19 = vld [vmem:[#allocation2 + $0x3c] sm:$0xff]  ;;  %v231_v22 = vld [vmem:[%s3779_s10 + $0x30] sm:$0xff] }
  0x15   : > { %654 = vst.msk [vmem:[#allocation2 + $0xe8] sm:$0xff] %vm624_vm0, %v3293_v8  ;;  %655 = vst.msk [vmem:[#allocation2 + $0xf0] sm:$0xff] %vm624_vm0, %v3293_v8  ;;  %3129 = vmatprep.mubr.msk.f32.mxu0 %vm270_vm1, %v227_v14  ;;  %v927_v23 = vld [vmem:[#allocation2 + $0x64] sm:$0xff]  ;;  %v232_v25 = vld [vmem:[%s3779_s10 + $0x38] sm:$0xff] }
  0x16   : > { %656 = vst.msk [vmem:[#allocation2 + $0xf8] sm:$0xff] %vm624_vm0, %v3293_v8  ;;  %657 = vst.msk [vmem:[#allocation2 + $0x100] sm:$0xff] %vm624_vm0, %v3293_v8  ;;  %v928_v20 = vld [vmem:[#allocation2 + $0x84] sm:$0xff]  ;;  %v929_v27 = vld [vmem:[#allocation2 + $0x8c] sm:$0xff] }
  0x17   : > { %658 = vst.msk [vmem:[#allocation2 + $0x108] sm:$0xff] %vm624_vm0, %v3293_v8  ;;  %659 = vst.msk [vmem:[#allocation2 + $0x110] sm:$0xff] %vm624_vm0, %v3293_v8  ;;  %994 = vrot.lane.b32.xlu0 %v926_v15, %s3294_s11  ;;  %992 = vrot.lane.b32.xlu1 %v925_v19, %s3294_s11  ;;  %v233_v26 = vld [vmem:[%s3779_s10 + $0x40] sm:$0xff]  ;;  %v234_v29 = vld [vmem:[%s3779_s10 + $0x48] sm:$0xff] }
  0x18   : > { %660 = vst.msk [vmem:[#allocation2 + $0x118] sm:$0xff] %vm624_vm0, %v3293_v8  ;;  %661 = vst.msk [vmem:[#allocation2 + $0x120] sm:$0xff] %vm624_vm0, %v3293_v8  ;;  %3130 = vmatmul.mubr.msk.f32.gmra.mrb[2].mxu0 %vm270_vm1, %v228_v16  ;;  %v930_v24 = vld [vmem:[#allocation2 + $0xac] sm:$0xff]  ;;  %v236_v33 = vld [vmem:[%s3779_s10 + $0x58] sm:$0xff] }
  0x19   : > { %662 = vst.msk [vmem:[#allocation2 + $0x128] sm:$0xff] %vm624_vm0, %v3293_v8  ;;  %663 = vst.msk [vmem:[#allocation2 + $0x130] sm:$0xff] %vm624_vm0, %v3293_v8  ;;  %3132 = vmatprep.mubr.msk.f32.mxu0 %vm270_vm1, %v229_v18  ;;  %v235_v30 = vld [vmem:[%s3779_s10 + $0x50] sm:$0xff]  ;;  %v237_v35 = vld [vmem:[%s3779_s10 + $0x60] sm:$0xff] }
  0x1a   : > { %664 = vst.msk [vmem:[#allocation2 + $0x138] sm:$0xff] %vm624_vm0, %v3293_v8  ;;  %665 = vst.msk [vmem:[#allocation2 + $0x140] sm:$0xff] %vm624_vm0, %v3293_v8  ;;  %v931_v31 = vld [vmem:[#allocation2 + $0xb4] sm:$0xff]  ;;  %v238_v41 = vld [vmem:[%s3779_s10 + $0x68] sm:$0xff] }
  0x1b   : > { %666 = vst.msk [vmem:[#allocation2 + $0x148] sm:$0xff] %vm624_vm0, %v3293_v8  ;;  %667 = vst.msk [vmem:[#allocation2 + $0x150] sm:$0xff] %vm624_vm0, %v3293_v8  ;;  %998 = vrot.lane.b32.xlu0 %v928_v20, %s3294_s11  ;;  %996 = vrot.lane.b32.xlu1 %v927_v23, %s3294_s11  ;;  %v932_v28 = vld [vmem:[#allocation2 + $0xd4] sm:$0xff]  ;;  %v933_v37 = vld [vmem:[#allocation2 + $0xdc] sm:$0xff] }
  0x1c   : > { %668 = vst.msk [vmem:[#allocation2 + $0x158] sm:$0xff] %vm624_vm0, %v3293_v8  ;;  %669 = vst.msk [vmem:[#allocation2 + $0x160] sm:$0xff] %vm624_vm0, %v3293_v8  ;;  %3133 = vmatmul.mubr.msk.f32.gmra.mrb[4].mxu0 %vm270_vm1, %v230_v21  ;;  %v862_v38 = vld [vmem:[#allocation2 + $0x50] sm:$0xff]  ;;  %v864_v40 = vld [vmem:[#allocation2 + $0x78] sm:$0xff] }
  0x1d   : > { %670 = vst.msk [vmem:[#allocation2 + $0x168] sm:$0xff] %vm624_vm0, %v3293_v8  ;;  %671 = vst.msk [vmem:[#allocation2 + $0x170] sm:$0xff] %vm624_vm0, %v3293_v8  ;;  %3135 = vmatprep.mubr.msk.f32.mxu0 %vm270_vm1, %v231_v22  ;;  %v934_v32 = vld [vmem:[#allocation2 + $0xfc] sm:$0xff]  ;;  %v239_v43 = vld [vmem:[%s3779_s10 + $0x70] sm:$0xff] }
  0x1e   : > { %672 = vst.msk [vmem:[#allocation2 + $0x178] sm:$0xff] %vm624_vm0, %v3293_v8  ;;  %673 = vst.msk [vmem:[#allocation2 + $0x180] sm:$0xff] %vm624_vm0, %v3293_v8  ;;  %v866_v42 = vld [vmem:[#allocation2 + $0xa0] sm:$0xff]  ;;  %v868_v44 = vld [vmem:[#allocation2 + $0xc8] sm:$0xff] }
  0x1f   : > { %674 = vst.msk [vmem:[#allocation2 + $0x188] sm:$0xff] %vm624_vm0, %v3293_v8  ;;  %675 = vst.msk [vmem:[#allocation2 + $0x190] sm:$0xff] %vm624_vm0, %v3293_v8  ;;  %1002 = vrot.lane.b32.xlu0 %v930_v24, %s3294_s11  ;;  %1000 = vrot.lane.b32.xlu1 %v929_v27, %s3294_s11  ;;  %v935_v45 = vld [vmem:[#allocation2 + $0x104] sm:$0xff]  ;;  %v870_v46 = vld [vmem:[#allocation2 + $0xf0] sm:$0xff] }
  0x20   : > { %676 = vst.msk [vmem:[#allocation2 + $0x198] sm:$0xff] %vm624_vm0, %v3293_v8  ;;  %677 = vst.msk [vmem:[#allocation2 + $0x1a0] sm:$0xff] %vm624_vm0, %v3293_v8  ;;  %3136 = vmatmul.mubr.msk.f32.gmra.mrb[6].mxu0 %vm270_vm1, %v232_v25  ;;  %v936_v39 = vld [vmem:[#allocation2 + $0x124] sm:$0xff]  ;;  %v872_v48 = vld [vmem:[#allocation2 + $0x118] sm:$0xff] }
  0x21   : > { %678 = vst.msk [vmem:[#allocation2 + $0x1a8] sm:$0xff] %vm624_vm0, %v3293_v8  ;;  %679 = vst.msk [vmem:[#allocation2 + $0x1b0] sm:$0xff] %vm624_vm0, %v3293_v8  ;;  %3138 = vmatprep.mubr.msk.f32.mxu0 %vm270_vm1, %v233_v26  ;;  %v240_v49 = vld [vmem:[%s3779_s10 + $0x78] sm:$0xff]  ;;  %v874_v50 = vld [vmem:[#allocation2 + $0x140] sm:$0xff] }
  0x22   : > { %680 = vst.msk [vmem:[#allocation2 + $0x1b8] sm:$0xff] %vm624_vm0, %v3293_v8  ;;  %681 = vst.msk [vmem:[#allocation2 + $0x1c0] sm:$0xff] %vm624_vm0, %v3293_v8  ;;  %v938_v47 = vld [vmem:[#allocation2 + $0x14c] sm:$0xff]  ;;  %v241_v51 = vld [vmem:[%s3779_s10 + $0x80] sm:$0xff] }
  0x23   : > { %682 = vst.msk [vmem:[#allocation2 + $0x1c8] sm:$0xff] %vm624_vm0, %v3293_v8  ;;  %683 = vst.msk [vmem:[#allocation2 + $0x1d0] sm:$0xff] %vm624_vm0, %v3293_v8  ;;  %1006 = vrot.lane.b32.xlu0 %v932_v28, %s3294_s11  ;;  %1004 = vrot.lane.b32.xlu1 %v931_v31, %s3294_s11  ;;  %v937_v53 = vld [vmem:[#allocation2 + $0x12c] sm:$0xff]  ;;  %v863_v60 = vld [vmem:[#allocation2 + $0x58] sm:$0xff] }
  0x24   : > { %684 = vst.msk [vmem:[#allocation2 + $0x1d8] sm:$0xff] %vm624_vm0, %v3293_v8  ;;  %685 = vst.msk [vmem:[#allocation2 + $0x1e0] sm:$0xff] %vm624_vm0, %v3293_v8  ;;  %3139 = vmatmul.mubr.msk.f32.gmra.mrb[8].mxu0 %vm270_vm1, %v234_v29  ;;  %v876_v52 = vld [vmem:[#allocation2 + $0x168] sm:$0xff]  ;;  %v861_v57 = vld [vmem:[#allocation2 + $0x30] sm:$0xff] }
  0x25   : > { %686 = vst.msk [vmem:[#allocation2 + $0x1e8] sm:$0xff] %vm624_vm0, %v3293_v8  ;;  %687 = vst.msk [vmem:[#allocation2 + $0x1f0] sm:$0xff] %vm624_vm0, %v3293_v8  ;;  %3141 = vmatprep.mubr.msk.f32.mxu0 %vm270_vm1, %v235_v30  ;;  %v860_v54 = vld [vmem:[#allocation2 + $0x28] sm:$0xff]  ;;  %v940_v56 = vld [vmem:[#allocation2 + $0x174] sm:$0xff] }
  0x26   : > { %688 = vst.msk [vmem:[#allocation2 + $0x1f8] sm:$0xff] %vm624_vm0, %v3293_v8  ;;  %689 = vst.msk [vmem:[#allocation2 + $0x200] sm:$0xff] %vm624_vm0, %v3293_v8  ;;  %v878_v55 = vld [vmem:[#allocation2 + $0x190] sm:$0xff]  ;;  %v242_v59 = vld [vmem:[%s3779_s10 + $0x88] sm:$0xff] }
  0x27   : > { %690 = vst.msk [vmem:[#allocation2 + $0x208] sm:$0xff] %vm624_vm0, %v3293_v8  ;;  %691 = vst.msk [vmem:[#allocation2 + $0x210] sm:$0xff] %vm624_vm0, %v3293_v8  ;;  %1010 = vrot.lane.b32.xlu0 %v934_v32, %s3294_s11  ;;  %1008 = vrot.lane.b32.xlu1 %v933_v37, %s3294_s11  ;;  %v243_v61 = vld [vmem:[%s3779_s10 + $0x90] sm:$0xff]  ;;  %v865_v63 = vld [vmem:[#allocation2 + $0x80] sm:$0xff] }
  0x28   : > { %692 = vst.msk [vmem:[#allocation2 + $0x218] sm:$0xff] %vm624_vm0, %v3293_v8  ;;  %693 = vst.msk [vmem:[#allocation2 + $0x220] sm:$0xff] %vm624_vm0, %v3293_v8  ;;  %3142 = vmatmul.mubr.msk.f32.gmra.mrb[10].mxu0 %vm270_vm1, %v236_v33  ;;  %v939_v62 = vld [vmem:[#allocation2 + $0x154] sm:$0xff]  ;;  %v942_v0 = vld [vmem:[#allocation2 + $0x19c] sm:$0xff] }
  0x29   : > { %694 = vst.msk [vmem:[#allocation2 + $0x228] sm:$0xff] %vm624_vm0, %v3293_v8  ;;  %695 = vst.msk [vmem:[#allocation2 + $0x230] sm:$0xff] %vm624_vm0, %v3293_v8  ;;  %3144 = vmatprep.mubr.msk.f32.mxu0 %vm270_vm1, %v237_v35  ;;  %v880_v58 = vld [vmem:[#allocation2 + $0x1b8] sm:$0xff]  ;;  %v245_v2 = vld [vmem:[%s3779_s10 + $0xa0] sm:$0xff] }
  0x2a   : > { %696 = vst.msk [vmem:[#allocation2 + $0x238] sm:$0xff] %vm624_vm0, %v3293_v8  ;;  %697 = vst.msk [vmem:[#allocation2 + $0x240] sm:$0xff] %vm624_vm0, %v3293_v8  ;;  %v244_v1 = vld [vmem:[%s3779_s10 + $0x98] sm:$0xff]  ;;  %v867_v4 = vld [vmem:[#allocation2 + $0xa8] sm:$0xff] }
  0x2b   : > { %698 = vst.msk [vmem:[#allocation2 + $0x248] sm:$0xff] %vm624_vm0, %v3293_v8  ;;  %699 = vst.msk [vmem:[#allocation2 + $0x250] sm:$0xff] %vm624_vm0, %v3293_v8  ;;  %1014 = vrot.lane.b32.xlu0 %v936_v39, %s3294_s11  ;;  %1012 = vrot.lane.b32.xlu1 %v935_v45, %s3294_s11  ;;  %v941_v3 = vld [vmem:[#allocation2 + $0x17c] sm:$0xff]  ;;  %v944_v5 = vld [vmem:[#allocation2 + $0x1c4] sm:$0xff] }
  0x2c   : > { %700 = vst.msk [vmem:[#allocation2 + $0x258] sm:$0xff] %vm624_vm0, %v3293_v8  ;;  %701 = vst.msk [vmem:[#allocation2 + $0x260] sm:$0xff] %vm624_vm0, %v3293_v8  ;;  %3145 = vmatmul.mubr.msk.f32.gmra.mrb[12].mxu0 %vm270_vm1, %v238_v41  ;;  %v246_v6 = vld [vmem:[%s3779_s10 + $0xa8] sm:$0xff]  ;;  %v247_v7 = vld [vmem:[%s3779_s10 + $0xb0] sm:$0xff] }
  0x2d   : > { %702 = vst.msk [vmem:[#allocation2 + $0x268] sm:$0xff] %vm624_vm0, %v3293_v8  ;;  %703 = vst.msk [vmem:[#allocation2 + $0x270] sm:$0xff] %vm624_vm0, %v3293_v8  ;;  %3147 = vmatprep.mubr.msk.f32.mxu0 %vm270_vm1, %v239_v43  ;;  %v869_v9 = vld [vmem:[#allocation2 + $0xd0] sm:$0xff]  ;;  %v1115_v10 = vld [vmem:[#allocation2 + $0x18] sm:$0xff] }
  0x2e   : > { %704 = vst.msk [vmem:[#allocation2 + $0x278] sm:$0xff] %vm624_vm0, %v3293_v8  ;;  %705 = vst.msk [vmem:[#allocation2 + $0x280] sm:$0xff] %vm624_vm0, %v3293_v8  ;;  %v248_v11 = vld [vmem:[%s3779_s10 + $0xb8] sm:$0xff]  ;;  %v249_v12 = vld [vmem:[%s3779_s10 + $0xc0] sm:$0xff] }
  0x2f   : > { %706 = vst.msk [vmem:[#allocation2 + $0x288] sm:$0xff] %vm624_vm0, %v3293_v8  ;;  %707 = vst.msk [vmem:[#allocation2 + $0x290] sm:$0xff] %vm624_vm0, %v3293_v8  ;;  %1018 = vrot.lane.b32.xlu0 %v938_v47, %s3294_s11  ;;  %1016 = vrot.lane.b32.xlu1 %v937_v53, %s3294_s11  ;;  %v945_v13 = vld [vmem:[#allocation2 + $0x1cc] sm:$0xff]  ;;  %v871_v14 = vld [vmem:[#allocation2 + $0xf8] sm:$0xff] }
  0x30   : > { %708 = vst.msk [vmem:[#allocation2 + $0x298] sm:$0xff] %vm624_vm0, %v3293_v8  ;;  %709 = vst.msk [vmem:[#allocation2 + $0x2a0] sm:$0xff] %vm624_vm0, %v3293_v8  ;;  %3148 = vmatmul.mubr.msk.f32.gmra.mrb[14].mxu0 %vm270_vm1, %v240_v49  ;;  %v1117_v15 = vld [vmem:[#allocation2 + $0x40] sm:$0xff]  ;;  %v250_v16 = vld [vmem:[%s3779_s10 + $0xc8] sm:$0xff] }
  0x31   : > { %710 = vst.msk [vmem:[#allocation2 + $0x2a8] sm:$0xff] %vm624_vm0, %v3293_v8  ;;  %711 = vst.msk [vmem:[#allocation2 + $0x2b0] sm:$0xff] %vm624_vm0, %v3293_v8  ;;  %3150 = vmatprep.mubr.msk.f32.mxu0 %vm270_vm1, %v241_v51  ;;  %v251_v17 = vld [vmem:[%s3779_s10 + $0xd0] sm:$0xff]  ;;  %v1116_v18 = vld [vmem:[#allocation2 + $0x20] sm:$0xff] }
  0x32   : > { %712 = vst.msk [vmem:[#allocation2 + $0x2b8] sm:$0xff] %vm624_vm0, %v3293_v8  ;;  %713 = vst.msk [vmem:[#allocation2 + $0x2c0] sm:$0xff] %vm624_vm0, %v3293_v8  ;;  %v873_v19 = vld [vmem:[#allocation2 + $0x120] sm:$0xff]  ;;  %v1119_v20 = vld [vmem:[#allocation2 + $0x68] sm:$0xff] }
  0x33   : > { %714 = vst.msk [vmem:[#allocation2 + $0x2c8] sm:$0xff] %vm624_vm0, %v3293_v8  ;;  %715 = vst.msk [vmem:[#allocation2 + $0x2d0] sm:$0xff] %vm624_vm0, %v3293_v8  ;;  %1022 = vrot.lane.b32.xlu0 %v940_v56, %s3294_s11  ;;  %1020 = vrot.lane.b32.xlu1 %v939_v62, %s3294_s11  ;;  %v252_v21 = vld [vmem:[%s3779_s10 + $0xd8] sm:$0xff]  ;;  %v253_v22 = vld [vmem:[%s3779_s10 + $0xe0] sm:$0xff] }
  0x34   : > { %716 = vst.msk [vmem:[#allocation2 + $0x2d8] sm:$0xff] %vm624_vm0, %v3293_v8  ;;  %717 = vst.msk [vmem:[#allocation2 + $0x2e0] sm:$0xff] %vm624_vm0, %v3293_v8  ;;  %3151 = vmatmul.mubr.msk.f32.gmra.mrb[16].mxu0 %vm270_vm1, %v242_v59  ;;  %v1118_v23 = vld [vmem:[#allocation2 + $0x48] sm:$0xff]  ;;  %v1121_v25 = vld [vmem:[#allocation2 + $0x90] sm:$0xff] }
  0x35   : > { %718 = vst.msk [vmem:[#allocation2 + $0x2e8] sm:$0xff] %vm624_vm0, %v3293_v8  ;;  %719 = vst.msk [vmem:[#allocation2 + $0x2f0] sm:$0xff] %vm624_vm0, %v3293_v8  ;;  %3153 = vmatprep.mubr.msk.f32.mxu0 %vm270_vm1, %v243_v61  ;;  %v875_v24 = vld [vmem:[#allocation2 + $0x148] sm:$0xff]  ;;  %v255_v27 = vld [vmem:[%s3779_s10 + $0xf0] sm:$0xff] }
  0x36   : > { %720 = vst.msk [vmem:[#allocation2 + $0x2f8] sm:$0xff] %vm624_vm0, %v3293_v8  ;;  %721 = vst.msk [vmem:[#allocation2 + $0x300] sm:$0xff] %vm624_vm0, %v3293_v8  ;;  %v254_v26 = vld [vmem:[%s3779_s10 + $0xe8] sm:$0xff]  ;;  %v1120_v28 = vld [vmem:[#allocation2 + $0x70] sm:$0xff] }
  0x37   : > { %722 = vst.msk [vmem:[#allocation2 + $0x308] sm:$0xff] %vm624_vm0, %v3293_v8  ;;  %723 = vst.msk [vmem:[#allocation2 + $0x310] sm:$0xff] %vm624_vm0, %v3293_v8  ;;  %1026 = vrot.lane.b32.xlu0 %v942_v0, %s3294_s11  ;;  %1024 = vrot.lane.b32.xlu1 %v941_v3, %s3294_s11  ;;  %v1123_v29 = vld [vmem:[#allocation2 + $0xb8] sm:$0xff]  ;;  %v1125_v32 = vld [vmem:[#allocation2 + $0xe0] sm:$0xff] }
  0x38   : > { %724 = vst.msk [vmem:[#allocation2 + $0x318] sm:$0xff] %vm624_vm0, %v3293_v8  ;;  %725 = vst.msk [vmem:[#allocation2 + $0x320] sm:$0xff] %vm624_vm0, %v3293_v8  ;;  %3154 = vmatmul.mubr.msk.f32.gmra.mrb[18].mxu0 %vm270_vm1, %v244_v1  ;;  %v256_v30 = vld [vmem:[%s3779_s10 + $0xf8] sm:$0xff]  ;;  %v1124_v33 = vld [vmem:[#allocation2 + $0xc0] sm:$0xff] }
  0x39   : > { %726 = vst.msk [vmem:[#allocation2 + $0x328] sm:$0xff] %vm624_vm0, %v3293_v8  ;;  %727 = vst.msk [vmem:[#allocation2 + $0x330] sm:$0xff] %vm624_vm0, %v3293_v8  ;;  %3156 = vmatprep.mubr.msk.f32.mxu0 %vm270_vm1, %v245_v2  ;;  %v1122_v31 = vld [vmem:[#allocation2 + $0x98] sm:$0xff]  ;;  %v1126_v35 = vld [vmem:[#allocation2 + $0xe8] sm:$0xff] }
  0x3a   : > { %728 = vst.msk [vmem:[#allocation2 + $0x338] sm:$0xff] %vm624_vm0, %v3293_v8  ;;  %729 = vst.msk [vmem:[#allocation2 + $0x340] sm:$0xff] %vm624_vm0, %v3293_v8  ;;  %v1128_v37 = vld [vmem:[#allocation2 + $0x110] sm:$0xff]  ;;  %v1130_v39 = vld [vmem:[#allocation2 + $0x138] sm:$0xff] }
  0x3b   : > { %730 = vst.msk [vmem:[#allocation2 + $0x348] sm:$0xff] %vm624_vm0, %v3293_v8  ;;  %731 = vst.msk [vmem:[#allocation2 + $0x350] sm:$0xff] %vm624_vm0, %v3293_v8  ;;  %1030 = vrot.lane.b32.xlu0 %v944_v5, %s3294_s11  ;;  %v1132_v41 = vld [vmem:[#allocation2 + $0x160] sm:$0xff]  ;;  %v1134_v43 = vld [vmem:[#allocation2 + $0x188] sm:$0xff] }
  0x3c   : > { %732 = vst.msk [vmem:[#allocation2 + $0x358] sm:$0xff] %vm624_vm0, %v3293_v8  ;;  %733 = vst.msk [vmem:[#allocation2 + $0x360] sm:$0xff] %vm624_vm0, %v3293_v8  ;;  %3157 = vmatmul.mubr.msk.f32.gmra.mrb[20].mxu0 %vm270_vm1, %v246_v6  ;;  %v877_v45 = vld [vmem:[#allocation2 + $0x170] sm:$0xff]  ;;  %v1308_v47 = vld [vmem:[#allocation2 + $0x1e0] sm:$0xff] }
  0x3d   : > { %734 = vst.msk [vmem:[#allocation2 + $0x368] sm:$0xff] %vm624_vm0, %v3293_v8  ;;  %735 = vst.msk [vmem:[#allocation2 + $0x370] sm:$0xff] %vm624_vm0, %v3293_v8  ;;  %3159 = vmatprep.mubr.msk.f32.mxu0 %vm270_vm1, %v247_v7  ;;  %v881_v49 = vld [vmem:[#allocation2 + $0x1c0] sm:$0xff]  ;;  %v1310_v51 = vld [vmem:[#allocation2 + $0x208] sm:$0xff] }
  0x3e   : > { %736 = vst.msk [vmem:[#allocation2 + $0x378] sm:$0xff] %vm624_vm0, %v3293_v8  ;;  %737 = vst.msk [vmem:[#allocation2 + $0x380] sm:$0xff] %vm624_vm0, %v3293_v8  ;;  %v1312_v53 = vld [vmem:[#allocation2 + $0x230] sm:$0xff]  ;;  %v1318_v59 = vld [vmem:[#allocation2 + $0x2a8] sm:$0xff] }
  0x3f   : > { %738 = vst.msk [vmem:[#allocation2 + $0x388] sm:$0xff] %vm624_vm0, %v3293_v8  ;;  %739 = vst.msk [vmem:[#allocation2 + $0x390] sm:$0xff] %vm624_vm0, %v3293_v8  ;;  %1179 = vrot.lane.b32.xlu0 %v1115_v10, %s3295_s12  ;;  %v1144_v56 = vld [vmem:[#allocation2 + $0x250] sm:$0xff]  ;;  %v1324_v2 = vld [vmem:[#allocation2 + $0x320] sm:$0xff] }
  0x40   : > { %740 = vst.msk [vmem:[#allocation2 + $0x398] sm:$0xff] %vm624_vm0, %v3293_v8  ;;  %741 = vst.msk [vmem:[#allocation2 + $0x3a0] sm:$0xff] %vm624_vm0, %v3293_v8  ;;  %3160 = vmatmul.mubr.msk.f32.gmra.mrb[22].mxu0 %vm270_vm1, %v248_v11  ;;  %v1320_v61 = vld [vmem:[#allocation2 + $0x2d0] sm:$0xff] }
  0x41   : > { %742 = vst.msk [vmem:[#allocation2 + $0x3a8] sm:$0xff] %vm624_vm0, %v3293_v8  ;;  %743 = vst.msk [vmem:[#allocation2 + $0x3b0] sm:$0xff] %vm624_vm0, %v3293_v8  ;;  %3162 = vmatprep.mubr.msk.f32.mxu0 %vm270_vm1, %v249_v12 }
  0x42   : > { %744 = vst.msk [vmem:[#allocation2 + $0x3b8] sm:$0xff] %vm624_vm0, %v3293_v8  ;;  %745 = vst.msk [vmem:[#allocation2 + $0x3c0] sm:$0xff] %vm624_vm0, %v3293_v8 }
  0x43   : > { %746 = vst.msk [vmem:[#allocation2 + $0x3c8] sm:$0xff] %vm624_vm0, %v3293_v8  ;;  %747 = vst.msk [vmem:[#allocation2 + $0x3d0] sm:$0xff] %vm624_vm0, %v3293_v8  ;;  %1183 = vrot.lane.b32.xlu0 %v1117_v15, %s3295_s12 }
  0x44   : > { %748 = vst.msk [vmem:[#allocation2 + $0x3d8] sm:$0xff] %vm624_vm0, %v3293_v8  ;;  %749 = vst.msk [vmem:[#allocation2 + $0x3e0] sm:$0xff] %vm624_vm0, %v3293_v8  ;;  %3163 = vmatmul.mubr.msk.f32.gmra.mrb[24].mxu0 %vm270_vm1, %v250_v16 }
  0x45   : > { %750 = vst.msk [vmem:[#allocation2 + $0x3e8] sm:$0xff] %vm624_vm0, %v3293_v8  ;;  %751 = vst.msk [vmem:[#allocation2 + $0x3f0] sm:$0xff] %vm624_vm0, %v3293_v8  ;;  %3165 = vmatprep.mubr.msk.f32.mxu0 %vm270_vm1, %v251_v17 }
  0x46   : > { %752 = vst.msk [vmem:[#allocation2 + $0x3f8] sm:$0xff] %vm624_vm0, %v3293_v8  ;;  %753 = vst.msk [vmem:[#allocation2 + $0x400] sm:$0xff] %vm624_vm0, %v3293_v8 }
  0x47   : > { %754 = vst.msk [vmem:[#allocation2 + $0x408] sm:$0xff] %vm624_vm0, %v3293_v8  ;;  %755 = vst.msk [vmem:[#allocation2 + $0x410] sm:$0xff] %vm624_vm0, %v3293_v8  ;;  %1187 = vrot.lane.b32.xlu0 %v1119_v20, %s3295_s12  ;;  %v1705_v20 = vld [vmem:[#allocation2 + $0x2c8] sm:$0xff] }
  0x48   : > { %756 = vst.msk [vmem:[#allocation2 + $0x418] sm:$0xff] %vm624_vm0, %v3293_v8  ;;  %757 = vst.msk [vmem:[#allocation2 + $0x420] sm:$0xff] %vm624_vm0, %v3293_v8  ;;  %3166 = vmatmul.mubr.msk.f32.gmra.mrb[26].mxu0 %vm270_vm1, %v252_v21 }
  0x49   : > { %758 = vst.msk [vmem:[#allocation2 + $0x428] sm:$0xff] %vm624_vm0, %v3293_v8  ;;  %759 = vst.msk [vmem:[#allocation2 + $0x430] sm:$0xff] %vm624_vm0, %v3293_v8  ;;  %3168 = vmatprep.mubr.msk.f32.mxu0 %vm270_vm1, %v253_v22  ;;  %v1888_v5 = vld [vmem:[#allocation2 + $0x3c0] sm:$0xff] }
  0x4a   : > { %760 = vst.msk [vmem:[#allocation2 + $0x438] sm:$0xff] %vm624_vm0, %v3293_v8  ;;  %761 = vst.msk [vmem:[#allocation2 + $0x440] sm:$0xff] %vm624_vm0, %v3293_v8 }
  0x4b   : > { %762 = vst.msk [vmem:[#allocation2 + $0x448] sm:$0xff] %vm624_vm0, %v3293_v8  ;;  %763 = vst.msk [vmem:[#allocation2 + $0x450] sm:$0xff] %vm624_vm0, %v3293_v8  ;;  %1191 = vrot.lane.b32.xlu0 %v1121_v25, %s3295_s12 }
  0x4c   : > { %764 = vst.msk [vmem:[#allocation2 + $0x458] sm:$0xff] %vm624_vm0, %v3293_v8  ;;  %765 = vst.msk [vmem:[#allocation2 + $0x460] sm:$0xff] %vm624_vm0, %v3293_v8  ;;  %3169 = vmatmul.mubr.msk.f32.gmra.mrb[28].mxu0 %vm270_vm1, %v254_v26 }
  0x4d   : > { %766 = vst.msk [vmem:[#allocation2 + $0x468] sm:$0xff] %vm624_vm0, %v3293_v8  ;;  %767 = vst.msk [vmem:[#allocation2 + $0x470] sm:$0xff] %vm624_vm0, %v3293_v8  ;;  %3171 = vmatprep.mubr.msk.f32.mxu0 %vm270_vm1, %v255_v27 }
  0x4e   : > { %768 = vst.msk [vmem:[#allocation2 + $0x478] sm:$0xff] %vm624_vm0, %v3293_v8  ;;  %769 = vst.msk [vmem:[#allocation2 + $0x480] sm:$0xff] %vm624_vm0, %v3293_v8  ;;  %v2277_v17 = vld [vmem:[#allocation2 + $0x408] sm:$0xff]  ;;  %v1892_v21 = vld [vmem:[#allocation2 + $0x410] sm:$0xff] }
  0x4f   : > { %770 = vst.msk [vmem:[#allocation2 + $0x488] sm:$0xff] %vm624_vm0, %v3293_v8  ;;  %771 = vst.msk [vmem:[#allocation2 + $0x490] sm:$0xff] %vm624_vm0, %v3293_v8  ;;  %1195 = vrot.lane.b32.xlu0 %v1123_v29, %s3295_s12 }
  0x50   : > { %772 = vst.msk [vmem:[#allocation2 + $0x498] sm:$0xff] %vm624_vm0, %v3293_v8  ;;  %773 = vst.msk [vmem:[#allocation2 + $0x4a0] sm:$0xff] %vm624_vm0, %v3293_v8  ;;  %3172 = vmatmul.mubr.msk.f32.gmra.mrb[30].mxu0 %vm270_vm1, %v256_v30  ;;  %v2279_v25 = vld [vmem:[#allocation2 + $0x430] sm:$0xff] }
  0x51   : > { %774 = vst.msk [vmem:[#allocation2 + $0x4a8] sm:$0xff] %vm624_vm0, %v3293_v8  ;;  %775 = vst.msk [vmem:[#allocation2 + $0x4b0] sm:$0xff] %vm624_vm0, %v3293_v8  ;;  %v1894_v29 = vld [vmem:[#allocation2 + $0x438] sm:$0xff] }
  0x52   : > { %776 = vst.msk [vmem:[#allocation2 + $0x4b8] sm:$0xff] %vm624_vm0, %v3293_v8  ;;  %777 = vst.msk [vmem:[#allocation2 + $0x4c0] sm:$0xff] %vm624_vm0, %v3293_v8 }
  0x53   : > { %778 = vst.msk [vmem:[#allocation2 + $0x4c8] sm:$0xff] %vm624_vm0, %v3293_v8  ;;  %779 = vst.msk [vmem:[#allocation2 + $0x4d0] sm:$0xff] %vm624_vm0, %v3293_v8  ;;  %1199 = vrot.lane.b32.xlu0 %v1125_v32, %s3295_s12  ;;  %v1707_v32 = vld [vmem:[#allocation2 + $0x2f0] sm:$0xff] }
  0x54   : > { %780 = vst.msk [vmem:[#allocation2 + $0x4d8] sm:$0xff] %vm624_vm0, %v3293_v8  ;;  %781 = vst.msk [vmem:[#allocation2 + $0x4e0] sm:$0xff] %vm624_vm0, %v3293_v8  ;;  %v1897_v12 = vld [vmem:[#allocation2 + $0x468] sm:$0xff] }
  0x55   : > { %782 = vst.msk [vmem:[#allocation2 + $0x4e8] sm:$0xff] %vm624_vm0, %v3293_v8  ;;  %783 = vst.msk [vmem:[#allocation2 + $0x4f0] sm:$0xff] %vm624_vm0, %v3293_v8  ;;  %v2282_v16 = vld [vmem:[#allocation2 + $0x478] sm:$0xff] }
  0x56   : > { %784 = vst.msk [vmem:[#allocation2 + $0x4f8] sm:$0xff] %vm624_vm0, %v3293_v8  ;;  %785 = vst.msk [vmem:[#allocation2 + $0x500] sm:$0xff] %vm624_vm0, %v3293_v8 }
  0x57   : > { %786 = vst.msk [vmem:[#allocation2 + $0x508] sm:$0xff] %vm624_vm0, %v3293_v8  ;;  %787 = vst.msk [vmem:[#allocation2 + $0x510] sm:$0xff] %vm624_vm0, %v3293_v8 }
  0x58   : > { %788 = vst.msk [vmem:[#allocation2 + $0x518] sm:$0xff] %vm624_vm0, %v3293_v8  ;;  %789 = vst.msk [vmem:[#allocation2 + $0x520] sm:$0xff] %vm624_vm0, %v3293_v8 }
  0x59   : > { %790 = vst.msk [vmem:[#allocation2 + $0x528] sm:$0xff] %vm624_vm0, %v3293_v8  ;;  %791 = vst.msk [vmem:[#allocation2 + $0x530] sm:$0xff] %vm624_vm0, %v3293_v8 }
  0x5a   : > { %792 = vst.msk [vmem:[#allocation2 + $0x538] sm:$0xff] %vm624_vm0, %v3293_v8  ;;  %793 = vst.msk [vmem:[#allocation2 + $0x540] sm:$0xff] %vm624_vm0, %v3293_v8 }
  0x5b   : > { %794 = vst.msk [vmem:[#allocation2 + $0x548] sm:$0xff] %vm624_vm0, %v3293_v8  ;;  %795 = vst.msk [vmem:[#allocation2 + $0x550] sm:$0xff] %vm624_vm0, %v3293_v8 }
  0x5c   : > { %796 = vst.msk [vmem:[#allocation2 + $0x558] sm:$0xff] %vm624_vm0, %v3293_v8  ;;  %797 = vst.msk [vmem:[#allocation2 + $0x560] sm:$0xff] %vm624_vm0, %v3293_v8 }
  0x5d   : > { %798 = vst.msk [vmem:[#allocation2 + $0x568] sm:$0xff] %vm624_vm0, %v3293_v8  ;;  %799 = vst.msk [vmem:[#allocation2 + $0x570] sm:$0xff] %vm624_vm0, %v3293_v8 }
  0x5e   : > { %800 = vst.msk [vmem:[#allocation2 + $0x578] sm:$0xff] %vm624_vm0, %v3293_v8  ;;  %801 = vst.msk [vmem:[#allocation2 + $0x580] sm:$0xff] %vm624_vm0, %v3293_v8 }
  0x5f   : > { %802 = vst.msk [vmem:[#allocation2 + $0x588] sm:$0xff] %vm624_vm0, %v3293_v8  ;;  %803 = vst.msk [vmem:[#allocation2 + $0x590] sm:$0xff] %vm624_vm0, %v3293_v8 }
  0x60   : > { %804 = vst.msk [vmem:[#allocation2 + $0x598] sm:$0xff] %vm624_vm0, %v3293_v8  ;;  %805 = vst.msk [vmem:[#allocation2 + $0x5a0] sm:$0xff] %vm624_vm0, %v3293_v8 }
  0x61   : > { %806 = vst.msk [vmem:[#allocation2 + $0x5a8] sm:$0xff] %vm624_vm0, %v3293_v8  ;;  %807 = vst.msk [vmem:[#allocation2 + $0x5b0] sm:$0xff] %vm624_vm0, %v3293_v8 }
  0x62   : > { %808 = vst.msk [vmem:[#allocation2 + $0x5b8] sm:$0xff] %vm624_vm0, %v3293_v8  ;;  %809 = vst.msk [vmem:[#allocation2 + $0x5c0] sm:$0xff] %vm624_vm0, %v3293_v8 }
  0x63   : > { %810 = vst.msk [vmem:[#allocation2 + $0x5c8] sm:$0xff] %vm624_vm0, %v3293_v8  ;;  %811 = vst.msk [vmem:[#allocation2 + $0x5d0] sm:$0xff] %vm624_vm0, %v3293_v8 }
  0x64   : > { %812 = vst.msk [vmem:[#allocation2 + $0x5d8] sm:$0xff] %vm624_vm0, %v3293_v8  ;;  %813 = vst.msk [vmem:[#allocation2 + $0x5e0] sm:$0xff] %vm624_vm0, %v3293_v8 }
  0x65   : > { %814 = vst.msk [vmem:[#allocation2 + $0x5e8] sm:$0xff] %vm624_vm0, %v3293_v8  ;;  %815 = vst.msk [vmem:[#allocation2 + $0x5f0] sm:$0xff] %vm624_vm0, %v3293_v8 }
  0x66   : > { %816 = vst.msk [vmem:[#allocation2 + $0x5f8] sm:$0xff] %vm624_vm0, %v3293_v8  ;;  %817 = vst.msk [vmem:[#allocation2 + $0x600] sm:$0xff] %vm624_vm0, %v3293_v8 }
  0x67   : > { %818 = vst.msk [vmem:[#allocation2 + $0x608] sm:$0xff] %vm624_vm0, %v3293_v8  ;;  %819 = vst.msk [vmem:[#allocation2 + $0x610] sm:$0xff] %vm624_vm0, %v3293_v8 }
  0x68   : > { %820 = vst.msk [vmem:[#allocation2 + $0x618] sm:$0xff] %vm624_vm0, %v3293_v8  ;;  %821 = vst.msk [vmem:[#allocation2 + $0x620] sm:$0xff] %vm624_vm0, %v3293_v8 }
  0x69   : > { %822 = vst.msk [vmem:[#allocation2 + $0x628] sm:$0xff] %vm624_vm0, %v3293_v8  ;;  %823 = vst.msk [vmem:[#allocation2 + $0x630] sm:$0xff] %vm624_vm0, %v3293_v8 }
  0x6a   : > { %824 = vst.msk [vmem:[#allocation2 + $0x638] sm:$0xff] %vm624_vm0, %v3293_v8  ;;  %890 = vst.msk [vmem:[#allocation3] sm:$0xff] %vm624_vm0, %v858_v34  ;;  %v943_v8 = vld [vmem:[#allocation2 + $0x1a4] sm:$0xff] }
  0x6b   : > { %891 = vst.msk [vmem:[#allocation3 + $0x8] sm:$0xff] %vm624_vm0, %v859_v36  ;;  %894 = vst.msk [vmem:[#allocation3 + $0x20] sm:$0xff] %vm624_vm0, %v862_v38  ;;  %1028 = vrot.lane.b32.xlu1 %v943_v8, %s3294_s11  ;;  %v1127_v34 = vld [vmem:[#allocation2 + $0x108] sm:$0xff]  ;;  %v1129_v36 = vld [vmem:[#allocation2 + $0x130] sm:$0xff] }
  0x6c   : > { %896 = vst.msk [vmem:[#allocation3 + $0x30] sm:$0xff] %vm624_vm0, %v864_v40  ;;  %898 = vst.msk [vmem:[#allocation3 + $0x40] sm:$0xff] %vm624_vm0, %v866_v42  ;;  %1203 = vrot.lane.b32.xlu0 %v1127_v34, %s3295_s12  ;;  %v1131_v38 = vld [vmem:[#allocation2 + $0x158] sm:$0xff]  ;;  %v1133_v40 = vld [vmem:[#allocation2 + $0x180] sm:$0xff] }
  0x6d   : > { %900 = vst.msk [vmem:[#allocation3 + $0x50] sm:$0xff] %vm624_vm0, %v868_v44  ;;  %902 = vst.msk [vmem:[#allocation3 + $0x60] sm:$0xff] %vm624_vm0, %v870_v46  ;;  %v1135_v42 = vld [vmem:[#allocation2 + $0x1a8] sm:$0xff]  ;;  %v1137_v44 = vld [vmem:[#allocation2 + $0x1d0] sm:$0xff] }
  0x6e   : > { %904 = vst.msk [vmem:[#allocation3 + $0x70] sm:$0xff] %vm624_vm0, %v872_v48  ;;  %906 = vst.msk [vmem:[#allocation3 + $0x80] sm:$0xff] %vm624_vm0, %v874_v50  ;;  %v1136_v46 = vld [vmem:[#allocation2 + $0x1b0] sm:$0xff]  ;;  %v879_v48 = vld [vmem:[#allocation2 + $0x198] sm:$0xff] }
  0x6f   : > { %908 = vst.msk [vmem:[#allocation3 + $0x90] sm:$0xff] %vm624_vm0, %v876_v52  ;;  %892 = vst.msk [vmem:[#allocation3 + $0x10] sm:$0xff] %vm624_vm0, %v860_v54  ;;  %1032 = vrot.lane.b32.xlu1 %v945_v13, %s3294_s11  ;;  %v1138_v50 = vld [vmem:[#allocation2 + $0x1d8] sm:$0xff]  ;;  %v1140_v52 = vld [vmem:[#allocation2 + $0x200] sm:$0xff] }
  0x70   : > { %910 = vst.msk [vmem:[#allocation3 + $0xa0] sm:$0xff] %vm624_vm0, %v878_v55  ;;  %893 = vst.msk [vmem:[#allocation3 + $0x18] sm:$0xff] %vm624_vm0, %v861_v57  ;;  %1207 = vrot.lane.b32.xlu0 %v1129_v36, %s3295_s12  ;;  %v1142_v54 = vld [vmem:[#allocation2 + $0x228] sm:$0xff]  ;;  %v1314_v55 = vld [vmem:[#allocation2 + $0x258] sm:$0xff] }
  0x71   : > { %912 = vst.msk [vmem:[#allocation3 + $0xb0] sm:$0xff] %vm624_vm0, %v880_v58  ;;  %895 = vst.msk [vmem:[#allocation3 + $0x28] sm:$0xff] %vm624_vm0, %v863_v60  ;;  %v1316_v57 = vld [vmem:[#allocation2 + $0x280] sm:$0xff]  ;;  %v1146_v58 = vld [vmem:[#allocation2 + $0x278] sm:$0xff] }
  0x72   : > { %897 = vst.msk [vmem:[#allocation3 + $0x38] sm:$0xff] %vm624_vm0, %v865_v63  ;;  %899 = vst.msk [vmem:[#allocation3 + $0x48] sm:$0xff] %vm624_vm0, %v867_v4  ;;  %v1322_v63 = vld [vmem:[#allocation2 + $0x2f8] sm:$0xff]  ;;  %v1703_v8 = vld [vmem:[#allocation2 + $0x2a0] sm:$0xff] }
  0x73   : > { %901 = vst.msk [vmem:[#allocation3 + $0x58] sm:$0xff] %vm624_vm0, %v869_v9  ;;  %903 = vst.msk [vmem:[#allocation3 + $0x68] sm:$0xff] %vm624_vm0, %v871_v14  ;;  %1181 = vrot.lane.b32.xlu1 %v1116_v18, %s3295_s12  ;;  %v2275_v9 = vld [vmem:[#allocation2 + $0x3e0] sm:$0xff]  ;;  %v1890_v13 = vld [vmem:[#allocation2 + $0x3e8] sm:$0xff] }
  0x74   : > { %905 = vst.msk [vmem:[#allocation3 + $0x78] sm:$0xff] %vm624_vm0, %v873_v19  ;;  %907 = vst.msk [vmem:[#allocation3 + $0x88] sm:$0xff] %vm624_vm0, %v875_v24  ;;  %1211 = vrot.lane.b32.xlu0 %v1131_v38, %s3295_s12  ;;  %v1899_v24 = vld [vmem:[#allocation2 + $0x490] sm:$0xff]  ;;  %v1901_v36 = vld [vmem:[#allocation2 + $0x4b8] sm:$0xff] }
  0x75   : > { %909 = vst.msk [vmem:[#allocation3 + $0x98] sm:$0xff] %vm624_vm0, %v877_v45  ;;  %911 = vst.msk [vmem:[#allocation3 + $0xa8] sm:$0xff] %vm624_vm0, %v879_v48 }
  0x76   : > { %913 = vst.msk [vmem:[#allocation3 + $0xb8] sm:$0xff] %vm624_vm0, %v881_v49  ;;  %v1898_v49 = vld [vmem:[#allocation2 + $0x488] sm:$0xff] }
  0x77   : > { %1185 = vrot.lane.b32.xlu1 %v1118_v23, %s3295_s12 }
  0x78   : > { %1215 = vrot.lane.b32.xlu0 %v1133_v40, %s3295_s12  ;;  %v2089_v40 = vld [vmem:[#allocation2 + $0x46c] sm:$0xff] }
  0x7b   : > { %1189 = vrot.lane.b32.xlu1 %v1120_v28, %s3295_s12  ;;  %v2284_v28 = vld [vmem:[#allocation2 + $0x4a0] sm:$0xff] }
  0x7c   : > { %1219 = vrot.lane.b32.xlu0 %v1135_v42, %s3295_s12 }
  0x7f   : > { %1193 = vrot.lane.b32.xlu1 %v1122_v31, %s3295_s12 }
  0x80   : > { %1223 = vrot.lane.b32.xlu0 %v1137_v44, %s3295_s12 }
  0x81   : > { %v987_v60 = vpop.permute.xlu0 %986 }
  0x82   : > { %1083 = vst.msk [vmem:[#allocation3] sm:$0xff] %vm1082_vm2, %v987_v60 }
  0x83   : > { %1197 = vrot.lane.b32.xlu1 %v1124_v33, %s3295_s12  ;;  %v2281_v33 = vld [vmem:[#allocation2 + $0x458] sm:$0xff] }
  0x84   : > { %1372 = vrot.lane.b32.xlu0 %v1308_v47, %s3296_s13 }
  0x85   : > { %v989_v62 = vpop.permute.xlu0 %988  ;;  %v991_v0 = vpop.permute.xlu1 %990 }
  0x86   : > { %1084 = vst.msk [vmem:[#allocation3 + $0x8] sm:$0xff] %vm1082_vm2, %v989_v62  ;;  %1085 = vst.msk [vmem:[#allocation3 + $0x10] sm:$0xff] %vm1082_vm2, %v991_v0 }
  0x87   : > { %1201 = vrot.lane.b32.xlu1 %v1126_v35, %s3295_s12 }
  0x88   : > { %1376 = vrot.lane.b32.xlu0 %v1310_v51, %s3296_s13 }
  0x89   : > { %v995_v1 = vpop.permute.xlu0 %994  ;;  %v993_v3 = vpop.permute.xlu1 %992 }
  0x8a   : > { %1087 = vst.msk [vmem:[#allocation3 + $0x20] sm:$0xff] %vm1082_vm2, %v995_v1  ;;  %1086 = vst.msk [vmem:[#allocation3 + $0x18] sm:$0xff] %vm1082_vm2, %v993_v3 }
  0x8b   : > { %1205 = vrot.lane.b32.xlu1 %v1128_v37, %s3295_s12  ;;  %v1896_v37 = vld [vmem:[#allocation2 + $0x460] sm:$0xff] }
  0x8c   : > { %1380 = vrot.lane.b32.xlu0 %v1312_v53, %s3296_s13 }
  0x8d   : > { %v999_v4 = vpop.permute.xlu0 %998  ;;  %v997_v6 = vpop.permute.xlu1 %996 }
  0x8e   : > { %1089 = vst.msk [vmem:[#allocation3 + $0x30] sm:$0xff] %vm1082_vm2, %v999_v4  ;;  %1088 = vst.msk [vmem:[#allocation3 + $0x28] sm:$0xff] %vm1082_vm2, %v997_v6 }
  0x8f   : > { %1209 = vrot.lane.b32.xlu1 %v1130_v39, %s3295_s12 }
  0x90   : > { %1384 = vrot.lane.b32.xlu0 %v1314_v55, %s3296_s13  ;;  %v2092_v55 = vld [vmem:[#allocation2 + $0x49c] sm:$0xff] }
  0x91   : > { %v1003_v7 = vpop.permute.xlu0 %1002  ;;  %v1001_v10 = vpop.permute.xlu1 %1000 }
  0x92   : > { %1091 = vst.msk [vmem:[#allocation3 + $0x40] sm:$0xff] %vm1082_vm2, %v1003_v7  ;;  %1090 = vst.msk [vmem:[#allocation3 + $0x38] sm:$0xff] %vm1082_vm2, %v1001_v10 }
  0x93   : > { %1213 = vrot.lane.b32.xlu1 %v1132_v41, %s3295_s12 }
  0x94   : > { %1388 = vrot.lane.b32.xlu0 %v1316_v57, %s3296_s13 }
  0x95   : > { %v1007_v11 = vpop.permute.xlu0 %1006  ;;  %v1005_v14 = vpop.permute.xlu1 %1004 }
  0x96   : > { %1093 = vst.msk [vmem:[#allocation3 + $0x50] sm:$0xff] %vm1082_vm2, %v1007_v11  ;;  %1092 = vst.msk [vmem:[#allocation3 + $0x48] sm:$0xff] %vm1082_vm2, %v1005_v14 }
  0x97   : > { %1217 = vrot.lane.b32.xlu1 %v1134_v43, %s3295_s12  ;;  %v2090_v43 = vld [vmem:[#allocation2 + $0x474] sm:$0xff] }
  0x98   : > { %1392 = vrot.lane.b32.xlu0 %v1318_v59, %s3296_s13 }
  0x99   : > { %v1011_v15 = vpop.permute.xlu0 %1010  ;;  %v1009_v18 = vpop.permute.xlu1 %1008 }
  0x9a   : > { %1095 = vst.msk [vmem:[#allocation3 + $0x60] sm:$0xff] %vm1082_vm2, %v1011_v15  ;;  %1094 = vst.msk [vmem:[#allocation3 + $0x58] sm:$0xff] %vm1082_vm2, %v1009_v18 }
  0x9b   : > { %1221 = vrot.lane.b32.xlu1 %v1136_v46, %s3295_s12  ;;  %v2283_v46 = vld [vmem:[#allocation2 + $0x480] sm:$0xff] }
  0x9c   : > { %1396 = vrot.lane.b32.xlu0 %v1320_v61, %s3296_s13  ;;  %v1900_v61 = vld [vmem:[#allocation2 + $0x4b0] sm:$0xff] }
  0x9d   : > { %v1015_v19 = vpop.permute.xlu0 %1014  ;;  %v1013_v22 = vpop.permute.xlu1 %1012 }
  0x9e   : > { %1097 = vst.msk [vmem:[#allocation3 + $0x70] sm:$0xff] %vm1082_vm2, %v1015_v19  ;;  %1096 = vst.msk [vmem:[#allocation3 + $0x68] sm:$0xff] %vm1082_vm2, %v1013_v22 }
  0x9f   : > { %1225 = vrot.lane.b32.xlu1 %v1138_v50, %s3295_s12 }
  0xa0   : > { %1400 = vrot.lane.b32.xlu0 %v1322_v63, %s3296_s13 }
  0xa1   : > { %v1019_v23 = vpop.permute.xlu0 %1018  ;;  %v1017_v26 = vpop.permute.xlu1 %1016 }
  0xa2   : > { %1099 = vst.msk [vmem:[#allocation3 + $0x80] sm:$0xff] %vm1082_vm2, %v1019_v23  ;;  %1098 = vst.msk [vmem:[#allocation3 + $0x78] sm:$0xff] %vm1082_vm2, %v1017_v26  ;;  %v882_v23 = vld [vmem:[#allocation2 + $0x1e0] sm:$0xff] }
  0xa3   : > { %1229 = vrot.lane.b32.xlu1 %v1140_v52, %s3295_s12  ;;  %914 = vst.msk [vmem:[#allocation3 + $0xc0] sm:$0xff] %vm624_vm0, %v882_v23 }
  0xa4   : > { %1404 = vrot.lane.b32.xlu0 %v1324_v2, %s3296_s13 }
  0xa5   : > { %v1023_v27 = vpop.permute.xlu0 %1022  ;;  %v1021_v30 = vpop.permute.xlu1 %1020 }
  0xa6   : > { %1101 = vst.msk [vmem:[#allocation3 + $0x90] sm:$0xff] %vm1082_vm2, %v1023_v27  ;;  %1100 = vst.msk [vmem:[#allocation3 + $0x88] sm:$0xff] %vm1082_vm2, %v1021_v30 }
  0xa7   : > { %1233 = vrot.lane.b32.xlu1 %v1142_v54, %s3295_s12 }
  0xa8   : > { %1952 = vrot.lane.b32.xlu0 %v1888_v5, %s3298_s15 }
  0xa9   : > { %v1027_v31 = vpop.permute.xlu0 %1026  ;;  %v1025_v34 = vpop.permute.xlu1 %1024 }
  0xaa   : > { %1103 = vst.msk [vmem:[#allocation3 + $0xa0] sm:$0xff] %vm1082_vm2, %v1027_v31  ;;  %1102 = vst.msk [vmem:[#allocation3 + $0x98] sm:$0xff] %vm1082_vm2, %v1025_v34 }
  0xab   : > { %1237 = vrot.lane.b32.xlu1 %v1144_v56, %s3295_s12 }
  0xac   : > { %2340 = vrot.lane.b32.xlu0 %v2275_v9, %s3299_s16  ;;  %v4011_v9 = vld [vmem:[%s4846_s2] ss:$0 sm:$0xff] }
  0xad   : > { %v1031_v35 = vpop.permute.xlu0 %1030 }
  0xae   : > { %1105 = vst.msk [vmem:[#allocation3 + $0xb0] sm:$0xff] %vm1082_vm2, %v1031_v35 }
  0xaf   : > { %1241 = vrot.lane.b32.xlu1 %v1146_v58, %s3295_s12 }
  0xb0   : > { %1956 = vrot.lane.b32.xlu0 %v1890_v13, %s3298_s15 }
  0xb1   : > { %v1180_v39 = vpop.permute.xlu0 %1179 }
  0xb2   : > { %1276 = vst.msk [vmem:[#allocation3] sm:$0xff] %vm1275_vm3, %v1180_v39 }
  0xb3   : > { %1760 = vrot.lane.b32.xlu1 %v1140_v52, %s3297_s14  ;;  %v2091_v52 = vld [vmem:[#allocation2 + $0x494] sm:$0xff] }
  0xb4   : > { %2344 = vrot.lane.b32.xlu0 %v2277_v17, %s3299_s16 }
  0xb5   : > { %v1184_v42 = vpop.permute.xlu0 %1183 }
  0xb6   : > { %1278 = vst.msk [vmem:[#allocation3 + $0x10] sm:$0xff] %vm1275_vm3, %v1184_v42 }
  0xb7   : > { %1764 = vrot.lane.b32.xlu1 %v1142_v54, %s3297_s14 }
  0xb8   : > { %1960 = vrot.lane.b32.xlu0 %v1892_v21, %s3298_s15 }
  0xb9   : > { %v1188_v45 = vpop.permute.xlu0 %1187 }
  0xba   : > { %1280 = vst.msk [vmem:[#allocation3 + $0x20] sm:$0xff] %vm1275_vm3, %v1188_v45 }
  0xbb   : > { %1768 = vrot.lane.b32.xlu1 %v1144_v56, %s3297_s14 }
  0xbc   : > { %2348 = vrot.lane.b32.xlu0 %v2279_v25, %s3299_s16 }
  0xbd   : > { %v1192_v48 = vpop.permute.xlu0 %1191 }
  0xbe   : > { %1282 = vst.msk [vmem:[#allocation3 + $0x30] sm:$0xff] %vm1275_vm3, %v1192_v48 }
  0xbf   : > { %1772 = vrot.lane.b32.xlu1 %v1146_v58, %s3297_s14  ;;  %v2285_v58 = vld [vmem:[#allocation2 + $0x4a8] sm:$0xff] }
  0xc0   : > { %1964 = vrot.lane.b32.xlu0 %v1894_v29, %s3298_s15 }
  0xc1   : > { %v1196_v51 = vpop.permute.xlu0 %1195 }
  0xc2   : > { %1284 = vst.msk [vmem:[#allocation3 + $0x40] sm:$0xff] %vm1275_vm3, %v1196_v51 }
  0xc3   : > { %1776 = vrot.lane.b32.xlu1 %v1703_v8, %s3297_s14 }
  0xc4   : > { %2352 = vrot.lane.b32.xlu0 %v2281_v33, %s3299_s16 }
  0xc5   : > { %v1200_v54 = vpop.permute.xlu0 %1199 }
  0xc6   : > { %1286 = vst.msk [vmem:[#allocation3 + $0x50] sm:$0xff] %vm1275_vm3, %v1200_v54 }
  0xc7   : > { %1970 = vrot.lane.b32.xlu1 %v1897_v12, %s3298_s15 }
  0xc8   : > { %1968 = vrot.lane.b32.xlu0 %v1896_v37, %s3298_s15 }
  0xcb   : > { %2354 = vrot.lane.b32.xlu1 %v2282_v16, %s3299_s16 }
  0xcc   : > { %2161 = vrot.lane.b32.xlu0 %v2089_v40, %s3300_s17 }
  0xcf   : > { %1780 = vrot.lane.b32.xlu1 %v1705_v20, %s3297_s14 }
  0xd0   : > { %2163 = vrot.lane.b32.xlu0 %v2090_v43, %s3300_s17 }
  0xd3   : > { %1974 = vrot.lane.b32.xlu1 %v1899_v24, %s3298_s15 }
  0xd4   : > { %2356 = vrot.lane.b32.xlu0 %v2283_v46, %s3299_s16 }
  0xd7   : > { %2358 = vrot.lane.b32.xlu1 %v2284_v28, %s3299_s16 }
  0xd8   : > { %1972 = vrot.lane.b32.xlu0 %v1898_v49, %s3298_s15 }
  0xdb   : > { %1784 = vrot.lane.b32.xlu1 %v1707_v32, %s3297_s14 }
  0xdc   : > { %2165 = vrot.lane.b32.xlu0 %v2091_v52, %s3300_s17 }
  0xdd   : > { %v1029_v38 = vpop.permute.xlu1 %1028 }
  0xde   : > { %1104 = vst.msk [vmem:[#allocation3 + $0xa8] sm:$0xff] %vm1082_vm2, %v1029_v38  ;;  %v1204_v57 = vpop.permute.xlu0 %1203 }
  0xdf   : > { %1978 = vrot.lane.b32.xlu1 %v1901_v36, %s3298_s15  ;;  %1288 = vst.msk [vmem:[#allocation3 + $0x60] sm:$0xff] %vm1275_vm3, %v1204_v57 }
  0xe0   : > { %2167 = vrot.lane.b32.xlu0 %v2092_v55, %s3300_s17 }
  0xe1   : > { %v1033_v41 = vpop.permute.xlu1 %1032 }
  0xe2   : > { %1106 = vst.msk [vmem:[#allocation3 + $0xb8] sm:$0xff] %vm1082_vm2, %v1033_v41  ;;  %v1208_v60 = vpop.permute.xlu0 %1207 }
  0xe3   : > { %1290 = vst.msk [vmem:[#allocation3 + $0x70] sm:$0xff] %vm1275_vm3, %v1208_v60 }
  0xe4   : > { %2360 = vrot.lane.b32.xlu0 %v2285_v58, %s3299_s16 }
  0xe5   : > { %v1182_v44 = vpop.permute.xlu1 %1181 }
  0xe6   : > { %1277 = vst.msk [vmem:[#allocation3 + $0x8] sm:$0xff] %vm1275_vm3, %v1182_v44  ;;  %v1212_v63 = vpop.permute.xlu0 %1211 }
  0xe7   : > { %1292 = vst.msk [vmem:[#allocation3 + $0x80] sm:$0xff] %vm1275_vm3, %v1212_v63  ;;  %v3128_v11 = vpop.f32.mrb[0].mxu0 }
  0xe8   : > { %1976 = vrot.lane.b32.xlu0 %v1900_v61, %s3298_s15  ;;  %v439_v12 = vadd.f32 %v3128_v11, %v4011_v9  ;;  %v433_v13 = vpop.f32.mrb[1].mxu0 }
  0xe9   : > { %v1186_v47 = vpop.permute.xlu1 %1185  ;;  %v434_v14 = vadd.f32 %v4011_v9, %v433_v13 }
  0xea   : > { %1279 = vst.msk [vmem:[#allocation3 + $0x18] sm:$0xff] %vm1275_vm3, %v1186_v47  ;;  %v1216_v1 = vpop.permute.xlu0 %1215  ;;  %v593_v16 = vmax.f32 %v439_v12, 0.0 }
  0xeb   : > { %1294 = vst.msk [vmem:[#allocation3 + $0x90] sm:$0xff] %vm1275_vm3, %v1216_v1  ;;  %v592_v17 = vmax.f32 %v434_v14, 0.0  ;;  %v3131_v18 = vpop.f32.mrb[2].mxu0 }
  0xec   : > { %827 = vst.msk [vmem:[#allocation2 + $0x1f4] sm:$0xff] %vm624_vm0, %v593_v16  ;;  %v449_v19 = vadd.f32 %v3131_v18, %v4011_v9  ;;  %v443_v20 = vpop.f32.mrb[3].mxu0 }
  0xed   : > { %v1190_v50 = vpop.permute.xlu1 %1189  ;;  %826 = vst.msk [vmem:[#allocation2 + $0x1ec] sm:$0xff] %vm624_vm0, %v592_v17  ;;  %v444_v21 = vadd.f32 %v4011_v9, %v443_v20 }
  0xee   : > { %1281 = vst.msk [vmem:[#allocation3 + $0x28] sm:$0xff] %vm1275_vm3, %v1190_v50  ;;  %v1220_v3 = vpop.permute.xlu0 %1219  ;;  %v595_v24 = vmax.f32 %v449_v19, 0.0 }
  0xef   : > { %1296 = vst.msk [vmem:[#allocation3 + $0xa0] sm:$0xff] %vm1275_vm3, %v1220_v3  ;;  %v594_v25 = vmax.f32 %v444_v21, 0.0  ;;  %v3134_v26 = vpop.f32.mrb[4].mxu0  ;;  %v886_v21 = vld [vmem:[#allocation2 + $0x230] sm:$0xff] }
  0xf0   : > { %829 = vst.msk [vmem:[#allocation2 + $0x21c] sm:$0xff] %vm624_vm0, %v595_v24  ;;  %v459_v27 = vadd.f32 %v3134_v26, %v4011_v9  ;;  %v453_v28 = vpop.f32.mrb[5].mxu0  ;;  %918 = vst.msk [vmem:[#allocation3 + $0xe0] sm:$0xff] %vm624_vm0, %v886_v21 }
  0xf1   : > { %v1194_v53 = vpop.permute.xlu1 %1193  ;;  %828 = vst.msk [vmem:[#allocation2 + $0x214] sm:$0xff] %vm624_vm0, %v594_v25  ;;  %v454_v29 = vadd.f32 %v4011_v9, %v453_v28 }
  0xf2   : > { %1283 = vst.msk [vmem:[#allocation3 + $0x38] sm:$0xff] %vm1275_vm3, %v1194_v53  ;;  %v1224_v5 = vpop.permute.xlu0 %1223  ;;  %v597_v31 = vmax.f32 %v459_v27, 0.0 }
  0xf3   : > { %1298 = vst.msk [vmem:[#allocation3 + $0xb0] sm:$0xff] %vm1275_vm3, %v1224_v5  ;;  %v1139_v32 = vld [vmem:[#allocation2 + $0x1f8] sm:$0xff]  ;;  %v596_v34 = vmax.f32 %v454_v29, 0.0  ;;  %v3137_v35 = vpop.f32.mrb[6].mxu0 }
  0xf4   : > { %v947_v33 = vld [vmem:[#allocation2 + $0x1f4] sm:$0xff]  ;;  %1227 = vrot.lane.b32.xlu0 %v1139_v32, %s3295_s12  ;;  %v1309_v36 = vld [vmem:[#allocation2 + $0x1e8] sm:$0xff]  ;;  %831 = vst.msk [vmem:[#allocation2 + $0x244] sm:$0xff] %vm624_vm0, %v597_v31  ;;  %v469_v37 = vadd.f32 %v3137_v35, %v4011_v9  ;;  %v463_v38 = vpop.f32.mrb[7].mxu0 }
  0xf5   : > { %v1198_v56 = vpop.permute.xlu1 %1197  ;;  %1036 = vrot.lane.b32.xlu1 %v947_v33, %s3294_s11  ;;  %830 = vst.msk [vmem:[#allocation2 + $0x23c] sm:$0xff] %vm624_vm0, %v596_v34  ;;  %v464_v40 = vadd.f32 %v4011_v9, %v463_v38  ;;  %915 = vst.msk [vmem:[#allocation3 + $0xc8] sm:$0xff] %vm624_vm0, %v1309_v36  ;;  %v946_v50 = vld [vmem:[#allocation2 + $0x1ec] sm:$0xff] }
  0xf6   : > { %1285 = vst.msk [vmem:[#allocation3 + $0x48] sm:$0xff] %vm1275_vm3, %v1198_v56  ;;  %v1373_v7 = vpop.permute.xlu0 %1372  ;;  %v599_v41 = vmax.f32 %v469_v37, 0.0 }
  0xf7   : > { %1469 = vst.msk [vmem:[#allocation3] sm:$0xff] %vm1468_vm4, %v1373_v7  ;;  %v598_v42 = vmax.f32 %v464_v40, 0.0  ;;  %v3140_v43 = vpop.f32.mrb[8].mxu0  ;;  %v949_v56 = vld [vmem:[#allocation2 + $0x21c] sm:$0xff] }
  0xf8   : > { %1758 = vrot.lane.b32.xlu0 %v1139_v32, %s3297_s14  ;;  %v1311_v44 = vld [vmem:[#allocation2 + $0x210] sm:$0xff]  ;;  %833 = vst.msk [vmem:[#allocation2 + $0x26c] sm:$0xff] %vm624_vm0, %v599_v41  ;;  %v479_v45 = vadd.f32 %v3140_v43, %v4011_v9  ;;  %v473_v46 = vpop.f32.mrb[9].mxu0  ;;  %v1696_v5 = vld [vmem:[#allocation2 + $0x220] sm:$0xff] }
  0xf9   : > { %v1202_v59 = vpop.permute.xlu1 %1201  ;;  %1567 = vrot.lane.b32.xlu1 %v947_v33, %s3301_s22  ;;  %832 = vst.msk [vmem:[#allocation2 + $0x264] sm:$0xff] %vm624_vm0, %v598_v42  ;;  %v474_v48 = vadd.f32 %v4011_v9, %v473_v46  ;;  %917 = vst.msk [vmem:[#allocation3 + $0xd8] sm:$0xff] %vm624_vm0, %v1311_v44  ;;  %v1503_v23 = vld [vmem:[#allocation2 + $0x214] sm:$0xff] }
  0xfa   : > { %1287 = vst.msk [vmem:[#allocation3 + $0x58] sm:$0xff] %vm1275_vm3, %v1202_v59  ;;  %v1377_v10 = vpop.permute.xlu0 %1376  ;;  %v601_v49 = vmax.f32 %v479_v45, 0.0  ;;  %v884_v59 = vld [vmem:[#allocation2 + $0x208] sm:$0xff] }
  0xfb   : > { %1471 = vst.msk [vmem:[#allocation3 + $0x10] sm:$0xff] %vm1468_vm4, %v1377_v10  ;;  %v600_v51 = vmax.f32 %v474_v48, 0.0  ;;  %v3143_v52 = vpop.f32.mrb[10].mxu0  ;;  %v951_v29 = vld [vmem:[#allocation2 + $0x244] sm:$0xff] }
  0xfc   : > { %1034 = vrot.lane.b32.xlu0 %v946_v50, %s3294_s11  ;;  %v4047_v53 = vld [vmem:[#allocation2 + $0x238] sm:$0xff]  ;;  %835 = vst.msk [vmem:[#allocation2 + $0x294] sm:$0xff] %vm624_vm0, %v601_v49  ;;  %v489_v54 = vadd.f32 %v3143_v52, %v4011_v9  ;;  %v483_v55 = vpop.f32.mrb[11].mxu0  ;;  %916 = vst.msk [vmem:[#allocation3 + $0xd0] sm:$0xff] %vm624_vm0, %v884_v59 }
  0xfd   : > { %v1206_v62 = vpop.permute.xlu1 %1205  ;;  %1374 = vrot.lane.b32.xlu1 %v1309_v36, %s3296_s13  ;;  %834 = vst.msk [vmem:[#allocation2 + $0x28c] sm:$0xff] %vm624_vm0, %v600_v51  ;;  %v484_v58 = vadd.f32 %v4011_v9, %v483_v55  ;;  %919 = vst.msk [vmem:[#allocation3 + $0xe8] sm:$0xff] %vm624_vm0, %v4047_v53  ;;  %v950_v49 = vld [vmem:[#allocation2 + $0x23c] sm:$0xff] }
  0xfe   : > { %1289 = vst.msk [vmem:[#allocation3 + $0x68] sm:$0xff] %vm1275_vm3, %v1206_v62  ;;  %v1381_v15 = vpop.permute.xlu0 %1380  ;;  %v603_v60 = vmax.f32 %v489_v54, 0.0 }
  0xff   : > { %1473 = vst.msk [vmem:[#allocation3 + $0x20] sm:$0xff] %vm1468_vm4, %v1381_v15  ;;  %v602_v61 = vmax.f32 %v484_v58, 0.0  ;;  %v3146_v62 = vpop.f32.mrb[12].mxu0 }
 0x100   : > { %1565 = vrot.lane.b32.xlu0 %v946_v50, %s3301_s22  ;;  %837 = vst.msk [vmem:[#allocation2 + $0x2bc] sm:$0xff] %vm624_vm0, %v603_v60  ;;  %v499_v63 = vadd.f32 %v3146_v62, %v4011_v9  ;;  %v4061_v1 = vld [vmem:[#allocation2 + $0x260] sm:$0xff] }
 0x101   : > { %v1210_v0 = vpop.permute.xlu1 %1209  ;;  %1040 = vrot.lane.b32.xlu1 %v949_v56, %s3294_s11  ;;  %836 = vst.msk [vmem:[#allocation2 + $0x2b4] sm:$0xff] %vm624_vm0, %v602_v61  ;;  %921 = vst.msk [vmem:[#allocation3 + $0xf8] sm:$0xff] %vm624_vm0, %v4061_v1 }
 0x102   : > { %1291 = vst.msk [vmem:[#allocation3 + $0x78] sm:$0xff] %vm1275_vm3, %v1210_v0  ;;  %v1385_v22 = vpop.permute.xlu0 %1384  ;;  %v493_v0 = vpop.f32.mrb[13].mxu0 }
 0x103   : > { %1475 = vst.msk [vmem:[#allocation3 + $0x30] sm:$0xff] %vm1468_vm4, %v1385_v22  ;;  %v494_v3 = vadd.f32 %v4011_v9, %v493_v0  ;;  %v3149_v7 = vpop.f32.mrb[14].mxu0 }
 0x104   : > { %1231 = vrot.lane.b32.xlu0 %v1696_v5, %s3295_s12  ;;  %v503_v10 = vpop.f32.mrb[15].mxu0 }
 0x105   : > { %v1214_v2 = vpop.permute.xlu1 %1213  ;;  %1762 = vrot.lane.b32.xlu1 %v1696_v5, %s3297_s14  ;;  %v504_v13 = vadd.f32 %v4011_v9, %v503_v10 }
 0x106   : > { %1293 = vst.msk [vmem:[#allocation3 + $0x88] sm:$0xff] %vm1275_vm3, %v1214_v2  ;;  %v1389_v30 = vpop.permute.xlu0 %1388 }
 0x107   : > { %1477 = vst.msk [vmem:[#allocation3 + $0x40] sm:$0xff] %vm1468_vm4, %v1389_v30  ;;  %v606_v15 = vmax.f32 %v504_v13, 0.0  ;;  %v3152_v16 = vpop.f32.mrb[16].mxu0  ;;  %v1143_v30 = vld [vmem:[#allocation2 + $0x248] sm:$0xff] }
 0x108   : > { %1571 = vrot.lane.b32.xlu0 %v949_v56, %s3301_s22  ;;  %v519_v17 = vadd.f32 %v3152_v16, %v4011_v9  ;;  %v513_v18 = vpop.f32.mrb[17].mxu0 }
 0x109   : > { %v1218_v4 = vpop.permute.xlu1 %1217  ;;  %1378 = vrot.lane.b32.xlu1 %v1311_v44, %s3296_s13  ;;  %840 = vst.msk [vmem:[#allocation2 + $0x304] sm:$0xff] %vm624_vm0, %v606_v15  ;;  %v514_v20 = vadd.f32 %v4011_v9, %v513_v18 }
 0x10a   : > { %1295 = vst.msk [vmem:[#allocation3 + $0x98] sm:$0xff] %vm1275_vm3, %v1218_v4  ;;  %v1393_v39 = vpop.permute.xlu0 %1392  ;;  %v605_v4 = vmax.f32 %v499_v63, 0.0  ;;  %v609_v22 = vmax.f32 %v519_v17, 0.0  ;;  %v953_v63 = vld [vmem:[#allocation2 + $0x26c] sm:$0xff] }
 0x10b   : > { %1479 = vst.msk [vmem:[#allocation3 + $0x50] sm:$0xff] %vm1468_vm4, %v1393_v39  ;;  %v608_v24 = vmax.f32 %v514_v20, 0.0  ;;  %v3155_v25 = vpop.f32.mrb[18].mxu0 }
 0x10c   : > { %839 = vst.msk [vmem:[#allocation2 + $0x2e4] sm:$0xff] %vm624_vm0, %v605_v4  ;;  %1038 = vrot.lane.b32.xlu0 %v1503_v23, %s3294_s11  ;;  %843 = vst.msk [vmem:[#allocation2 + $0x334] sm:$0xff] %vm624_vm0, %v609_v22  ;;  %v529_v27 = vadd.f32 %v3155_v25, %v4011_v9  ;;  %v523_v28 = vpop.f32.mrb[19].mxu0  ;;  %v1510_v22 = vld [vmem:[#allocation2 + $0x294] sm:$0xff] }
 0x10d   : > { %v1222_v6 = vpop.permute.xlu1 %1221  ;;  %1569 = vrot.lane.b32.xlu1 %v1503_v23, %s3301_s22  ;;  %842 = vst.msk [vmem:[#allocation2 + $0x32c] sm:$0xff] %vm624_vm0, %v608_v24  ;;  %v524_v32 = vadd.f32 %v4011_v9, %v523_v28 }
 0x10e   : > { %1297 = vst.msk [vmem:[#allocation3 + $0xa8] sm:$0xff] %vm1275_vm3, %v1222_v6  ;;  %v1397_v47 = vpop.permute.xlu0 %1396  ;;  %v604_v6 = vmax.f32 %v494_v3, 0.0  ;;  %v611_v33 = vmax.f32 %v529_v27, 0.0  ;;  %v1512_v27 = vld [vmem:[#allocation2 + $0x2bc] sm:$0xff] }
 0x10f   : > { %1481 = vst.msk [vmem:[#allocation3 + $0x60] sm:$0xff] %vm1468_vm4, %v1397_v47  ;;  %v610_v34 = vmax.f32 %v524_v32, 0.0  ;;  %v3158_v35 = vpop.f32.mrb[20].mxu0  ;;  %v888_v47 = vld [vmem:[#allocation2 + $0x258] sm:$0xff] }
 0x110   : > { %838 = vst.msk [vmem:[#allocation2 + $0x2dc] sm:$0xff] %vm624_vm0, %v604_v6  ;;  %1235 = vrot.lane.b32.xlu0 %v1143_v30, %s3295_s12  ;;  %845 = vst.msk [vmem:[#allocation2 + $0x35c] sm:$0xff] %vm624_vm0, %v611_v33  ;;  %v539_v36 = vadd.f32 %v3158_v35, %v4011_v9  ;;  %v533_v37 = vpop.f32.mrb[21].mxu0  ;;  %v2093_v33 = vld [vmem:[#allocation2 + $0x4bc] sm:$0xff]  ;;  %v2094_v35 = vld [vmem:[#allocation2 + $0x4c4] sm:$0xff] }
 0x111   : > { %v1226_v8 = vpop.permute.xlu1 %1225  ;;  %1044 = vrot.lane.b32.xlu1 %v951_v29, %s3294_s11  ;;  %844 = vst.msk [vmem:[#allocation2 + $0x354] sm:$0xff] %vm624_vm0, %v610_v34  ;;  %v534_v38 = vadd.f32 %v4011_v9, %v533_v37  ;;  %920 = vst.msk [vmem:[#allocation3 + $0xf0] sm:$0xff] %vm624_vm0, %v888_v47  ;;  %v1317_v34 = vld [vmem:[#allocation2 + $0x288] sm:$0xff] }
 0x112   : > { %1299 = vst.msk [vmem:[#allocation3 + $0xb8] sm:$0xff] %vm1275_vm3, %v1226_v8  ;;  %v1401_v57 = vpop.permute.xlu0 %1400  ;;  %v509_v8 = vadd.f32 %v3149_v7, %v4011_v9  ;;  %v613_v40 = vmax.f32 %v539_v36, 0.0 }
 0x113   : > { %1483 = vst.msk [vmem:[#allocation3 + $0x70] sm:$0xff] %vm1468_vm4, %v1401_v57  ;;  %v612_v42 = vmax.f32 %v534_v38, 0.0  ;;  %v3161_v43 = vpop.f32.mrb[22].mxu0  ;;  %v1145_v57 = vld [vmem:[#allocation2 + $0x270] sm:$0xff] }
 0x114   : > { %v607_v14 = vmax.f32 %v509_v8, 0.0  ;;  %1575 = vrot.lane.b32.xlu0 %v951_v29, %s3301_s22  ;;  %847 = vst.msk [vmem:[#allocation2 + $0x384] sm:$0xff] %vm624_vm0, %v613_v40  ;;  %v549_v44 = vadd.f32 %v3161_v43, %v4011_v9  ;;  %v543_v45 = vpop.f32.mrb[23].mxu0  ;;  %v1509_v38 = vld [vmem:[#allocation2 + $0x28c] sm:$0xff]  ;;  %v1704_v40 = vld [vmem:[#allocation2 + $0x2c0] sm:$0xff] }
 0x115   : > { %v4075_v12 = vpop.permute.xlu1 %1229  ;;  %1766 = vrot.lane.b32.xlu1 %v1143_v30, %s3297_s14  ;;  %846 = vst.msk [vmem:[#allocation2 + $0x37c] sm:$0xff] %vm624_vm0, %v612_v42  ;;  %v544_v46 = vadd.f32 %v4011_v9, %v543_v45  ;;  %v1514_v30 = vld [vmem:[#allocation2 + $0x2e4] sm:$0xff] }
 0x116   : > { %v1405_v2 = vpop.permute.xlu0 %1404  ;;  %841 = vst.msk [vmem:[#allocation2 + $0x30c] sm:$0xff] %vm624_vm0, %v607_v14  ;;  %v615_v48 = vmax.f32 %v549_v44, 0.0  ;;  %v952_v14 = vld [vmem:[#allocation2 + $0x264] sm:$0xff] }
 0x117   : > { %1485 = vst.msk [vmem:[#allocation3 + $0x80] sm:$0xff] %vm1468_vm4, %v1405_v2  ;;  %v614_v50 = vmax.f32 %v544_v46, 0.0  ;;  %v3164_v51 = vpop.f32.mrb[24].mxu0  ;;  %v1319_v46 = vld [vmem:[#allocation2 + $0x2b0] sm:$0xff] }
 0x118   : > { %1042 = vrot.lane.b32.xlu0 %v950_v49, %s3294_s11  ;;  %849 = vst.msk [vmem:[#allocation2 + $0x3ac] sm:$0xff] %vm624_vm0, %v615_v48  ;;  %v559_v54 = vadd.f32 %v3164_v51, %v4011_v9  ;;  %v553_v56 = vpop.f32.mrb[25].mxu0  ;;  %v2286_v51 = vld [vmem:[#allocation2 + $0x4c8] sm:$0xff] }
 0x119   : > { %v4087_v26 = vpop.permute.xlu1 %1233  ;;  %1382 = vrot.lane.b32.xlu1 %v4047_v53, %s3296_s13  ;;  %848 = vst.msk [vmem:[#allocation2 + $0x3a4] sm:$0xff] %vm624_vm0, %v614_v50  ;;  %v554_v58 = vadd.f32 %v4011_v9, %v553_v56  ;;  %v1511_v50 = vld [vmem:[#allocation2 + $0x2b4] sm:$0xff] }
 0x11a   : > { %v4072_v11 = vpop.permute.xlu0 %1952  ;;  %v617_v59 = vmax.f32 %v559_v54, 0.0 }
 0x11b   : > { %v616_v60 = vmax.f32 %v554_v58, 0.0  ;;  %v3167_v61 = vpop.f32.mrb[26].mxu0  ;;  %v1706_v58 = vld [vmem:[#allocation2 + $0x2e8] sm:$0xff] }
 0x11c   : > { %1239 = vrot.lane.b32.xlu0 %v1145_v57, %s3295_s12  ;;  %851 = vst.msk [vmem:[#allocation2 + $0x3d4] sm:$0xff] %vm624_vm0, %v617_v59  ;;  %v569_v53 = vadd.f32 %v3167_v61, %v4011_v9  ;;  %v563_v62 = vpop.f32.mrb[27].mxu0 }
 0x11d   : > { %v4103_v39 = vpop.permute.xlu1 %1237  ;;  %1573 = vrot.lane.b32.xlu1 %v950_v49, %s3301_s22  ;;  %850 = vst.msk [vmem:[#allocation2 + $0x3cc] sm:$0xff] %vm624_vm0, %v616_v60  ;;  %v564_v2 = vadd.f32 %v4011_v9, %v563_v62  ;;  %v1321_v62 = vld [vmem:[#allocation2 + $0x2d8] sm:$0xff] }
 0x11e   : > { %v4082_v19 = vpop.permute.xlu0 %2340  ;;  %v619_v4 = vmax.f32 %v569_v53, 0.0 }
 0x11f   : > { %v618_v5 = vmax.f32 %v564_v2, 0.0  ;;  %v3170_v6 = vpop.f32.mrb[28].mxu0  ;;  %v2500_v2 = vld [vmem:[%s4847_s3 + $0x8] sm:$0xff] }
 0x120   : > { %1579 = vrot.lane.b32.xlu0 %v953_v63, %s3301_s22  ;;  %853 = vst.msk [vmem:[#allocation2 + $0x3fc] sm:$0xff] %vm624_vm0, %v619_v4  ;;  %v579_v7 = vadd.f32 %v3170_v6, %v4011_v9  ;;  %v573_v8 = vpop.f32.mrb[29].mxu0  ;;  %v1513_v6 = vld [vmem:[#allocation2 + $0x2dc] sm:$0xff] }
 0x121   : > { %v4114_v52 = vpop.permute.xlu1 %1241  ;;  %1048 = vrot.lane.b32.xlu1 %v953_v63, %s3294_s11  ;;  %852 = vst.msk [vmem:[#allocation2 + $0x3f4] sm:$0xff] %vm624_vm0, %v618_v5  ;;  %v574_v10 = vadd.f32 %v4011_v9, %v573_v8  ;;  %v2499_v63 = vld [vmem:[%s4847_s3] sm:$0xff] }
 0x122   : > { %v4094_v31 = vpop.permute.xlu0 %1956  ;;  %v621_v13 = vmax.f32 %v579_v7, 0.0  ;;  %v3252_v5 = vpack.c.bf16 %v2500_v2, %v2499_v63 }
 0x123   : > { %v620_v16 = vmax.f32 %v574_v10, 0.0  ;;  %v3173_v17 = vpop.f32.mrb[30].mxu0  ;;  %v4176_v42 = vld [vmem:[#allocation2 + $0x3d4] sm:$0xff] }
 0x124   : > { %1046 = vrot.lane.b32.xlu0 %v952_v14, %s3294_s11  ;;  %855 = vst.msk [vmem:[#allocation2 + $0x424] sm:$0xff] %vm624_vm0, %v621_v13  ;;  %v589_v20 = vadd.f32 %v3173_v17, %v4011_v9  ;;  %v583_v21 = vpop.f32.mrb[31].mxu0  ;;  %v4185_v45 = vld [vmem:[#allocation2 + $0x3cc] sm:$0xff]  ;;  %3253 = vmatprep.subr.bf16.mxu1 %v3252_v5  ;;  %v2502_v13 = vld [vmem:[%s4847_s3 + $0x18] sm:$0xff]  ;;  %v1323_v17 = vld [vmem:[#allocation2 + $0x300] sm:$0xff] }
 0x125   : > { %v4130_v0 = vpop.permute.xlu1 %1760  ;;  %1770 = vrot.lane.b32.xlu1 %v1145_v57, %s3297_s14  ;;  %854 = vst.msk [vmem:[#allocation2 + $0x41c] sm:$0xff] %vm624_vm0, %v620_v16  ;;  %v584_v23 = vadd.f32 %v4011_v9, %v583_v21  ;;  %v1702_v9 = vld [vmem:[#allocation2 + $0x298] sm:$0xff]  ;;  %v2501_v10 = vld [vmem:[%s4847_s3 + $0x10] sm:$0xff]  ;;  %3255 = vmatpush3.bf16.msra.mxu1 %v3252_v5  ;;  %v2504_v21 = vld [vmem:[%s4847_s3 + $0x28] sm:$0xff] }
 0x126   : > { %v4105_v41 = vpop.permute.xlu0 %2344  ;;  %v623_v24 = vmax.f32 %v589_v20, 0.0  ;;  %v3256_v16 = vpack.c.bf16 %v2502_v13, %v2501_v10  ;;  %v2503_v20 = vld [vmem:[%s4847_s3 + $0x20] sm:$0xff]  ;;  %v4278_v2 = vld [vmem:[#allocation2 + $0x3c8] sm:$0xff] }
 0x127   : > { %v622_v25 = vmax.f32 %v584_v23, 0.0  ;;  %v4190_v47 = vld [vmem:[#allocation2 + $0x3fc] sm:$0xff] }
 0x128   : > { %1583 = vrot.lane.b32.xlu0 %v1510_v22, %s3301_s22  ;;  %857 = vst.msk [vmem:[#allocation2 + $0x44c] sm:$0xff] %vm624_vm0, %v623_v24  ;;  %v4199_v54 = vld [vmem:[#allocation2 + $0x3f4] sm:$0xff]  ;;  %3257 = vmatprep.subr.bf16.mxu1 %v3256_v16  ;;  %v3260_v22 = vpack.c.bf16 %v2504_v21, %v2503_v20  ;;  %v4285_v5 = vld [vmem:[#allocation2 + $0x400] sm:$0xff] }
 0x129   : > { %v4141_v15 = vpop.permute.xlu1 %1764  ;;  %1386 = vrot.lane.b32.xlu1 %v4061_v1, %s3296_s13  ;;  %856 = vst.msk [vmem:[#allocation2 + $0x444] sm:$0xff] %vm624_vm0, %v622_v25  ;;  %3259 = vmatpush3.bf16.msra.mxu1 %v3256_v16  ;;  %v1515_v25 = vld [vmem:[#allocation2 + $0x304] sm:$0xff]  ;;  %v2289_v21 = vld [vmem:[#allocation2 + $0x4f8] sm:$0xff] }
 0x12a   : > { %v4121_v55 = vpop.permute.xlu0 %1960  ;;  %3261 = vmatprep.subr.bf16.mxu1 %v3260_v22 }
 0x12b   : > { %v4208_v59 = vld [vmem:[#allocation2 + $0x424] sm:$0xff] }
 0x12c   : > { %1587 = vrot.lane.b32.xlu0 %v1512_v27, %s3301_s22  ;;  %v4213_v60 = vld [vmem:[#allocation2 + $0x41c] sm:$0xff]  ;;  %v1516_v27 = vld [vmem:[#allocation2 + $0x30c] sm:$0xff] }
 0x12d   : > { %v4156_v28 = vpop.permute.xlu1 %1768  ;;  %1577 = vrot.lane.b32.xlu1 %v952_v14, %s3301_s22  ;;  %3263 = vmatpush3.bf16.msra.mxu1 %v3260_v22  ;;  %v4301_v20 = vld [vmem:[#allocation2 + $0x428] sm:$0xff] }
 0x12e   : > { %v4133_v3 = vpop.permute.xlu0 %2348 }
 0x12f   : > { %v4228_v4 = vld [vmem:[#allocation2 + $0x44c] sm:$0xff] }
 0x130   : > { %1591 = vrot.lane.b32.xlu0 %v1514_v30, %s3301_s22  ;;  %v2087_v14 = vld [vmem:[#allocation2 + $0x444] sm:$0xff]  ;;  %v2506_v30 = vld [vmem:[%s4847_s3 + $0x38] sm:$0xff] }
 0x131   : > { %1774 = vrot.lane.b32.xlu1 %v1702_v9, %s3297_s14  ;;  %v4164_v1 = vpop.permute.xlu1 %1772  ;;  %v2505_v9 = vld [vmem:[%s4847_s3 + $0x30] sm:$0xff] }
 0x132   : > { %v4145_v18 = vpop.permute.xlu0 %1964 }
 0x134   : > { %2169 = vrot.lane.b32.xlu0 %v2093_v33, %s3300_s17  ;;  %v2287_v33 = vld [vmem:[#allocation2 + $0x4d0] sm:$0xff] }
 0x135   : > { %1390 = vrot.lane.b32.xlu1 %v1317_v34, %s3296_s13  ;;  %v4170_v36 = vpop.permute.xlu1 %1776  ;;  %v3264_v34 = vpack.c.bf16 %v2506_v30, %v2505_v9  ;;  %v4313_v30 = vld [vmem:[#allocation2 + $0x418] sm:$0xff] }
 0x136   : > { %v4158_v29 = vpop.permute.xlu0 %2352 }
 0x137   : > { %3265 = vmatprep.subr.bf16.mxu1 %v3264_v34 }
 0x138   : > { %2171 = vrot.lane.b32.xlu0 %v2094_v35, %s3300_s17  ;;  %v1325_v35 = vld [vmem:[#allocation2 + $0x328] sm:$0xff]  ;;  %3267 = vmatpush3.bf16.msra.mxu1 %v3264_v34 }
 0x139   : > { %1581 = vrot.lane.b32.xlu1 %v1509_v38, %s3301_s22  ;;  %v4181_v43 = vpop.permute.xlu1 %1970 }
 0x13a   : > { %v4166_v32 = vpop.permute.xlu0 %1968 }
 0x13c   : > { %2147 = vrot.lane.b32.xlu0 %v4176_v42, %s3300_s17 }
 0x13d   : > { %1778 = vrot.lane.b32.xlu1 %v1704_v40, %s3297_s14  ;;  %v4192_v48 = vpop.permute.xlu1 %2354 }
 0x13e   : > { %v4172_v37 = vpop.permute.xlu0 %2161 }
 0x140   : > { %2145 = vrot.lane.b32.xlu0 %v4185_v45, %s3300_s17 }
 0x141   : > { %1394 = vrot.lane.b32.xlu1 %v1319_v46, %s3296_s13  ;;  %v4204_v56 = vpop.permute.xlu1 %1780  ;;  %v4269_v46 = vld [vmem:[#allocation2 + $0x3d8] sm:$0xff] }
 0x142   : > { %v4183_v44 = vpop.permute.xlu0 %2163 }
 0x144   : > { %2151 = vrot.lane.b32.xlu0 %v4190_v47, %s3300_s17 }
 0x145   : > { %1585 = vrot.lane.b32.xlu1 %v1511_v50, %s3301_s22  ;;  %v4215_v61 = vpop.permute.xlu1 %1974  ;;  %v1902_v50 = vld [vmem:[#allocation2 + $0x4d8] sm:$0xff] }
 0x146   : > { %v4194_v49 = vpop.permute.xlu0 %2356 }
 0x148   : > { %2149 = vrot.lane.b32.xlu0 %v4199_v54, %s3300_s17 }
 0x149   : > { %2362 = vrot.lane.b32.xlu1 %v2286_v51, %s3299_s16  ;;  %v4233_v7 = vpop.permute.xlu1 %2358  ;;  %v2507_v51 = vld [vmem:[%s4847_s3 + $0x40] sm:$0xff] }
 0x14a   : > { %v4206_v57 = vpop.permute.xlu0 %1972  ;;  %3190 = vmatprep.subr.mxu1 %v2507_v51 }
 0x14b   : > { %3191 = vmatpush3.msra.mxu1 %v2507_v51  ;;  %v4329_v51 = vld [vmem:[#allocation2 + $0x440] sm:$0xff] }
 0x14c   : > { %2155 = vrot.lane.b32.xlu0 %v4208_v59, %s3300_s17 }
 0x14d   : > { %1782 = vrot.lane.b32.xlu1 %v1706_v58, %s3297_s14  ;;  %v4251_v23 = vpop.permute.xlu1 %1784  ;;  %v2095_v58 = vld [vmem:[#allocation2 + $0x4e4] sm:$0xff] }
 0x14e   : > { %v4217_v53 = vpop.permute.xlu0 %2165 }
 0x150   : > { %2153 = vrot.lane.b32.xlu0 %v4213_v60, %s3300_s17 }
 0x151   : > { %1398 = vrot.lane.b32.xlu1 %v1321_v62, %s3296_s13  ;;  %v4265_v38 = vpop.permute.xlu1 %1978 }
 0x152   : > { %v4235_v8 = vpop.permute.xlu0 %2167 }
 0x154   : > { %2159 = vrot.lane.b32.xlu0 %v4228_v4, %s3300_s17 }
 0x155   : > { %1589 = vrot.lane.b32.xlu1 %v1513_v6, %s3301_s22  ;;  %v2096_v6 = vld [vmem:[#allocation2 + $0x4ec] sm:$0xff] }
 0x156   : > { %v4253_v24 = vpop.permute.xlu0 %2360 }
 0x158   : > { %2157 = vrot.lane.b32.xlu0 %v2087_v14, %s3300_s17 }
 0x159   : > { %1402 = vrot.lane.b32.xlu1 %v1323_v17, %s3296_s13  ;;  %v1518_v17 = vld [vmem:[#allocation2 + $0x334] sm:$0xff] }
 0x15a   : > { %v4267_v40 = vpop.permute.xlu0 %1976 }
 0x15c   : > { %1595 = vrot.lane.b32.xlu0 %v1516_v27, %s3301_s22 }
 0x15d   : > { %1593 = vrot.lane.b32.xlu1 %v1515_v25, %s3301_s22 }
 0x160   : > { %2364 = vrot.lane.b32.xlu0 %v2287_v33, %s3299_s16  ;;  %v1905_v33 = vld [vmem:[#allocation2 + $0x508] sm:$0xff] }
 0x161   : > { %1406 = vrot.lane.b32.xlu1 %v1325_v35, %s3296_s13 }
 0x164   : > { %1980 = vrot.lane.b32.xlu0 %v1902_v50, %s3298_s15 }
 0x165   : > { %2338 = vrot.lane.b32.xlu1 %v4269_v46, %s3299_s16 }
 0x166   : > { %v1228_v62 = vpop.permute.xlu0 %1227 }
 0x167   : > { %v1037_v63 = vpop.permute.xlu1 %1036 }
 0x168   : > { %1108 = vst.msk [vmem:[#allocation3 + $0xc8] sm:$0xff] %vm1082_vm2, %v1037_v63  ;;  %2173 = vrot.lane.b32.xlu0 %v2095_v58, %s3300_s17  ;;  %v1327_v58 = vld [vmem:[#allocation2 + $0x350] sm:$0xff] }
 0x169   : > { %1301 = vst.msk [vmem:[#allocation3 + $0xc8] sm:$0xff] %vm1275_vm3, %v4075_v12  ;;  %1954 = vrot.lane.b32.xlu1 %v4278_v2, %s3298_s15  ;;  %v4292_v12 = vld [vmem:[#allocation2 + $0x3f0] sm:$0xff] }
 0x16a   : > { %v1759_v10 = vpop.permute.xlu0 %1758 }
 0x16b   : > { %v1568_v13 = vpop.permute.xlu1 %1567 }
 0x16c   : > { %2175 = vrot.lane.b32.xlu0 %v2096_v6, %s3300_s17  ;;  %v1708_v6 = vld [vmem:[#allocation2 + $0x310] sm:$0xff] }
 0x16d   : > { %2342 = vrot.lane.b32.xlu1 %v4285_v5, %s3299_s16 }
 0x16e   : > { %v1035_v16 = vpop.permute.xlu0 %1034 }
 0x16f   : > { %v1375_v14 = vpop.permute.xlu1 %1374  ;;  %1107 = vst.msk [vmem:[#allocation3 + $0xc0] sm:$0xff] %vm1082_vm2, %v1035_v16  ;;  %v1520_v16 = vld [vmem:[#allocation2 + $0x35c] sm:$0xff] }
 0x170   : > { %1470 = vst.msk [vmem:[#allocation3 + $0x8] sm:$0xff] %vm1468_vm4, %v1375_v14  ;;  %1599 = vrot.lane.b32.xlu0 %v1518_v17, %s3301_s22  ;;  %v2291_v17 = vld [vmem:[#allocation2 + $0x520] sm:$0xff] }
 0x171   : > { %1663 = vst.msk [vmem:[#allocation3 + $0x8] sm:$0xff] %vm1661_vm5, %v1568_v13  ;;  %1958 = vrot.lane.b32.xlu1 %v4292_v12, %s3298_s15 }
 0x172   : > { %1300 = vst.msk [vmem:[#allocation3 + $0xc0] sm:$0xff] %vm1275_vm3, %v1228_v62  ;;  %v1566_v25 = vpop.permute.xlu0 %1565  ;;  %v2098_v62 = vld [vmem:[#allocation2 + $0x514] sm:$0xff] }
 0x173   : > { %1856 = vst.msk [vmem:[#allocation3 + $0x8] sm:$0xff] %vm1854_vm6, %v4130_v0  ;;  %v1041_v22 = vpop.permute.xlu1 %1040  ;;  %v1904_v0 = vld [vmem:[#allocation2 + $0x500] sm:$0xff] }
 0x174   : > { %1110 = vst.msk [vmem:[#allocation3 + $0xd8] sm:$0xff] %vm1082_vm2, %v1041_v22  ;;  %2368 = vrot.lane.b32.xlu0 %v2289_v21, %s3299_s16 }
 0x175   : > { %1662 = vst.msk [vmem:[#allocation3] sm:$0xff] %vm1661_vm5, %v1566_v25  ;;  %2346 = vrot.lane.b32.xlu1 %v4301_v20, %s3299_s16 }
 0x176   : > { %1303 = vst.msk [vmem:[#allocation3 + $0xd8] sm:$0xff] %vm1275_vm3, %v4087_v26  ;;  %v1232_v9 = vpop.permute.xlu0 %1231  ;;  %v4318_v26 = vld [vmem:[#allocation2 + $0x450] sm:$0xff] }
 0x177   : > { %1855 = vst.msk [vmem:[#allocation3] sm:$0xff] %vm1854_vm6, %v1759_v10  ;;  %v1763_v27 = vpop.permute.xlu1 %1762  ;;  %v1709_v10 = vld [vmem:[#allocation2 + $0x318] sm:$0xff] }
 0x178   : > { %2049 = vst.msk [vmem:[#allocation3] sm:$0xff] %vm2048_vm7, %v4072_v11  ;;  %1984 = vrot.lane.b32.xlu0 %v1904_v0, %s3298_s15 }
 0x179   : > { %1962 = vrot.lane.b32.xlu1 %v4313_v30, %s3298_s15 }
 0x17a   : > { %v1572_v35 = vpop.permute.xlu0 %1571 }
 0x17b   : > { %v1379_v34 = vpop.permute.xlu1 %1378 }
 0x17c   : > { %1472 = vst.msk [vmem:[#allocation3 + $0x18] sm:$0xff] %vm1468_vm4, %v1379_v34  ;;  %1986 = vrot.lane.b32.xlu0 %v1905_v33, %s3298_s15  ;;  %v1907_v33 = vld [vmem:[#allocation2 + $0x530] sm:$0xff] }
 0x17d   : > { %1665 = vst.msk [vmem:[#allocation3 + $0x18] sm:$0xff] %vm1661_vm5, %v1572_v35  ;;  %2350 = vrot.lane.b32.xlu1 %v4318_v26, %s3299_s16 }
 0x17e   : > { %1858 = vst.msk [vmem:[#allocation3 + $0x18] sm:$0xff] %vm1854_vm6, %v4141_v15  ;;  %v1039_v50 = vpop.permute.xlu0 %1038 }
 0x17f   : > { %v1570_v11 = vpop.permute.xlu1 %1569  ;;  %1109 = vst.msk [vmem:[#allocation3 + $0xd0] sm:$0xff] %vm1082_vm2, %v1039_v50  ;;  %v1710_v50 = vld [vmem:[#allocation2 + $0x338] sm:$0xff] }
 0x180   : > { %1664 = vst.msk [vmem:[#allocation3 + $0x10] sm:$0xff] %vm1661_vm5, %v1570_v11  ;;  %1410 = vrot.lane.b32.xlu0 %v1327_v58, %s3296_s13  ;;  %v1329_v58 = vld [vmem:[#allocation2 + $0x378] sm:$0xff] }
 0x181   : > { %1857 = vst.msk [vmem:[#allocation3 + $0x10] sm:$0xff] %vm1854_vm6, %v1763_v27  ;;  %1966 = vrot.lane.b32.xlu1 %v4329_v51, %s3298_s15  ;;  %v1517_v27 = vld [vmem:[#allocation2 + $0x32c] sm:$0xff] }
 0x182   : > { %1302 = vst.msk [vmem:[#allocation3 + $0xd0] sm:$0xff] %vm1275_vm3, %v1232_v9  ;;  %v1236_v63 = vpop.permute.xlu0 %1235  ;;  %v2288_v9 = vld [vmem:[#allocation2 + $0x4f0] sm:$0xff] }
 0x183   : > { %2051 = vst.msk [vmem:[#allocation3 + $0x10] sm:$0xff] %vm2048_vm7, %v4094_v31  ;;  %v1045_v15 = vpop.permute.xlu1 %1044  ;;  %v1903_v31 = vld [vmem:[#allocation2 + $0x4e0] sm:$0xff] }
 0x184   : > { %1112 = vst.msk [vmem:[#allocation3 + $0xe8] sm:$0xff] %vm1082_vm2, %v1045_v15  ;;  %2179 = vrot.lane.b32.xlu0 %v2098_v62, %s3300_s17  ;;  %v2100_v62 = vld [vmem:[#allocation2 + $0x53c] sm:$0xff] }
 0x185   : > { %1305 = vst.msk [vmem:[#allocation3 + $0xe8] sm:$0xff] %vm1275_vm3, %v4103_v39  ;;  %1786 = vrot.lane.b32.xlu1 %v1708_v6, %s3297_s14  ;;  %v1906_v39 = vld [vmem:[#allocation2 + $0x528] sm:$0xff] }
 0x186   : > { %v1576_v14 = vpop.permute.xlu0 %1575 }
 0x187   : > { %v1767_v13 = vpop.permute.xlu1 %1766 }
 0x188   : > { %1603 = vrot.lane.b32.xlu0 %v1520_v16, %s3301_s22  ;;  %v2293_v16 = vld [vmem:[#allocation2 + $0x548] sm:$0xff] }
 0x189   : > { %1788 = vrot.lane.b32.xlu1 %v1709_v10, %s3297_s14 }
 0x18a   : > { %v1043_v22 = vpop.permute.xlu0 %1042 }
 0x18b   : > { %v1383_v21 = vpop.permute.xlu1 %1382  ;;  %1111 = vst.msk [vmem:[#allocation3 + $0xe0] sm:$0xff] %vm1082_vm2, %v1043_v22 }
 0x18c   : > { %1474 = vst.msk [vmem:[#allocation3 + $0x28] sm:$0xff] %vm1468_vm4, %v1383_v21  ;;  %2372 = vrot.lane.b32.xlu0 %v2291_v17, %s3299_s16 }
 0x18d   : > { %1667 = vst.msk [vmem:[#allocation3 + $0x28] sm:$0xff] %vm1661_vm5, %v1576_v14  ;;  %1982 = vrot.lane.b32.xlu1 %v1903_v31, %s3298_s15  ;;  %v2097_v14 = vld [vmem:[#allocation2 + $0x50c] sm:$0xff] }
 0x18e   : > { %1304 = vst.msk [vmem:[#allocation3 + $0xe0] sm:$0xff] %vm1275_vm3, %v1236_v63  ;;  %v1240_v0 = vpop.permute.xlu0 %1239  ;;  %v1326_v63 = vld [vmem:[#allocation2 + $0x348] sm:$0xff] }
 0x18f   : > { %1860 = vst.msk [vmem:[#allocation3 + $0x28] sm:$0xff] %vm1854_vm6, %v4156_v28  ;;  %v1574_v25 = vpop.permute.xlu1 %1573 }
 0x190   : > { %1666 = vst.msk [vmem:[#allocation3 + $0x20] sm:$0xff] %vm1661_vm5, %v1574_v25  ;;  %1988 = vrot.lane.b32.xlu0 %v1906_v39, %s3298_s15  ;;  %v1519_v39 = vld [vmem:[#allocation2 + $0x354] sm:$0xff] }
 0x191   : > { %1859 = vst.msk [vmem:[#allocation3 + $0x20] sm:$0xff] %vm1854_vm6, %v1767_v13  ;;  %1597 = vrot.lane.b32.xlu1 %v1517_v27, %s3301_s22  ;;  %v1522_v13 = vld [vmem:[#allocation2 + $0x384] sm:$0xff]  ;;  %v1909_v25 = vld [vmem:[#allocation2 + $0x558] sm:$0xff] }
 0x192   : > { %2053 = vst.msk [vmem:[#allocation3 + $0x20] sm:$0xff] %vm2048_vm7, %v4121_v55  ;;  %v1580_v35 = vpop.permute.xlu0 %1579  ;;  %v1711_v55 = vld [vmem:[#allocation2 + $0x340] sm:$0xff] }
 0x193   : > { %v1049_v34 = vpop.permute.xlu1 %1048 }
 0x194   : > { %1114 = vst.msk [vmem:[#allocation3 + $0xf8] sm:$0xff] %vm1082_vm2, %v1049_v34  ;;  %1990 = vrot.lane.b32.xlu0 %v1907_v33, %s3298_s15  ;;  %v2102_v33 = vld [vmem:[#allocation2 + $0x564] sm:$0xff] }
 0x195   : > { %1307 = vst.msk [vmem:[#allocation3 + $0xf8] sm:$0xff] %vm1275_vm3, %v4114_v52  ;;  %2366 = vrot.lane.b32.xlu1 %v2288_v9, %s3299_s16  ;;  %v1713_v9 = vld [vmem:[#allocation2 + $0x368] sm:$0xff] }
 0x196   : > { %v1047_v11 = vpop.permute.xlu0 %1046 }
 0x197   : > { %v1771_v28 = vpop.permute.xlu1 %1770  ;;  %1113 = vst.msk [vmem:[#allocation3 + $0xf0] sm:$0xff] %vm1082_vm2, %v1047_v11 }
 0x198   : > { %1306 = vst.msk [vmem:[#allocation3 + $0xf0] sm:$0xff] %vm1275_vm3, %v1240_v0  ;;  %1414 = vrot.lane.b32.xlu0 %v1329_v58, %s3296_s13 }
 0x199   : > { %1790 = vrot.lane.b32.xlu1 %v1710_v50, %s3297_s14 }
 0x19a   : > { %v1584_v52 = vpop.permute.xlu0 %1583 }
 0x19b   : > { %v1387_v15 = vpop.permute.xlu1 %1386 }
 0x19c   : > { %1476 = vst.msk [vmem:[#allocation3 + $0x38] sm:$0xff] %vm1468_vm4, %v1387_v15  ;;  %2183 = vrot.lane.b32.xlu0 %v2100_v62, %s3300_s17 }
 0x19d   : > { %1669 = vst.msk [vmem:[#allocation3 + $0x38] sm:$0xff] %vm1661_vm5, %v1580_v35  ;;  %1792 = vrot.lane.b32.xlu1 %v1711_v55, %s3297_s14  ;;  %v1911_v55 = vld [vmem:[#allocation2 + $0x580] sm:$0xff] }
 0x19e   : > { %1862 = vst.msk [vmem:[#allocation3 + $0x38] sm:$0xff] %vm1854_vm6, %v4164_v1  ;;  %v1588_v10 = vpop.permute.xlu0 %1587  ;;  %v1908_v1 = vld [vmem:[#allocation2 + $0x550] sm:$0xff] }
 0x19f   : > { %v1578_v6 = vpop.permute.xlu1 %1577 }
 0x1a0   : > { %1668 = vst.msk [vmem:[#allocation3 + $0x30] sm:$0xff] %vm1661_vm5, %v1578_v6  ;;  %1607 = vrot.lane.b32.xlu0 %v1522_v13, %s3301_s22 }
 0x1a1   : > { %1861 = vst.msk [vmem:[#allocation3 + $0x30] sm:$0xff] %vm1854_vm6, %v1771_v28  ;;  %1408 = vrot.lane.b32.xlu1 %v1326_v63, %s3296_s13  ;;  %v1524_v28 = vld [vmem:[#allocation2 + $0x3ac] sm:$0xff] }
 0x1a2   : > { %2055 = vst.msk [vmem:[#allocation3 + $0x30] sm:$0xff] %vm2048_vm7, %v4145_v18  ;;  %v4380_v17 = vpop.permute.xlu0 %1591  ;;  %v2290_v18 = vld [vmem:[#allocation2 + $0x518] sm:$0xff]  ;;  %v1714_v63 = vld [vmem:[#allocation2 + $0x388] sm:$0xff] }
 0x1a3   : > { %v1775_v31 = vpop.permute.xlu1 %1774 }
 0x1a4   : > { %2376 = vrot.lane.b32.xlu0 %v2293_v16, %s3299_s16  ;;  %v2297_v16 = vld [vmem:[#allocation2 + $0x598] sm:$0xff] }
 0x1a5   : > { %2177 = vrot.lane.b32.xlu1 %v2097_v14, %s3300_s17  ;;  %v2101_v14 = vld [vmem:[#allocation2 + $0x55c] sm:$0xff] }
 0x1a6   : > { %v4384_v22 = vpop.permute.xlu0 %2169 }
 0x1a7   : > { %v1391_v21 = vpop.permute.xlu1 %1390 }
 0x1a8   : > { %1478 = vst.msk [vmem:[#allocation3 + $0x48] sm:$0xff] %vm1468_vm4, %v1391_v21  ;;  %1992 = vrot.lane.b32.xlu0 %v1908_v1, %s3298_s15  ;;  %v1912_v1 = vld [vmem:[#allocation2 + $0x5a0] sm:$0xff] }
 0x1a9   : > { %1671 = vst.msk [vmem:[#allocation3 + $0x48] sm:$0xff] %vm1661_vm5, %v1584_v52  ;;  %1601 = vrot.lane.b32.xlu1 %v1519_v39, %s3301_s22  ;;  %v1523_v39 = vld [vmem:[#allocation2 + $0x3a4] sm:$0xff] }
 0x1aa   : > { %1864 = vst.msk [vmem:[#allocation3 + $0x48] sm:$0xff] %vm1854_vm6, %v4170_v36  ;;  %v4394_v27 = vpop.permute.xlu0 %2171 }
 0x1ab   : > { %2058 = vst.msk [vmem:[#allocation3 + $0x48] sm:$0xff] %vm2048_vm7, %v4181_v43  ;;  %v1582_v0 = vpop.permute.xlu1 %1581 }
 0x1ac   : > { %2251 = vst.msk [vmem:[#allocation3 + $0x48] sm:$0xff] %vm2241_vm8, %v4183_v44  ;;  %1994 = vrot.lane.b32.xlu0 %v1909_v25, %s3298_s15  ;;  %v1712_v44 = vld [vmem:[#allocation2 + $0x360] sm:$0xff] }
 0x1ad   : > { %1670 = vst.msk [vmem:[#allocation3 + $0x40] sm:$0xff] %vm1661_vm5, %v1582_v0  ;;  %2370 = vrot.lane.b32.xlu1 %v2290_v18, %s3299_s16  ;;  %v1913_v18 = vld [vmem:[#allocation2 + $0x5a8] sm:$0xff] }
 0x1ae   : > { %2444 = vst.msk [vmem:[#allocation3 + $0x48] sm:$0xff] %vm2434_vm9, %v4194_v49  ;;  %v4408_v43 = vpop.permute.xlu0 %2147  ;;  %v1331_v49 = vld [vmem:[#allocation2 + $0x3a0] sm:$0xff] }
 0x1af   : > { %1863 = vst.msk [vmem:[#allocation3 + $0x40] sm:$0xff] %vm1854_vm6, %v1775_v31  ;;  %v1779_v36 = vpop.permute.xlu1 %1778 }
 0x1b0   : > { %2057 = vst.msk [vmem:[#allocation3 + $0x40] sm:$0xff] %vm2048_vm7, %v4166_v32  ;;  %1418 = vrot.lane.b32.xlu0 %v1331_v49, %s3296_s13  ;;  %v1328_v32 = vld [vmem:[#allocation2 + $0x370] sm:$0xff] }
 0x1b1   : > { %2250 = vst.msk [vmem:[#allocation3 + $0x40] sm:$0xff] %vm2241_vm8, %v4172_v37  ;;  %1794 = vrot.lane.b32.xlu1 %v1712_v44, %s3297_s14  ;;  %v1716_v49 = vld [vmem:[#allocation2 + $0x3b0] sm:$0xff] }
 0x1b2   : > { %2443 = vst.msk [vmem:[#allocation3 + $0x40] sm:$0xff] %vm2434_vm9, %v4192_v48  ;;  %v2146_v35 = vpop.permute.xlu0 %2145 }
 0x1b3   : > { %v1395_v34 = vpop.permute.xlu1 %1394  ;;  %2242 = vst.msk [vmem:[#allocation3] sm:$0xff] %vm2241_vm8, %v2146_v35 }
 0x1b4   : > { %1480 = vst.msk [vmem:[#allocation3 + $0x58] sm:$0xff] %vm1468_vm4, %v1395_v34  ;;  %2187 = vrot.lane.b32.xlu0 %v2102_v33, %s3300_s17 }
 0x1b5   : > { %1673 = vst.msk [vmem:[#allocation3 + $0x58] sm:$0xff] %vm1661_vm5, %v1588_v10  ;;  %1796 = vrot.lane.b32.xlu1 %v1713_v9, %s3297_s14  ;;  %v2106_v9 = vld [vmem:[#allocation2 + $0x5b4] sm:$0xff] }
 0x1b6   : > { %1866 = vst.msk [vmem:[#allocation3 + $0x58] sm:$0xff] %vm1854_vm6, %v4204_v56  ;;  %v4423_v48 = vpop.permute.xlu0 %2151  ;;  %v2099_v56 = vld [vmem:[#allocation2 + $0x534] sm:$0xff] }
 0x1b7   : > { %2060 = vst.msk [vmem:[#allocation3 + $0x58] sm:$0xff] %vm2048_vm7, %v4215_v61  ;;  %v1586_v37 = vpop.permute.xlu1 %1585  ;;  %v2295_v61 = vld [vmem:[#allocation2 + $0x570] sm:$0xff] }
 0x1b8   : > { %2253 = vst.msk [vmem:[#allocation3 + $0x58] sm:$0xff] %vm2241_vm8, %v4235_v8  ;;  %1611 = vrot.lane.b32.xlu0 %v1524_v28, %s3301_s22  ;;  %v2299_v28 = vld [vmem:[#allocation2 + $0x5c0] sm:$0xff] }
 0x1b9   : > { %1672 = vst.msk [vmem:[#allocation3 + $0x50] sm:$0xff] %vm1661_vm5, %v1586_v37  ;;  %1412 = vrot.lane.b32.xlu1 %v1328_v32, %s3296_s13 }
 0x1ba   : > { %2446 = vst.msk [vmem:[#allocation3 + $0x58] sm:$0xff] %vm2434_vm9, %v4253_v24  ;;  %v2150_v11 = vpop.permute.xlu0 %2149  ;;  %v1910_v24 = vld [vmem:[#allocation2 + $0x578] sm:$0xff] }
 0x1bb   : > { %1865 = vst.msk [vmem:[#allocation3 + $0x50] sm:$0xff] %vm1854_vm6, %v1779_v36  ;;  %v2363_v8 = vpop.permute.xlu1 %2362 }
 0x1bc   : > { %2059 = vst.msk [vmem:[#allocation3 + $0x50] sm:$0xff] %vm2048_vm7, %v4206_v57  ;;  %2380 = vrot.lane.b32.xlu0 %v2295_v61, %s3299_s16  ;;  %v1521_v57 = vld [vmem:[#allocation2 + $0x37c] sm:$0xff] }
 0x1bd   : > { %2252 = vst.msk [vmem:[#allocation3 + $0x50] sm:$0xff] %vm2241_vm8, %v4217_v53  ;;  %2244 = vst.msk [vmem:[#allocation3 + $0x10] sm:$0xff] %vm2241_vm8, %v2150_v11  ;;  %2181 = vrot.lane.b32.xlu1 %v2099_v56, %s3300_s17  ;;  %v2292_v53 = vld [vmem:[#allocation2 + $0x540] sm:$0xff] }
 0x1be   : > { %2445 = vst.msk [vmem:[#allocation3 + $0x50] sm:$0xff] %vm2434_vm9, %v4233_v7  ;;  %v4442_v58 = vpop.permute.xlu0 %2155 }
 0x1bf   : > { %v1783_v50 = vpop.permute.xlu1 %1782 }
 0x1c0   : > { %1996 = vrot.lane.b32.xlu0 %v1910_v24, %s3298_s15 }
 0x1c1   : > { %1605 = vrot.lane.b32.xlu1 %v1521_v57, %s3301_s22 }
 0x1c2   : > { %v2154_v15 = vpop.permute.xlu0 %2153 }
 0x1c3   : > { %v1399_v62 = vpop.permute.xlu1 %1398  ;;  %2246 = vst.msk [vmem:[#allocation3 + $0x20] sm:$0xff] %vm2241_vm8, %v2154_v15  ;;  %v2108_v15 = vld [vmem:[#allocation2 + $0x5dc] sm:$0xff] }
 0x1c4   : > { %1482 = vst.msk [vmem:[#allocation3 + $0x68] sm:$0xff] %vm1468_vm4, %v1399_v62  ;;  %1998 = vrot.lane.b32.xlu0 %v1911_v55, %s3298_s15 }
 0x1c5   : > { %1675 = vst.msk [vmem:[#allocation3 + $0x68] sm:$0xff] %vm1661_vm5, %v4380_v17  ;;  %2374 = vrot.lane.b32.xlu1 %v2292_v53, %s3299_s16 }
 0x1c6   : > { %1868 = vst.msk [vmem:[#allocation3 + $0x68] sm:$0xff] %vm1854_vm6, %v4251_v23  ;;  %v4456_v52 = vpop.permute.xlu0 %2159  ;;  %v1715_v23 = vld [vmem:[#allocation2 + $0x390] sm:$0xff] }
 0x1c7   : > { %2062 = vst.msk [vmem:[#allocation3 + $0x68] sm:$0xff] %vm2048_vm7, %v4265_v38  ;;  %v1590_v7 = vpop.permute.xlu1 %1589  ;;  %v2104_v38 = vld [vmem:[#allocation2 + $0x58c] sm:$0xff] }
 0x1c8   : > { %2255 = vst.msk [vmem:[#allocation3 + $0x68] sm:$0xff] %vm2241_vm8, %v4394_v27  ;;  %1422 = vrot.lane.b32.xlu0 %v4278_v2, %s3296_s13  ;;  %v1330_v2 = vld [vmem:[#allocation2 + $0x398] sm:$0xff] }
 0x1c9   : > { %1674 = vst.msk [vmem:[#allocation3 + $0x60] sm:$0xff] %vm1661_vm5, %v1590_v7  ;;  %1798 = vrot.lane.b32.xlu1 %v1714_v63, %s3297_s14 }
 0x1ca   : > { %1867 = vst.msk [vmem:[#allocation3 + $0x60] sm:$0xff] %vm1854_vm6, %v1783_v50  ;;  %v2158_v10 = vpop.permute.xlu0 %2157  ;;  %v2296_v50 = vld [vmem:[#allocation2 + $0x590] sm:$0xff] }
 0x1cb   : > { %2061 = vst.msk [vmem:[#allocation3 + $0x60] sm:$0xff] %vm2048_vm7, %v4267_v40  ;;  %v1403_v6 = vpop.permute.xlu1 %1402 }
 0x1cc   : > { %2254 = vst.msk [vmem:[#allocation3 + $0x60] sm:$0xff] %vm2241_vm8, %v4384_v22  ;;  %2248 = vst.msk [vmem:[#allocation3 + $0x30] sm:$0xff] %vm2241_vm8, %v2158_v10  ;;  %2191 = vrot.lane.b32.xlu0 %v2104_v38, %s3300_s17  ;;  %v2477_v10 = vld [vmem:[#allocation3 + $0x50] sm:$0xff] }
 0x1cd   : > { %2447 = vst.msk [vmem:[#allocation3 + $0x60] sm:$0xff] %vm2434_vm9, %v2363_v8  ;;  %1800 = vrot.lane.b32.xlu1 %v1715_v23, %s3297_s14 }
 0x1ce   : > { %1484 = vst.msk [vmem:[#allocation3 + $0x78] sm:$0xff] %vm1468_vm4, %v1403_v6  ;;  %v1596_v40 = vpop.permute.xlu0 %1595  ;;  %v2476_v6 = vld [vmem:[#allocation3 + $0x48] sm:$0xff] }
 0x1cf   : > { %v1594_v13 = vpop.permute.xlu1 %1593  ;;  %1677 = vst.msk [vmem:[#allocation3 + $0x78] sm:$0xff] %vm1661_vm5, %v1596_v40 }
 0x1d0   : > { %1676 = vst.msk [vmem:[#allocation3 + $0x70] sm:$0xff] %vm1661_vm5, %v1594_v13  ;;  %1615 = vrot.lane.b32.xlu0 %v4176_v42, %s3301_s22  ;;  %v2294_v42 = vld [vmem:[#allocation2 + $0x568] sm:$0xff] }
 0x1d1   : > { %1416 = vrot.lane.b32.xlu1 %v1330_v2, %s3296_s13  ;;  %v2105_v2 = vld [vmem:[#allocation2 + $0x5ac] sm:$0xff] }
 0x1d2   : > { %v2365_v17 = vpop.permute.xlu0 %2364  ;;  %v2301_v13 = vld [vmem:[#allocation2 + $0x5e8] sm:$0xff] }
 0x1d3   : > { %v1407_v31 = vpop.permute.xlu1 %1406  ;;  %2448 = vst.msk [vmem:[#allocation3 + $0x68] sm:$0xff] %vm2434_vm9, %v2365_v17 }
 0x1d4   : > { %1486 = vst.msk [vmem:[#allocation3 + $0x88] sm:$0xff] %vm1468_vm4, %v1407_v31  ;;  %2384 = vrot.lane.b32.xlu0 %v2297_v16, %s3299_s16  ;;  %v2479_v16 = vld [vmem:[#allocation3 + $0x60] sm:$0xff]  ;;  %v1916_v31 = vld [vmem:[#allocation2 + $0x5f0] sm:$0xff] }
 0x1d5   : > { %2185 = vrot.lane.b32.xlu1 %v2101_v14, %s3300_s17 }
 0x1d6   : > { %v4483_v22 = vpop.permute.xlu0 %1980 }
 0x1d7   : > { %v2339_v21 = vpop.permute.xlu1 %2338 }
 0x1d8   : > { %2435 = vst.msk [vmem:[#allocation3] sm:$0xff] %vm2434_vm9, %v2339_v21  ;;  %2000 = vrot.lane.b32.xlu0 %v1912_v1, %s3298_s15 }
 0x1d9   : > { %1609 = vrot.lane.b32.xlu1 %v1523_v39, %s3301_s22  ;;  %v1917_v39 = vld [vmem:[#allocation2 + $0x5f8] sm:$0xff] }
 0x1da   : > { %v4488_v0 = vpop.permute.xlu0 %2173  ;;  %v2480_v21 = vld [vmem:[#allocation3 + $0x68] sm:$0xff] }
 0x1db   : > { %v1955_v25 = vpop.permute.xlu1 %1954 }
 0x1dc   : > { %2050 = vst.msk [vmem:[#allocation3 + $0x8] sm:$0xff] %vm2048_vm7, %v1955_v25  ;;  %2002 = vrot.lane.b32.xlu0 %v1913_v18, %s3298_s15 }
 0x1dd   : > { %2243 = vst.msk [vmem:[#allocation3 + $0x8] sm:$0xff] %vm2241_vm8, %v4408_v43  ;;  %2378 = vrot.lane.b32.xlu1 %v2294_v42, %s3299_s16  ;;  %v1717_v43 = vld [vmem:[#allocation2 + $0x3b8] sm:$0xff] }
 0x1de   : > { %2436 = vst.msk [vmem:[#allocation3 + $0x8] sm:$0xff] %vm2434_vm9, %v4082_v19  ;;  %v4497_v36 = vpop.permute.xlu0 %2175 }
 0x1df   : > { %v2343_v27 = vpop.permute.xlu1 %2342  ;;  %v2467_v44 = vld [vmem:[#allocation3] sm:$0xff] }
 0x1e0   : > { %2437 = vst.msk [vmem:[#allocation3 + $0x10] sm:$0xff] %vm2434_vm9, %v2343_v27  ;;  %3192 = vmatprep.mubr.msk.f32.mxu1 %vm2515_vm10, %v2467_v44  ;;  %1426 = vrot.lane.b32.xlu0 %v4292_v12, %s3296_s13  ;;  %v1332_v12 = vld [vmem:[#allocation2 + $0x3c0] sm:$0xff] }
 0x1e1   : > { %1802 = vrot.lane.b32.xlu1 %v1716_v49, %s3297_s14  ;;  %v2110_v44 = vld [vmem:[#allocation2 + $0x604] sm:$0xff] }
 0x1e2   : > { %v1600_v34 = vpop.permute.xlu0 %1599 }
 0x1e3   : > { %v1959_v33 = vpop.permute.xlu1 %1958  ;;  %1679 = vst.msk [vmem:[#allocation3 + $0x88] sm:$0xff] %vm1661_vm5, %v1600_v34  ;;  %v2303_v34 = vld [vmem:[#allocation2 + $0x610] sm:$0xff] }
 0x1e4   : > { %2052 = vst.msk [vmem:[#allocation3 + $0x18] sm:$0xff] %vm2048_vm7, %v1959_v33  ;;  %2195 = vrot.lane.b32.xlu0 %v2106_v9, %s3300_s17  ;;  %v2107_v33 = vld [vmem:[#allocation2 + $0x5d4] sm:$0xff] }
 0x1e5   : > { %2245 = vst.msk [vmem:[#allocation3 + $0x18] sm:$0xff] %vm2241_vm8, %v4423_v48  ;;  %1804 = vrot.lane.b32.xlu1 %v1717_v43, %s3297_s14  ;;  %v2468_v19 = vld [vmem:[#allocation3 + $0x8] sm:$0xff] }
 0x1e6   : > { %2438 = vst.msk [vmem:[#allocation3 + $0x18] sm:$0xff] %vm2434_vm9, %v4105_v41  ;;  %3193 = vmatmul.mubr.msk.f32.vlgmr.msra.gmra.mrb[0].mxu1 %vm2515_vm10, %v2468_v19  ;;  %v4513_v32 = vpop.permute.xlu0 %2368  ;;  %v2103_v48 = vld [vmem:[#allocation2 + $0x584] sm:$0xff] }
 0x1e7   : > { %v2347_v35 = vpop.permute.xlu1 %2346  ;;  %v2469_v37 = vld [vmem:[#allocation3 + $0x10] sm:$0xff] }
 0x1e8   : > { %2439 = vst.msk [vmem:[#allocation3 + $0x20] sm:$0xff] %vm2434_vm9, %v2347_v35  ;;  %3195 = vmatprep.mubr.msk.f32.mxu1 %vm2515_vm10, %v2469_v37  ;;  %1619 = vrot.lane.b32.xlu0 %v4190_v47, %s3301_s22  ;;  %v1914_v47 = vld [vmem:[#allocation2 + $0x5c8] sm:$0xff]  ;;  %v1918_v35 = vld [vmem:[#allocation2 + $0x618] sm:$0xff] }
 0x1e9   : > { %1420 = vrot.lane.b32.xlu1 %v1332_v12, %s3296_s13 }
 0x1ea   : > { %v4520_v41 = vpop.permute.xlu0 %1984 }
 0x1eb   : > { %v1963_v56 = vpop.permute.xlu1 %1962 }
 0x1ec   : > { %2054 = vst.msk [vmem:[#allocation3 + $0x28] sm:$0xff] %vm2048_vm7, %v1963_v56  ;;  %2388 = vrot.lane.b32.xlu0 %v2299_v28, %s3299_s16 }
 0x1ed   : > { %2247 = vst.msk [vmem:[#allocation3 + $0x28] sm:$0xff] %vm2241_vm8, %v4442_v58  ;;  %2189 = vrot.lane.b32.xlu1 %v2103_v48, %s3300_s17  ;;  %v2470_v61 = vld [vmem:[#allocation3 + $0x18] sm:$0xff]  ;;  %v1915_v58 = vld [vmem:[#allocation2 + $0x5d0] sm:$0xff]  ;;  %v2111_v48 = vld [vmem:[#allocation2 + $0x624] sm:$0xff] }
 0x1ee   : > { %2440 = vst.msk [vmem:[#allocation3 + $0x28] sm:$0xff] %vm2434_vm9, %v4133_v3  ;;  %3196 = vmatmul.mubr.msk.f32.gmra.mrb[2].mxu1 %vm2515_vm10, %v2470_v61  ;;  %v4530_v11 = vpop.permute.xlu0 %1986 }
 0x1ef   : > { %v2351_v8 = vpop.permute.xlu1 %2350  ;;  %v2471_v24 = vld [vmem:[#allocation3 + $0x20] sm:$0xff] }
 0x1f0   : > { %2441 = vst.msk [vmem:[#allocation3 + $0x30] sm:$0xff] %vm2434_vm9, %v2351_v8  ;;  %3198 = vmatprep.mubr.msk.f32.mxu1 %vm2515_vm10, %v2471_v24  ;;  %2004 = vrot.lane.b32.xlu0 %v1914_v47, %s3298_s15  ;;  %v2304_v8 = vld [vmem:[#allocation2 + $0x630] sm:$0xff] }
 0x1f1   : > { %1613 = vrot.lane.b32.xlu1 %v4185_v45, %s3301_s22 }
 0x1f2   : > { %v1411_v3 = vpop.permute.xlu0 %1410 }
 0x1f3   : > { %v1967_v57 = vpop.permute.xlu1 %1966  ;;  %1488 = vst.msk [vmem:[#allocation3 + $0x98] sm:$0xff] %vm1468_vm4, %v1411_v3  ;;  %v2109_v3 = vld [vmem:[#allocation2 + $0x5fc] sm:$0xff] }
 0x1f4   : > { %2056 = vst.msk [vmem:[#allocation3 + $0x38] sm:$0xff] %vm2048_vm7, %v1967_v57  ;;  %2006 = vrot.lane.b32.xlu0 %v1915_v58, %s3298_s15  ;;  %v1338_v58 = vld [vmem:[#allocation2 + $0x438] sm:$0xff] }
 0x1f5   : > { %2249 = vst.msk [vmem:[#allocation3 + $0x38] sm:$0xff] %vm2241_vm8, %v4456_v52  ;;  %2382 = vrot.lane.b32.xlu1 %v2296_v50, %s3299_s16  ;;  %v2472_v53 = vld [vmem:[#allocation3 + $0x28] sm:$0xff] }
 0x1f6   : > { %2442 = vst.msk [vmem:[#allocation3 + $0x38] sm:$0xff] %vm2434_vm9, %v4158_v29  ;;  %3199 = vmatmul.mubr.msk.f32.gmra.mrb[4].mxu1 %vm2515_vm10, %v2472_v53  ;;  %v4546_v55 = vpop.permute.xlu0 %2179  ;;  %v1719_v29 = vld [vmem:[#allocation2 + $0x3e0] sm:$0xff] }
 0x1f7   : > { %v1787_v45 = vpop.permute.xlu1 %1786  ;;  %v2473_v62 = vld [vmem:[#allocation3 + $0x30] sm:$0xff] }
 0x1f8   : > { %1869 = vst.msk [vmem:[#allocation3 + $0x70] sm:$0xff] %vm1854_vm6, %v1787_v45  ;;  %3201 = vmatprep.mubr.msk.f32.mxu1 %vm2515_vm10, %v2473_v62  ;;  %1430 = vrot.lane.b32.xlu0 %v4313_v30, %s3296_s13  ;;  %v1334_v30 = vld [vmem:[#allocation2 + $0x3e8] sm:$0xff] }
 0x1f9   : > { %2063 = vst.msk [vmem:[#allocation3 + $0x70] sm:$0xff] %vm2048_vm7, %v4483_v22  ;;  %1806 = vrot.lane.b32.xlu1 %v4269_v46, %s3297_s14  ;;  %v2475_v46 = vld [vmem:[#allocation3 + $0x40] sm:$0xff]  ;;  %v2298_v22 = vld [vmem:[#allocation2 + $0x5b8] sm:$0xff] }
 0x1fa   : > { %2256 = vst.msk [vmem:[#allocation3 + $0x70] sm:$0xff] %vm2241_vm8, %v4488_v0  ;;  %v1604_v52 = vpop.permute.xlu0 %1603 }
 0x1fb   : > { %v1789_v7 = vpop.permute.xlu1 %1788  ;;  %1681 = vst.msk [vmem:[#allocation3 + $0x98] sm:$0xff] %vm1661_vm5, %v1604_v52 }
 0x1fc   : > { %1870 = vst.msk [vmem:[#allocation3 + $0x78] sm:$0xff] %vm1854_vm6, %v1789_v7  ;;  %2199 = vrot.lane.b32.xlu0 %v2108_v15, %s3300_s17  ;;  %v2302_v15 = vld [vmem:[#allocation2 + $0x608] sm:$0xff] }
 0x1fd   : > { %1808 = vrot.lane.b32.xlu1 %v1719_v29, %s3297_s14  ;;  %v2474_v63 = vld [vmem:[#allocation3 + $0x38] sm:$0xff]  ;;  %v1531_v29 = vld [vmem:[#allocation2 + $0x444] sm:$0xff] }
 0x1fe   : > { %3202 = vmatmul.mubr.msk.f32.gmra.mrb[6].mxu1 %vm2515_vm10, %v2474_v63  ;;  %v2373_v38 = vpop.permute.xlu0 %2372 }
 0x1ff   : > { %v1983_v23 = vpop.permute.xlu1 %1982  ;;  %3204 = vmatprep.mubr.msk.f32.mxu1 %vm2515_vm10, %v2475_v46 }
 0x200   : > { %2064 = vst.msk [vmem:[#allocation3 + $0x78] sm:$0xff] %vm2048_vm7, %v1983_v23  ;;  %1623 = vrot.lane.b32.xlu0 %v4208_v59, %s3301_s22  ;;  %v2478_v59 = vld [vmem:[#allocation3 + $0x58] sm:$0xff] }
 0x201   : > { %2257 = vst.msk [vmem:[#allocation3 + $0x78] sm:$0xff] %vm2241_vm8, %v4497_v36  ;;  %1424 = vrot.lane.b32.xlu1 %v1334_v30, %s3296_s13  ;;  %v1721_v36 = vld [vmem:[#allocation2 + $0x408] sm:$0xff] }
 0x202   : > { %2450 = vst.msk [vmem:[#allocation3 + $0x78] sm:$0xff] %vm2434_vm9, %v4513_v32  ;;  %3205 = vmatmul.mubr.msk.f32.gmra.mrb[8].mxu1 %vm2515_vm10, %v2476_v6  ;;  %v4574_v14 = vpop.permute.xlu0 %1988 }
 0x203   : > { %v1598_v40 = vpop.permute.xlu1 %1597  ;;  %3207 = vmatprep.mubr.msk.f32.mxu1 %vm2515_vm10, %v2477_v10 }
 0x204   : > { %1678 = vst.msk [vmem:[#allocation3 + $0x80] sm:$0xff] %vm1661_vm5, %v1598_v40  ;;  %2392 = vrot.lane.b32.xlu0 %v2301_v13, %s3299_s16 }
 0x205   : > { %2193 = vrot.lane.b32.xlu1 %v2105_v2, %s3300_s17  ;;  %v1919_v2 = vld [vmem:[#allocation2 + $0x620] sm:$0xff] }
 0x206   : > { %3208 = vmatmul.mubr.msk.f32.gmra.mrb[10].mxu1 %vm2515_vm10, %v2478_v59  ;;  %v4581_v1 = vpop.permute.xlu0 %1990 }
 0x207   : > { %v2367_v17 = vpop.permute.xlu1 %2366  ;;  %3210 = vmatprep.mubr.msk.f32.mxu1 %vm2515_vm10, %v2479_v16  ;;  %v2305_v16 = vld [vmem:[#allocation2 + $0x638] sm:$0xff] }
 0x208   : > { %2449 = vst.msk [vmem:[#allocation3 + $0x70] sm:$0xff] %vm2434_vm9, %v2367_v17  ;;  %2008 = vrot.lane.b32.xlu0 %v1916_v31, %s3298_s15 }
 0x209   : > { %1617 = vrot.lane.b32.xlu1 %v4199_v54, %s3301_s22  ;;  %v2482_v27 = vld [vmem:[#allocation3 + $0x78] sm:$0xff] }
 0x20a   : > { %3211 = vmatmul.mubr.msk.f32.gmra.mrb[12].mxu1 %vm2515_vm10, %v2480_v21  ;;  %v1415_v18 = vpop.permute.xlu0 %1414 }
 0x20b   : > { %v1791_v42 = vpop.permute.xlu1 %1790  ;;  %1490 = vst.msk [vmem:[#allocation3 + $0xa8] sm:$0xff] %vm1468_vm4, %v1415_v18 }
 0x20c   : > { %1871 = vst.msk [vmem:[#allocation3 + $0x80] sm:$0xff] %vm1854_vm6, %v1791_v42  ;;  %2010 = vrot.lane.b32.xlu0 %v1917_v39, %s3298_s15 }
 0x20d   : > { %2065 = vst.msk [vmem:[#allocation3 + $0x80] sm:$0xff] %vm2048_vm7, %v4520_v41  ;;  %2386 = vrot.lane.b32.xlu1 %v2298_v22, %s3299_s16 }
 0x20e   : > { %v2184_v25 = vpop.permute.xlu0 %2183 }
 0x20f   : > { %v1793_v54 = vpop.permute.xlu1 %1792  ;;  %v2481_v0 = vld [vmem:[#allocation3 + $0x70] sm:$0xff] }
 0x210   : > { %1872 = vst.msk [vmem:[#allocation3 + $0x88] sm:$0xff] %vm1854_vm6, %v1793_v54  ;;  %3213 = vmatprep.mubr.msk.f32.mxu1 %vm2515_vm10, %v2481_v0  ;;  %1434 = vrot.lane.b32.xlu0 %v4329_v51, %s3296_s13 }
 0x211   : > { %2066 = vst.msk [vmem:[#allocation3 + $0x88] sm:$0xff] %vm2048_vm7, %v4530_v11  ;;  %1810 = vrot.lane.b32.xlu1 %v4285_v5, %s3297_s14  ;;  %3214 = vmatmul.mubr.msk.f32.gmra.mrb[14].mxu1 %vm2515_vm10, %v2482_v27  ;;  %v1336_v5 = vld [vmem:[#allocation2 + $0x410] sm:$0xff] }
 0x212   : > { %2259 = vst.msk [vmem:[#allocation3 + $0x88] sm:$0xff] %vm2241_vm8, %v4546_v55  ;;  %v1608_v43 = vpop.permute.xlu0 %1607  ;;  %v1723_v11 = vld [vmem:[#allocation2 + $0x430] sm:$0xff] }
 0x213   : > { %2452 = vst.msk [vmem:[#allocation3 + $0x88] sm:$0xff] %vm2434_vm9, %v2373_v38  ;;  %v1409_v49 = vpop.permute.xlu1 %1408  ;;  %v1725_v38 = vld [vmem:[#allocation2 + $0x458] sm:$0xff] }
 0x214   : > { %1487 = vst.msk [vmem:[#allocation3 + $0x90] sm:$0xff] %vm1468_vm4, %v1409_v49  ;;  %2203 = vrot.lane.b32.xlu0 %v2110_v44, %s3300_s17 }
 0x215   : > { %1683 = vst.msk [vmem:[#allocation3 + $0xa8] sm:$0xff] %vm1661_vm5, %v1608_v43  ;;  %1812 = vrot.lane.b32.xlu1 %v1721_v36, %s3297_s14 }
 0x216   : > { %v2377_v9 = vpop.permute.xlu0 %2376 }
 0x217   : > { %v2178_v51 = vpop.permute.xlu1 %2177 }
 0x218   : > { %2258 = vst.msk [vmem:[#allocation3 + $0x80] sm:$0xff] %vm2241_vm8, %v2178_v51  ;;  %1627 = vrot.lane.b32.xlu0 %v4228_v4, %s3301_s22  ;;  %v2300_v4 = vld [vmem:[#allocation2 + $0x5e0] sm:$0xff] }
 0x219   : > { %1428 = vrot.lane.b32.xlu1 %v1336_v5, %s3296_s13 }
 0x21a   : > { %v1993_v12 = vpop.permute.xlu0 %1992  ;;  %v2484_v41 = vld [vmem:[#allocation3 + $0x88] sm:$0xff] }
 0x21b   : > { %v1602_v19 = vpop.permute.xlu1 %1601 }
 0x21c   : > { %1680 = vst.msk [vmem:[#allocation3 + $0x90] sm:$0xff] %vm1661_vm5, %v1602_v19  ;;  %2396 = vrot.lane.b32.xlu0 %v2303_v34, %s3299_s16 }
 0x21d   : > { %2197 = vrot.lane.b32.xlu1 %v2107_v33, %s3300_s17 }
 0x21e   : > { %v1995_v37 = vpop.permute.xlu0 %1994 }
 0x21f   : > { %v2371_v32 = vpop.permute.xlu1 %2370 }
 0x220   : > { %2451 = vst.msk [vmem:[#allocation3 + $0x80] sm:$0xff] %vm2434_vm9, %v2371_v32  ;;  %2012 = vrot.lane.b32.xlu0 %v1918_v35, %s3298_s15 }
 0x221   : > { %1621 = vrot.lane.b32.xlu1 %v4213_v60, %s3301_s22 }
 0x222   : > { %v1419_v56 = vpop.permute.xlu0 %1418 }
 0x223   : > { %v1795_v28 = vpop.permute.xlu1 %1794  ;;  %1492 = vst.msk [vmem:[#allocation3 + $0xb8] sm:$0xff] %vm1468_vm4, %v1419_v56 }
 0x224   : > { %1873 = vst.msk [vmem:[#allocation3 + $0x90] sm:$0xff] %vm1854_vm6, %v1795_v28  ;;  %2205 = vrot.lane.b32.xlu0 %v2111_v48, %s3300_s17 }
 0x225   : > { %2067 = vst.msk [vmem:[#allocation3 + $0x90] sm:$0xff] %vm2048_vm7, %v4574_v14  ;;  %2390 = vrot.lane.b32.xlu1 %v2300_v4, %s3299_s16 }
 0x226   : > { %v2188_v60 = vpop.permute.xlu0 %2187 }
 0x227   : > { %v1797_v61 = vpop.permute.xlu1 %1796  ;;  %v2483_v47 = vld [vmem:[#allocation3 + $0x80] sm:$0xff] }
 0x228   : > { %1874 = vst.msk [vmem:[#allocation3 + $0x98] sm:$0xff] %vm1854_vm6, %v1797_v61  ;;  %3216 = vmatprep.mubr.msk.f32.mxu1 %vm2515_vm10, %v2483_v47  ;;  %2398 = vrot.lane.b32.xlu0 %v2304_v8, %s3299_s16 }
 0x229   : > { %2068 = vst.msk [vmem:[#allocation3 + $0x98] sm:$0xff] %vm2048_vm7, %v4581_v1  ;;  %1814 = vrot.lane.b32.xlu1 %v4301_v20, %s3297_s14  ;;  %3217 = vmatmul.mubr.msk.f32.gmra.mrb[16].mxu1 %vm2515_vm10, %v2484_v41 }
 0x22a   : > { %2261 = vst.msk [vmem:[#allocation3 + $0x98] sm:$0xff] %vm2241_vm8, %v2184_v25  ;;  %v1612_v50 = vpop.permute.xlu0 %1611 }
 0x22b   : > { %2454 = vst.msk [vmem:[#allocation3 + $0x98] sm:$0xff] %vm2434_vm9, %v2377_v9  ;;  %v1413_v24 = vpop.permute.xlu1 %1412 }
 0x22c   : > { %1489 = vst.msk [vmem:[#allocation3 + $0xa0] sm:$0xff] %vm1468_vm4, %v1413_v24 }
 0x22d   : > { %1685 = vst.msk [vmem:[#allocation3 + $0xb8] sm:$0xff] %vm1661_vm5, %v1612_v50  ;;  %1816 = vrot.lane.b32.xlu1 %v1723_v11, %s3297_s14 }
 0x22e   : > { %v2381_v20 = vpop.permute.xlu0 %2380 }
 0x22f   : > { %v2182_v57 = vpop.permute.xlu1 %2181 }
 0x230   : > { %2260 = vst.msk [vmem:[#allocation3 + $0x90] sm:$0xff] %vm2241_vm8, %v2182_v57 }
 0x231   : > { %1432 = vrot.lane.b32.xlu1 %v1338_v58, %s3296_s13 }
 0x232   : > { %v1997_v45 = vpop.permute.xlu0 %1996  ;;  %v2486_v63 = vld [vmem:[#allocation3 + $0x98] sm:$0xff] }
 0x233   : > { %v1606_v53 = vpop.permute.xlu1 %1605 }
 0x234   : > { %1682 = vst.msk [vmem:[#allocation3 + $0xa0] sm:$0xff] %vm1661_vm5, %v1606_v53 }
 0x235   : > { %2201 = vrot.lane.b32.xlu1 %v2109_v3, %s3300_s17 }
 0x236   : > { %v1999_v62 = vpop.permute.xlu0 %1998 }
 0x237   : > { %v2375_v55 = vpop.permute.xlu1 %2374 }
 0x238   : > { %2453 = vst.msk [vmem:[#allocation3 + $0x90] sm:$0xff] %vm2434_vm9, %v2375_v55 }
 0x239   : > { %1625 = vrot.lane.b32.xlu1 %v1531_v29, %s3301_s22 }
 0x23a   : > { %v1423_v52 = vpop.permute.xlu0 %1422 }
 0x23b   : > { %v1799_v7 = vpop.permute.xlu1 %1798  ;;  %1494 = vst.msk [vmem:[#allocation3 + $0xc8] sm:$0xff] %vm1468_vm4, %v1423_v52 }
 0x23c   : > { %1875 = vst.msk [vmem:[#allocation3 + $0xa0] sm:$0xff] %vm1854_vm6, %v1799_v7 }
 0x23d   : > { %2069 = vst.msk [vmem:[#allocation3 + $0xa0] sm:$0xff] %vm2048_vm7, %v1993_v12  ;;  %2394 = vrot.lane.b32.xlu1 %v2302_v15, %s3299_s16 }
 0x23e   : > { %v2192_v30 = vpop.permute.xlu0 %2191 }
 0x23f   : > { %v1801_v46 = vpop.permute.xlu1 %1800  ;;  %v2485_v23 = vld [vmem:[#allocation3 + $0x90] sm:$0xff] }
 0x240   : > { %1876 = vst.msk [vmem:[#allocation3 + $0xa8] sm:$0xff] %vm1854_vm6, %v1801_v46  ;;  %3219 = vmatprep.mubr.msk.f32.mxu1 %vm2515_vm10, %v2485_v23 }
 0x241   : > { %2070 = vst.msk [vmem:[#allocation3 + $0xa8] sm:$0xff] %vm2048_vm7, %v1995_v37  ;;  %1818 = vrot.lane.b32.xlu1 %v4318_v26, %s3297_s14  ;;  %3220 = vmatmul.mubr.msk.f32.gmra.mrb[18].mxu1 %vm2515_vm10, %v2486_v63  ;;  %v2112_v26 = vld [vmem:[#allocation2 + $0x62c] sm:$0xff] }
 0x242   : > { %2263 = vst.msk [vmem:[#allocation3 + $0xa8] sm:$0xff] %vm2241_vm8, %v2188_v60  ;;  %v1616_v10 = vpop.permute.xlu0 %1615 }
 0x243   : > { %2456 = vst.msk [vmem:[#allocation3 + $0xa8] sm:$0xff] %vm2434_vm9, %v2381_v20  ;;  %v1417_v6 = vpop.permute.xlu1 %1416 }
 0x244   : > { %1491 = vst.msk [vmem:[#allocation3 + $0xb0] sm:$0xff] %vm1468_vm4, %v1417_v6 }
 0x245   : > { %1687 = vst.msk [vmem:[#allocation3 + $0xc8] sm:$0xff] %vm1661_vm5, %v1616_v10  ;;  %1820 = vrot.lane.b32.xlu1 %v1725_v38, %s3297_s14 }
 0x246   : > { %v2385_v40 = vpop.permute.xlu0 %2384 }
 0x247   : > { %v2186_v13 = vpop.permute.xlu1 %2185 }
 0x248   : > { %2262 = vst.msk [vmem:[#allocation3 + $0xa0] sm:$0xff] %vm2241_vm8, %v2186_v13 }
 0x249   : > { %2014 = vrot.lane.b32.xlu1 %v1919_v2, %s3298_s15  ;;  %v4727_v2 = vld [vmem:[%s4848_s4] ss:$0 sm:$0xff] }
 0x24a   : > { %v2001_v59 = vpop.permute.xlu0 %2000  ;;  %v2488_v22 = vld [vmem:[#allocation3 + $0xa8] sm:$0xff] }
 0x24b   : > { %v1610_v14 = vpop.permute.xlu1 %1609 }
 0x24c   : > { %1684 = vst.msk [vmem:[#allocation3 + $0xb0] sm:$0xff] %vm1661_vm5, %v1610_v14 }
 0x24d   : > { %2207 = vrot.lane.b32.xlu1 %v2112_v26, %s3300_s17  ;;  %s4739_s17 = scalar_lea.vmem %s4849_s5, %s3033_s7 }
 0x24e   : > { %v2003_v17 = vpop.permute.xlu0 %2002 }
 0x24f   : > { %v2379_v31 = vpop.permute.xlu1 %2378 }
 0x250   : > { %2455 = vst.msk [vmem:[#allocation3 + $0xa0] sm:$0xff] %vm2434_vm9, %v2379_v31 }
 0x251   : > { %2400 = vrot.lane.b32.xlu1 %v2305_v16, %s3299_s16 }
 0x252   : > { %v1427_v21 = vpop.permute.xlu0 %1426 }
 0x253   : > { %v1803_v1 = vpop.permute.xlu1 %1802  ;;  %1496 = vst.msk [vmem:[#allocation3 + $0xd8] sm:$0xff] %vm1468_vm4, %v1427_v21 }
 0x254   : > { %1877 = vst.msk [vmem:[#allocation3 + $0xb0] sm:$0xff] %vm1854_vm6, %v1803_v1 }
 0x255   : > { %2071 = vst.msk [vmem:[#allocation3 + $0xb0] sm:$0xff] %vm2048_vm7, %v1997_v45 }
 0x256   : > { %v2196_v42 = vpop.permute.xlu0 %2195 }
 0x257   : > { %v1805_v39 = vpop.permute.xlu1 %1804  ;;  %v2487_v18 = vld [vmem:[#allocation3 + $0xa0] sm:$0xff] }
 0x258   : > { %1878 = vst.msk [vmem:[#allocation3 + $0xb8] sm:$0xff] %vm1854_vm6, %v1805_v39  ;;  %3222 = vmatprep.mubr.msk.f32.mxu1 %vm2515_vm10, %v2487_v18 }
 0x259   : > { %2072 = vst.msk [vmem:[#allocation3 + $0xb8] sm:$0xff] %vm2048_vm7, %v1999_v62  ;;  %3223 = vmatmul.mubr.msk.f32.gmra.mrb[20].mxu1 %vm2515_vm10, %v2488_v22 }
 0x25a   : > { %2265 = vst.msk [vmem:[#allocation3 + $0xb8] sm:$0xff] %vm2241_vm8, %v2192_v30  ;;  %v1620_v25 = vpop.permute.xlu0 %1619 }
 0x25b   : > { %2458 = vst.msk [vmem:[#allocation3 + $0xb8] sm:$0xff] %vm2434_vm9, %v2385_v40  ;;  %v1421_v54 = vpop.permute.xlu1 %1420 }
 0x25c   : > { %1493 = vst.msk [vmem:[#allocation3 + $0xc0] sm:$0xff] %vm1468_vm4, %v1421_v54 }
 0x25d   : > { %1689 = vst.msk [vmem:[#allocation3 + $0xd8] sm:$0xff] %vm1661_vm5, %v1620_v25 }
 0x25e   : > { %v2389_v27 = vpop.permute.xlu0 %2388 }
 0x25f   : > { %v2190_v0 = vpop.permute.xlu1 %2189 }
 0x260   : > { %2264 = vst.msk [vmem:[#allocation3 + $0xb0] sm:$0xff] %vm2241_vm8, %v2190_v0 }
 0x262   : > { %v2005_v44 = vpop.permute.xlu0 %2004  ;;  %v2490_v9 = vld [vmem:[#allocation3 + $0xb8] sm:$0xff] }
 0x263   : > { %v1614_v36 = vpop.permute.xlu1 %1613 }
 0x264   : > { %1686 = vst.msk [vmem:[#allocation3 + $0xc0] sm:$0xff] %vm1661_vm5, %v1614_v36 }
 0x266   : > { %v2007_v43 = vpop.permute.xlu0 %2006 }
 0x267   : > { %v2383_v49 = vpop.permute.xlu1 %2382 }
 0x268   : > { %2457 = vst.msk [vmem:[#allocation3 + $0xb0] sm:$0xff] %vm2434_vm9, %v2383_v49 }
 0x26a   : > { %v1431_v51 = vpop.permute.xlu0 %1430 }
 0x26b   : > { %v1807_v5 = vpop.permute.xlu1 %1806  ;;  %1498 = vst.msk [vmem:[#allocation3 + $0xe8] sm:$0xff] %vm1468_vm4, %v1431_v51 }
 0x26c   : > { %1879 = vst.msk [vmem:[#allocation3 + $0xc0] sm:$0xff] %vm1854_vm6, %v1807_v5 }
 0x26d   : > { %2073 = vst.msk [vmem:[#allocation3 + $0xc0] sm:$0xff] %vm2048_vm7, %v2001_v59 }
 0x26e   : > { %v2200_v34 = vpop.permute.xlu0 %2199 }
 0x26f   : > { %v1809_v33 = vpop.permute.xlu1 %1808  ;;  %v2489_v19 = vld [vmem:[#allocation3 + $0xb0] sm:$0xff] }
 0x270   : > { %1880 = vst.msk [vmem:[#allocation3 + $0xc8] sm:$0xff] %vm1854_vm6, %v1809_v33  ;;  %3225 = vmatprep.mubr.msk.f32.mxu1 %vm2515_vm10, %v2489_v19 }
 0x271   : > { %2074 = vst.msk [vmem:[#allocation3 + $0xc8] sm:$0xff] %vm2048_vm7, %v2003_v17  ;;  %3226 = vmatmul.mubr.msk.f32.gmra.mrb[22].mxu1 %vm2515_vm10, %v2490_v9 }
 0x272   : > { %2267 = vst.msk [vmem:[#allocation3 + $0xc8] sm:$0xff] %vm2241_vm8, %v2196_v42  ;;  %v1624_v35 = vpop.permute.xlu0 %1623 }
 0x273   : > { %2460 = vst.msk [vmem:[#allocation3 + $0xc8] sm:$0xff] %vm2434_vm9, %v2389_v27  ;;  %v1425_v12 = vpop.permute.xlu1 %1424 }
 0x274   : > { %1495 = vst.msk [vmem:[#allocation3 + $0xd0] sm:$0xff] %vm1468_vm4, %v1425_v12 }
 0x275   : > { %1691 = vst.msk [vmem:[#allocation3 + $0xe8] sm:$0xff] %vm1661_vm5, %v1624_v35 }
 0x276   : > { %v2393_v37 = vpop.permute.xlu0 %2392 }
 0x277   : > { %v2194_v32 = vpop.permute.xlu1 %2193 }
 0x278   : > { %2266 = vst.msk [vmem:[#allocation3 + $0xc0] sm:$0xff] %vm2241_vm8, %v2194_v32 }
 0x27a   : > { %v2009_v48 = vpop.permute.xlu0 %2008  ;;  %v2492_v60 = vld [vmem:[#allocation3 + $0xc8] sm:$0xff] }
 0x27b   : > { %v1618_v4 = vpop.permute.xlu1 %1617 }
 0x27c   : > { %1688 = vst.msk [vmem:[#allocation3 + $0xd0] sm:$0xff] %vm1661_vm5, %v1618_v4 }
 0x27e   : > { %v2011_v56 = vpop.permute.xlu0 %2010 }
 0x27f   : > { %v2387_v28 = vpop.permute.xlu1 %2386 }
 0x280   : > { %2459 = vst.msk [vmem:[#allocation3 + $0xc0] sm:$0xff] %vm2434_vm9, %v2387_v28 }
 0x282   : > { %v1435_v61 = vpop.permute.xlu0 %1434 }
 0x283   : > { %v1811_v41 = vpop.permute.xlu1 %1810  ;;  %1500 = vst.msk [vmem:[#allocation3 + $0xf8] sm:$0xff] %vm1468_vm4, %v1435_v61 }
 0x284   : > { %1881 = vst.msk [vmem:[#allocation3 + $0xd0] sm:$0xff] %vm1854_vm6, %v1811_v41 }
 0x285   : > { %2075 = vst.msk [vmem:[#allocation3 + $0xd0] sm:$0xff] %vm2048_vm7, %v2005_v44 }
 0x286   : > { %v2204_v8 = vpop.permute.xlu0 %2203 }
 0x287   : > { %v1813_v47 = vpop.permute.xlu1 %1812  ;;  %v2491_v11 = vld [vmem:[#allocation3 + $0xc0] sm:$0xff] }
 0x288   : > { %1882 = vst.msk [vmem:[#allocation3 + $0xd8] sm:$0xff] %vm1854_vm6, %v1813_v47  ;;  %3228 = vmatprep.mubr.msk.f32.mxu1 %vm2515_vm10, %v2491_v11 }
 0x289   : > { %2076 = vst.msk [vmem:[#allocation3 + $0xd8] sm:$0xff] %vm2048_vm7, %v2007_v43  ;;  %3229 = vmatmul.mubr.msk.f32.gmra.mrb[24].mxu1 %vm2515_vm10, %v2492_v60 }
 0x28a   : > { %2269 = vst.msk [vmem:[#allocation3 + $0xd8] sm:$0xff] %vm2241_vm8, %v2200_v34  ;;  %v1628_v50 = vpop.permute.xlu0 %1627 }
 0x28b   : > { %2462 = vst.msk [vmem:[#allocation3 + $0xd8] sm:$0xff] %vm2434_vm9, %v2393_v37  ;;  %v1429_v24 = vpop.permute.xlu1 %1428 }
 0x28c   : > { %1497 = vst.msk [vmem:[#allocation3 + $0xe0] sm:$0xff] %vm1468_vm4, %v1429_v24 }
 0x28d   : > { %1693 = vst.msk [vmem:[#allocation3 + $0xf8] sm:$0xff] %vm1661_vm5, %v1628_v50 }
 0x28e   : > { %v2397_v62 = vpop.permute.xlu0 %2396 }
 0x28f   : > { %v2198_v58 = vpop.permute.xlu1 %2197 }
 0x290   : > { %2268 = vst.msk [vmem:[#allocation3 + $0xd0] sm:$0xff] %vm2241_vm8, %v2198_v58 }
 0x292   : > { %v2494_v53 = vld [vmem:[#allocation3 + $0xd8] sm:$0xff]  ;;  %v2013_v7 = vpop.permute.xlu0 %2012 }
 0x293   : > { %v1622_v57 = vpop.permute.xlu1 %1621 }
 0x294   : > { %1690 = vst.msk [vmem:[#allocation3 + $0xe0] sm:$0xff] %vm1661_vm5, %v1622_v57 }
 0x296   : > { %v2206_v63 = vpop.permute.xlu0 %2205 }
 0x297   : > { %v2391_v20 = vpop.permute.xlu1 %2390 }
 0x298   : > { %2461 = vst.msk [vmem:[#allocation3 + $0xd0] sm:$0xff] %vm2434_vm9, %v2391_v20 }
 0x29a   : > { %v2399_v23 = vpop.permute.xlu0 %2398 }
 0x29b   : > { %v1815_v3 = vpop.permute.xlu1 %1814 }
 0x29c   : > { %1883 = vst.msk [vmem:[#allocation3 + $0xe0] sm:$0xff] %vm1854_vm6, %v1815_v3 }
 0x29d   : > { %2077 = vst.msk [vmem:[#allocation3 + $0xe0] sm:$0xff] %vm2048_vm7, %v2009_v48 }
 0x29f   : > { %v1817_v45 = vpop.permute.xlu1 %1816  ;;  %v2493_v55 = vld [vmem:[#allocation3 + $0xd0] sm:$0xff] }
 0x2a0   : > { %1884 = vst.msk [vmem:[#allocation3 + $0xe8] sm:$0xff] %vm1854_vm6, %v1817_v45  ;;  %3231 = vmatprep.mubr.msk.f32.mxu1 %vm2515_vm10, %v2493_v55 }
 0x2a1   : > { %2078 = vst.msk [vmem:[#allocation3 + $0xe8] sm:$0xff] %vm2048_vm7, %v2011_v56  ;;  %3232 = vmatmul.mubr.msk.f32.gmra.mrb[26].mxu1 %vm2515_vm10, %v2494_v53 }
 0x2a2   : > { %2271 = vst.msk [vmem:[#allocation3 + $0xe8] sm:$0xff] %vm2241_vm8, %v2204_v8 }
 0x2a3   : > { %v1433_v29 = vpop.permute.xlu1 %1432  ;;  %2464 = vst.msk [vmem:[#allocation3 + $0xe8] sm:$0xff] %vm2434_vm9, %v2397_v62 }
 0x2a4   : > { %1499 = vst.msk [vmem:[#allocation3 + $0xf0] sm:$0xff] %vm1468_vm4, %v1433_v29 }
 0x2a7   : > { %v2202_v15 = vpop.permute.xlu1 %2201 }
 0x2a8   : > { %2270 = vst.msk [vmem:[#allocation3 + $0xe0] sm:$0xff] %vm2241_vm8, %v2202_v15 }
 0x2aa   : > { %v2496_v38 = vld [vmem:[#allocation3 + $0xe8] sm:$0xff] }
 0x2ab   : > { %v1626_v52 = vpop.permute.xlu1 %1625 }
 0x2ac   : > { %1692 = vst.msk [vmem:[#allocation3 + $0xf0] sm:$0xff] %vm1661_vm5, %v1626_v52 }
 0x2af   : > { %v2395_v46 = vpop.permute.xlu1 %2394 }
 0x2b0   : > { %2463 = vst.msk [vmem:[#allocation3 + $0xe0] sm:$0xff] %vm2434_vm9, %v2395_v46 }
 0x2b3   : > { %v1819_v30 = vpop.permute.xlu1 %1818 }
 0x2b4   : > { %1885 = vst.msk [vmem:[#allocation3 + $0xf0] sm:$0xff] %vm1854_vm6, %v1819_v30 }
 0x2b5   : > { %2079 = vst.msk [vmem:[#allocation3 + $0xf0] sm:$0xff] %vm2048_vm7, %v2013_v7 }
 0x2b6   : > { %2272 = vst.msk [vmem:[#allocation3 + $0xf0] sm:$0xff] %vm2241_vm8, %v2206_v63 }
 0x2b7   : > { %v1821_v6 = vpop.permute.xlu1 %1820  ;;  %v2495_v10 = vld [vmem:[#allocation3 + $0xe0] sm:$0xff]  ;;  %2465 = vst.msk [vmem:[#allocation3 + $0xf0] sm:$0xff] %vm2434_vm9, %v2399_v23 }
 0x2b8   : > { %1886 = vst.msk [vmem:[#allocation3 + $0xf8] sm:$0xff] %vm1854_vm6, %v1821_v6  ;;  %3234 = vmatprep.mubr.msk.f32.mxu1 %vm2515_vm10, %v2495_v10 }
 0x2b9   : > { %v3194_v13 = vpop.f32.mrb[0].mxu1  ;;  %3235 = vmatmul.mubr.msk.f32.gmra.mrb[28].mxu1 %vm2515_vm10, %v2496_v38 }
 0x2ba   : > { %v2684_v40 = vadd.f32 %v3194_v13, %v4727_v2  ;;  %v2678_v26 = vpop.f32.mrb[1].mxu1 }
 0x2bb   : > { %v2679_v14 = vadd.f32 %v4727_v2, %v2678_v26  ;;  %v2015_v59 = vpop.permute.xlu1 %2014 }
 0x2bc   : > { %v2838_v16 = vmax.f32 %v2684_v40, 0.0  ;;  %2080 = vst.msk [vmem:[#allocation3 + $0xf8] sm:$0xff] %vm2048_vm7, %v2015_v59 }
 0x2bd   : > { %v2837_v31 = vmax.f32 %v2679_v14, 0.0 }
 0x2be   : > { %2870 = vst.msk [vmem:[%s4739_s17 + $0x8] sm:$0xff] %vm624_vm0, %v2838_v16  ;;  %v2497_v17 = vld [vmem:[#allocation3 + $0xf0] sm:$0xff] }
 0x2bf   : > { %2869 = vst.msk [vmem:[%s4739_s17] sm:$0xff] %vm624_vm0, %v2837_v31  ;;  %v2208_v1 = vpop.permute.xlu1 %2207  ;;  %3237 = vmatprep.mubr.msk.f32.mxu1 %vm2515_vm10, %v2497_v17 }
 0x2c0   : > { %2273 = vst.msk [vmem:[#allocation3 + $0xf8] sm:$0xff] %vm2241_vm8, %v2208_v1 }
 0x2c1   : > { %v3197_v21 = vpop.f32.mrb[2].mxu1 }
 0x2c2   : > { %v2694_v22 = vadd.f32 %v3197_v21, %v4727_v2  ;;  %v2688_v39 = vpop.f32.mrb[3].mxu1 }
 0x2c3   : > { %v2689_v42 = vadd.f32 %v4727_v2, %v2688_v39  ;;  %v2401_v18 = vpop.permute.xlu1 %2400 }
 0x2c4   : > { %v2840_v54 = vmax.f32 %v2694_v22, 0.0  ;;  %2466 = vst.msk [vmem:[#allocation3 + $0xf8] sm:$0xff] %vm2434_vm9, %v2401_v18 }
 0x2c5   : > { %v2839_v25 = vmax.f32 %v2689_v42, 0.0 }
 0x2c6   : > { %2872 = vst.msk [vmem:[%s4739_s17 + $0x18] sm:$0xff] %vm624_vm0, %v2840_v54 }
 0x2c7   : > { %2871 = vst.msk [vmem:[%s4739_s17 + $0x10] sm:$0xff] %vm624_vm0, %v2839_v25 }
 0x2c9   : > { %v3200_v0 = vpop.f32.mrb[4].mxu1 }
 0x2ca   : > { %v2704_v27 = vadd.f32 %v3200_v0, %v4727_v2  ;;  %v2698_v36 = vpop.f32.mrb[5].mxu1 }
 0x2cb   : > { %v2699_v44 = vadd.f32 %v4727_v2, %v2698_v36  ;;  %v2498_v49 = vld [vmem:[#allocation3 + $0xf8] sm:$0xff] }
 0x2cc   : > { %v2842_v43 = vmax.f32 %v2704_v27, 0.0  ;;  %3238 = vmatmul.mubr.msk.f32.gmra.mrb[30].mxu1 %vm2515_vm10, %v2498_v49 }
 0x2cd   : > { %v2841_v5 = vmax.f32 %v2699_v44, 0.0 }
 0x2ce   : > { %2874 = vst.msk [vmem:[%s4739_s17 + $0x28] sm:$0xff] %vm624_vm0, %v2842_v43 }
 0x2cf   : > { %2873 = vst.msk [vmem:[%s4739_s17 + $0x20] sm:$0xff] %vm624_vm0, %v2841_v5 }
 0x2d1   : > { %v3203_v51 = vpop.f32.mrb[6].mxu1 }
 0x2d2   : > { %v2714_v9 = vadd.f32 %v3203_v51, %v4727_v2  ;;  %v2708_v33 = vpop.f32.mrb[7].mxu1 }
 0x2d3   : > { %v2709_v34 = vadd.f32 %v4727_v2, %v2708_v33 }
 0x2d4   : > { %v2844_v19 = vmax.f32 %v2714_v9, 0.0 }
 0x2d5   : > { %v2843_v12 = vmax.f32 %v2709_v34, 0.0  ;;  %v3206_v35 = vpop.f32.mrb[8].mxu1 }
 0x2d6   : > { %2876 = vst.msk [vmem:[%s4739_s17 + $0x38] sm:$0xff] %vm624_vm0, %v2844_v19  ;;  %v2724_v32 = vadd.f32 %v3206_v35, %v4727_v2  ;;  %v2718_v37 = vpop.f32.mrb[9].mxu1 }
 0x2d7   : > { %2875 = vst.msk [vmem:[%s4739_s17 + $0x30] sm:$0xff] %vm624_vm0, %v2843_v12  ;;  %v2719_v4 = vadd.f32 %v4727_v2, %v2718_v37 }
 0x2d8   : > { %v2846_v48 = vmax.f32 %v2724_v32, 0.0 }
 0x2d9   : > { %v2845_v28 = vmax.f32 %v2719_v4, 0.0  ;;  %v3209_v56 = vpop.f32.mrb[10].mxu1 }
 0x2da   : > { %2878 = vst.msk [vmem:[%s4739_s17 + $0x48] sm:$0xff] %vm624_vm0, %v2846_v48  ;;  %v2734_v41 = vadd.f32 %v3209_v56, %v4727_v2  ;;  %v2728_v61 = vpop.f32.mrb[11].mxu1 }
 0x2db   : > { %2877 = vst.msk [vmem:[%s4739_s17 + $0x40] sm:$0xff] %vm624_vm0, %v2845_v28  ;;  %v2729_v60 = vadd.f32 %v4727_v2, %v2728_v61 }
 0x2dc   : > { %v2848_v47 = vmax.f32 %v2734_v41, 0.0 }
 0x2dd   : > { %v2847_v8 = vmax.f32 %v2729_v60, 0.0  ;;  %v3212_v11 = vpop.f32.mrb[12].mxu1 }
 0x2de   : > { %2880 = vst.msk [vmem:[%s4739_s17 + $0x58] sm:$0xff] %vm624_vm0, %v2848_v47  ;;  %v2744_v24 = vadd.f32 %v3212_v11, %v4727_v2  ;;  %v2738_v50 = vpop.f32.mrb[13].mxu1 }
 0x2df   : > { %2879 = vst.msk [vmem:[%s4739_s17 + $0x50] sm:$0xff] %vm624_vm0, %v2847_v8  ;;  %v2739_v58 = vadd.f32 %v4727_v2, %v2738_v50 }
 0x2e0   : > { %v2850_v57 = vmax.f32 %v2744_v24, 0.0 }
 0x2e1   : > { %v2849_v20 = vmax.f32 %v2739_v58, 0.0 }
 0x2e2   : > { %2882 = vst.msk [vmem:[%s4739_s17 + $0x68] sm:$0xff] %vm624_vm0, %v2850_v57 }
 0x2e3   : > { %2881 = vst.msk [vmem:[%s4739_s17 + $0x60] sm:$0xff] %vm624_vm0, %v2849_v20 }
 0x2e4   : > { %v3215_v3 = vpop.f32.mrb[14].mxu1 }
 0x2e5   : > { %v2754_v53 = vadd.f32 %v3215_v3, %v4727_v2  ;;  %v2748_v45 = vpop.f32.mrb[15].mxu1 }
 0x2e6   : > { %v2749_v55 = vadd.f32 %v4727_v2, %v2748_v45 }
 0x2e7   : > { %v2852_v62 = vmax.f32 %v2754_v53, 0.0 }
 0x2e8   : > { %v2851_v29 = vmax.f32 %v2749_v55, 0.0 }
 0x2e9   : > { %2884 = vst.msk [vmem:[%s4739_s17 + $0x78] sm:$0xff] %vm624_vm0, %v2852_v62 }
 0x2ea   : > { %2883 = vst.msk [vmem:[%s4739_s17 + $0x70] sm:$0xff] %vm624_vm0, %v2851_v29 }
 0x2fc   : > { %v3218_v15 = vpop.f32.mrb[16].mxu1 }
 0x2fd   : > { %v2764_v7 = vadd.f32 %v3218_v15, %v4727_v2  ;;  %v2758_v52 = vpop.f32.mrb[17].mxu1 }
 0x2fe   : > { %v2759_v63 = vadd.f32 %v4727_v2, %v2758_v52 }
 0x2ff   : > { %v2854_v46 = vmax.f32 %v2764_v7, 0.0 }
 0x300   : > { %v2853_v30 = vmax.f32 %v2759_v63, 0.0 }
 0x301   : > { %2886 = vst.msk [vmem:[%s4739_s17 + $0x88] sm:$0xff] %vm624_vm0, %v2854_v46 }
 0x302   : > { %2885 = vst.msk [vmem:[%s4739_s17 + $0x80] sm:$0xff] %vm624_vm0, %v2853_v30 }
 0x314   : > { %v3221_v23 = vpop.f32.mrb[18].mxu1 }
 0x315   : > { %v2774_v38 = vadd.f32 %v3221_v23, %v4727_v2  ;;  %v2768_v6 = vpop.f32.mrb[19].mxu1 }
 0x316   : > { %v2769_v10 = vadd.f32 %v4727_v2, %v2768_v6 }
 0x317   : > { %v2856_v13 = vmax.f32 %v2774_v38, 0.0 }
 0x318   : > { %v2855_v40 = vmax.f32 %v2769_v10, 0.0 }
 0x319   : > { %2888 = vst.msk [vmem:[%s4739_s17 + $0x98] sm:$0xff] %vm624_vm0, %v2856_v13 }
 0x31a   : > { %2887 = vst.msk [vmem:[%s4739_s17 + $0x90] sm:$0xff] %vm624_vm0, %v2855_v40 }
 0x32c   : > { %v3224_v26 = vpop.f32.mrb[20].mxu1 }
 0x32d   : > { %v2784_v14 = vadd.f32 %v3224_v26, %v4727_v2  ;;  %v2778_v59 = vpop.f32.mrb[21].mxu1 }
 0x32e   : > { %v2779_v16 = vadd.f32 %v4727_v2, %v2778_v59 }
 0x32f   : > { %v2858_v31 = vmax.f32 %v2784_v14, 0.0 }
 0x330   : > { %v2857_v17 = vmax.f32 %v2779_v16, 0.0 }
 0x331   : > { %2890 = vst.msk [vmem:[%s4739_s17 + $0xa8] sm:$0xff] %vm624_vm0, %v2858_v31 }
 0x332   : > { %2889 = vst.msk [vmem:[%s4739_s17 + $0xa0] sm:$0xff] %vm624_vm0, %v2857_v17 }
 0x344   : > { %v3227_v1 = vpop.f32.mrb[22].mxu1 }
 0x345   : > { %v2794_v21 = vadd.f32 %v3227_v1, %v4727_v2  ;;  %v2788_v22 = vpop.f32.mrb[23].mxu1 }
 0x346   : > { %v2789_v39 = vadd.f32 %v4727_v2, %v2788_v22 }
 0x347   : > { %v2860_v42 = vmax.f32 %v2794_v21, 0.0 }
 0x348   : > { %v2859_v18 = vmax.f32 %v2789_v39, 0.0 }
 0x349   : > { %2892 = vst.msk [vmem:[%s4739_s17 + $0xb8] sm:$0xff] %vm624_vm0, %v2860_v42 }
 0x34a   : > { %2891 = vst.msk [vmem:[%s4739_s17 + $0xb0] sm:$0xff] %vm624_vm0, %v2859_v18 }
 0x35c   : > { %v3230_v54 = vpop.f32.mrb[24].mxu1 }
 0x35d   : > { %v2804_v25 = vadd.f32 %v3230_v54, %v4727_v2  ;;  %v2798_v0 = vpop.f32.mrb[25].mxu1 }
 0x35e   : > { %v2799_v27 = vadd.f32 %v4727_v2, %v2798_v0 }
 0x35f   : > { %v2862_v36 = vmax.f32 %v2804_v25, 0.0 }
 0x360   : > { %v2861_v44 = vmax.f32 %v2799_v27, 0.0 }
 0x361   : > { %2894 = vst.msk [vmem:[%s4739_s17 + $0xc8] sm:$0xff] %vm624_vm0, %v2862_v36 }
 0x362   : > { %2893 = vst.msk [vmem:[%s4739_s17 + $0xc0] sm:$0xff] %vm624_vm0, %v2861_v44 }
 0x374   : > { %v3233_v49 = vpop.f32.mrb[26].mxu1 }
 0x375   : > { %v2814_v43 = vadd.f32 %v3233_v49, %v4727_v2  ;;  %v2808_v5 = vpop.f32.mrb[27].mxu1 }
 0x376   : > { %v2809_v51 = vadd.f32 %v4727_v2, %v2808_v5 }
 0x377   : > { %v2864_v9 = vmax.f32 %v2814_v43, 0.0 }
 0x378   : > { %v2863_v33 = vmax.f32 %v2809_v51, 0.0 }
 0x379   : > { %2896 = vst.msk [vmem:[%s4739_s17 + $0xd8] sm:$0xff] %vm624_vm0, %v2864_v9 }
 0x37a   : > { %2895 = vst.msk [vmem:[%s4739_s17 + $0xd0] sm:$0xff] %vm624_vm0, %v2863_v33 }
 0x38c   : > { %v3236_v34 = vpop.f32.mrb[28].mxu1 }
 0x38d   : > { %v2824_v19 = vadd.f32 %v3236_v34, %v4727_v2  ;;  %v2818_v12 = vpop.f32.mrb[29].mxu1 }
 0x38e   : > { %v2819_v35 = vadd.f32 %v4727_v2, %v2818_v12 }
 0x38f   : > { %v2866_v32 = vmax.f32 %v2824_v19, 0.0 }
 0x390   : > { %v2865_v37 = vmax.f32 %v2819_v35, 0.0 }
 0x391   : > { %2898 = vst.msk [vmem:[%s4739_s17 + $0xe8] sm:$0xff] %vm624_vm0, %v2866_v32 }
 0x392   : > { %2897 = vst.msk [vmem:[%s4739_s17 + $0xe0] sm:$0xff] %vm624_vm0, %v2865_v37 }
 0x39f   : > { %v3239_v4 = vpop.f32.mrb[30].mxu1 }
 0x3a0   : > { %v2834_v48 = vadd.f32 %v3239_v4, %v4727_v2  ;;  %v2828_v28 = vpop.f32.mrb[31].mxu1 }
 0x3a1   : > { %v2829_v56 = vadd.f32 %v4727_v2, %v2828_v28 }
 0x3a2   : > { %v2868_v41 = vmax.f32 %v2834_v48, 0.0 }
 0x3a3   : > { %v2867_v61 = vmax.f32 %v2829_v56, 0.0 }
 0x3a4   : > { %2900 = vst.msk [vmem:[%s4739_s17 + $0xf8] sm:$0xff] %vm624_vm0, %v2868_v41 }
 0x3a5   : > { %2899 = vst.msk [vmem:[%s4739_s17 + $0xf0] sm:$0xff] %vm624_vm0, %v2867_v61 }
 0x3a6 PF: > { %s15_s18 = sadd.s32 1, %s3291_s18  }
 0x3a7   : > { %p12_p4 = scmp.ge.s32.totalorder %s15_s18, 4  }
 0x3a9   :  { %14 = sbr.rel (!%p12_p4) target bundleno = 1 (0x1), region = 72 }

</bundles_post_ra>
